<compile_context>
chip_gen: v7x
topology: tpu7x:2x2x1
jax: 0.10.0
libtpu: 0.0.40
codegen_flags: <defaults>
</compile_context>

<pallas_src>
import functools

import jax
import jax.numpy as jnp
from jax.experimental import pallas as pl
from jax.experimental.pallas import tpu as pltpu


def _fused_pose_head_kernel(x_ref, w0_ref, wr_ref, b_ref, o_ref,
                            xpad_ref, buf0_ref, buf1_ref,
                            *, B, H, W, K, Cin, Chid, L):
    """Fused v1convX head for one block of B ROIs.

    x_ref   : (B, H, W, Cin)            bf16 unpadded ROI features
    w0_ref  : (K*K*Cin, Chid)           bf16 layer-0 weights, im2col layout
    wr_ref  : (max(L-1,1), K*K*Chid, Chid) bf16 remaining layer weights
    b_ref   : (L, 1, Chid)              f32 biases
    o_ref   : (B, H, W, Chid)           f32 output
    xpad_ref: (B, H+2p, W+2p, Cin)      f32 scratch (padded layer-0 input)
    buf0/1  : (B, H+2p, W+2p, Chid)     f32 scratch (padded activation ping-pong)
    """
    pad = K // 2

    # Zero the padded scratch buffers (gives the SAME-padding halo for free,
    # done in VMEM instead of an HBM jnp.pad per layer). Zeroed every grid step
    # so correctness does not depend on which core ran step 0.
    xpad_ref[...] = jnp.zeros_like(xpad_ref)
    buf0_ref[...] = jnp.zeros_like(buf0_ref)
    buf1_ref[...] = jnp.zeros_like(buf1_ref)

    # Copy the unpadded input block into the interior of the padded scratch.
    xpad_ref[:, pad:pad + H, pad:pad + W, :] = x_ref[...].astype(xpad_ref.dtype)

    def conv_relu(src_ref, cin_l, w2d_bf16, bias_row_f32):
        # src_ref: (B, Hp, Wp, cin_l) f32 padded activations.
        src = src_ref[...]
        # In-register im2col: concat the K*K shifted windows along the channel
        # (lane) axis, then merge (B, H, W) into matmul rows once per layer.
        taps = []
        for kh in range(K):
            for kw in range(K):
                taps.append(src[:, kh:kh + H, kw:kw + W, :])
        p = jnp.concatenate(taps, axis=-1)                         # (B,H,W,K*K*cin_l)
        p2d = p.reshape(B * H * W, K * K * cin_l).astype(jnp.bfloat16)
        # Single bf16 MXU matmul per layer, f32 accumulation.
        acc = jnp.dot(p2d, w2d_bf16, preferred_element_type=jnp.float32)
        # Bias + ReLU epilogue in f32 (inplace=True in torch is irrelevant here).
        return jnp.maximum(acc + bias_row_f32, 0.0)                # (B*H*W, Chid)

    pp = (buf0_ref, buf1_ref)
    src_ref = xpad_ref
    cin_l = Cin
    for layer in range(L):
        w2d = w0_ref[...] if layer == 0 else wr_ref[layer - 1]
        b_row = b_ref[layer]                                       # (1, Chid)
        y = conv_relu(src_ref, cin_l, w2d, b_row)
        if layer == L - 1:
            o_ref[...] = y.reshape(B, H, W, Chid).astype(o_ref.dtype)
        else:
            dst_ref = pp[layer % 2]
            dst_ref[:, pad:pad + H, pad:pad + W, :] = y.reshape(B, H, W, Chid)
            src_ref = dst_ref
            cin_l = Chid


def fused_conv_fcn(x_nhwc, weights, biases, *, kernel_size, b_tile=8):
    """All stacked conv+ReLU layers in one pallas_call, grid over ROI blocks."""
    N, H, W, Cin = x_nhwc.shape
    K = kernel_size
    assert K % 2 == 1, "v1convX SAME padding assumes odd CONV_HEAD_KERNEL"
    L = len(weights)
    assert L >= 1
    Chid = weights[0].shape[-1]
    pad = K // 2
    Hp, Wp = H + 2 * pad, W + 2 * pad

    # Batch multiple ROIs per grid step so M = B_TILE*H*W fills the MXU.
    B_TILE = max(1, min(b_tile, N))
    num_blocks = -(-N // B_TILE)
    N_pad = num_blocks * B_TILE

    x_in = x_nhwc.astype(jnp.bfloat16)           # bf16 activations at the boundary
    if N_pad != N:
        x_in = jnp.pad(x_in, ((0, N_pad - N), (0, 0), (0, 0), (0, 0)))

    # Weights in im2col layout (K*K*Cin, Cout), bf16.
    w0 = weights[0].reshape(K * K * Cin, Chid).astype(jnp.bfloat16)
    if L > 1:
        wr = jnp.stack(
            [w.reshape(K * K * Chid, Chid) for w in weights[1:]]
        ).astype(jnp.bfloat16)
    else:
        wr = jnp.zeros((1, K * K * Chid, Chid), jnp.bfloat16)      # unused dummy
    b = jnp.stack(biases).reshape(L, 1, Chid).astype(jnp.float32)

    kernel = functools.partial(
        _fused_pose_head_kernel,
        B=B_TILE, H=H, W=W, K=K, Cin=Cin, Chid=Chid, L=L,
    )

    flops = 2 * N_pad * H * W * K * K * (Cin * Chid + (L - 1) * Chid * Chid)
    bytes_accessed = (
        int(x_in.size) * 2 + int(w0.size) * 2 + int(wr.size) * 2
        + int(b.size) * 4 + N_pad * H * W * Chid * 4
    )

    out = pl.pallas_call(
        kernel,
        out_shape=jax.ShapeDtypeStruct((N_pad, H, W, Chid), jnp.float32),
        grid=(num_blocks,),
        in_specs=[
            pl.BlockSpec((B_TILE, H, W, Cin), lambda n: (n, 0, 0, 0)),
            pl.BlockSpec((K * K * Cin, Chid), lambda n: (0, 0)),
            pl.BlockSpec((max(L - 1, 1), K * K * Chid, Chid), lambda n: (0, 0, 0)),
            pl.BlockSpec((L, 1, Chid), lambda n: (0, 0, 0)),
        ],
        out_specs=pl.BlockSpec((B_TILE, H, W, Chid), lambda n: (n, 0, 0, 0)),
        scratch_shapes=[
            pltpu.VMEM((B_TILE, Hp, Wp, Cin), jnp.float32),   # padded layer-0 input
            pltpu.VMEM((B_TILE, Hp, Wp, Chid), jnp.float32),  # activation ping
            pltpu.VMEM((B_TILE, Hp, Wp, Chid), jnp.float32),  # activation pong
        ],
        compiler_params=pltpu.CompilerParams(
            dimension_semantics=("parallel",),
            vmem_limit_bytes=48 * 1024 * 1024,
        ),
        cost_estimate=pl.CostEstimate(
            flops=flops, transcendentals=0, bytes_accessed=bytes_accessed
        ),
    )(x_in, w0, wr, b)

    return out[:N]


class RoIPoseHeadV1ConvX:
    """Synthetic-weight JAX port of roi_pose_head_v1convX.conv_fcn.

    cfg.KRCNN.CONV_INIT == 'GaussianFill' -> weights ~ N(0, 0.01), bias = 0.
    Weights stored as (K, K, Cin, Cout) (a permutation of PyTorch's
    (Cout, Cin, K, K) with the same distribution / semantics).
    """

    def __init__(self, dim_in, hidden_dim, kernel_size, num_stacked_convs, key):
        assert kernel_size % 2 == 1, "only odd CONV_HEAD_KERNEL supported (SAME)"
        self.kernel_size = kernel_size
        self.dim_out = hidden_dim
        self.weights = []
        self.biases = []
        cin = dim_in
        for _ in range(num_stacked_convs):
            key, sub = jax.random.split(key)
            w = 0.01 * jax.random.normal(
                sub, (kernel_size, kernel_size, cin, hidden_dim), dtype=jnp.float32
            )
            b = jnp.zeros((hidden_dim,), dtype=jnp.float32)
            self.weights.append(w)
            self.biases.append(b)
            cin = hidden_dim

    def __call__(self, x_nchw, b_tile=8):
        # TODO(synk): roi_xform (RoIAlign/RoIPool over rpn_ret['keypoint_rois'])
        # is an external Detectron op; input here is treated as already-pooled
        # ROI features of shape (num_rois, dim_in, R, R).
        x = jnp.transpose(x_nchw, (0, 2, 3, 1))          # NCHW -> NHWC
        y = fused_conv_fcn(
            x, self.weights, self.biases,
            kernel_size=self.kernel_size, b_tile=b_tile,
        )
        return jnp.transpose(y, (0, 3, 1, 2))            # NHWC -> NCHW


def _reference_forward(x_nchw, head):
    """Pure-JAX f32 reference (lax conv) for the correctness check."""
    x = x_nchw
    for w, b in zip(head.weights, head.biases):
        y = jax.lax.conv_general_dilated(
            x, w, window_strides=(1, 1), padding="SAME",
            dimension_numbers=("NCHW", "HWIO", "NCHW"),
        )
        x = jnp.maximum(y + b[None, :, None, None], 0.0)
    return x


if __name__ == "__main__":
    # Small, module-consistent shapes: num_rois=2, dim_in=4, ROI resolution 16x16,
    # CONV_HEAD_DIM=32, CONV_HEAD_KERNEL=3, NUM_STACKED_CONVS=2.
    key = jax.random.PRNGKey(0)
    key, xkey = jax.random.split(key)
    x = jax.random.normal(xkey, (2, 4, 16, 16), dtype=jnp.float32)

    head = RoIPoseHeadV1ConvX(
        dim_in=4, hidden_dim=32, kernel_size=3, num_stacked_convs=2, key=key
    )

    out = jax.block_until_ready(head(x))
    assert out.shape == (2, 32, 16, 16), out.shape

    ref = jax.block_until_ready(_reference_forward(x, head))
    # bf16 matmul inputs with f32 accumulation -> loosen tolerance accordingly.
    max_err = float(jnp.max(jnp.abs(out - ref)))
    assert jnp.allclose(out, ref, atol=2e-3, rtol=2e-2), max_err

    print("KERNEL_OK")
</pallas_src>

<mosaic_0001>
module attributes {stable_mosaic.version = 11 : i64} {
  func.func @_fused_pose_head_kernel(%arg0: i32, %arg1: memref<2x16x16x4xbf16, #tpu.memory_space<vmem>>, %arg2: memref<36x32xbf16, #tpu.memory_space<vmem>>, %arg3: memref<1x288x32xbf16, #tpu.memory_space<vmem>>, %arg4: memref<2x1x32xf32, #tpu.memory_space<vmem>>, %arg5: memref<2x16x16x32xf32, #tpu.memory_space<vmem>>, %arg6: memref<2x18x18x4xf32, #tpu.memory_space<vmem>>, %arg7: memref<2x18x18x32xf32, #tpu.memory_space<vmem>>, %arg8: memref<2x18x18x32xf32, #tpu.memory_space<vmem>>) attributes {dimension_semantics = [#tpu.dimension_semantics<parallel>], iteration_bounds = array<i64: 1>, scalar_prefetch = 0 : i64, scratch_operands = 3 : i64, tpu.core_type = #tpu.core_type<tc>, window_params = [{transform_indices = @transform_0, window_bounds = array<i64: 2, 16, 16, 4>}, {pipeline_mode = #tpu.pipeline_mode<synchronous>, transform_indices = @transform_1, window_bounds = array<i64: 36, 32>}, {pipeline_mode = #tpu.pipeline_mode<synchronous>, transform_indices = @transform_2, window_bounds = array<i64: 1, 288, 32>}, {pipeline_mode = #tpu.pipeline_mode<synchronous>, transform_indices = @transform_3, window_bounds = array<i64: 2, 1, 32>}, {transform_indices = @transform_4, window_bounds = array<i64: 2, 16, 16, 32>}]} {
    %cst = arith.constant 0.000000e+00 : f32
    %0 = vector.broadcast %cst : f32 to vector<2x18x18x4xf32>
    %c0 = arith.constant 0 : index
    %c0_0 = arith.constant 0 : index
    %c0_1 = arith.constant 0 : index
    %c0_2 = arith.constant 0 : index
    %1 = vector.load %arg6[%c0, %c0_0, %c0_1, %c0_2] : memref<2x18x18x4xf32, #tpu.memory_space<vmem>>, vector<2x18x18x4xf32>
    tpu.vector_store %arg6[%c0, %c0_0, %c0_1, %c0_2], %0 {strides = array<i32>} : memref<2x18x18x4xf32, #tpu.memory_space<vmem>>, vector<2x18x18x4xf32>,
    %cst_3 = arith.constant 0.000000e+00 : f32
    %2 = vector.broadcast %cst_3 : f32 to vector<2x18x18x32xf32>
    %c0_4 = arith.constant 0 : index
    %c0_5 = arith.constant 0 : index
    %c0_6 = arith.constant 0 : index
    %c0_7 = arith.constant 0 : index
    %3 = vector.load %arg7[%c0_4, %c0_5, %c0_6, %c0_7] : memref<2x18x18x32xf32, #tpu.memory_space<vmem>>, vector<2x18x18x32xf32>
    tpu.vector_store %arg7[%c0_4, %c0_5, %c0_6, %c0_7], %2 {strides = array<i32>} : memref<2x18x18x32xf32, #tpu.memory_space<vmem>>, vector<2x18x18x32xf32>,
    %cst_8 = arith.constant 0.000000e+00 : f32
    %4 = vector.broadcast %cst_8 : f32 to vector<2x18x18x32xf32>
    %c0_9 = arith.constant 0 : index
    %c0_10 = arith.constant 0 : index
    %c0_11 = arith.constant 0 : index
    %c0_12 = arith.constant 0 : index
    %5 = vector.load %arg8[%c0_9, %c0_10, %c0_11, %c0_12] : memref<2x18x18x32xf32, #tpu.memory_space<vmem>>, vector<2x18x18x32xf32>
    tpu.vector_store %arg8[%c0_9, %c0_10, %c0_11, %c0_12], %4 {strides = array<i32>} : memref<2x18x18x32xf32, #tpu.memory_space<vmem>>, vector<2x18x18x32xf32>,
    %c0_13 = arith.constant 0 : index
    %c0_14 = arith.constant 0 : index
    %c0_15 = arith.constant 0 : index
    %c0_16 = arith.constant 0 : index
    %6 = vector.load %arg1[%c0_13, %c0_14, %c0_15, %c0_16] : memref<2x16x16x4xbf16, #tpu.memory_space<vmem>>, vector<2x16x16x4xbf16>
    %7 = arith.extf %6 : vector<2x16x16x4xbf16> to vector<2x16x16x4xf32>
    %c0_17 = arith.constant 0 : index
    %c1 = arith.constant 1 : index
    %c1_18 = arith.constant 1 : index
    %c0_19 = arith.constant 0 : index
    %8 = vector.load %arg6[%c0_17, %c1, %c1_18, %c0_19] : memref<2x18x18x4xf32, #tpu.memory_space<vmem>>, vector<2x16x16x4xf32>
    tpu.vector_store %arg6[%c0_17, %c1, %c1_18, %c0_19], %7 {strides = array<i32>} : memref<2x18x18x4xf32, #tpu.memory_space<vmem>>, vector<2x16x16x4xf32>,
    %c0_20 = arith.constant 0 : index
    %c0_21 = arith.constant 0 : index
    %9 = vector.load %arg2[%c0_20, %c0_21] : memref<36x32xbf16, #tpu.memory_space<vmem>>, vector<36x32xbf16>
    %c0_22 = arith.constant 0 : index
    %c0_23 = arith.constant 0 : index
    %c0_24 = arith.constant 0 : index
    %10 = vector.load %arg4[%c0_22, %c0_23, %c0_24] : memref<2x1x32xf32, #tpu.memory_space<vmem>>, vector<1x1x32xf32>
    %11 = vector.shape_cast %10 : vector<1x1x32xf32> to vector<1x32xf32>
    %c0_25 = arith.constant 0 : index
    %c0_26 = arith.constant 0 : index
    %c0_27 = arith.constant 0 : index
    %c0_28 = arith.constant 0 : index
    %12 = vector.load %arg6[%c0_25, %c0_26, %c0_27, %c0_28] : memref<2x18x18x4xf32, #tpu.memory_space<vmem>>, vector<2x18x18x4xf32>
    %13 = vector.extract_strided_slice %12 {offsets = [0, 0, 0, 0], sizes = [2, 16, 16, 4], strides = [1, 1, 1, 1]} : vector<2x18x18x4xf32> to vector<2x16x16x4xf32>
    %14 = vector.extract_strided_slice %12 {offsets = [0, 0, 1, 0], sizes = [2, 16, 16, 4], strides = [1, 1, 1, 1]} : vector<2x18x18x4xf32> to vector<2x16x16x4xf32>
    %15 = vector.extract_strided_slice %12 {offsets = [0, 0, 2, 0], sizes = [2, 16, 16, 4], strides = [1, 1, 1, 1]} : vector<2x18x18x4xf32> to vector<2x16x16x4xf32>
    %16 = vector.extract_strided_slice %12 {offsets = [0, 1, 0, 0], sizes = [2, 16, 16, 4], strides = [1, 1, 1, 1]} : vector<2x18x18x4xf32> to vector<2x16x16x4xf32>
    %17 = vector.extract_strided_slice %12 {offsets = [0, 1, 1, 0], sizes = [2, 16, 16, 4], strides = [1, 1, 1, 1]} : vector<2x18x18x4xf32> to vector<2x16x16x4xf32>
    %18 = vector.extract_strided_slice %12 {offsets = [0, 1, 2, 0], sizes = [2, 16, 16, 4], strides = [1, 1, 1, 1]} : vector<2x18x18x4xf32> to vector<2x16x16x4xf32>
    %19 = vector.extract_strided_slice %12 {offsets = [0, 2, 0, 0], sizes = [2, 16, 16, 4], strides = [1, 1, 1, 1]} : vector<2x18x18x4xf32> to vector<2x16x16x4xf32>
    %20 = vector.extract_strided_slice %12 {offsets = [0, 2, 1, 0], sizes = [2, 16, 16, 4], strides = [1, 1, 1, 1]} : vector<2x18x18x4xf32> to vector<2x16x16x4xf32>
    %21 = vector.extract_strided_slice %12 {offsets = [0, 2, 2, 0], sizes = [2, 16, 16, 4], strides = [1, 1, 1, 1]} : vector<2x18x18x4xf32> to vector<2x16x16x4xf32>
    %22 = tpu.concatenate %13, %14, %15, %16, %17, %18, %19, %20, %21 in 3 : vector<2x16x16x4xf32>, vector<2x16x16x4xf32>, vector<2x16x16x4xf32>, vector<2x16x16x4xf32>, vector<2x16x16x4xf32>, vector<2x16x16x4xf32>, vector<2x16x16x4xf32>, vector<2x16x16x4xf32>, vector<2x16x16x4xf32> -> vector<2x16x16x36xf32>
    %23 = vector.shape_cast %22 : vector<2x16x16x36xf32> to vector<512x36xf32>
    %24 = arith.truncf %23 : vector<512x36xf32> to vector<512x36xbf16>
    %cst_29 = arith.constant dense<0.000000e+00> : vector<512x32xf32>
    %25 = tpu.matmul %24, %9, %cst_29 {dimension_numbers = #tpu.dot_dimension_numbers<[1], [0], [0], [1], [0, 0, 1, 1], [], []>} : vector<512x36xbf16>, vector<36x32xbf16>, vector<512x32xf32> -> vector<512x32xf32>
    %26 = vector.broadcast %11 : vector<1x32xf32> to vector<512x32xf32>
    %27 = arith.addf %25, %26 : vector<512x32xf32>
    %cst_30 = arith.constant 0.000000e+00 : f32
    %28 = vector.broadcast %cst_30 : f32 to vector<512x32xf32>
    %29 = arith.maximumf %27, %28 : vector<512x32xf32>
    %30 = vector.shape_cast %29 : vector<512x32xf32> to vector<2x16x16x32xf32>
    %c0_31 = arith.constant 0 : index
    %c1_32 = arith.constant 1 : index
    %c1_33 = arith.constant 1 : index
    %c0_34 = arith.constant 0 : index
    %31 = vector.load %arg7[%c0_31, %c1_32, %c1_33, %c0_34] : memref<2x18x18x32xf32, #tpu.memory_space<vmem>>, vector<2x16x16x32xf32>
    tpu.vector_store %arg7[%c0_31, %c1_32, %c1_33, %c0_34], %30 {strides = array<i32>} : memref<2x18x18x32xf32, #tpu.memory_space<vmem>>, vector<2x16x16x32xf32>,
    %c0_35 = arith.constant 0 : index
    %c0_36 = arith.constant 0 : index
    %c0_37 = arith.constant 0 : index
    %32 = vector.load %arg3[%c0_35, %c0_36, %c0_37] : memref<1x288x32xbf16, #tpu.memory_space<vmem>>, vector<1x288x32xbf16>
    %33 = vector.shape_cast %32 : vector<1x288x32xbf16> to vector<288x32xbf16>
    %c1_38 = arith.constant 1 : index
    %c0_39 = arith.constant 0 : index
    %c0_40 = arith.constant 0 : index
    %34 = vector.load %arg4[%c1_38, %c0_39, %c0_40] : memref<2x1x32xf32, #tpu.memory_space<vmem>>, vector<1x1x32xf32>
    %35 = vector.shape_cast %34 : vector<1x1x32xf32> to vector<1x32xf32>
    %c0_41 = arith.constant 0 : index
    %c0_42 = arith.constant 0 : index
    %c0_43 = arith.constant 0 : index
    %c0_44 = arith.constant 0 : index
    %36 = vector.load %arg7[%c0_41, %c0_42, %c0_43, %c0_44] : memref<2x18x18x32xf32, #tpu.memory_space<vmem>>, vector<2x18x18x32xf32>
    %37 = vector.extract_strided_slice %36 {offsets = [0, 0, 0, 0], sizes = [2, 16, 16, 32], strides = [1, 1, 1, 1]} : vector<2x18x18x32xf32> to vector<2x16x16x32xf32>
    %38 = vector.extract_strided_slice %36 {offsets = [0, 0, 1, 0], sizes = [2, 16, 16, 32], strides = [1, 1, 1, 1]} : vector<2x18x18x32xf32> to vector<2x16x16x32xf32>
    %39 = vector.extract_strided_slice %36 {offsets = [0, 0, 2, 0], sizes = [2, 16, 16, 32], strides = [1, 1, 1, 1]} : vector<2x18x18x32xf32> to vector<2x16x16x32xf32>
    %40 = vector.extract_strided_slice %36 {offsets = [0, 1, 0, 0], sizes = [2, 16, 16, 32], strides = [1, 1, 1, 1]} : vector<2x18x18x32xf32> to vector<2x16x16x32xf32>
    %41 = vector.extract_strided_slice %36 {offsets = [0, 1, 1, 0], sizes = [2, 16, 16, 32], strides = [1, 1, 1, 1]} : vector<2x18x18x32xf32> to vector<2x16x16x32xf32>
    %42 = vector.extract_strided_slice %36 {offsets = [0, 1, 2, 0], sizes = [2, 16, 16, 32], strides = [1, 1, 1, 1]} : vector<2x18x18x32xf32> to vector<2x16x16x32xf32>
    %43 = vector.extract_strided_slice %36 {offsets = [0, 2, 0, 0], sizes = [2, 16, 16, 32], strides = [1, 1, 1, 1]} : vector<2x18x18x32xf32> to vector<2x16x16x32xf32>
    %44 = vector.extract_strided_slice %36 {offsets = [0, 2, 1, 0], sizes = [2, 16, 16, 32], strides = [1, 1, 1, 1]} : vector<2x18x18x32xf32> to vector<2x16x16x32xf32>
    %45 = vector.extract_strided_slice %36 {offsets = [0, 2, 2, 0], sizes = [2, 16, 16, 32], strides = [1, 1, 1, 1]} : vector<2x18x18x32xf32> to vector<2x16x16x32xf32>
    %46 = tpu.concatenate %37, %38, %39, %40, %41, %42, %43, %44, %45 in 3 : vector<2x16x16x32xf32>, vector<2x16x16x32xf32>, vector<2x16x16x32xf32>, vector<2x16x16x32xf32>, vector<2x16x16x32xf32>, vector<2x16x16x32xf32>, vector<2x16x16x32xf32>, vector<2x16x16x32xf32>, vector<2x16x16x32xf32> -> vector<2x16x16x288xf32>
    %47 = vector.shape_cast %46 : vector<2x16x16x288xf32> to vector<512x288xf32>
    %48 = arith.truncf %47 : vector<512x288xf32> to vector<512x288xbf16>
    %cst_45 = arith.constant dense<0.000000e+00> : vector<512x32xf32>
    %49 = tpu.matmul %48, %33, %cst_45 {dimension_numbers = #tpu.dot_dimension_numbers<[1], [0], [0], [1], [0, 0, 1, 1], [], []>} : vector<512x288xbf16>, vector<288x32xbf16>, vector<512x32xf32> -> vector<512x32xf32>
    %50 = vector.broadcast %35 : vector<1x32xf32> to vector<512x32xf32>
    %51 = arith.addf %49, %50 : vector<512x32xf32>
    %cst_46 = arith.constant 0.000000e+00 : f32
    %52 = vector.broadcast %cst_46 : f32 to vector<512x32xf32>
    %53 = arith.maximumf %51, %52 : vector<512x32xf32>
    %54 = vector.shape_cast %53 : vector<512x32xf32> to vector<2x16x16x32xf32>
    %c0_47 = arith.constant 0 : index
    %c0_48 = arith.constant 0 : index
    %c0_49 = arith.constant 0 : index
    %c0_50 = arith.constant 0 : index
    %55 = vector.load %arg5[%c0_47, %c0_48, %c0_49, %c0_50] : memref<2x16x16x32xf32, #tpu.memory_space<vmem>>, vector<2x16x16x32xf32>
    tpu.vector_store %arg5[%c0_47, %c0_48, %c0_49, %c0_50], %54 {strides = array<i32>} : memref<2x16x16x32xf32, #tpu.memory_space<vmem>>, vector<2x16x16x32xf32>,
    return
  }
  func.func @transform_0(%arg0: i32) -> (i32, i32, i32, i32) {
    %c0_i32 = arith.constant 0 : i32
    %c0_i32_0 = arith.constant 0 : i32
    %c0_i32_1 = arith.constant 0 : i32
    %c0_i32_2 = arith.constant 0 : i32
    return %arg0, %c0_i32, %c0_i32_0, %c0_i32_1 : i32, i32, i32, i32
  }
  func.func @transform_1(%arg0: i32) -> (i32, i32) {
    %c0_i32 = arith.constant 0 : i32
    %c0_i32_0 = arith.constant 0 : i32
    %c0_i32_1 = arith.constant 0 : i32
    return %c0_i32, %c0_i32_0 : i32, i32
  }
  func.func @transform_2(%arg0: i32) -> (i32, i32, i32) {
    %c0_i32 = arith.constant 0 : i32
    %c0_i32_0 = arith.constant 0 : i32
    %c0_i32_1 = arith.constant 0 : i32
    %c0_i32_2 = arith.constant 0 : i32
    return %c0_i32, %c0_i32_0, %c0_i32_1 : i32, i32, i32
  }
  func.func @transform_3(%arg0: i32) -> (i32, i32, i32) {
    %c0_i32 = arith.constant 0 : i32
    %c0_i32_0 = arith.constant 0 : i32
    %c0_i32_1 = arith.constant 0 : i32
    %c0_i32_2 = arith.constant 0 : i32
    return %c0_i32, %c0_i32_0, %c0_i32_1 : i32, i32, i32
  }
  func.func @transform_4(%arg0: i32) -> (i32, i32, i32, i32) {
    %c0_i32 = arith.constant 0 : i32
    %c0_i32_0 = arith.constant 0 : i32
    %c0_i32_1 = arith.constant 0 : i32
    %c0_i32_2 = arith.constant 0 : i32
    return %arg0, %c0_i32, %c0_i32_0, %c0_i32_1 : i32, i32, i32, i32
  }
}

</mosaic_0001>

<bundles_post_ra>
// kernel: tpu_custom_call.1
= control target key start
LH: loop header
LB: loop body
LE: loop exit
PB: predicated region body
PF: predicated region fallthrough
CT: control target
= control target key end

     0   :  { %vm19_vm0 = vcmask 31744   ;;  %vm22_vm1 = vcmask 25600   ;;  %v17484_v1 = vmov 0.0   ;;  %vm750_vm2 = vcmask 1046528   ;;  %s10061_s21 = smov 4   ;;  %s17479_s0 = inlined_call_operand.vmem [shape: bf16[2,16,16,4], index: 0, kind: input, shape index: {}]   ;;  %s17480_s1 = inlined_call_operand.vmem [shape: bf16[36,32], index: 1, kind: input, shape index: {}]   ;;  %s17481_s2 = inlined_call_operand.vmem [shape: bf16[1,288,32], index: 2, kind: input, shape index: {}]   ;;  %s17482_s3 = inlined_call_operand.vmem [shape: f32[2,1,32], index: 3, kind: input, shape index: {}]   ;;  %s17483_s4 = inlined_call_operand.hbm [shape: f32[2,16,16,32], index: 4, kind: output, shape index: {}]  }
   0x1   :  { %v10102_v0 = vld [vmem:[%s17479_s0 + $0x8] sm:$0xff]   ;;  %20 = vst.msk [vmem:[#allocation2] sm:$0xff] %vm19_vm0, %v17484_v1  ;;  %21 = vst.msk [vmem:[#allocation2 + $0x8] sm:$0xff] %vm19_vm0, %v17484_v1  ;;  %v7147_v4 = vld [vmem:[%s17479_s0] sm:$0xff]   ;;  %vm1103_vm3 = vcmask 1045504  }
   0x2   :  { %23 = vst.msk [vmem:[#allocation2 + $0x10] sm:$0x3] %vm22_vm1, %v17484_v1  ;;  %26 = vst.msk [vmem:[#allocation2 + $0x28] sm:$0x3] %vm22_vm1, %v17484_v1  ;;  %v7152_v2 = vunpack.c.l.bf16 %v10102_v0  ;;  %v7153_v3 = vunpack.c.h.bf16 %v10102_v0  ;;  %v7275_v5 = vld [vmem:[%s17479_s0 + $0x10] sm:$0xff]   ;;  %v7276_v6 = vld [vmem:[%s17479_s0 + $0x18] sm:$0xff]   ;;  %v7148_v7 = vunpack.c.l.bf16 %v7147_v4  ;;  %v7149_v8 = vunpack.c.h.bf16 %v7147_v4 }
   0x3   :  { %24 = vst.msk [vmem:[#allocation2 + $0x18] sm:$0xff] %vm19_vm0, %v17484_v1  ;;  %25 = vst.msk [vmem:[#allocation2 + $0x20] sm:$0xff] %vm19_vm0, %v17484_v1  ;;  %v7156_v9 = vunpack.c.l.bf16 %v7275_v5  ;;  %v7157_v10 = vunpack.c.h.bf16 %v7275_v5  ;;  %v7277_v11 = vld [vmem:[%s17479_s0 + $0x20] sm:$0xff]   ;;  %v7278_v12 = vld [vmem:[%s17479_s0 + $0x28] sm:$0xff]   ;;  %v7160_v14 = vunpack.c.l.bf16 %v7276_v6  ;;  %v7161_v15 = vunpack.c.h.bf16 %v7276_v6 }
   0x4   :  { %27 = vst.msk [vmem:[#allocation2 + $0x30] sm:$0xff] %vm19_vm0, %v17484_v1  ;;  %28 = vst.msk [vmem:[#allocation2 + $0x38] sm:$0xff] %vm19_vm0, %v17484_v1  ;;  %v7279_v13 = vld [vmem:[%s17479_s0 + $0x30] sm:$0xff]   ;;  %v7164_v16 = vunpack.c.l.bf16 %v7277_v11  ;;  %v7165_v17 = vunpack.c.h.bf16 %v7277_v11  ;;  %v7280_v18 = vld [vmem:[%s17479_s0 + $0x38] sm:$0xff]   ;;  %v7168_v21 = vunpack.c.l.bf16 %v7278_v12  ;;  %v7169_v22 = vunpack.c.h.bf16 %v7278_v12 }
   0x5   :  { %29 = vst.msk [vmem:[#allocation2 + $0x40] sm:$0x3] %vm22_vm1, %v17484_v1  ;;  %32 = vst.msk [vmem:[#allocation2 + $0x58] sm:$0x3] %vm22_vm1, %v17484_v1  ;;  %v7281_v19 = vld [vmem:[%s17479_s0 + $0x40] sm:$0xff]   ;;  %v7282_v20 = vld [vmem:[%s17479_s0 + $0x48] sm:$0xff]   ;;  %v7172_v23 = vunpack.c.l.bf16 %v7279_v13  ;;  %v7173_v24 = vunpack.c.h.bf16 %v7279_v13  ;;  %v7176_v28 = vunpack.c.l.bf16 %v7280_v18  ;;  %v7177_v29 = vunpack.c.h.bf16 %v7280_v18 }
   0x6   :  { %30 = vst.msk [vmem:[#allocation2 + $0x48] sm:$0xff] %vm19_vm0, %v17484_v1  ;;  %31 = vst.msk [vmem:[#allocation2 + $0x50] sm:$0xff] %vm19_vm0, %v17484_v1  ;;  %v7283_v25 = vld [vmem:[%s17479_s0 + $0x50] sm:$0xff]   ;;  %v7284_v26 = vld [vmem:[%s17479_s0 + $0x58] sm:$0xff]   ;;  %v7180_v30 = vunpack.c.l.bf16 %v7281_v19  ;;  %v7181_v31 = vunpack.c.h.bf16 %v7281_v19  ;;  %v7184_v34 = vunpack.c.l.bf16 %v7282_v20  ;;  %v7185_v35 = vunpack.c.h.bf16 %v7282_v20 }
   0x7   :  { %33 = vst.msk [vmem:[#allocation2 + $0x60] sm:$0xff] %vm19_vm0, %v17484_v1  ;;  %34 = vst.msk [vmem:[#allocation2 + $0x68] sm:$0xff] %vm19_vm0, %v17484_v1  ;;  %v7285_v27 = vld [vmem:[%s17479_s0 + $0x60] sm:$0xff]   ;;  %v7286_v32 = vld [vmem:[%s17479_s0 + $0x68] sm:$0xff]   ;;  %v7188_v36 = vunpack.c.l.bf16 %v7283_v25  ;;  %v7189_v37 = vunpack.c.h.bf16 %v7283_v25  ;;  %v7192_v38 = vunpack.c.l.bf16 %v7284_v26  ;;  %v7193_v39 = vunpack.c.h.bf16 %v7284_v26 }
   0x8   :  { %35 = vst.msk [vmem:[#allocation2 + $0x70] sm:$0x3] %vm22_vm1, %v17484_v1  ;;  %38 = vst.msk [vmem:[#allocation2 + $0x88] sm:$0x3] %vm22_vm1, %v17484_v1  ;;  %v7287_v33 = vld [vmem:[%s17479_s0 + $0x70] sm:$0xff]   ;;  %v7196_v40 = vunpack.c.l.bf16 %v7285_v27  ;;  %v7197_v41 = vunpack.c.h.bf16 %v7285_v27  ;;  %v7289_v42 = vld [vmem:[%s17479_s0 + $0x80] sm:$0xff]   ;;  %v7200_v46 = vunpack.c.l.bf16 %v7286_v32  ;;  %v7201_v47 = vunpack.c.h.bf16 %v7286_v32 }
   0x9   :  { %36 = vst.msk [vmem:[#allocation2 + $0x78] sm:$0xff] %vm19_vm0, %v17484_v1  ;;  %37 = vst.msk [vmem:[#allocation2 + $0x80] sm:$0xff] %vm19_vm0, %v17484_v1  ;;  %v10385_v43 = vld [vmem:[#allocation2] sm:$0xff]  ;;  %v10387_v44 = vld [vmem:[#allocation2 + $0x8] sm:$0xff]  ;;  %v7204_v48 = vunpack.c.l.bf16 %v7287_v33  ;;  %v7205_v49 = vunpack.c.h.bf16 %v7287_v33  ;;  %v7212_v57 = vunpack.c.l.bf16 %v7289_v42  ;;  %v7213_v58 = vunpack.c.h.bf16 %v7289_v42 }
   0xa   :  { %39 = vst.msk [vmem:[#allocation2 + $0x90] sm:$0xff] %vm19_vm0, %v17484_v1  ;;  %40 = vst.msk [vmem:[#allocation2 + $0x98] sm:$0xff] %vm19_vm0, %v17484_v1  ;;  %v10389_v45 = vld [vmem:[#allocation2 + $0x10] sm:$0x3]  ;;  %v751_v50 = vrot.slane %v10385_v43, 1  ;;  %v752_v51 = vrot.slane %v10387_v44, 1 }
   0xb   :  { %41 = vst.msk [vmem:[#allocation2 + $0xa0] sm:$0x3] %vm22_vm1, %v17484_v1  ;;  %44 = vst.msk [vmem:[#allocation2 + $0xb8] sm:$0x3] %vm22_vm1, %v17484_v1  ;;  %v754_v52 = vrot.slane %v10389_v45, 1 }
   0xc   :  { %42 = vst.msk [vmem:[#allocation2 + $0xa8] sm:$0xff] %vm19_vm0, %v17484_v1  ;;  %43 = vst.msk [vmem:[#allocation2 + $0xb0] sm:$0xff] %vm19_vm0, %v17484_v1  ;;  %v753_v59 = vsel %vm750_vm2, %v751_v50, %v752_v51 }
   0xd   :  { %45 = vst.msk [vmem:[#allocation2 + $0xc0] sm:$0xff] %vm19_vm0, %v17484_v1  ;;  %46 = vst.msk [vmem:[#allocation2 + $0xc8] sm:$0xff] %vm19_vm0, %v17484_v1  ;;  %v755_v60 = vsel %vm750_vm2, %v752_v51, %v754_v52 }
   0xe   :  { %47 = vst.msk [vmem:[#allocation2 + $0xd0] sm:$0x3] %vm22_vm1, %v17484_v1  ;;  %50 = vst.msk [vmem:[#allocation2 + $0xe8] sm:$0x3] %vm22_vm1, %v17484_v1 }
   0xf   :  { %48 = vst.msk [vmem:[#allocation2 + $0xd8] sm:$0xff] %vm19_vm0, %v17484_v1  ;;  %49 = vst.msk [vmem:[#allocation2 + $0xe0] sm:$0xff] %vm19_vm0, %v17484_v1 }
  0x10   :  { %51 = vst.msk [vmem:[#allocation2 + $0xf0] sm:$0xff] %vm19_vm0, %v17484_v1  ;;  %52 = vst.msk [vmem:[#allocation2 + $0xf8] sm:$0xff] %vm19_vm0, %v17484_v1 }
  0x11   :  { %53 = vst.msk [vmem:[#allocation2 + $0x100] sm:$0x3] %vm22_vm1, %v17484_v1  ;;  %56 = vst.msk [vmem:[#allocation2 + $0x118] sm:$0x3] %vm22_vm1, %v17484_v1 }
  0x12   :  { %54 = vst.msk [vmem:[#allocation2 + $0x108] sm:$0xff] %vm19_vm0, %v17484_v1  ;;  %55 = vst.msk [vmem:[#allocation2 + $0x110] sm:$0xff] %vm19_vm0, %v17484_v1 }
  0x13   :  { %57 = vst.msk [vmem:[#allocation2 + $0x120] sm:$0xff] %vm19_vm0, %v17484_v1  ;;  %58 = vst.msk [vmem:[#allocation2 + $0x128] sm:$0xff] %vm19_vm0, %v17484_v1 }
  0x14   :  { %59 = vst.msk [vmem:[#allocation2 + $0x130] sm:$0x3] %vm22_vm1, %v17484_v1  ;;  %62 = vst.msk [vmem:[#allocation2 + $0x148] sm:$0x3] %vm22_vm1, %v17484_v1 }
  0x15   :  { %60 = vst.msk [vmem:[#allocation2 + $0x138] sm:$0xff] %vm19_vm0, %v17484_v1  ;;  %61 = vst.msk [vmem:[#allocation2 + $0x140] sm:$0xff] %vm19_vm0, %v17484_v1 }
  0x16   :  { %63 = vst.msk [vmem:[#allocation2 + $0x150] sm:$0xff] %vm19_vm0, %v17484_v1  ;;  %64 = vst.msk [vmem:[#allocation2 + $0x158] sm:$0xff] %vm19_vm0, %v17484_v1 }
  0x17   :  { %65 = vst.msk [vmem:[#allocation2 + $0x160] sm:$0x3] %vm22_vm1, %v17484_v1  ;;  %68 = vst.msk [vmem:[#allocation2 + $0x178] sm:$0x3] %vm22_vm1, %v17484_v1 }
  0x18   :  { %66 = vst.msk [vmem:[#allocation2 + $0x168] sm:$0xff] %vm19_vm0, %v17484_v1  ;;  %67 = vst.msk [vmem:[#allocation2 + $0x170] sm:$0xff] %vm19_vm0, %v17484_v1 }
  0x19   :  { %69 = vst.msk [vmem:[#allocation2 + $0x180] sm:$0xff] %vm19_vm0, %v17484_v1  ;;  %70 = vst.msk [vmem:[#allocation2 + $0x188] sm:$0xff] %vm19_vm0, %v17484_v1 }
  0x1a   :  { %71 = vst.msk [vmem:[#allocation2 + $0x190] sm:$0x3] %vm22_vm1, %v17484_v1  ;;  %74 = vst.msk [vmem:[#allocation2 + $0x1a8] sm:$0x3] %vm22_vm1, %v17484_v1 }
  0x1b   :  { %72 = vst.msk [vmem:[#allocation2 + $0x198] sm:$0xff] %vm19_vm0, %v17484_v1  ;;  %73 = vst.msk [vmem:[#allocation2 + $0x1a0] sm:$0xff] %vm19_vm0, %v17484_v1 }
  0x1c   :  { %75 = vst.msk [vmem:[#allocation2 + $0x1b0] sm:$0xff] %vm19_vm0, %v17484_v1  ;;  %76 = vst.msk [vmem:[#allocation2 + $0x1b8] sm:$0xff] %vm19_vm0, %v17484_v1 }
  0x1d   :  { %77 = vst.msk [vmem:[#allocation2 + $0x1c0] sm:$0x3] %vm22_vm1, %v17484_v1  ;;  %80 = vst.msk [vmem:[#allocation2 + $0x1d8] sm:$0x3] %vm22_vm1, %v17484_v1 }
  0x1e   :  { %78 = vst.msk [vmem:[#allocation2 + $0x1c8] sm:$0xff] %vm19_vm0, %v17484_v1  ;;  %79 = vst.msk [vmem:[#allocation2 + $0x1d0] sm:$0xff] %vm19_vm0, %v17484_v1 }
  0x1f   :  { %81 = vst.msk [vmem:[#allocation2 + $0x1e0] sm:$0xff] %vm19_vm0, %v17484_v1  ;;  %82 = vst.msk [vmem:[#allocation2 + $0x1e8] sm:$0xff] %vm19_vm0, %v17484_v1 }
  0x20   :  { %83 = vst.msk [vmem:[#allocation2 + $0x1f0] sm:$0x3] %vm22_vm1, %v17484_v1  ;;  %86 = vst.msk [vmem:[#allocation2 + $0x208] sm:$0x3] %vm22_vm1, %v17484_v1 }
  0x21   :  { %84 = vst.msk [vmem:[#allocation2 + $0x1f8] sm:$0xff] %vm19_vm0, %v17484_v1  ;;  %85 = vst.msk [vmem:[#allocation2 + $0x200] sm:$0xff] %vm19_vm0, %v17484_v1 }
  0x22   :  { %87 = vst.msk [vmem:[#allocation2 + $0x210] sm:$0xff] %vm19_vm0, %v17484_v1  ;;  %88 = vst.msk [vmem:[#allocation2 + $0x218] sm:$0xff] %vm19_vm0, %v17484_v1 }
  0x23   :  { %89 = vst.msk [vmem:[#allocation2 + $0x220] sm:$0x3] %vm22_vm1, %v17484_v1  ;;  %92 = vst.msk [vmem:[#allocation2 + $0x238] sm:$0x3] %vm22_vm1, %v17484_v1  ;;  %v10412_v56 = vld [vmem:[#allocation2 + $0x1b0] sm:$0xff] }
  0x24   :  { %90 = vst.msk [vmem:[#allocation2 + $0x228] sm:$0xff] %vm19_vm0, %v17484_v1  ;;  %91 = vst.msk [vmem:[#allocation2 + $0x230] sm:$0xff] %vm19_vm0, %v17484_v1 }
  0x25   :  { %93 = vst.msk [vmem:[#allocation2 + $0x240] sm:$0xff] %vm19_vm0, %v17484_v1  ;;  %94 = vst.msk [vmem:[#allocation2 + $0x248] sm:$0xff] %vm19_vm0, %v17484_v1 }
  0x26   :  { %95 = vst.msk [vmem:[#allocation2 + $0x250] sm:$0x3] %vm22_vm1, %v17484_v1  ;;  %98 = vst.msk [vmem:[#allocation2 + $0x268] sm:$0x3] %vm22_vm1, %v17484_v1 }
  0x27   :  { %96 = vst.msk [vmem:[#allocation2 + $0x258] sm:$0xff] %vm19_vm0, %v17484_v1  ;;  %97 = vst.msk [vmem:[#allocation2 + $0x260] sm:$0xff] %vm19_vm0, %v17484_v1 }
  0x28   :  { %99 = vst.msk [vmem:[#allocation2 + $0x270] sm:$0xff] %vm19_vm0, %v17484_v1  ;;  %100 = vst.msk [vmem:[#allocation2 + $0x278] sm:$0xff] %vm19_vm0, %v17484_v1 }
  0x29   :  { %101 = vst.msk [vmem:[#allocation2 + $0x280] sm:$0x3] %vm22_vm1, %v17484_v1  ;;  %104 = vst.msk [vmem:[#allocation2 + $0x298] sm:$0x3] %vm22_vm1, %v17484_v1 }
  0x2a   :  { %102 = vst.msk [vmem:[#allocation2 + $0x288] sm:$0xff] %vm19_vm0, %v17484_v1  ;;  %103 = vst.msk [vmem:[#allocation2 + $0x290] sm:$0xff] %vm19_vm0, %v17484_v1 }
  0x2b   :  { %105 = vst.msk [vmem:[#allocation2 + $0x2a0] sm:$0xff] %vm19_vm0, %v17484_v1  ;;  %106 = vst.msk [vmem:[#allocation2 + $0x2a8] sm:$0xff] %vm19_vm0, %v17484_v1 }
  0x2c   :  { %107 = vst.msk [vmem:[#allocation2 + $0x2b0] sm:$0x3] %vm22_vm1, %v17484_v1  ;;  %110 = vst.msk [vmem:[#allocation2 + $0x2c8] sm:$0x3] %vm22_vm1, %v17484_v1 }
  0x2d   :  { %108 = vst.msk [vmem:[#allocation2 + $0x2b8] sm:$0xff] %vm19_vm0, %v17484_v1  ;;  %109 = vst.msk [vmem:[#allocation2 + $0x2c0] sm:$0xff] %vm19_vm0, %v17484_v1 }
  0x2e   :  { %111 = vst.msk [vmem:[#allocation2 + $0x2d0] sm:$0xff] %vm19_vm0, %v17484_v1  ;;  %112 = vst.msk [vmem:[#allocation2 + $0x2d8] sm:$0xff] %vm19_vm0, %v17484_v1 }
  0x2f   :  { %113 = vst.msk [vmem:[#allocation2 + $0x2e0] sm:$0x3] %vm22_vm1, %v17484_v1  ;;  %116 = vst.msk [vmem:[#allocation2 + $0x2f8] sm:$0x3] %vm22_vm1, %v17484_v1 }
  0x30   :  { %114 = vst.msk [vmem:[#allocation2 + $0x2e8] sm:$0xff] %vm19_vm0, %v17484_v1  ;;  %115 = vst.msk [vmem:[#allocation2 + $0x2f0] sm:$0xff] %vm19_vm0, %v17484_v1 }
  0x31   :  { %117 = vst.msk [vmem:[#allocation2 + $0x300] sm:$0xff] %vm19_vm0, %v17484_v1  ;;  %118 = vst.msk [vmem:[#allocation2 + $0x308] sm:$0xff] %vm19_vm0, %v17484_v1 }
  0x32   :  { %119 = vst.msk [vmem:[#allocation2 + $0x310] sm:$0x3] %vm22_vm1, %v17484_v1  ;;  %122 = vst.msk [vmem:[#allocation2 + $0x328] sm:$0x3] %vm22_vm1, %v17484_v1 }
  0x33   :  { %120 = vst.msk [vmem:[#allocation2 + $0x318] sm:$0xff] %vm19_vm0, %v17484_v1  ;;  %121 = vst.msk [vmem:[#allocation2 + $0x320] sm:$0xff] %vm19_vm0, %v17484_v1 }
  0x34   :  { %123 = vst.msk [vmem:[#allocation2 + $0x330] sm:$0xff] %vm19_vm0, %v17484_v1  ;;  %124 = vst.msk [vmem:[#allocation2 + $0x338] sm:$0xff] %vm19_vm0, %v17484_v1 }
  0x35   :  { %125 = vst.msk [vmem:[#allocation2 + $0x340] sm:$0x3] %vm22_vm1, %v17484_v1  ;;  %128 = vst.msk [vmem:[#allocation2 + $0x358] sm:$0x3] %vm22_vm1, %v17484_v1 }
  0x36   :  { %126 = vst.msk [vmem:[#allocation2 + $0x348] sm:$0xff] %vm19_vm0, %v17484_v1  ;;  %127 = vst.msk [vmem:[#allocation2 + $0x350] sm:$0xff] %vm19_vm0, %v17484_v1 }
  0x37   :  { %478 = vst.msk [vmem:[#allocation2 + $0x31] sm:$0xff] %vm19_vm0, %v7152_v2  ;;  %479 = vst.msk [vmem:[#allocation2 + $0x39] sm:$0xff] %vm19_vm0, %v7153_v3  ;;  %v7559_v3 = vpack.i.bf16 %v755_v60, %v753_v59 }
  0x38   :  { %476 = vst.msk [vmem:[#allocation2 + $0x19] sm:$0xff] %vm19_vm0, %v7148_v7  ;;  %477 = vst.msk [vmem:[#allocation2 + $0x21] sm:$0xff] %vm19_vm0, %v7149_v8 }
  0x39   :  { %480 = vst.msk [vmem:[#allocation2 + $0x49] sm:$0xff] %vm19_vm0, %v7156_v9  ;;  %481 = vst.msk [vmem:[#allocation2 + $0x51] sm:$0xff] %vm19_vm0, %v7157_v10  ;;  %7560 = vrot.lane.b32.xlu0 %v7559_v3, %s10061_s21 }
  0x3a   :  { %482 = vst.msk [vmem:[#allocation2 + $0x61] sm:$0xff] %vm19_vm0, %v7160_v14  ;;  %483 = vst.msk [vmem:[#allocation2 + $0x69] sm:$0xff] %vm19_vm0, %v7161_v15 }
  0x3b   :  { %484 = vst.msk [vmem:[#allocation2 + $0x79] sm:$0xff] %vm19_vm0, %v7164_v16  ;;  %485 = vst.msk [vmem:[#allocation2 + $0x81] sm:$0xff] %vm19_vm0, %v7165_v17 }
  0x3c   :  { %486 = vst.msk [vmem:[#allocation2 + $0x91] sm:$0xff] %vm19_vm0, %v7168_v21  ;;  %487 = vst.msk [vmem:[#allocation2 + $0x99] sm:$0xff] %vm19_vm0, %v7169_v22 }
  0x3d   :  { %488 = vst.msk [vmem:[#allocation2 + $0xa9] sm:$0xff] %vm19_vm0, %v7172_v23  ;;  %489 = vst.msk [vmem:[#allocation2 + $0xb1] sm:$0xff] %vm19_vm0, %v7173_v24 }
  0x3e   :  { %490 = vst.msk [vmem:[#allocation2 + $0xc1] sm:$0xff] %vm19_vm0, %v7176_v28  ;;  %491 = vst.msk [vmem:[#allocation2 + $0xc9] sm:$0xff] %vm19_vm0, %v7177_v29  ;;  %v10402_v53 = vld [vmem:[#allocation2 + $0x30] sm:$0xff]  ;;  %v10404_v54 = vld [vmem:[#allocation2 + $0x38] sm:$0xff] }
  0x3f   :  { %492 = vst.msk [vmem:[#allocation2 + $0xd9] sm:$0xff] %vm19_vm0, %v7180_v30  ;;  %493 = vst.msk [vmem:[#allocation2 + $0xe1] sm:$0xff] %vm19_vm0, %v7181_v31  ;;  %v10406_v55 = vld [vmem:[#allocation2 + $0x40] sm:$0x3]  ;;  %v761_v61 = vrot.slane %v10402_v53, 1  ;;  %v762_v62 = vrot.slane %v10404_v54, 1 }
  0x40   :  { %494 = vst.msk [vmem:[#allocation2 + $0xf1] sm:$0xff] %vm19_vm0, %v7184_v34  ;;  %495 = vst.msk [vmem:[#allocation2 + $0xf9] sm:$0xff] %vm19_vm0, %v7185_v35  ;;  %v10418_v63 = vld [vmem:[#allocation2 + $0x18] sm:$0xff]  ;;  %v10420_v0 = vld [vmem:[#allocation2 + $0x20] sm:$0xff]  ;;  %v764_v4 = vrot.slane %v10406_v55, 1 }
  0x41   :  { %496 = vst.msk [vmem:[#allocation2 + $0x109] sm:$0xff] %vm19_vm0, %v7188_v36  ;;  %497 = vst.msk [vmem:[#allocation2 + $0x111] sm:$0xff] %vm19_vm0, %v7189_v37  ;;  %v10422_v2 = vld [vmem:[#allocation2 + $0x28] sm:$0x3]  ;;  %v756_v5 = vrot.slane %v10418_v63, 1  ;;  %v10428_v7 = vld [vmem:[#allocation2 + $0x50] sm:$0xff]  ;;  %v763_v9 = vsel %vm750_vm2, %v761_v61, %v762_v62 }
  0x42   :  { %498 = vst.msk [vmem:[#allocation2 + $0x121] sm:$0xff] %vm19_vm0, %v7192_v38  ;;  %499 = vst.msk [vmem:[#allocation2 + $0x129] sm:$0xff] %vm19_vm0, %v7193_v39  ;;  %v10426_v6 = vld [vmem:[#allocation2 + $0x48] sm:$0xff]  ;;  %v10430_v8 = vld [vmem:[#allocation2 + $0x60] sm:$0xff]  ;;  %v757_v10 = vrot.slane %v10420_v0, 1  ;;  %v759_v11 = vrot.slane %v10422_v2, 1  ;;  %v765_v15 = vsel %vm750_vm2, %v762_v62, %v764_v4 }
  0x43   :  { %500 = vst.msk [vmem:[#allocation2 + $0x139] sm:$0xff] %vm19_vm0, %v7196_v40  ;;  %501 = vst.msk [vmem:[#allocation2 + $0x141] sm:$0xff] %vm19_vm0, %v7197_v41  ;;  %v10437_v12 = vld [vmem:[#allocation2 + $0x58] sm:$0x3]  ;;  %v766_v13 = vrot.slane %v10426_v6, 1  ;;  %v10440_v14 = vld [vmem:[#allocation2 + $0x68] sm:$0xff]  ;;  %v10451_v21 = vpack.i.bf16 %v765_v15, %v763_v9 }
  0x44   :  { %502 = vst.msk [vmem:[#allocation2 + $0x151] sm:$0xff] %vm19_vm0, %v7200_v46  ;;  %503 = vst.msk [vmem:[#allocation2 + $0x159] sm:$0xff] %vm19_vm0, %v7201_v47  ;;  %v767_v16 = vrot.slane %v10428_v7, 1  ;;  %v769_v17 = vrot.slane %v10437_v12, 1  ;;  %v10446_v18 = vld [vmem:[#allocation2 + $0x70] sm:$0x3]  ;;  %v758_v22 = vsel %vm750_vm2, %v756_v5, %v757_v10  ;;  %v760_v23 = vsel %vm750_vm2, %v757_v10, %v759_v11 }
  0x45   :  { %504 = vst.msk [vmem:[#allocation2 + $0x169] sm:$0xff] %vm19_vm0, %v7204_v48  ;;  %505 = vst.msk [vmem:[#allocation2 + $0x171] sm:$0xff] %vm19_vm0, %v7205_v49  ;;  %v771_v19 = vrot.slane %v10430_v8, 1  ;;  %v10449_v20 = vld [vmem:[#allocation2 + $0x78] sm:$0xff]  ;;  %v10455_v24 = vld [vmem:[#allocation2 + $0x80] sm:$0xff]  ;;  %v10462_v28 = vpack.i.bf16 %v760_v23, %v758_v22  ;;  %v772_v31 = vrot.slane %v10440_v14, 1  ;;  %7570 = vrot.lane.b32.xlu1 %v10451_v21, %s10061_s21 }
  0x46   :  { %508 = vst.msk [vmem:[#allocation2 + $0x1c9] sm:$0xff] %vm19_vm0, %v7212_v57  ;;  %509 = vst.msk [vmem:[#allocation2 + $0x1d1] sm:$0xff] %vm19_vm0, %v7213_v58  ;;  %v10457_v25 = vld [vmem:[#allocation2 + $0x88] sm:$0x3]  ;;  %v10459_v26 = vld [vmem:[#allocation2 + $0x90] sm:$0xff]  ;;  %v768_v29 = vsel %vm750_vm2, %v766_v13, %v767_v16  ;;  %v770_v30 = vsel %vm750_vm2, %v767_v16, %v769_v17  ;;  %v774_v36 = vrot.slane %v10446_v18, 1 }
  0x47   :  { %18082 = vst [vmem:[#allocation8_spill] sm:$0xff] %v10451_v21  ;;  %18083 = vst [vmem:[#allocation9_spill] sm:$0xff] %v10462_v28  ;;  %v10467_v32 = vld [vmem:[#allocation2 + $0x98] sm:$0xff]  ;;  %v10469_v33 = vld [vmem:[#allocation2 + $0xa0] sm:$0x3]  ;;  %v10475_v35 = vpack.i.bf16 %v770_v30, %v768_v29  ;;  %v776_v37 = vrot.slane %v10449_v20, 1  ;;  %7565 = vrot.lane.b32.xlu0 %v10462_v28, %s10061_s21  ;;  %v773_v40 = vsel %vm750_vm2, %v771_v19, %v772_v31 }
  0x48   :  { %v10471_v34 = vld [vmem:[#allocation2 + $0xa8] sm:$0xff]  ;;  %v777_v38 = vrot.slane %v10455_v24, 1  ;;  %v10480_v39 = vld [vmem:[#allocation2 + $0xb0] sm:$0xff]  ;;  %v779_v41 = vrot.slane %v10457_v25, 1  ;;  %v781_v42 = vrot.slane %v10459_v26, 1  ;;  %v782_v46 = vrot.slane %v10467_v32, 1 }
  0x49   :  { %18084 = vst [vmem:[#allocation10_spill] sm:$0xff] %v10475_v35  ;;  %v10488_v47 = vld [vmem:[#allocation2 + $0xb8] sm:$0x3]  ;;  %v10490_v48 = vld [vmem:[#allocation2 + $0xc0] sm:$0xff]  ;;  %v775_v49 = vsel %vm750_vm2, %v772_v31, %v774_v36  ;;  %v784_v51 = vrot.slane %v10469_v33, 1  ;;  %v786_v52 = vrot.slane %v10471_v34, 1  ;;  %7575 = vrot.lane.b32.xlu1 %v10475_v35, %s10061_s21 }
  0x4a   :  { %v778_v50 = vsel %vm750_vm2, %v776_v37, %v777_v38  ;;  %v10496_v57 = vld [vmem:[#allocation2 + $0xc8] sm:$0xff]  ;;  %v10498_v58 = vld [vmem:[#allocation2 + $0xd0] sm:$0x3]  ;;  %v10500_v59 = vpack.i.bf16 %v775_v49, %v773_v40  ;;  %v780_v60 = vsel %vm750_vm2, %v777_v38, %v779_v41  ;;  %v783_v61 = vsel %vm750_vm2, %v781_v42, %v782_v46  ;;  %v10505_v3 = vld [vmem:[#allocation2 + $0xd8] sm:$0xff] }
  0x4b   :  { %v787_v62 = vrot.slane %v10480_v39, 1  ;;  %v10507_v4 = vld [vmem:[#allocation2 + $0xe0] sm:$0xff]  ;;  %v10509_v5 = vld [vmem:[#allocation2 + $0xe8] sm:$0x3]  ;;  %v10513_v9 = vpack.i.bf16 %v780_v60, %v778_v50  ;;  %v785_v10 = vsel %vm750_vm2, %v782_v46, %v784_v51  ;;  %v789_v11 = vrot.slane %v10488_v47, 1  ;;  %v10518_v15 = vld [vmem:[#allocation2 + $0xf0] sm:$0xff] }
  0x4c   :  { %18085 = vst [vmem:[#allocation11_spill] sm:$0xff] %v10500_v59  ;;  %v791_v13 = vrot.slane %v10490_v48, 1  ;;  %v10520_v16 = vld [vmem:[#allocation2 + $0x1b8] sm:$0xff]  ;;  %7580 = vrot.lane.b32.xlu0 %v10500_v59, %s10061_s21  ;;  %v10524_v17 = vpack.i.bf16 %v785_v10, %v783_v61  ;;  %v792_v22 = vrot.slane %v10496_v57, 1  ;;  %v794_v23 = vrot.slane %v10498_v58, 1  ;;  %v10537_v40 = vld [vmem:[#allocation2 + $0x108] sm:$0xff] }
  0x4d   :  { %18086 = vst [vmem:[#allocation12_spill] sm:$0xff] %v10513_v9  ;;  %18087 = vst [vmem:[#allocation13_spill] sm:$0xff] %v10520_v16  ;;  %v788_v19 = vsel %vm750_vm2, %v786_v52, %v787_v62  ;;  %v10529_v29 = vld [vmem:[#allocation2 + $0xf8] sm:$0xff]  ;;  %v10531_v30 = vld [vmem:[#allocation2 + $0x100] sm:$0x3]  ;;  %v790_v31 = vsel %vm750_vm2, %v787_v62, %v789_v11  ;;  %v796_v36 = vrot.slane %v10505_v3, 1  ;;  %7585 = vrot.lane.b32.xlu1 %v10513_v9, %s10061_s21 }
  0x4e   :  { %18088 = vst [vmem:[#allocation14_spill] sm:$0xff] %v10524_v17  ;;  %v797_v37 = vrot.slane %v10507_v4, 1  ;;  %v799_v38 = vrot.slane %v10509_v5, 1  ;;  %v10539_v41 = vld [vmem:[#allocation2 + $0x110] sm:$0xff]  ;;  %v793_v42 = vsel %vm750_vm2, %v791_v13, %v792_v22  ;;  %v795_v46 = vsel %vm750_vm2, %v792_v22, %v794_v23  ;;  %v10544_v50 = vld [vmem:[#allocation2 + $0x118] sm:$0x3] }
  0x4f   :  { %18089 = vst [vmem:[#allocation15_spill] sm:$0xff] %v10539_v41  ;;  %v801_v49 = vrot.slane %v10518_v15, 1  ;;  %18090 = vst [vmem:[#allocation16_spill] sm:$0xff] %v10544_v50  ;;  %v10546_v51 = vld [vmem:[#allocation2 + $0x120] sm:$0xff]  ;;  %v10548_v52 = vld [vmem:[#allocation2 + $0x128] sm:$0xff]  ;;  %v10553_v61 = vpack.i.bf16 %v790_v31, %v788_v19  ;;  %v10555_v62 = vpack.i.bf16 %v795_v46, %v793_v42  ;;  %v802_v11 = vrot.slane %v10529_v29, 1 }
  0x50   :  { %18091 = vst [vmem:[#allocation17_spill] sm:$0xff] %v10546_v51  ;;  %18092 = vst [vmem:[#allocation18_spill] sm:$0xff] %v10548_v52  ;;  %v798_v10 = vsel %vm750_vm2, %v796_v36, %v797_v37  ;;  %v10559_v13 = vld [vmem:[#allocation2 + $0x130] sm:$0x3]  ;;  %v10561_v22 = vld [vmem:[#allocation2 + $0x138] sm:$0xff]  ;;  %7590 = vrot.lane.b32.xlu0 %v10524_v17, %s10061_s21  ;;  %v800_v23 = vsel %vm750_vm2, %v797_v37, %v799_v38  ;;  %v804_v1 = vrot.slane %v10531_v30, 1 }
  0x51   :  { %18093 = vst [vmem:[#allocation19_spill] sm:$0xff] %v10553_v61  ;;  %18094 = vst [vmem:[#allocation20_spill] sm:$0xff] %v10555_v62  ;;  %v806_v19 = vrot.slane %v10537_v40, 1  ;;  %v807_v31 = vrot.slane %v10539_v41, 1  ;;  %v10569_v42 = vld [vmem:[#allocation2 + $0x140] sm:$0xff]  ;;  %v803_v36 = vsel %vm750_vm2, %v801_v49, %v802_v11  ;;  %v809_v46 = vrot.slane %v10544_v50, 1  ;;  %7595 = vrot.lane.b32.xlu1 %v10553_v61, %s10061_s21 }
  0x52   :  { %18095 = vst [vmem:[#allocation21_spill] sm:$0xff] %v10559_v13  ;;  %18096 = vst [vmem:[#allocation22_spill] sm:$0xff] %v10561_v22  ;;  %v811_v27 = vrot.slane %v10546_v51, 1  ;;  %v812_v60 = vrot.slane %v10548_v52, 1  ;;  %v10575_v9 = vld [vmem:[#allocation2 + $0x148] sm:$0x3]  ;;  %v805_v37 = vsel %vm750_vm2, %v802_v11, %v804_v1  ;;  %v10591_v52 = vpack.i.bf16 %v800_v23, %v798_v10 }
  0x53   :  { %18097 = vst [vmem:[#allocation23_spill] sm:$0xff] %v10569_v42  ;;  %18098 = vst [vmem:[#allocation24_spill] sm:$0xff] %v10575_v9  ;;  %v10577_v17 = vld [vmem:[#allocation2 + $0x150] sm:$0xff]  ;;  %v808_v38 = vsel %vm750_vm2, %v806_v19, %v807_v31  ;;  %v814_v59 = vrot.slane %v10559_v13, 1  ;;  %v816_v35 = vrot.slane %v10561_v22, 1  ;;  %v10583_v21 = vld [vmem:[#allocation2 + $0x158] sm:$0xff]  ;;  %v10593_v51 = vpack.i.bf16 %v805_v37, %v803_v36 }
  0x54   :  { %18099 = vst [vmem:[#allocation25_spill] sm:$0xff] %v10577_v17  ;;  %18100 = vst [vmem:[#allocation26_spill] sm:$0xff] %v10583_v21  ;;  %v10585_v49 = vld [vmem:[#allocation2 + $0x160] sm:$0x3]  ;;  %v10587_v28 = vld [vmem:[#allocation2 + $0x168] sm:$0xff]  ;;  %v810_v1 = vsel %vm750_vm2, %v807_v31, %v809_v46  ;;  %v817_v11 = vrot.slane %v10569_v42, 1  ;;  %7600 = vrot.lane.b32.xlu0 %v10555_v62, %s10061_s21  ;;  %v813_v50 = vsel %vm750_vm2, %v811_v27, %v812_v60 }
  0x55   :  { %18101 = vst [vmem:[#allocation27_spill] sm:$0xff] %v10585_v49  ;;  %18102 = vst [vmem:[#allocation28_spill] sm:$0xff] %v10587_v28  ;;  %v10597_v19 = vld [vmem:[#allocation2 + $0x170] sm:$0xff]  ;;  %v10599_v22 = vld [vmem:[#allocation2 + $0x178] sm:$0x3]  ;;  %v815_v10 = vsel %vm750_vm2, %v812_v60, %v814_v59  ;;  %v819_v23 = vrot.slane %v10575_v9, 1  ;;  %v10613_v37 = vpack.i.bf16 %v810_v1, %v808_v38  ;;  %7605 = vrot.lane.b32.xlu1 %v10591_v52, %s10061_s21 }
  0x56   :  { %18103 = vst [vmem:[#allocation29_spill] sm:$0xff] %v10591_v52  ;;  %18104 = vst [vmem:[#allocation30_spill] sm:$0xff] %v10593_v51  ;;  %v10601_v13 = vld [vmem:[#allocation2 + $0x1c0] sm:$0x3]  ;;  %v821_v36 = vrot.slane %v10577_v17, 1  ;;  %v10609_v31 = vld [vmem:[#allocation2 + $0x1c8] sm:$0xff]  ;;  %v818_v61 = vsel %vm750_vm2, %v816_v35, %v817_v11 }
  0x57   :  { %18105 = vst [vmem:[#allocation31_spill] sm:$0xff] %v10597_v19  ;;  %18106 = vst [vmem:[#allocation32_spill] sm:$0xff] %v10599_v22  ;;  %v10611_v46 = vld [vmem:[#allocation2 + $0x1d8] sm:$0x3]  ;;  %v822_v42 = vrot.slane %v10583_v21, 1  ;;  %v824_v62 = vrot.slane %v10585_v49, 1  ;;  %v820_v60 = vsel %vm750_vm2, %v817_v11, %v819_v23  ;;  %v10632_v49 = vpack.i.bf16 %v815_v10, %v813_v50 }
  0x58   :  { %18107 = vst [vmem:[#allocation33_spill] sm:$0xff] %v10601_v13  ;;  %18108 = vst [vmem:[#allocation34_spill] sm:$0xff] %v10611_v46  ;;  %v7290_v27 = vld [vmem:[%s17479_s0 + $0x88] sm:$0xff]   ;;  %v7291_v59 = vld [vmem:[%s17479_s0 + $0x90] sm:$0xff]   ;;  %v826_v17 = vrot.slane %v10587_v28, 1  ;;  %v827_v38 = vrot.slane %v10597_v19, 1  ;;  %v10634_v21 = vpack.i.bf16 %v820_v60, %v818_v61  ;;  %7610 = vrot.lane.b32.xlu0 %v10593_v51, %s10061_s21 }
  0x59   :  { %18109 = vst [vmem:[#allocation35_spill] sm:$0xff] %v10613_v37  ;;  %v829_v35 = vrot.slane %v10599_v22, 1  ;;  %v10628_v1 = vld [vmem:[#allocation2 + $0x1d0] sm:$0xff]  ;;  %18110 = vst [vmem:[#allocation36_spill] sm:$0xff] %v10632_v49  ;;  %v823_v9 = vsel %vm750_vm2, %v821_v36, %v822_v42  ;;  %v825_v41 = vsel %vm750_vm2, %v822_v42, %v824_v62  ;;  %v7292_v11 = vld [vmem:[%s17479_s0 + $0x98] sm:$0xff]   ;;  %v18112_v50 = vrot.slane %v10520_v16, 1  ;;  %7615 = vrot.lane.b32.xlu1 %v10613_v37, %s10061_s21 }
  0x5a   :  { %18111 = vst [vmem:[#allocation37_spill] sm:$0xff] %v10634_v21  ;;  %v828_v23 = vsel %vm750_vm2, %v826_v17, %v827_v38  ;;  %v18113_v61 = vrot.slane %v10412_v56, 1  ;;  %v834_v62 = vrot.slane %v10601_v13, 1  ;;  %v7293_v42 = vld [vmem:[%s17479_s0 + $0xa0] sm:$0xff]   ;;  %v7294_v36 = vld [vmem:[%s17479_s0 + $0xa8] sm:$0xff]   ;;  %v10659_v17 = vpack.i.bf16 %v825_v41, %v823_v9 }
  0x5b   :  { %v830_v22 = vsel %vm750_vm2, %v827_v38, %v829_v35  ;;  %v836_v60 = vrot.slane %v10609_v31, 1  ;;  %v837_v38 = vrot.slane %v10628_v1, 1  ;;  %v839_v56 = vrot.slane %v10611_v46, 1  ;;  %v7295_v35 = vld [vmem:[%s17479_s0 + $0xb0] sm:$0xff]   ;;  %v7297_v13 = vld [vmem:[%s17479_s0 + $0xc0] sm:$0xff]   ;;  %v7298_v19 = vld [vmem:[%s17479_s0 + $0xc8] sm:$0xff]  }
  0x5c   :  { %v10650_v10 = vsel %vm750_vm2, %v18113_v61, %v18112_v50  ;;  %18114 = vst [vmem:[#allocation38_spill] sm:$0xff] %v10659_v17  ;;  %v7296_v50 = vld [vmem:[%s17479_s0 + $0xb8] sm:$0xff]   ;;  %v18115_v61 = vrot.slane %v10520_v16, 1  ;;  %v7216_v9 = vunpack.c.l.bf16 %v7290_v27  ;;  %v7217_v41 = vunpack.c.h.bf16 %v7290_v27  ;;  %v7299_v27 = vld [vmem:[%s17479_s0 + $0xd0] sm:$0xff]   ;;  %7620 = vrot.lane.b32.xlu0 %v10632_v49, %s10061_s21 }
  0x5d   :  { %v7220_v52 = vunpack.c.l.bf16 %v7291_v59  ;;  %v10683_v28 = vpack.i.bf16 %v830_v22, %v828_v23  ;;  %v838_v16 = vsel %vm750_vm2, %v836_v60, %v837_v38  ;;  %v7300_v46 = vld [vmem:[%s17479_s0 + $0xd8] sm:$0xff]   ;;  %v7225_v60 = vunpack.c.h.bf16 %v7292_v11  ;;  %7625 = vrot.lane.b32.xlu1 %v10634_v21, %s10061_s21 }
  0x5e   :  { %v10673_v51 = vsel %vm750_vm2, %v18115_v61, %v834_v62  ;;  %v840_v62 = vsel %vm750_vm2, %v837_v38, %v839_v56  ;;  %v7221_v61 = vunpack.c.h.bf16 %v7291_v59  ;;  %510 = vst.msk [vmem:[#allocation2 + $0x1e1] sm:$0xff] %vm19_vm0, %v7216_v9  ;;  %511 = vst.msk [vmem:[#allocation2 + $0x1e9] sm:$0xff] %vm19_vm0, %v7217_v41  ;;  %v7224_v59 = vunpack.c.l.bf16 %v7292_v11  ;;  %v7301_v38 = vld [vmem:[%s17479_s0 + $0xe0] sm:$0xff]   ;;  %v7302_v56 = vld [vmem:[%s17479_s0 + $0xe8] sm:$0xff]  }
  0x5f   :  { %18116 = vst [vmem:[#allocation39_spill] sm:$0xff] %v10683_v28  ;;  %v10697_v23 = vpack.i.bf16 %v840_v62, %v838_v16  ;;  %512 = vst.msk [vmem:[#allocation2 + $0x1f9] sm:$0xff] %vm19_vm0, %v7220_v52  ;;  %v7228_v16 = vunpack.c.l.bf16 %v7293_v42  ;;  %v7229_v62 = vunpack.c.h.bf16 %v7293_v42  ;;  %v7232_v22 = vunpack.c.l.bf16 %v7294_v36  ;;  %v7303_v52 = vld [vmem:[%s17479_s0 + $0xf0] sm:$0xff]  }
  0x60   :  { %513 = vst.msk [vmem:[#allocation2 + $0x201] sm:$0xff] %vm19_vm0, %v7221_v61  ;;  %v7233_v9 = vunpack.c.h.bf16 %v7294_v36  ;;  %514 = vst.msk [vmem:[#allocation2 + $0x211] sm:$0xff] %vm19_vm0, %v7224_v59  ;;  %v7236_v11 = vunpack.c.l.bf16 %v7295_v35  ;;  %v7237_v41 = vunpack.c.h.bf16 %v7295_v35  ;;  %v7240_v49 = vunpack.c.l.bf16 %v7296_v50  ;;  %7630 = vrot.lane.b32.xlu0 %v10659_v17, %s10061_s21 }
  0x61   :  { %18117 = vst [vmem:[#allocation40_spill] sm:$0xff] %v10697_v23  ;;  %515 = vst.msk [vmem:[#allocation2 + $0x219] sm:$0xff] %vm19_vm0, %v7225_v60  ;;  %v7241_v37 = vunpack.c.h.bf16 %v7296_v50  ;;  %v7244_v42 = vunpack.c.l.bf16 %v7297_v13  ;;  %v7245_v36 = vunpack.c.h.bf16 %v7297_v13  ;;  %v7248_v61 = vunpack.c.l.bf16 %v7298_v19  ;;  %7635 = vrot.lane.b32.xlu1 %v10683_v28, %s10061_s21 }
  0x62   :  { %516 = vst.msk [vmem:[#allocation2 + $0x229] sm:$0xff] %vm19_vm0, %v7228_v16  ;;  %517 = vst.msk [vmem:[#allocation2 + $0x231] sm:$0xff] %vm19_vm0, %v7229_v62  ;;  %v7249_v59 = vunpack.c.h.bf16 %v7298_v19  ;;  %v7252_v35 = vunpack.c.l.bf16 %v7299_v27  ;;  %v7253_v50 = vunpack.c.h.bf16 %v7299_v27  ;;  %v7257_v60 = vunpack.c.h.bf16 %v7300_v46 }
  0x63   :  { %518 = vst.msk [vmem:[#allocation2 + $0x241] sm:$0xff] %vm19_vm0, %v7232_v22  ;;  %519 = vst.msk [vmem:[#allocation2 + $0x249] sm:$0xff] %vm19_vm0, %v7233_v9  ;;  %v7256_v22 = vunpack.c.l.bf16 %v7300_v46  ;;  %v7260_v13 = vunpack.c.l.bf16 %v7301_v38  ;;  %v7261_v19 = vunpack.c.h.bf16 %v7301_v38  ;;  %v7264_v16 = vunpack.c.l.bf16 %v7302_v56 }
  0x64   :  { %520 = vst.msk [vmem:[#allocation2 + $0x259] sm:$0xff] %vm19_vm0, %v7236_v11  ;;  %521 = vst.msk [vmem:[#allocation2 + $0x261] sm:$0xff] %vm19_vm0, %v7237_v41  ;;  %v7265_v62 = vunpack.c.h.bf16 %v7302_v56  ;;  %v7268_v46 = vunpack.c.l.bf16 %v7303_v52  ;;  %v18120_v41 = vpack.i.bf16 %v10673_v51, %v10650_v10 }
  0x65   :  { %522 = vst.msk [vmem:[#allocation2 + $0x271] sm:$0xff] %vm19_vm0, %v7240_v49  ;;  %523 = vst.msk [vmem:[#allocation2 + $0x279] sm:$0xff] %vm19_vm0, %v7241_v37  ;;  %v7269_v37 = vunpack.c.h.bf16 %v7303_v52  ;;  %v10738_v38 = vld [vmem:[#allocation2 + $0x1e0] sm:$0xff]  ;;  %v10740_v56 = vld [vmem:[#allocation2 + $0x1e8] sm:$0xff]  ;;  %7645 = vrot.lane.b32.xlu1 %v10697_v23, %s10061_s21 }
  0x66   :  { %524 = vst.msk [vmem:[#allocation2 + $0x289] sm:$0xff] %vm19_vm0, %v7244_v42  ;;  %525 = vst.msk [vmem:[#allocation2 + $0x291] sm:$0xff] %vm19_vm0, %v7245_v36  ;;  %v10742_v9 = vld [vmem:[#allocation2 + $0x1f0] sm:$0x3]  ;;  %7640 = vrot.lane.b32.xlu0 %v18120_v41, %s10061_s21  ;;  %v841_v42 = vrot.slane %v10738_v38, 1  ;;  %v842_v36 = vrot.slane %v10740_v56, 1 }
  0x67   :  { %526 = vst.msk [vmem:[#allocation2 + $0x2a1] sm:$0xff] %vm19_vm0, %v7248_v61  ;;  %527 = vst.msk [vmem:[#allocation2 + $0x2a9] sm:$0xff] %vm19_vm0, %v7249_v59  ;;  %v844_v61 = vrot.slane %v10742_v9, 1  ;;  %v10757_v59 = vld [vmem:[#allocation2 + $0x1f8] sm:$0xff] }
  0x68   :  { %528 = vst.msk [vmem:[#allocation2 + $0x2b9] sm:$0xff] %vm19_vm0, %v7252_v35  ;;  %529 = vst.msk [vmem:[#allocation2 + $0x2c1] sm:$0xff] %vm19_vm0, %v7253_v50  ;;  %v10759_v35 = vld [vmem:[#allocation2 + $0x200] sm:$0xff]  ;;  %v846_v51 = vrot.slane %v10757_v59, 1 }
  0x69   :  { %530 = vst.msk [vmem:[#allocation2 + $0x2d1] sm:$0xff] %vm19_vm0, %v7256_v22  ;;  %531 = vst.msk [vmem:[#allocation2 + $0x2d9] sm:$0xff] %vm19_vm0, %v7257_v60  ;;  %v10764_v22 = vld [vmem:[#allocation2 + $0x208] sm:$0x3]  ;;  %v847_v10 = vrot.slane %v10759_v35, 1  ;;  %v10768_v60 = vld [vmem:[#allocation2 + $0x210] sm:$0xff] }
  0x6a   :  { %18118 = vst [vmem:[#allocation41_spill] sm:$0xff] %v10740_v56  ;;  %18119 = vst [vmem:[#allocation42_spill] sm:$0xff] %v10742_v9  ;;  %v10778_v41 = vld [vmem:[#allocation2 + $0x228] sm:$0xff]  ;;  %v10780_v11 = vld [vmem:[#allocation2 + $0x230] sm:$0xff] }
  0x6b   :  { %532 = vst.msk [vmem:[#allocation2 + $0x2e9] sm:$0xff] %vm19_vm0, %v7260_v13  ;;  %533 = vst.msk [vmem:[#allocation2 + $0x2f1] sm:$0xff] %vm19_vm0, %v7261_v19  ;;  %v10770_v13 = vld [vmem:[#allocation2 + $0x218] sm:$0xff]  ;;  %v843_v19 = vsel %vm750_vm2, %v841_v42, %v842_v36  ;;  %v848_v49 = vsel %vm750_vm2, %v846_v51, %v847_v10  ;;  %v10791_v27 = vld [vmem:[#allocation2 + $0x240] sm:$0xff]  ;;  %v856_v17 = vrot.slane %v10778_v41, 1  ;;  %v857_v23 = vrot.slane %v10780_v11, 1 }
  0x6c   :  { %534 = vst.msk [vmem:[#allocation2 + $0x301] sm:$0xff] %vm19_vm0, %v7264_v16  ;;  %535 = vst.msk [vmem:[#allocation2 + $0x309] sm:$0xff] %vm19_vm0, %v7265_v62  ;;  %v845_v16 = vsel %vm750_vm2, %v842_v36, %v844_v61  ;;  %v849_v62 = vrot.slane %v10764_v22, 1  ;;  %v852_v42 = vrot.slane %v10770_v13, 1  ;;  %v10789_v61 = vld [vmem:[#allocation2 + $0x238] sm:$0x3] }
  0x6d   :  { %18121 = vst [vmem:[#allocation43_spill] sm:$0xff] %v10757_v59  ;;  %18122 = vst [vmem:[#allocation44_spill] sm:$0xff] %v10759_v35  ;;  %v10784_v50 = vpack.i.bf16 %v845_v16, %v843_v19  ;;  %v10793_v52 = vld [vmem:[#allocation2 + $0x248] sm:$0xff]  ;;  %v859_v19 = vrot.slane %v10789_v61, 1  ;;  %v10799_v16 = vld [vmem:[#allocation2 + $0x250] sm:$0x3] }
  0x6e   :  { %536 = vst.msk [vmem:[#allocation2 + $0x319] sm:$0xff] %vm19_vm0, %v7268_v46  ;;  %537 = vst.msk [vmem:[#allocation2 + $0x321] sm:$0xff] %vm19_vm0, %v7269_v37  ;;  %v10775_v46 = vld [vmem:[#allocation2 + $0x220] sm:$0x3]  ;;  %v851_v37 = vrot.slane %v10768_v60, 1  ;;  %v850_v28 = vsel %vm750_vm2, %v847_v10, %v849_v62  ;;  %v10801_v51 = vld [vmem:[#allocation2 + $0x258] sm:$0xff] }
  0x6f   :  { %18123 = vst [vmem:[#allocation45_spill] sm:$0xff] %v10764_v22  ;;  %18124 = vst [vmem:[#allocation46_spill] sm:$0xff] %v10768_v60  ;;  %v854_v36 = vrot.slane %v10775_v46, 1  ;;  %7650 = vrot.lane.b32.xlu0 %v10784_v50, %s10061_s21  ;;  %v10805_v21 = vpack.i.bf16 %v850_v28, %v848_v49  ;;  %v861_v10 = vrot.slane %v10791_v27, 1  ;;  %v10810_v62 = vld [vmem:[#allocation2 + $0x260] sm:$0xff]  ;;  %v858_v60 = vsel %vm750_vm2, %v856_v17, %v857_v23  ;;  %v10821_v49 = vld [vmem:[#allocation2 + $0x278] sm:$0xff] }
  0x70   :  { %18125 = vst [vmem:[#allocation47_spill] sm:$0xff] %v10770_v13  ;;  %18126 = vst [vmem:[#allocation48_spill] sm:$0xff] %v10775_v46  ;;  %v853_v46 = vsel %vm750_vm2, %v851_v37, %v852_v42  ;;  %v862_v28 = vrot.slane %v10793_v52, 1  ;;  %v10823_v37 = vld [vmem:[#allocation2 + $0x280] sm:$0x3]  ;;  %v867_v17 = vrot.slane %v10810_v62, 1 }
  0x71   :  { %18127 = vst [vmem:[#allocation49_spill] sm:$0xff] %v10778_v41  ;;  %18128 = vst [vmem:[#allocation50_spill] sm:$0xff] %v10780_v11  ;;  %v855_v13 = vsel %vm750_vm2, %v852_v42, %v854_v36  ;;  %v10812_v11 = vld [vmem:[#allocation2 + $0x268] sm:$0x3]  ;;  %7655 = vrot.lane.b32.xlu1 %v10805_v21, %s10061_s21  ;;  %v872_v22 = vrot.slane %v10821_v49, 1  ;;  %v10859_v59 = vld [vmem:[#allocation2 + $0x2b8] sm:$0xff] }
  0x72   :  { %18129 = vst [vmem:[#allocation51_spill] sm:$0xff] %v10784_v50  ;;  %18130 = vst [vmem:[#allocation52_spill] sm:$0xff] %v10789_v61  ;;  %v10814_v61 = vld [vmem:[#allocation2 + $0x270] sm:$0xff]  ;;  %v10816_v41 = vpack.i.bf16 %v855_v13, %v853_v46  ;;  %v860_v50 = vsel %vm750_vm2, %v857_v23, %v859_v19  ;;  %v10825_v42 = vld [vmem:[#allocation2 + $0x288] sm:$0xff]  ;;  %v864_v13 = vrot.slane %v10799_v16, 1  ;;  %v866_v46 = vrot.slane %v10801_v51, 1 }
  0x73   :  { %18131 = vst [vmem:[#allocation53_spill] sm:$0xff] %v10791_v27  ;;  %18132 = vst [vmem:[#allocation54_spill] sm:$0xff] %v10793_v52  ;;  %v10829_v36 = vpack.i.bf16 %v860_v50, %v858_v60  ;;  %v10834_v23 = vld [vmem:[#allocation2 + $0x290] sm:$0xff]  ;;  %v863_v19 = vsel %vm750_vm2, %v861_v10, %v862_v28  ;;  %v869_v52 = vrot.slane %v10812_v11, 1  ;;  %v871_v27 = vrot.slane %v10814_v61, 1  ;;  %v10842_v50 = vld [vmem:[#allocation2 + $0x2a0] sm:$0xff] }
  0x74   :  { %18133 = vst [vmem:[#allocation55_spill] sm:$0xff] %v10799_v16  ;;  %18134 = vst [vmem:[#allocation56_spill] sm:$0xff] %v10801_v51  ;;  %v10840_v35 = vld [vmem:[#allocation2 + $0x298] sm:$0x3]  ;;  %7660 = vrot.lane.b32.xlu0 %v10816_v41, %s10061_s21  ;;  %v865_v60 = vsel %vm750_vm2, %v862_v28, %v864_v13  ;;  %v876_v10 = vrot.slane %v10825_v42, 1  ;;  %v10861_v28 = vld [vmem:[#allocation2 + $0x2c0] sm:$0xff] }
  0x75   :  { %18135 = vst [vmem:[#allocation57_spill] sm:$0xff] %v10805_v21  ;;  %18136 = vst [vmem:[#allocation58_spill] sm:$0xff] %v10810_v62  ;;  %v868_v21 = vsel %vm750_vm2, %v866_v46, %v867_v17  ;;  %v874_v62 = vrot.slane %v10823_v37, 1  ;;  %v870_v51 = vsel %vm750_vm2, %v867_v17, %v869_v52  ;;  %v873_v16 = vsel %vm750_vm2, %v871_v27, %v872_v22  ;;  %v10863_v13 = vld [vmem:[#allocation2 + $0x2c8] sm:$0x3]  ;;  %v10872_v17 = vld [vmem:[#allocation2 + $0x2d0] sm:$0xff] }
  0x76   :  { %18137 = vst [vmem:[#allocation59_spill] sm:$0xff] %v10812_v11  ;;  %18138 = vst [vmem:[#allocation60_spill] sm:$0xff] %v10814_v61  ;;  %v10850_v11 = vld [vmem:[#allocation2 + $0x2a8] sm:$0xff]  ;;  %v10852_v61 = vld [vmem:[#allocation2 + $0x2b0] sm:$0x3]  ;;  %7665 = vrot.lane.b32.xlu1 %v10829_v36, %s10061_s21  ;;  %v10867_v46 = vpack.i.bf16 %v870_v51, %v868_v21  ;;  %v879_v52 = vrot.slane %v10840_v35, 1 }
  0x77   :  { %18139 = vst [vmem:[#allocation61_spill] sm:$0xff] %v10816_v41  ;;  %18140 = vst [vmem:[#allocation62_spill] sm:$0xff] %v10821_v49  ;;  %v10854_v49 = vpack.i.bf16 %v865_v60, %v863_v19  ;;  %v877_v41 = vrot.slane %v10834_v23, 1  ;;  %v875_v19 = vsel %vm750_vm2, %v872_v22, %v874_v62  ;;  %v881_v27 = vrot.slane %v10842_v50, 1  ;;  %v10874_v60 = vld [vmem:[#allocation2 + $0x2d8] sm:$0xff]  ;;  %v10883_v51 = vld [vmem:[#allocation2 + $0x2e8] sm:$0xff] }
  0x78   :  { %18141 = vst [vmem:[#allocation63_spill] sm:$0xff] %v10823_v37  ;;  %18142 = vst [vmem:[#allocation64_spill] sm:$0xff] %v10825_v42  ;;  %v882_v37 = vrot.slane %v10850_v11, 1  ;;  %v10881_v21 = vld [vmem:[#allocation2 + $0x2e0] sm:$0x3]  ;;  %v10885_v22 = vld [vmem:[#allocation2 + $0x2f0] sm:$0xff] }
  0x79   :  { %18143 = vst [vmem:[#allocation65_spill] sm:$0xff] %v10829_v36  ;;  %18144 = vst [vmem:[#allocation66_spill] sm:$0xff] %v10834_v23  ;;  %v10876_v23 = vpack.i.bf16 %v875_v19, %v873_v16  ;;  %v878_v42 = vsel %vm750_vm2, %v876_v10, %v877_v41  ;;  %v884_v36 = vrot.slane %v10852_v61, 1  ;;  %7670 = vrot.lane.b32.xlu0 %v10854_v49, %s10061_s21  ;;  %v886_v16 = vrot.slane %v10859_v59, 1  ;;  %v10900_v56 = vld [vmem:[#allocation2 + $0x308] sm:$0xff] }
  0x7a   :  { %18145 = vst [vmem:[#allocation67_spill] sm:$0xff] %v10840_v35  ;;  %18146 = vst [vmem:[#allocation68_spill] sm:$0xff] %v10842_v50  ;;  %v880_v62 = vsel %vm750_vm2, %v877_v41, %v879_v52  ;;  %v887_v19 = vrot.slane %v10861_v28, 1  ;;  %v889_v10 = vrot.slane %v10863_v13, 1  ;;  %v883_v50 = vsel %vm750_vm2, %v881_v27, %v882_v37  ;;  %7675 = vrot.lane.b32.xlu1 %v10867_v46, %s10061_s21  ;;  %v10911_v27 = vld [vmem:[#allocation2 + $0x318] sm:$0xff] }
  0x7b   :  { %18147 = vst [vmem:[#allocation69_spill] sm:$0xff] %v10850_v11  ;;  %18148 = vst [vmem:[#allocation70_spill] sm:$0xff] %v10852_v61  ;;  %v10893_v11 = vld [vmem:[#allocation2 + $0x2f8] sm:$0x3]  ;;  %v10895_v61 = vld [vmem:[#allocation2 + $0x300] sm:$0xff]  ;;  %v885_v35 = vsel %vm750_vm2, %v882_v37, %v884_v36  ;;  %v891_v9 = vrot.slane %v10872_v17, 1  ;;  %v10906_v41 = vpack.i.bf16 %v880_v62, %v878_v42 }
  0x7c   :  { %18149 = vst [vmem:[#allocation71_spill] sm:$0xff] %v10854_v49  ;;  %18150 = vst [vmem:[#allocation72_spill] sm:$0xff] %v10859_v59  ;;  %v10902_v49 = vld [vmem:[#allocation2 + $0x310] sm:$0x3]  ;;  %v888_v52 = vsel %vm750_vm2, %v886_v16, %v887_v19  ;;  %v894_v37 = vrot.slane %v10881_v21, 1  ;;  %v896_v36 = vrot.slane %v10883_v51, 1  ;;  %v10920_v42 = vpack.i.bf16 %v885_v35, %v883_v50 }
  0x7d   :  { %18151 = vst [vmem:[#allocation73_spill] sm:$0xff] %v10861_v28  ;;  %18152 = vst [vmem:[#allocation74_spill] sm:$0xff] %v10863_v13  ;;  %v890_v13 = vsel %vm750_vm2, %v887_v19, %v889_v10  ;;  %v892_v28 = vrot.slane %v10874_v60, 1  ;;  %v10916_v59 = vld [vmem:[#allocation2 + $0x320] sm:$0xff]  ;;  %7680 = vrot.lane.b32.xlu0 %v10876_v23, %s10061_s21  ;;  %v899_v19 = vrot.slane %v10893_v11, 1 }
  0x7e   :  { %18153 = vst [vmem:[#allocation75_spill] sm:$0xff] %v10867_v46  ;;  %18154 = vst [vmem:[#allocation76_spill] sm:$0xff] %v10872_v17  ;;  %v897_v17 = vrot.slane %v10885_v22, 1  ;;  %v10922_v62 = vpack.i.bf16 %v890_v13, %v888_v52  ;;  %v10926_v10 = vld [vmem:[#allocation2 + $0x328] sm:$0x3] }
  0x7f   :  { %18155 = vst [vmem:[#allocation77_spill] sm:$0xff] %v10876_v23  ;;  %18156 = vst [vmem:[#allocation78_spill] sm:$0xff] %v10881_v21  ;;  %v893_v16 = vsel %vm750_vm2, %v891_v9, %v892_v28  ;;  %v895_v46 = vsel %vm750_vm2, %v892_v28, %v894_v37  ;;  %v904_v21 = vrot.slane %v10902_v49, 1 }
  0x80   :  { %18157 = vst [vmem:[#allocation79_spill] sm:$0xff] %v10883_v51  ;;  %18158 = vst [vmem:[#allocation80_spill] sm:$0xff] %v10885_v22  ;;  %v901_v51 = vrot.slane %v10895_v61, 1  ;;  %v902_v22 = vrot.slane %v10900_v56, 1 }
  0x81   :  { %18159 = vst [vmem:[#allocation81_spill] sm:$0xff] %v10906_v41  ;;  %18160 = vst [vmem:[#allocation82_spill] sm:$0xff] %v10916_v59 }
  0x82   :  { %18161 = vst [vmem:[#allocation83_spill] sm:$0xff] %v10920_v42  ;;  %18162 = vst [vmem:[#allocation84_spill] sm:$0xff] %v10922_v62 }
  0x83   :  { %18163 = vst [vmem:[#allocation85_spill] sm:$0xff] %v10926_v10 }
  0x84   :  { %9 = vsyncpa [#allocation6], 0  ;;  %7685 = vrot.lane.b32.xlu1 %v10906_v41, %s10061_s21  ;;  %v898_v35 = vsel %vm750_vm2, %v896_v36, %v897_v17  ;;  %v900_v9 = vsel %vm750_vm2, %v897_v17, %v899_v19  ;;  %v906_v50 = vrot.slane %v10911_v27, 1  ;;  %v907_v13 = vrot.slane %v10916_v59, 1  ;;  %7690 = vrot.lane.b32.xlu0 %v10920_v42, %s10061_s21  ;;  %s10062_s25 = smov 8   ;;  %s10064_s29 = smov 16  }
  0x85   :  { %v1117_v28 = vrot.slane %v10406_v55, 2  ;;  %v909_v52 = vrot.slane %v10926_v10, 1  ;;  %v10942_v37 = vpack.i.bf16 %v895_v46, %v893_v16  ;;  %v18165_v23 = vrot.slane %v10387_v44, 2  ;;  %s10065_s30 = smov 20   ;;  %s10066_s5 = smov 24  }
  0x86   :  { %v18166_v41 = vrot.slane %v10385_v43, 2  ;;  %v18167_v17 = vrot.slane %v10389_v45, 2  ;;  %v1112_v55 = vrot.slane %v10422_v2, 2  ;;  %v10955_v10 = vpack.i.bf16 %v900_v9, %v898_v35  ;;  %s10067_s6 = smov 28   ;;  %s10069_s17 = smov 64  }
  0x87   :  { %18164 = vst [vmem:[#allocation86_spill] sm:$0xff] %v10942_v37  ;;  %v18168_v19 = vmov %v18165_v23  ;;  %v903_v42 = vsel %vm750_vm2, %v901_v51, %v902_v22  ;;  %v905_v46 = vsel %vm750_vm2, %v902_v22, %v904_v21  ;;  %v18170_v16 = vrot.slane %v10420_v0, 2  ;;  %s10071_s22 = smov 96  }
  0x88   :  { %v1106_v36 = vsel %vm1103_vm3, %v18166_v41, %v18165_v23  ;;  %v1108_v59 = vsel %vm1103_vm3, %v18168_v19, %v18167_v17  ;;  %18169 = vst [vmem:[#allocation87_spill] sm:$0xff] %v10955_v10  ;;  %v18171_v43 = vrot.slane %v10418_v63, 2  ;;  %7695 = vrot.lane.b32.xlu1 %v10922_v62, %s10061_s21  ;;  %v908_v44 = vsel %vm750_vm2, %v906_v50, %v907_v13 }
  0x89   :  { %v910_v45 = vsel %vm750_vm2, %v907_v13, %v909_v52  ;;  %v18172_v2 = vmov %v18170_v16  ;;  %v1114_v51 = vrot.slane %v10402_v53, 2  ;;  %v1115_v22 = vrot.slane %v10404_v54, 2  ;;  %7700 = vrot.lane.b32.xlu0 %v10942_v37, %s10061_s21 }
  0x8a   :  { %v1111_v23 = vsel %vm1103_vm3, %v18171_v43, %v18170_v16  ;;  %v1113_v41 = vsel %vm1103_vm3, %v18172_v2, %v1112_v55  ;;  %v1119_v63 = vrot.slane %v10426_v6, 2  ;;  %v1120_v35 = vrot.slane %v10428_v7, 2 }
  0x8b   :  { %v10972_v21 = vpack.i.bf16 %v1113_v41, %v1111_v23  ;;  %v10979_v9 = vpack.i.bf16 %v905_v46, %v903_v42  ;;  %v1122_v50 = vrot.slane %v10437_v12, 2  ;;  %v10984_v0 = vpack.i.bf16 %v910_v45, %v908_v44 }
  0x8c   :  { %7705 = vrot.lane.b32.xlu1 %v10955_v10, %s10061_s21  ;;  %v7719_v53 = vpack.i.bf16 %v1108_v59, %v1106_v36  ;;  %v1116_v13 = vsel %vm1103_vm3, %v1114_v51, %v1115_v22  ;;  %v1118_v54 = vsel %vm1103_vm3, %v1115_v22, %v1117_v28  ;;  %v1121_v6 = vsel %vm1103_vm3, %v1119_v63, %v1120_v35 }
  0x8d   :  { %18173 = vst [vmem:[#allocation88_spill] sm:$0xff] %v10979_v9  ;;  %18174 = vst [vmem:[#allocation89_spill] sm:$0xff] %v10984_v0  ;;  %v1124_v7 = vrot.slane %v10430_v8, 2  ;;  %7710 = vrot.lane.b32.xlu0 %v10979_v9, %s10061_s21  ;;  %v1123_v42 = vsel %vm1103_vm3, %v1120_v35, %v1122_v50  ;;  %v1125_v12 = vrot.slane %v10440_v14, 2  ;;  %v1127_v52 = vrot.slane %v10446_v18, 2  ;;  %v18180_v50 = vld [vmem:[#allocation15_spill] sm:$0xff] }
  0x8e   :  { %v1129_v17 = vrot.slane %v10449_v20, 2  ;;  %v1130_v59 = vrot.slane %v10455_v24, 2  ;;  %v1132_v36 = vrot.slane %v10457_v25, 2  ;;  %v1134_v28 = vrot.slane %v10459_v26, 2 }
  0x8f   :  { %v1135_v19 = vrot.slane %v10467_v32, 2  ;;  %v1137_v8 = vrot.slane %v10469_v33, 2  ;;  %v11004_v14 = vpack.i.bf16 %v1118_v54, %v1116_v13  ;;  %v11006_v18 = vpack.i.bf16 %v1123_v42, %v1121_v6  ;;  %v18181_v13 = vld [vmem:[#allocation16_spill] sm:$0xff]  ;;  %v18182_v6 = vld [vmem:[#allocation17_spill] sm:$0xff]  ;;  %v18183_v42 = vld [vmem:[#allocation18_spill] sm:$0xff] }
  0x90   :  { %7715 = vrot.lane.b32.xlu1 %v10984_v0, %s10061_s21  ;;  %v1126_v20 = vsel %vm1103_vm3, %v1124_v7, %v1125_v12  ;;  %v1128_v24 = vsel %vm1103_vm3, %v1125_v12, %v1127_v52  ;;  %v1131_v25 = vsel %vm1103_vm3, %v1129_v17, %v1130_v59  ;;  %v1133_v26 = vsel %vm1103_vm3, %v1130_v59, %v1132_v36 }
  0x91   :  { %7720 = vrot.lane.b32.xlu0 %v7719_v53, %s10062_s25  ;;  %18175 = vst [vmem:[#allocation90_spill] sm:$0xff] %v11004_v14  ;;  %18176 = vst [vmem:[#allocation91_spill] sm:$0xff] %v11006_v18  ;;  %v1136_v32 = vsel %vm1103_vm3, %v1134_v28, %v1135_v19  ;;  %v1139_v55 = vrot.slane %v10471_v34, 2  ;;  %v1138_v33 = vsel %vm1103_vm3, %v1135_v19, %v1137_v8  ;;  %v1140_v46 = vrot.slane %v10480_v39, 2  ;;  %v18188_v19 = vld [vmem:[#allocation34_spill] sm:$0xff] }
  0x92   :  { %v1142_v16 = vrot.slane %v10488_v47, 2  ;;  %v1144_v43 = vrot.slane %v10490_v48, 2  ;;  %v1145_v23 = vrot.slane %v10496_v57, 2  ;;  %v1147_v44 = vrot.slane %v10498_v58, 2 }
  0x93   :  { %v1149_v45 = vrot.slane %v10505_v3, 2  ;;  %v1150_v2 = vrot.slane %v10507_v4, 2  ;;  %v11026_v34 = vpack.i.bf16 %v1128_v24, %v1126_v20  ;;  %v1152_v41 = vrot.slane %v10509_v5, 2 }
  0x94   :  { %7725 = vrot.lane.b32.xlu1 %v10972_v21, %s10062_s25  ;;  %v11031_v39 = vpack.i.bf16 %v1133_v26, %v1131_v25  ;;  %v11033_v47 = vpack.i.bf16 %v1138_v33, %v1136_v32  ;;  %v1141_v48 = vsel %vm1103_vm3, %v1139_v55, %v1140_v46  ;;  %v1143_v57 = vsel %vm1103_vm3, %v1140_v46, %v1142_v16  ;;  %v18191_v55 = vld [vmem:[#allocation24_spill] sm:$0xff] }
  0x95   :  { %7730 = vrot.lane.b32.xlu0 %v11004_v14, %s10062_s25  ;;  %18177 = vst [vmem:[#allocation92_spill] sm:$0xff] %v11026_v34  ;;  %v1146_v58 = vsel %vm1103_vm3, %v1144_v43, %v1145_v23  ;;  %v1148_v3 = vsel %vm1103_vm3, %v1145_v23, %v1147_v44  ;;  %v1151_v4 = vsel %vm1103_vm3, %v1149_v45, %v1150_v2  ;;  %v1154_v51 = vrot.slane %v10518_v15, 2  ;;  %v18192_v23 = vld [vmem:[#allocation25_spill] sm:$0xff]  ;;  %v18193_v45 = vld [vmem:[#allocation26_spill] sm:$0xff] }
  0x96   :  { %18178 = vst [vmem:[#allocation93_spill] sm:$0xff] %v11031_v39  ;;  %18179 = vst [vmem:[#allocation94_spill] sm:$0xff] %v11033_v47  ;;  %v1153_v5 = vsel %vm1103_vm3, %v1150_v2, %v1152_v41  ;;  %v1155_v22 = vrot.slane %v10529_v29, 2  ;;  %v1157_v63 = vrot.slane %v10531_v30, 2  ;;  %v1159_v35 = vrot.slane %v10537_v40, 2  ;;  %v18186_v29 = vld [vmem:[#allocation21_spill] sm:$0xff] }
  0x97   :  { %v1160_v53 = vrot.slane %v18180_v50, 2  ;;  %v1162_v54 = vrot.slane %v18181_v13, 2  ;;  %v1164_v7 = vrot.slane %v18182_v6, 2  ;;  %v1165_v12 = vrot.slane %v18183_v42, 2  ;;  %v18200_v50 = vld [vmem:[#allocation31_spill] sm:$0xff]  ;;  %v18201_v13 = vld [vmem:[#allocation32_spill] sm:$0xff] }
  0x98   :  { %7735 = vrot.lane.b32.xlu1 %v11006_v18, %s10062_s25  ;;  %v11053_v15 = vpack.i.bf16 %v1143_v57, %v1141_v48  ;;  %v11055_v52 = vpack.i.bf16 %v1148_v3, %v1146_v58  ;;  %v1167_v17 = vrot.slane %v18186_v29, 2  ;;  %v1189_v30 = vrot.slane %v10609_v31, 2  ;;  %v18189_v31 = vld [vmem:[#allocation22_spill] sm:$0xff]  ;;  %v18196_v57 = vld [vmem:[#allocation27_spill] sm:$0xff] }
  0x99   :  { %7740 = vrot.lane.b32.xlu0 %v11026_v34, %s10062_s25  ;;  %v1190_v40 = vrot.slane %v10628_v1, 2  ;;  %v11062_v59 = vpack.i.bf16 %v1153_v5, %v1151_v4  ;;  %v1156_v36 = vsel %vm1103_vm3, %v1154_v51, %v1155_v22  ;;  %v1158_v28 = vsel %vm1103_vm3, %v1155_v22, %v1157_v63  ;;  %v18190_v1 = vld [vmem:[#allocation23_spill] sm:$0xff]  ;;  %v18199_v63 = vld [vmem:[#allocation28_spill] sm:$0xff] }
  0x9a   :  { %18184 = vst [vmem:[#allocation15_spill] sm:$0xff] %v11053_v15  ;;  %18185 = vst [vmem:[#allocation16_spill] sm:$0xff] %v11055_v52  ;;  %v1192_v8 = vrot.slane %v18188_v19, 2  ;;  %v1161_v20 = vsel %vm1103_vm3, %v1159_v35, %v1160_v53  ;;  %v1163_v24 = vsel %vm1103_vm3, %v1160_v53, %v1162_v54  ;;  %v1166_v25 = vsel %vm1103_vm3, %v1164_v7, %v1165_v12  ;;  %v9820_v7 = vld [vmem:[#allocation2 + $0x1b0] sm:$0xff] }
  0x9b   :  { %18187 = vst [vmem:[#allocation17_spill] sm:$0xff] %v11062_v59  ;;  %v1169_v26 = vrot.slane %v18189_v31, 2  ;;  %v1170_v32 = vrot.slane %v18190_v1, 2  ;;  %v1172_v33 = vrot.slane %v18191_v55, 2  ;;  %v1191_v46 = vsel %vm1103_vm3, %v1189_v30, %v1190_v40 }
  0x9c   :  { %7745 = vrot.lane.b32.xlu1 %v11031_v39, %s10062_s25  ;;  %v1193_v16 = vsel %vm1103_vm3, %v1190_v40, %v1192_v8  ;;  %v1168_v43 = vsel %vm1103_vm3, %v1165_v12, %v1167_v17  ;;  %v1174_v44 = vrot.slane %v18192_v23, 2  ;;  %v1175_v2 = vrot.slane %v18193_v45, 2  ;;  %v18202_v12 = vld [vmem:[#allocation13_spill] sm:$0xff] }
  0x9d   :  { %7750 = vrot.lane.b32.xlu0 %v11033_v47, %s10062_s25  ;;  %v11080_v41 = vpack.i.bf16 %v1193_v16, %v1191_v46  ;;  %v11084_v48 = vpack.i.bf16 %v1158_v28, %v1156_v36  ;;  %v1177_v58 = vrot.slane %v18196_v57, 2  ;;  %v11089_v3 = vpack.i.bf16 %v1163_v24, %v1161_v20  ;;  %v18203_v17 = vld [vmem:[#allocation33_spill] sm:$0xff]  ;;  %v18210_v16 = vld [vmem:[#allocation44_spill] sm:$0xff] }
  0x9e   :  { %v11091_v4 = vpack.i.bf16 %v1168_v43, %v1166_v25  ;;  %v1171_v51 = vsel %vm1103_vm3, %v1169_v26, %v1170_v32  ;;  %v1173_v5 = vsel %vm1103_vm3, %v1170_v32, %v1172_v33  ;;  %v1176_v22 = vsel %vm1103_vm3, %v1174_v44, %v1175_v2  ;;  %v18206_v25 = vld [vmem:[#allocation41_spill] sm:$0xff]  ;;  %v18207_v26 = vld [vmem:[#allocation42_spill] sm:$0xff]  ;;  %v18209_v33 = vld [vmem:[#allocation43_spill] sm:$0xff] }
  0x9f   :  { %18194 = vst [vmem:[#allocation18_spill] sm:$0xff] %v11080_v41  ;;  %18195 = vst [vmem:[#allocation21_spill] sm:$0xff] %v11084_v48  ;;  %v1179_v35 = vrot.slane %v18199_v63, 2  ;;  %v1180_v53 = vrot.slane %v18200_v50, 2  ;;  %v1182_v54 = vrot.slane %v18201_v13, 2  ;;  %v1178_v6 = vsel %vm1103_vm3, %v1175_v2, %v1177_v58  ;;  %v18211_v23 = vld [vmem:[#allocation45_spill] sm:$0xff] }
  0xa0   :  { %7755 = vrot.lane.b32.xlu1 %v11053_v15, %s10062_s25  ;;  %18197 = vst [vmem:[#allocation34_spill] sm:$0xff] %v11089_v3  ;;  %18198 = vst [vmem:[#allocation22_spill] sm:$0xff] %v11091_v4  ;;  %v1184_v42 = vrot.slane %v9820_v7, 2  ;;  %v1185_v29 = vrot.slane %v18202_v12, 2  ;;  %v1187_v30 = vrot.slane %v18203_v17, 2  ;;  %v11106_v40 = vpack.i.bf16 %v1173_v5, %v1171_v51  ;;  %v18212_v2 = vld [vmem:[#allocation46_spill] sm:$0xff] }
  0xa1   :  { %7760 = vrot.lane.b32.xlu0 %v11055_v52, %s10062_s25  ;;  %v11108_v36 = vpack.i.bf16 %v1178_v6, %v1176_v22  ;;  %v1181_v28 = vsel %vm1103_vm3, %v1179_v35, %v1180_v53  ;;  %v1183_v19 = vsel %vm1103_vm3, %v1180_v53, %v1182_v54  ;;  %v1194_v24 = vrot.slane %v10738_v38, 2  ;;  %v18213_v58 = vld [vmem:[#allocation47_spill] sm:$0xff]  ;;  %v18214_v5 = vld [vmem:[#allocation48_spill] sm:$0xff]  ;;  %v18215_v35 = vld [vmem:[#allocation49_spill] sm:$0xff] }
  0xa2   :  { %18204 = vst [vmem:[#allocation23_spill] sm:$0xff] %v11106_v40  ;;  %v1186_v8 = vsel %vm1103_vm3, %v1184_v42, %v1185_v29  ;;  %v1188_v20 = vsel %vm1103_vm3, %v1185_v29, %v1187_v30  ;;  %v1195_v31 = vrot.slane %v18206_v25, 2  ;;  %v1197_v1 = vrot.slane %v18207_v26, 2  ;;  %v18216_v53 = vld [vmem:[#allocation50_spill] sm:$0xff]  ;;  %v18217_v54 = vld [vmem:[#allocation52_spill] sm:$0xff]  ;;  %v18219_v30 = vld [vmem:[#allocation53_spill] sm:$0xff] }
  0xa3   :  { %18205 = vst [vmem:[#allocation24_spill] sm:$0xff] %v11108_v36  ;;  %v11121_v32 = vpack.i.bf16 %v1183_v19, %v1181_v28  ;;  %v7799_v55 = vpack.i.bf16 %v1188_v20, %v1186_v8  ;;  %v1199_v46 = vrot.slane %v18209_v33, 2  ;;  %v1200_v43 = vrot.slane %v18210_v16, 2  ;;  %v18220_v20 = vld [vmem:[#allocation54_spill] sm:$0xff] }
  0xa4   :  { %7765 = vrot.lane.b32.xlu1 %v11062_v59, %s10062_s25  ;;  %v1202_v44 = vrot.slane %v18211_v23, 2  ;;  %v1196_v45 = vsel %vm1103_vm3, %v1194_v24, %v1195_v31  ;;  %v1204_v57 = vrot.slane %v18212_v2, 2  ;;  %v1205_v51 = vrot.slane %v18213_v58, 2 }
  0xa5   :  { %7770 = vrot.lane.b32.xlu0 %v11084_v48, %s10062_s25  ;;  %18208 = vst [vmem:[#allocation25_spill] sm:$0xff] %v11121_v32  ;;  %v1207_v22 = vrot.slane %v18214_v5, 2  ;;  %v1198_v63 = vsel %vm1103_vm3, %v1195_v31, %v1197_v1  ;;  %v1209_v50 = vrot.slane %v18215_v35, 2  ;;  %v1210_v13 = vrot.slane %v18216_v53, 2  ;;  %v18221_v31 = vld [vmem:[#allocation55_spill] sm:$0xff] }
  0xa6   :  { %v1212_v6 = vrot.slane %v18217_v54, 2  ;;  %v1201_v7 = vsel %vm1103_vm3, %v1199_v46, %v1200_v43  ;;  %v1203_v42 = vsel %vm1103_vm3, %v1200_v43, %v1202_v44  ;;  %v11141_v12 = vpack.i.bf16 %v1198_v63, %v1196_v45  ;;  %v18224_v43 = vld [vmem:[#allocation58_spill] sm:$0xff]  ;;  %v18225_v44 = vld [vmem:[#allocation59_spill] sm:$0xff] }
  0xa7   :  { %v1206_v29 = vsel %vm1103_vm3, %v1204_v57, %v1205_v51  ;;  %v1208_v17 = vsel %vm1103_vm3, %v1205_v51, %v1207_v22  ;;  %v1214_v28 = vrot.slane %v18219_v30, 2  ;;  %v1211_v19 = vsel %vm1103_vm3, %v1209_v50, %v1210_v13  ;;  %v7288_v57 = vld [vmem:[%s17479_s0 + $0x78] sm:$0xff]   ;;  %v18228_v22 = vld [vmem:[#allocation60_spill] sm:$0xff]  ;;  %v18229_v50 = vld [vmem:[#allocation62_spill] sm:$0xff] }
  0xa8   :  { %7775 = vrot.lane.b32.xlu1 %v11089_v3, %s10062_s25  ;;  %18218 = vst [vmem:[#allocation26_spill] sm:$0xff] %v11141_v12  ;;  %v1213_v8 = vsel %vm1103_vm3, %v1210_v13, %v1212_v6  ;;  %v1215_v24 = vrot.slane %v18220_v20, 2  ;;  %v1217_v26 = vrot.slane %v18221_v31, 2  ;;  %v11152_v1 = vpack.i.bf16 %v1203_v42, %v1201_v7  ;;  %v18230_v7 = vld [vmem:[#allocation63_spill] sm:$0xff]  ;;  %v18231_v31 = vld [vmem:[#allocation64_spill] sm:$0xff] }
  0xa9   :  { %7780 = vrot.lane.b32.xlu0 %v11091_v4, %s10062_s25  ;;  %v1220_v23 = vrot.slane %v18224_v43, 2  ;;  %v1222_v45 = vrot.slane %v18225_v44, 2  ;;  %v11162_v51 = vpack.i.bf16 %v1208_v17, %v1206_v29  ;;  %v11164_v5 = vpack.i.bf16 %v1213_v8, %v1211_v19  ;;  %v18233_v17 = vld [vmem:[#allocation67_spill] sm:$0xff] }
  0xaa   :  { %18222 = vst [vmem:[#allocation27_spill] sm:$0xff] %v11152_v1  ;;  %v1224_v63 = vrot.slane %v18228_v22, 2  ;;  %v1225_v13 = vrot.slane %v18229_v50, 2  ;;  %v1216_v54 = vsel %vm1103_vm3, %v1214_v28, %v1215_v24  ;;  %v1218_v6 = vsel %vm1103_vm3, %v1215_v24, %v1217_v26  ;;  %v7304_v28 = vld [vmem:[%s17479_s0 + $0xf8] sm:$0xff]   ;;  %s10063_s0 = smov 12  }
  0xab   :  { %18226 = vst [vmem:[#allocation28_spill] sm:$0xff] %v11162_v51  ;;  %18227 = vst [vmem:[#allocation31_spill] sm:$0xff] %v11164_v5  ;;  %v1227_v42 = vrot.slane %v18230_v7, 2  ;;  %v1229_v44 = vrot.slane %v18231_v31, 2  ;;  %v1232_v19 = vrot.slane %v18233_v17, 2  ;;  %v7208_v8 = vunpack.c.l.bf16 %v7288_v57  ;;  %v18237_v17 = vld [vmem:[#allocation70_spill] sm:$0xff] }
  0xac   :  { %7785 = vrot.lane.b32.xlu1 %v11106_v40, %s10062_s25  ;;  %v11183_v24 = vpack.i.bf16 %v1218_v6, %v1216_v54  ;;  %v1226_v26 = vsel %vm1103_vm3, %v1224_v63, %v1225_v13  ;;  %v7272_v6 = vunpack.c.l.bf16 %v7304_v28  ;;  %v18240_v40 = vld [vmem:[#allocation73_spill] sm:$0xff]  ;;  %v7273_v3 = vunpack.c.h.bf16 %v7304_v28 }
  0xad   :  { %7790 = vrot.lane.b32.xlu0 %v11108_v36, %s10062_s25  ;;  %v1223_v36 = vsel %vm1103_vm3, %v1220_v23, %v1222_v45  ;;  %506 = vst.msk [vmem:[#allocation2 + $0x181] sm:$0xff] %vm19_vm0, %v7208_v8  ;;  %v18239_v8 = vld [vmem:[#allocation72_spill] sm:$0xff]  ;;  %vm2724_vm4 = vcmask 64512   ;;  %vm2789_vm5 = vcmask 97280   ;;  %vm2854_vm6 = vcmask 130048  }
  0xae   :  { %18234 = vst [vmem:[#allocation32_spill] sm:$0xff] %v11183_v24  ;;  %538 = vst.msk [vmem:[#allocation2 + $0x331] sm:$0xff] %vm19_vm0, %v7272_v6  ;;  %vm2919_vm7 = vcmask 162816   ;;  %vm129_vm8 = vcmask 261120   ;;  %vm3328_vm9 = vcmask 1041408   ;;  %vm2984_vm10 = vcmask 195584  }
  0xaf   :  { %539 = vst.msk [vmem:[#allocation2 + $0x339] sm:$0xff] %vm19_vm0, %v7273_v3  ;;  %vm3049_vm11 = vcmask 228352   ;;  %vm3231_vm12 = vcmask 293888   ;;  %vm132_vm13 = vcmask 254976   ;;  %vm5708_vm14 = vcmask 523264  }
  0xb0   :  { %7795 = vrot.lane.b32.xlu1 %v11121_v32, %s10062_s25  ;;  %vm5773_vm15 = vcmask 785408  }
  0xb1   :  { %7800 = vrot.lane.b32.xlu0 %v7799_v55, %s10062_s25  ;;  %v18223_v55 = vld [vmem:[#allocation56_spill] sm:$0xff] }
  0xb2   :  { %v1219_v46 = vrot.slane %v18223_v55, 2 }
  0xb4   :  { %7805 = vrot.lane.b32.xlu1 %v11080_v41, %s10062_s25  ;;  %v7209_v41 = vunpack.c.h.bf16 %v7288_v57  ;;  %v1221_v32 = vsel %vm1103_vm3, %v1219_v46, %v1220_v23  ;;  %v1228_v57 = vsel %vm1103_vm3, %v1225_v13, %v1227_v42  ;;  %v18235_v46 = vld [vmem:[#allocation68_spill] sm:$0xff]  ;;  %v18236_v23 = vld [vmem:[#allocation69_spill] sm:$0xff]  ;;  %v1240_v13 = vrot.slane %v18240_v40, 2  ;;  %v18241_v42 = vld [vmem:[#allocation74_spill] sm:$0xff] }
  0xb5   :  { %7810 = vrot.lane.b32.xlu0 %v11141_v12, %s10062_s25  ;;  %v18232_v12 = vld [vmem:[#allocation66_spill] sm:$0xff]  ;;  %v1234_v7 = vrot.slane %v18235_v46, 2  ;;  %v1235_v45 = vrot.slane %v18236_v23, 2  ;;  %v1242_v4 = vrot.slane %v18241_v42, 2  ;;  %v18247_v42 = vld [vmem:[#allocation80_spill] sm:$0xff] }
  0xb6   :  { %v1230_v29 = vrot.slane %v18232_v12, 2  ;;  %507 = vst.msk [vmem:[#allocation2 + $0x189] sm:$0xff] %vm19_vm0, %v7209_v41  ;;  %v1239_v41 = vrot.slane %v18239_v8, 2 }
  0xb7   :  { %v1243_v6 = vsel %vm1103_vm3, %v1240_v13, %v1242_v4 }
  0xb8   :  { %7815 = vrot.lane.b32.xlu1 %v11152_v1, %s10062_s25  ;;  %v1237_v1 = vrot.slane %v18237_v17, 2  ;;  %v1231_v54 = vsel %vm1103_vm3, %v1229_v44, %v1230_v29  ;;  %v1233_v63 = vsel %vm1103_vm3, %v1230_v29, %v1232_v19  ;;  %v11203_v17 = vpack.i.bf16 %v1228_v57, %v1226_v26  ;;  %v18244_v19 = vld [vmem:[#allocation78_spill] sm:$0xff]  ;;  %v18246_v26 = vld [vmem:[#allocation79_spill] sm:$0xff] }
  0xb9   :  { %7820 = vrot.lane.b32.xlu0 %v11162_v51, %s10062_s25  ;;  %v11194_v51 = vpack.i.bf16 %v1223_v36, %v1221_v32  ;;  %v1245_v32 = vrot.slane %v10874_v60, 2  ;;  %v1236_v44 = vsel %vm1103_vm3, %v1234_v7, %v1235_v45  ;;  %v1247_v48 = vrot.slane %v18244_v19, 2 }
  0xba   :  { %18242 = vst [vmem:[#allocation33_spill] sm:$0xff] %v11203_v17  ;;  %v1238_v29 = vsel %vm1103_vm3, %v1235_v45, %v1237_v1  ;;  %v11214_v28 = vpack.i.bf16 %v1233_v63, %v1231_v54  ;;  %v1249_v57 = vrot.slane %v18246_v26, 2  ;;  %v1241_v59 = vsel %vm1103_vm3, %v1239_v41, %v1240_v13  ;;  %v11226_v45 = vpop.permute.xlu0 %7560 }
  0xbb   :  { %18238 = vst [vmem:[#allocation13_spill] sm:$0xff] %v11194_v51  ;;  %v1252_v7 = vrot.slane %v10893_v11, 2  ;;  %v11223_v1 = vpack.i.bf16 %v1238_v29, %v1236_v44  ;;  %18249 = vst [vmem:[#allocation43_spill] sm:$0xff] %v11226_v45  ;;  %v1248_v54 = vsel %vm1103_vm3, %v1245_v32, %v1247_v48  ;;  %v1254_v63 = vrot.slane %v10895_v61, 2  ;;  %v18251_v44 = vld [vmem:[#allocation82_spill] sm:$0xff]  ;;  %v18252_v48 = vld [vmem:[#allocation85_spill] sm:$0xff]  ;;  %v11241_v45 = vpop.permute.xlu1 %7570 }
  0xbc   :  { %7825 = vrot.lane.b32.xlu1 %v11164_v5, %s10062_s25  ;;  %v18243_v5 = vld [vmem:[#allocation76_spill] sm:$0xff]  ;;  %18245 = vst [vmem:[#allocation41_spill] sm:$0xff] %v11214_v28  ;;  %v1255_v19 = vrot.slane %v10900_v56, 2  ;;  %v1257_v41 = vrot.slane %v10902_v49, 2  ;;  %v11234_v11 = vpack.i.bf16 %v1243_v6, %v1241_v59  ;;  %v1260_v29 = vrot.slane %v18251_v44, 2  ;;  %18253 = vst [vmem:[#allocation45_spill] sm:$0xff] %v11241_v45 }
  0xbd   :  { %7830 = vrot.lane.b32.xlu0 %v11183_v24, %s10062_s25  ;;  %v1244_v36 = vrot.slane %v18243_v5, 2  ;;  %v1250_v24 = vrot.slane %v18247_v42, 2  ;;  %18248 = vst [vmem:[#allocation42_spill] sm:$0xff] %v11223_v1 }
  0xbe   :  { %18250 = vst [vmem:[#allocation44_spill] sm:$0xff] %v11234_v11  ;;  %v1256_v59 = vsel %vm1103_vm3, %v1254_v63, %v1255_v19 }
  0xbf   :  { %v1246_v3 = vsel %vm1103_vm3, %v1244_v36, %v1245_v32  ;;  %v1251_v4 = vsel %vm1103_vm3, %v1249_v57, %v1250_v24  ;;  %v1253_v13 = vsel %vm1103_vm3, %v1250_v24, %v1252_v7  ;;  %v1259_v36 = vrot.slane %v10911_v27, 2 }
  0xc0   :  { %7835 = vrot.lane.b32.xlu1 %v11194_v51, %s10062_s25  ;;  %v1262_v32 = vrot.slane %v18252_v48, 2  ;;  %v11245_v49 = vpack.i.bf16 %v1248_v54, %v1246_v3  ;;  %v1258_v57 = vsel %vm1103_vm3, %v1255_v19, %v1257_v41  ;;  %v11253_v24 = vpack.i.bf16 %v1253_v13, %v1251_v4  ;;  %v11257_v48 = vpop.permute.xlu1 %7575  ;;  %v9821_v41 = vld [vmem:[#allocation2 + $0x18] sm:$0xff]  ;;  %v9822_v4 = vld [vmem:[#allocation2 + $0x20] sm:$0xff] }
  0xc1   :  { %7840 = vrot.lane.b32.xlu0 %v11203_v17, %s10062_s25  ;;  %v1261_v6 = vsel %vm1103_vm3, %v1259_v36, %v1260_v29  ;;  %18257 = vst [vmem:[#allocation49_spill] sm:$0xff] %v11257_v48  ;;  %v11261_v3 = vpack.i.bf16 %v1258_v57, %v1256_v59  ;;  %v7879_v13 = vpack.i.bf16 %v9822_v4, %v9821_v41  ;;  %v9827_v41 = vld [vmem:[#allocation2 + $0x60] sm:$0xff]  ;;  %v9828_v4 = vld [vmem:[#allocation2 + $0x68] sm:$0xff] }
  0xc2   :  { %18254 = vst [vmem:[#allocation46_spill] sm:$0xff] %v11245_v49  ;;  %18256 = vst [vmem:[#allocation48_spill] sm:$0xff] %v11253_v24  ;;  %v1263_v7 = vsel %vm1103_vm3, %v1260_v29, %v1262_v32  ;;  %v9823_v29 = vld [vmem:[#allocation2 + $0x30] sm:$0xff]  ;;  %v9824_v32 = vld [vmem:[#allocation2 + $0x38] sm:$0xff] }
  0xc3   :  { %18258 = vst [vmem:[#allocation50_spill] sm:$0xff] %v11261_v3  ;;  %v11267_v63 = vpack.i.bf16 %v1263_v7, %v1261_v6  ;;  %v11277_v59 = vpack.i.bf16 %v9824_v32, %v9823_v29  ;;  %v9825_v6 = vld [vmem:[#allocation2 + $0x48] sm:$0xff]  ;;  %v9826_v7 = vld [vmem:[#allocation2 + $0x50] sm:$0xff]  ;;  %v9829_v32 = vld [vmem:[#allocation2 + $0x78] sm:$0xff] }
  0xc4   :  { %7845 = vrot.lane.b32.xlu1 %v11214_v28, %s10062_s25  ;;  %v11247_v28 = vpop.permute.xlu0 %7565  ;;  %v11269_v19 = vpop.permute.xlu1 %7585 }
  0xc5   :  { %7850 = vrot.lane.b32.xlu0 %v11223_v1, %s10062_s25  ;;  %18255 = vst [vmem:[#allocation47_spill] sm:$0xff] %v11247_v28  ;;  %18260 = vst [vmem:[#allocation53_spill] sm:$0xff] %v11267_v63 }
  0xc6   :  { %18261 = vst [vmem:[#allocation54_spill] sm:$0xff] %v11269_v19  ;;  %18263 = vst [vmem:[#allocation56_spill] sm:$0xff] %v11277_v59  ;;  %v11282_v19 = vpack.i.bf16 %v9826_v7, %v9825_v6  ;;  %v9831_v7 = vld [vmem:[#allocation2 + $0x90] sm:$0xff] }
  0xc8   :  { %7855 = vrot.lane.b32.xlu1 %v11234_v11, %s10062_s25  ;;  %v11263_v54 = vpop.permute.xlu0 %7580  ;;  %v11279_v57 = vpop.permute.xlu1 %7595  ;;  %18265 = vst [vmem:[#allocation59_spill] sm:$0xff] %v11282_v19 }
  0xc9   :  { %7860 = vrot.lane.b32.xlu0 %v11245_v49, %s10062_s25  ;;  %18259 = vst [vmem:[#allocation52_spill] sm:$0xff] %v11263_v54  ;;  %18264 = vst [vmem:[#allocation58_spill] sm:$0xff] %v11279_v57 }
  0xcc   :  { %7865 = vrot.lane.b32.xlu1 %v11253_v24, %s10062_s25  ;;  %v11273_v36 = vpop.permute.xlu0 %7590  ;;  %v11290_v29 = vpop.permute.xlu1 %7605 }
  0xcd   :  { %7870 = vrot.lane.b32.xlu0 %v11261_v3, %s10062_s25  ;;  %18262 = vst [vmem:[#allocation55_spill] sm:$0xff] %v11273_v36  ;;  %v11288_v36 = vpack.i.bf16 %v9828_v4, %v9827_v41  ;;  %18268 = vst [vmem:[#allocation63_spill] sm:$0xff] %v11290_v29  ;;  %v9833_v4 = vld [vmem:[#allocation2 + $0xa8] sm:$0xff]  ;;  %v9834_v29 = vld [vmem:[#allocation2 + $0xb0] sm:$0xff]  ;;  %v7974_v3 = vpack.i.bf16 %v18213_v58, %v18212_v2  ;;  %v7989_v2 = vpack.i.bf16 %v18224_v43, %v18223_v55 }
  0xce   :  { %v11306_v28 = vpack.i.bf16 %v9834_v29, %v9833_v4  ;;  %v9839_v4 = vld [vmem:[#allocation2 + $0xf0] sm:$0xff]  ;;  %v8004_v55 = vpack.i.bf16 %v18236_v23, %v18235_v46  ;;  %v8019_v46 = vpack.i.bf16 %v18247_v42, %v18246_v26 }
  0xcf   :  { %18267 = vst [vmem:[#allocation62_spill] sm:$0xff] %v11288_v36 }
  0xd0   :  { %7875 = vrot.lane.b32.xlu1 %v11267_v63, %s10062_s25  ;;  %v11284_v54 = vpop.permute.xlu0 %7600  ;;  %v11302_v41 = vpop.permute.xlu1 %7615  ;;  %18273 = vst [vmem:[#allocation69_spill] sm:$0xff] %v11306_v28 }
  0xd1   :  { %7880 = vrot.lane.b32.xlu0 %v7879_v13, %s10063_s0  ;;  %18266 = vst [vmem:[#allocation60_spill] sm:$0xff] %v11284_v54  ;;  %v9830_v13 = vld [vmem:[#allocation2 + $0x80] sm:$0xff]  ;;  %v9832_v54 = vld [vmem:[#allocation2 + $0x98] sm:$0xff]  ;;  %18272 = vst [vmem:[#allocation68_spill] sm:$0xff] %v11302_v41 }
  0xd2   :  { %v11294_v57 = vpack.i.bf16 %v9830_v13, %v9829_v32  ;;  %v11300_v48 = vpack.i.bf16 %v9832_v54, %v9831_v7  ;;  %v9835_v13 = vld [vmem:[#allocation2 + $0xc0] sm:$0xff]  ;;  %v9837_v7 = vld [vmem:[#allocation2 + $0xd8] sm:$0xff] }
  0xd3   :  { %v9838_v41 = vld [vmem:[#allocation2 + $0xe0] sm:$0xff] }
  0xd4   :  { %7885 = vrot.lane.b32.xlu1 %v11277_v59, %s10063_s0  ;;  %18269 = vst [vmem:[#allocation64_spill] sm:$0xff] %v11294_v57  ;;  %v11296_v6 = vpop.permute.xlu0 %7610  ;;  %18271 = vst [vmem:[#allocation67_spill] sm:$0xff] %v11300_v48  ;;  %v11314_v54 = vpop.permute.xlu1 %7625 }
  0xd5   :  { %7890 = vrot.lane.b32.xlu0 %v11282_v19, %s10063_s0  ;;  %18270 = vst [vmem:[#allocation66_spill] sm:$0xff] %v11296_v6  ;;  %v9836_v6 = vld [vmem:[#allocation2 + $0xc8] sm:$0xff]  ;;  %18276 = vst [vmem:[#allocation73_spill] sm:$0xff] %v11314_v54  ;;  %v9842_v54 = vld [vmem:[#allocation2 + $0x110] sm:$0xff] }
  0xd6   :  { %v11312_v45 = vpack.i.bf16 %v9836_v6, %v9835_v13  ;;  %v9841_v13 = vld [vmem:[#allocation2 + $0x108] sm:$0xff] }
  0xd7   :  { %v11372_v19 = vld [vmem:[#allocation2 + $0x1c8] sm:$0xff] }
  0xd8   :  { %7895 = vrot.lane.b32.xlu1 %v11288_v36, %s10063_s0  ;;  %v11308_v32 = vpop.permute.xlu0 %7620  ;;  %18275 = vst [vmem:[#allocation72_spill] sm:$0xff] %v11312_v45  ;;  %v11326_v6 = vpop.permute.xlu1 %7635 }
  0xd9   :  { %7900 = vrot.lane.b32.xlu0 %v11294_v57, %s10063_s0  ;;  %18274 = vst [vmem:[#allocation70_spill] sm:$0xff] %v11308_v32  ;;  %v11318_v57 = vpack.i.bf16 %v9838_v41, %v9837_v7  ;;  %v9840_v32 = vld [vmem:[#allocation2 + $0xf8] sm:$0xff]  ;;  %18280 = vst [vmem:[#allocation79_spill] sm:$0xff] %v11326_v6  ;;  %v9843_v7 = vld [vmem:[#allocation2 + $0x120] sm:$0xff] }
  0xda   :  { %v9846_v6 = vld [vmem:[#allocation2 + $0x140] sm:$0xff] }
  0xdb   :  { %18277 = vst [vmem:[#allocation74_spill] sm:$0xff] %v11318_v57 }
  0xdc   :  { %7905 = vrot.lane.b32.xlu1 %v11300_v48, %s10063_s0  ;;  %v11320_v29 = vpop.permute.xlu0 %7630  ;;  %v11324_v48 = vpack.i.bf16 %v9840_v32, %v9839_v4  ;;  %v11338_v32 = vpop.permute.xlu1 %7645  ;;  %v9845_v4 = vld [vmem:[#allocation2 + $0x138] sm:$0xff] }
  0xdd   :  { %7910 = vrot.lane.b32.xlu0 %v11306_v28, %s10063_s0  ;;  %18278 = vst [vmem:[#allocation76_spill] sm:$0xff] %v11320_v29  ;;  %v11330_v28 = vpack.i.bf16 %v9842_v54, %v9841_v13  ;;  %v9844_v29 = vld [vmem:[#allocation2 + $0x128] sm:$0xff]  ;;  %v9847_v13 = vld [vmem:[#allocation2 + $0x150] sm:$0xff] }
  0xde   :  { %18279 = vst [vmem:[#allocation78_spill] sm:$0xff] %v11324_v48 }
  0xdf   :  { %18281 = vst [vmem:[#allocation80_spill] sm:$0xff] %v11330_v28 }
  0xe0   :  { %7915 = vrot.lane.b32.xlu1 %v11312_v45, %s10063_s0  ;;  %v11332_v41 = vpop.permute.xlu0 %7640  ;;  %v11336_v45 = vpack.i.bf16 %v9844_v29, %v9843_v7  ;;  %v11350_v29 = vld [vmem:[#allocation2 + $0x180] sm:$0xff]  ;;  %v11352_v7 = vld [vmem:[#allocation2 + $0x188] sm:$0xff] }
  0xe1   :  { %7920 = vrot.lane.b32.xlu0 %v11318_v57, %s10063_s0  ;;  %18282 = vst [vmem:[#allocation82_spill] sm:$0xff] %v11332_v41  ;;  %v11342_v57 = vpack.i.bf16 %v9846_v6, %v9845_v4  ;;  %v9848_v41 = vld [vmem:[#allocation2 + $0x158] sm:$0xff]  ;;  %v9849_v6 = vld [vmem:[#allocation2 + $0x168] sm:$0xff]  ;;  %v9850_v4 = vld [vmem:[#allocation2 + $0x170] sm:$0xff] }
  0xe2   :  { %18283 = vst [vmem:[#allocation85_spill] sm:$0xff] %v11336_v45 }
  0xe3   :  { %18284 = vst [vmem:[#allocation95_spill] sm:$0xff] %v11342_v57  ;;  %v11354_v36 = vpop.permute.xlu1 %7655 }
  0xe4   :  { %7925 = vrot.lane.b32.xlu1 %v11324_v48, %s10063_s0  ;;  %v11346_v54 = vpop.permute.xlu0 %7650  ;;  %v11348_v48 = vpack.i.bf16 %v9848_v41, %v9847_v13  ;;  %v11366_v41 = vpack.i.bf16 %v11352_v7, %v11350_v29 }
  0xe5   :  { %7930 = vrot.lane.b32.xlu0 %v11330_v28, %s10063_s0  ;;  %v11358_v28 = vpack.i.bf16 %v9850_v4, %v9849_v6 }
  0xe6   :  { %18285 = vst [vmem:[#allocation96_spill] sm:$0xff] %v11348_v48  ;;  %18287 = vst [vmem:[#allocation98_spill] sm:$0xff] %v11366_v41 }
  0xe7   :  { %18286 = vst [vmem:[#allocation97_spill] sm:$0xff] %v11358_v28 }
  0xe8   :  { %7935 = vrot.lane.b32.xlu1 %v11336_v45, %s10063_s0  ;;  %v11362_v45 = vpop.permute.xlu0 %7660  ;;  %v11368_v13 = vpop.permute.xlu1 %7665 }
  0xe9   :  { %7940 = vrot.lane.b32.xlu0 %v11342_v57, %s10063_s0  ;;  %v11374_v57 = vld [vmem:[#allocation2 + $0x1d0] sm:$0xff] }
  0xea   :  { %v7959_v6 = vpack.i.bf16 %v11374_v57, %v11372_v19 }
  0xec   :  { %7945 = vrot.lane.b32.xlu1 %v11348_v48, %s10063_s0  ;;  %v11380_v4 = vpop.permute.xlu0 %7670  ;;  %v7964_v48 = vpack.i.bf16 %v18206_v25, %v10738_v38  ;;  %v11384_v59 = vpop.permute.xlu1 %7675  ;;  %v7979_v38 = vpack.i.bf16 %v18216_v53, %v18215_v35  ;;  %v7994_v35 = vpack.i.bf16 %v18229_v50, %v18228_v22  ;;  %v8009_v22 = vpack.i.bf16 %v18240_v40, %v18239_v8  ;;  %v11444_v8 = vld [vmem:[#allocation2 + $0x330] sm:$0xff] }
  0xed   :  { %7950 = vrot.lane.b32.xlu0 %v11358_v28, %s10063_s0  ;;  %v7969_v28 = vpack.i.bf16 %v18210_v16, %v18209_v33  ;;  %v7984_v33 = vpack.i.bf16 %v18220_v20, %v18219_v30  ;;  %v7999_v30 = vpack.i.bf16 %v18232_v12, %v18231_v31  ;;  %v8014_v12 = vpack.i.bf16 %v10874_v60, %v18243_v5 }
  0xee   :  { %v8024_v40 = vpack.i.bf16 %v10900_v56, %v10895_v61  ;;  %v8029_v60 = vpack.i.bf16 %v18251_v44, %v10911_v27  ;;  %v18296_v27 = vld [vmem:[#allocation9_spill] sm:$0xff]  ;;  %v18297_v44 = vld [vmem:[#allocation8_spill] sm:$0xff] }
  0xf0   :  { %7955 = vrot.lane.b32.xlu1 %v11366_v41, %s10063_s0  ;;  %v11390_v63 = vpop.permute.xlu0 %7680 }
  0xf1   :  { %7960 = vrot.lane.b32.xlu0 %v7959_v6, %s10063_s0 }
  0xf4   :  { %7965 = vrot.lane.b32.xlu1 %v7964_v48, %s10063_s0 }
  0xf5   :  { %7970 = vrot.lane.b32.xlu0 %v7969_v28, %s10063_s0  ;;  %v11446_v28 = vld [vmem:[#allocation2 + $0x338] sm:$0xff] }
  0xf6   :  { %v11394_v41 = vpop.permute.xlu1 %7685  ;;  %v11400_v25 = vpop.permute.xlu0 %7690  ;;  %v8034_v26 = vpack.i.bf16 %v11446_v28, %v11444_v8 }
  0xf8   :  { %7975 = vrot.lane.b32.xlu1 %v7974_v3, %s10063_s0 }
  0xf9   :  { %7980 = vrot.lane.b32.xlu0 %v7979_v38, %s10063_s0  ;;  %v18300_v38 = vld [vmem:[#allocation10_spill] sm:$0xff] }
  0xfa   :  { %v11404_v16 = vpop.permute.xlu1 %7695 }
  0xfb   :  { %v11410_v58 = vpop.permute.xlu0 %7700 }
  0xfc   :  { %7985 = vrot.lane.b32.xlu1 %v7984_v33, %s10063_s0  ;;  %v18301_v33 = vld [vmem:[#allocation11_spill] sm:$0xff] }
  0xfd   :  { %7990 = vrot.lane.b32.xlu0 %v7989_v2, %s10063_s0 }
  0xfe   :  { %v11414_v53 = vpop.permute.xlu1 %7705 }
  0xff   :  { %v11420_v20 = vpop.permute.xlu0 %7710 }
 0x100   :  { %7995 = vrot.lane.b32.xlu1 %v7994_v35, %s10063_s0 }
 0x101   :  { %8000 = vrot.lane.b32.xlu0 %v7999_v30, %s10063_s0  ;;  %v18304_v30 = vld [vmem:[#allocation12_spill] sm:$0xff] }
 0x102   :  { %v11424_v43 = vpop.permute.xlu1 %7715 }
 0x103   :  { %v11430_v50 = vpop.permute.xlu0 %7720 }
 0x104   :  { %8005 = vrot.lane.b32.xlu1 %v8004_v55, %s10063_s0  ;;  %18288 = vst [vmem:[#allocation99_spill] sm:$0xff] %v11430_v50  ;;  %v18305_v55 = vld [vmem:[#allocation14_spill] sm:$0xff] }
 0x105   :  { %8010 = vrot.lane.b32.xlu0 %v8009_v22, %s10063_s0 }
 0x106   :  { %v11434_v31 = vpop.permute.xlu1 %7725 }
 0x107   :  { %18289 = vst [vmem:[#allocation100_spill] sm:$0xff] %v11434_v31  ;;  %v11440_v23 = vpop.permute.xlu0 %7730 }
 0x108   :  { %8015 = vrot.lane.b32.xlu1 %v8014_v12, %s10063_s0  ;;  %18290 = vst [vmem:[#allocation101_spill] sm:$0xff] %v11440_v23  ;;  %v18318_v23 = vld [vmem:[#allocation38_spill] sm:$0xff] }
 0x109   :  { %8020 = vrot.lane.b32.xlu0 %v8019_v46, %s10063_s0  ;;  %v18308_v46 = vld [vmem:[#allocation19_spill] sm:$0xff] }
 0x10a   :  { %v11448_v48 = vpop.permute.xlu1 %7735 }
 0x10b   :  { %18291 = vst [vmem:[#allocation102_spill] sm:$0xff] %v11448_v48  ;;  %v11454_v5 = vpop.permute.xlu0 %7740  ;;  %v18317_v48 = vld [vmem:[#allocation37_spill] sm:$0xff] }
 0x10c   :  { %8025 = vrot.lane.b32.xlu1 %v8024_v40, %s10063_s0  ;;  %18292 = vst [vmem:[#allocation103_spill] sm:$0xff] %v11454_v5  ;;  %v18309_v40 = vld [vmem:[#allocation20_spill] sm:$0xff] }
 0x10d   :  { %8030 = vrot.lane.b32.xlu0 %v8029_v60, %s10063_s0 }
 0x10e   :  { %v11458_v42 = vpop.permute.xlu1 %7745 }
 0x10f   :  { %18293 = vst [vmem:[#allocation104_spill] sm:$0xff] %v11458_v42  ;;  %v11462_v56 = vpop.permute.xlu0 %7750 }
 0x110   :  { %8035 = vrot.lane.b32.xlu1 %v8034_v26, %s10063_s0  ;;  %18294 = vst [vmem:[#allocation105_spill] sm:$0xff] %v11462_v56 }
 0x111   :  { %8040 = vrot.lane.b32.xlu0 %v18296_v27, %s10064_s29  ;;  %v18312_v27 = vld [vmem:[#allocation29_spill] sm:$0xff] }
 0x112   :  { %v11464_v61 = vpop.permute.xlu1 %7755 }
 0x113   :  { %18295 = vst [vmem:[#allocation106_spill] sm:$0xff] %v11464_v61  ;;  %v11470_v3 = vpop.permute.xlu0 %7760 }
 0x114   :  { %8045 = vrot.lane.b32.xlu1 %v18297_v44, %s10064_s29  ;;  %18298 = vst [vmem:[#allocation9_spill] sm:$0xff] %v11470_v3 }
 0x115   :  { %8050 = vrot.lane.b32.xlu0 %v18300_v38, %s10064_s29  ;;  %v1660_v38 = vrot.slane %v11446_v28, 1 }
 0x116   :  { %v11472_v6 = vpop.permute.xlu1 %7765 }
 0x117   :  { %18299 = vst [vmem:[#allocation107_spill] sm:$0xff] %v11472_v6  ;;  %v11478_v2 = vpop.permute.xlu0 %7770  ;;  %v1654_v6 = vrot.slane %v11350_v29, 1 }
 0x118   :  { %8055 = vrot.lane.b32.xlu1 %v18301_v33, %s10064_s29  ;;  %18302 = vst [vmem:[#allocation108_spill] sm:$0xff] %v11478_v2  ;;  %v18313_v2 = vld [vmem:[#allocation30_spill] sm:$0xff] }
 0x119   :  { %8060 = vrot.lane.b32.xlu0 %v18304_v30, %s10064_s29  ;;  %v18329_v30 = vld [vmem:[#allocation81_spill] sm:$0xff] }
 0x11a   :  { %v11480_v35 = vpop.permute.xlu1 %7775 }
 0x11b   :  { %18303 = vst [vmem:[#allocation109_spill] sm:$0xff] %v11480_v35  ;;  %v11486_v22 = vpop.permute.xlu0 %7780  ;;  %v11500_v35 = vld [vmem:[#allocation2 + $0x190] sm:$0x3] }
 0x11c   :  { %8065 = vrot.lane.b32.xlu1 %v18305_v55, %s10064_s29  ;;  %18306 = vst [vmem:[#allocation110_spill] sm:$0xff] %v11486_v22  ;;  %v1657_v3 = vrot.slane %v11500_v35, 1 }
 0x11d   :  { %8070 = vrot.lane.b32.xlu0 %v18308_v46, %s10064_s29  ;;  %v18327_v46 = vld [vmem:[#allocation75_spill] sm:$0xff] }
 0x11e   :  { %v11488_v12 = vpop.permute.xlu1 %7785 }
 0x11f   :  { %18307 = vst [vmem:[#allocation111_spill] sm:$0xff] %v11488_v12  ;;  %v11494_v60 = vpop.permute.xlu0 %7790  ;;  %v1655_v12 = vrot.slane %v11352_v7, 1 }
 0x120   :  { %8075 = vrot.lane.b32.xlu1 %v18309_v40, %s10064_s29  ;;  %18310 = vst [vmem:[#allocation112_spill] sm:$0xff] %v11494_v60  ;;  %v18316_v60 = vld [vmem:[#allocation36_spill] sm:$0xff] }
 0x121   :  { %8080 = vrot.lane.b32.xlu0 %v18312_v27, %s10064_s29  ;;  %v1656_v42 = vsel %vm750_vm2, %v1654_v6, %v1655_v12  ;;  %v18325_v27 = vld [vmem:[#allocation65_spill] sm:$0xff] }
 0x122   :  { %v11496_v26 = vpop.permute.xlu1 %7795 }
 0x123   :  { %18311 = vst [vmem:[#allocation113_spill] sm:$0xff] %v11496_v26  ;;  %v11504_v22 = vpop.permute.xlu0 %7800  ;;  %v18315_v26 = vld [vmem:[#allocation35_spill] sm:$0xff] }
 0x124   :  { %8085 = vrot.lane.b32.xlu1 %v18313_v2, %s10064_s29  ;;  %18314 = vst [vmem:[#allocation114_spill] sm:$0xff] %v11504_v22  ;;  %v1658_v22 = vsel %vm750_vm2, %v1655_v12, %v1657_v3  ;;  %v18321_v12 = vld [vmem:[#allocation40_spill] sm:$0xff] }
 0x125   :  { %8090 = vrot.lane.b32.xlu0 %v18315_v26, %s10064_s29  ;;  %v11527_v50 = vpack.i.bf16 %v1658_v22, %v1656_v42 }
 0x126   :  { %v11509_v61 = vpop.permute.xlu1 %7805 }
 0x127   :  { %v11515_v56 = vpop.permute.xlu0 %7810  ;;  %18319 = vst [vmem:[#allocation115_spill] sm:$0xff] %v11527_v50 }
 0x128   :  { %8095 = vrot.lane.b32.xlu1 %v18316_v60, %s10064_s29  ;;  %v18320_v60 = vld [vmem:[#allocation39_spill] sm:$0xff] }
 0x129   :  { %8100 = vrot.lane.b32.xlu0 %v18317_v48, %s10064_s29  ;;  %v18323_v48 = vld [vmem:[#allocation57_spill] sm:$0xff] }
 0x12a   :  { %v11519_v5 = vpop.permute.xlu1 %7815 }
 0x12b   :  { %v11525_v31 = vpop.permute.xlu0 %7820 }
 0x12c   :  { %8105 = vrot.lane.b32.xlu1 %v18318_v23, %s10064_s29  ;;  %v18322_v23 = vld [vmem:[#allocation51_spill] sm:$0xff] }
 0x12d   :  { %8110 = vrot.lane.b32.xlu0 %v18320_v60, %s10064_s29  ;;  %v18324_v60 = vld [vmem:[#allocation61_spill] sm:$0xff] }
 0x12e   :  { %v11529_v26 = vpop.permute.xlu1 %7825 }
 0x12f   :  { %v11535_v3 = vpop.permute.xlu0 %7830 }
 0x130   :  { %8115 = vrot.lane.b32.xlu1 %v11527_v50, %s10064_s29 }
 0x131   :  { %8120 = vrot.lane.b32.xlu0 %v18321_v12, %s10064_s29  ;;  %v18326_v12 = vld [vmem:[#allocation71_spill] sm:$0xff] }
 0x132   :  { %v11537_v6 = vpop.permute.xlu1 %7835 }
 0x133   :  { %v11543_v42 = vpop.permute.xlu0 %7840 }
 0x134   :  { %8125 = vrot.lane.b32.xlu1 %v18322_v23, %s10064_s29 }
 0x135   :  { %8130 = vrot.lane.b32.xlu0 %v18323_v48, %s10064_s29  ;;  %v18328_v48 = vld [vmem:[#allocation77_spill] sm:$0xff] }
 0x136   :  { %v11545_v22 = vpop.permute.xlu1 %7845 }
 0x137   :  { %v11551_v50 = vpop.permute.xlu0 %7850 }
 0x138   :  { %8135 = vrot.lane.b32.xlu1 %v18324_v60, %s10064_s29 }
 0x139   :  { %8140 = vrot.lane.b32.xlu0 %v18325_v27, %s10064_s29  ;;  %v11573_v27 = vld [vmem:[#allocation2 + $0x340] sm:$0x3] }
 0x13a   :  { %v11553_v2 = vpop.permute.xlu1 %7855  ;;  %18330 = vst [vmem:[#allocation40_spill] sm:$0xff] %v11573_v27 }
 0x13b   :  { %v11559_v23 = vpop.permute.xlu0 %7860 }
 0x13c   :  { %8145 = vrot.lane.b32.xlu1 %v18326_v12, %s10064_s29  ;;  %v18331_v12 = vld [vmem:[#allocation83_spill] sm:$0xff] }
 0x13d   :  { %8150 = vrot.lane.b32.xlu0 %v18327_v46, %s10064_s29  ;;  %v1659_v46 = vrot.slane %v11444_v8, 1 }
 0x13e   :  { %v11561_v40 = vpop.permute.xlu1 %7865 }
 0x13f   :  { %v11567_v60 = vpop.permute.xlu0 %7870 }
 0x140   :  { %8155 = vrot.lane.b32.xlu1 %v18328_v48, %s10064_s29  ;;  %v1662_v48 = vrot.slane %v11573_v27, 1 }
 0x141   :  { %8160 = vrot.lane.b32.xlu0 %v18329_v30, %s10064_s29 }
 0x142   :  { %v11569_v55 = vpop.permute.xlu1 %7875 }
 0x143   :  { %v11577_v33 = vpop.permute.xlu0 %7880 }
 0x144   :  { %8165 = vrot.lane.b32.xlu1 %v18331_v12, %s10064_s29  ;;  %18332 = vst [vmem:[#allocation116_spill] sm:$0xff] %v11577_v33  ;;  %v1661_v12 = vsel %vm750_vm2, %v1659_v46, %v1660_v38  ;;  %v1663_v33 = vsel %vm750_vm2, %v1660_v38, %v1662_v48  ;;  %v1857_v46 = vrot.slane %v11352_v7, 2  ;;  %v7648_v38 = vunpack.i.h.bf16 %v11338_v32 }
 0x145   :  { %8170 = vrot.lane.b32.xlu0 %v10922_v62, %s10064_s29  ;;  %v11600_v62 = vpack.i.bf16 %v1663_v33, %v1661_v12  ;;  %v7653_v12 = vunpack.i.h.bf16 %v11346_v54  ;;  %v7652_v7 = vunpack.i.l.bf16 %v11346_v54  ;;  %v7663_v54 = vunpack.i.h.bf16 %v11362_v45 }
 0x146   :  { %v11582_v44 = vpop.permute.xlu1 %7885 }
 0x147   :  { %18333 = vst [vmem:[#allocation117_spill] sm:$0xff] %v11582_v44  ;;  %v11588_v30 = vpop.permute.xlu0 %7890  ;;  %18337 = vst [vmem:[#allocation121_spill] sm:$0xff] %v11600_v62 }
 0x148   :  { %8175 = vrot.lane.b32.xlu1 %v10942_v37, %s10064_s29  ;;  %18334 = vst [vmem:[#allocation118_spill] sm:$0xff] %v11588_v30  ;;  %v7662_v30 = vunpack.i.l.bf16 %v11362_v45  ;;  %v7667_v45 = vunpack.i.l.bf16 %v11368_v13 }
 0x149   :  { %8180 = vrot.lane.b32.xlu0 %v10955_v10, %s10064_s29 }
 0x14a   :  { %v11592_v24 = vpop.permute.xlu1 %7895 }
 0x14b   :  { %18335 = vst [vmem:[#allocation119_spill] sm:$0xff] %v11592_v24  ;;  %v11598_v44 = vpop.permute.xlu0 %7900  ;;  %v7647_v24 = vunpack.i.l.bf16 %v11338_v32  ;;  %v11627_v32 = vsel %vm19_vm0, %v11374_v57, %v7648_v38  ;;  %v7673_v38 = vunpack.i.h.bf16 %v11380_v4 }
 0x14c   :  { %8185 = vrot.lane.b32.xlu1 %v10979_v9, %s10064_s29  ;;  %18336 = vst [vmem:[#allocation120_spill] sm:$0xff] %v11598_v44  ;;  %v1856_v44 = vrot.slane %v11350_v29, 2  ;;  %v11671_v9 = vld [vmem:[#allocation2 + $0x1f8] sm:$0xff] }
 0x14d   :  { %8190 = vrot.lane.b32.xlu0 %v10984_v0, %s10064_s29  ;;  %v11631_v29 = vsel %vm19_vm0, %v11372_v19, %v7647_v24  ;;  %v11647_v24 = vld [vmem:[#allocation2 + $0x1e0] sm:$0xff]  ;;  %v7677_v0 = vunpack.i.l.bf16 %v11384_v59  ;;  %18347 = vst [vmem:[#allocation131_spill] sm:$0xff] %v11671_v9 }
 0x14e   :  { %v11602_v49 = vpop.permute.xlu1 %7905  ;;  %18344 = vst [vmem:[#allocation128_spill] sm:$0xff] %v11647_v24  ;;  %v11651_v19 = vsel %vm19_vm0, %v11647_v24, %v7652_v7 }
 0x14f   :  { %18338 = vst [vmem:[#allocation122_spill] sm:$0xff] %v11602_v49  ;;  %v11609_v48 = vpop.permute.xlu0 %7910  ;;  %v1859_v49 = vrot.slane %v11500_v35, 2  ;;  %v11641_v35 = vld [vmem:[#allocation2 + $0x1e8] sm:$0xff] }
 0x150   :  { %8195 = vrot.lane.b32.xlu1 %v11600_v62, %s10064_s29  ;;  %18339 = vst [vmem:[#allocation123_spill] sm:$0xff] %v11609_v48  ;;  %18343 = vst [vmem:[#allocation127_spill] sm:$0xff] %v11641_v35  ;;  %v11645_v57 = vsel %vm19_vm0, %v11641_v35, %v7653_v12  ;;  %v1858_v12 = vsel %vm1103_vm3, %v1856_v44, %v1857_v46  ;;  %v7672_v62 = vunpack.i.l.bf16 %v11380_v4  ;;  %v11677_v44 = vld [vmem:[#allocation2 + $0x218] sm:$0xff] }
 0x151   :  { %8200 = vrot.lane.b32.xlu0 %v10972_v21, %s10065_s30  ;;  %v7658_v21 = vunpack.i.h.bf16 %v11354_v36  ;;  %18348 = vst [vmem:[#allocation132_spill] sm:$0xff] %v11677_v44 }
 0x152   :  { %v11614_v33 = vpop.permute.xlu1 %7915 }
 0x153   :  { %18340 = vst [vmem:[#allocation124_spill] sm:$0xff] %v11614_v33  ;;  %v11622_v48 = vpop.permute.xlu0 %7920  ;;  %v7657_v33 = vunpack.i.l.bf16 %v11354_v36  ;;  %v7668_v36 = vunpack.i.h.bf16 %v11368_v13  ;;  %v7678_v13 = vunpack.i.h.bf16 %v11384_v59  ;;  %v7683_v59 = vunpack.i.h.bf16 %v11390_v63 }
 0x154   :  { %8205 = vrot.lane.b32.xlu1 %v11004_v14, %s10065_s30  ;;  %18341 = vst [vmem:[#allocation125_spill] sm:$0xff] %v11622_v48  ;;  %v1860_v48 = vsel %vm1103_vm3, %v1857_v46, %v1859_v49  ;;  %v11681_v49 = vsel %vm19_vm0, %v11677_v44, %v7663_v54  ;;  %v11683_v46 = vld [vmem:[#allocation2 + $0x210] sm:$0xff]  ;;  %v11700_v54 = vld [vmem:[#allocation2 + $0x228] sm:$0xff]  ;;  %v7688_v44 = vunpack.i.h.bf16 %v11394_v41 }
 0x155   :  { %8210 = vrot.lane.b32.xlu0 %v11006_v18, %s10065_s30  ;;  %v11662_v18 = vld [vmem:[#allocation2 + $0x200] sm:$0xff]  ;;  %18349 = vst [vmem:[#allocation133_spill] sm:$0xff] %v11683_v46  ;;  %v11687_v4 = vsel %vm19_vm0, %v11683_v46, %v7662_v30  ;;  %18352 = vst [vmem:[#allocation136_spill] sm:$0xff] %v11700_v54  ;;  %v11704_v10 = vsel %vm19_vm0, %v11700_v54, %v7667_v45  ;;  %v7682_v30 = vunpack.i.l.bf16 %v11390_v63  ;;  %v7707_v54 = vunpack.i.l.bf16 %v11414_v53 }
 0x156   :  { %v11637_v14 = vpop.permute.xlu1 %7925  ;;  %18346 = vst [vmem:[#allocation130_spill] sm:$0xff] %v11662_v18  ;;  %v11666_v7 = vsel %vm19_vm0, %v11662_v18, %v7658_v21  ;;  %v11707_v37 = vpack.i.bf16 %v1860_v48, %v1858_v12  ;;  %v11721_v45 = vld [vmem:[#allocation2 + $0x240] sm:$0xff]  ;;  %v11733_v12 = vld [vmem:[#allocation2 + $0x258] sm:$0xff] }
 0x157   :  { %18342 = vst [vmem:[#allocation126_spill] sm:$0xff] %v11637_v14  ;;  %v11658_v14 = vpop.permute.xlu0 %7930  ;;  %18355 = vst [vmem:[#allocation139_spill] sm:$0xff] %v11721_v45  ;;  %v11725_v63 = vsel %vm19_vm0, %v11721_v45, %v7672_v62  ;;  %v11727_v48 = vld [vmem:[#allocation2 + $0x260] sm:$0xff]  ;;  %v7693_v62 = vunpack.i.h.bf16 %v11400_v25 }
 0x158   :  { %8215 = vrot.lane.b32.xlu1 %v11026_v34, %s10065_s30  ;;  %18345 = vst [vmem:[#allocation129_spill] sm:$0xff] %v11658_v14  ;;  %v11675_v14 = vsel %vm19_vm0, %v11671_v9, %v7657_v33  ;;  %v11694_v33 = vld [vmem:[#allocation2 + $0x230] sm:$0xff]  ;;  %18356 = vst [vmem:[#allocation140_spill] sm:$0xff] %v11727_v48  ;;  %v11797_v46 = vld [vmem:[#allocation2 + $0x2c0] sm:$0xff]  ;;  %v7812_v9 = vunpack.i.l.bf16 %v11515_v56 }
 0x159   :  { %8220 = vrot.lane.b32.xlu0 %v11031_v39, %s10065_s30  ;;  %18351 = vst [vmem:[#allocation135_spill] sm:$0xff] %v11694_v33  ;;  %v11698_v34 = vsel %vm19_vm0, %v11694_v33, %v7668_v36  ;;  %v7687_v36 = vunpack.i.l.bf16 %v11394_v41  ;;  %18357 = vst [vmem:[#allocation141_spill] sm:$0xff] %v11733_v12  ;;  %v11737_v41 = vsel %vm19_vm0, %v11733_v12, %v7677_v0  ;;  %v11760_v12 = vld [vmem:[#allocation2 + $0x290] sm:$0xff] }
 0x15a   :  { %v11690_v21 = vpop.permute.xlu1 %7935  ;;  %18361 = vst [vmem:[#allocation145_spill] sm:$0xff] %v11760_v12  ;;  %18368 = vst [vmem:[#allocation151_spill] sm:$0xff] %v11797_v46 }
 0x15b   :  { %18350 = vst [vmem:[#allocation134_spill] sm:$0xff] %v11690_v21  ;;  %v11709_v21 = vld [vmem:[#allocation2 + $0x248] sm:$0xff]  ;;  %v11719_v33 = vpop.permute.xlu0 %7940 }
 0x15c   :  { %18353 = vst [vmem:[#allocation137_spill] sm:$0xff] %v11709_v21  ;;  %v11713_v39 = vsel %vm19_vm0, %v11709_v21, %v7673_v38  ;;  %8225 = vrot.lane.b32.xlu1 %v11033_v47, %s10065_s30  ;;  %18354 = vst [vmem:[#allocation138_spill] sm:$0xff] %v11719_v33  ;;  %v11731_v38 = vsel %vm19_vm0, %v11727_v48, %v7678_v13  ;;  %v11739_v47 = vld [vmem:[#allocation2 + $0x278] sm:$0xff]  ;;  %v7692_v21 = vunpack.i.l.bf16 %v11400_v25  ;;  %v11751_v13 = vld [vmem:[#allocation2 + $0x270] sm:$0xff]  ;;  %v7698_v48 = vunpack.i.h.bf16 %v11404_v16 }
 0x15d   :  { %18358 = vst [vmem:[#allocation142_spill] sm:$0xff] %v11739_v47  ;;  %v11743_v33 = vsel %vm19_vm0, %v11739_v47, %v7683_v59  ;;  %8230 = vrot.lane.b32.xlu0 %v11053_v15, %s10065_s30  ;;  %18360 = vst [vmem:[#allocation144_spill] sm:$0xff] %v11751_v13  ;;  %v11755_v0 = vsel %vm19_vm0, %v11751_v13, %v7682_v30  ;;  %v7697_v59 = vunpack.i.l.bf16 %v11404_v16  ;;  %v7703_v47 = vunpack.i.h.bf16 %v11410_v58 }
 0x15e   :  { %v11747_v45 = vpop.permute.xlu1 %7945  ;;  %v11764_v25 = vsel %vm19_vm0, %v11760_v12, %v7688_v44  ;;  %v7702_v30 = vunpack.i.l.bf16 %v11410_v58  ;;  %v7708_v13 = vunpack.i.h.bf16 %v11414_v53  ;;  %v7713_v44 = vunpack.i.h.bf16 %v11420_v20  ;;  %v11780_v12 = vld [vmem:[#allocation2 + $0x2a8] sm:$0xff] }
 0x15f   :  { %18359 = vst [vmem:[#allocation143_spill] sm:$0xff] %v11747_v45  ;;  %v11766_v45 = vld [vmem:[#allocation2 + $0x288] sm:$0xff]  ;;  %v11775_v16 = vpop.permute.xlu0 %7950  ;;  %18364 = vst [vmem:[#allocation148_spill] sm:$0xff] %v11780_v12  ;;  %v11801_v18 = vsel %vm19_vm0, %v11797_v46, %v7698_v48  ;;  %v7808_v48 = vunpack.i.h.bf16 %v11509_v61  ;;  %v7807_v46 = vunpack.i.l.bf16 %v11509_v61 }
 0x160   :  { %18362 = vst [vmem:[#allocation146_spill] sm:$0xff] %v11766_v45  ;;  %v11770_v15 = vsel %vm19_vm0, %v11766_v45, %v7687_v36  ;;  %8235 = vrot.lane.b32.xlu1 %v11055_v52, %s10065_s30  ;;  %18363 = vst [vmem:[#allocation147_spill] sm:$0xff] %v11775_v16  ;;  %v11784_v36 = vsel %vm19_vm0, %v11780_v12, %v7693_v62  ;;  %v11786_v45 = vld [vmem:[#allocation2 + $0x2a0] sm:$0xff]  ;;  %v7712_v16 = vunpack.i.l.bf16 %v11420_v20  ;;  %v18367_v53 = vld [vmem:[#allocation17_spill] sm:$0xff] }
 0x161   :  { %18365 = vst [vmem:[#allocation149_spill] sm:$0xff] %v11786_v45  ;;  %v11790_v58 = vsel %vm19_vm0, %v11786_v45, %v7692_v21  ;;  %8240 = vrot.lane.b32.xlu0 %v18367_v53, %s10065_s30  ;;  %v11803_v62 = vld [vmem:[#allocation2 + $0x2b8] sm:$0xff]  ;;  %v18372_v45 = vld [vmem:[#allocation21_spill] sm:$0xff]  ;;  %v2760_v24 = vsel %vm2724_vm4, %v11627_v32, %v7808_v48  ;;  %v2761_v32 = vsel %vm2724_vm4, %v11651_v19, %v7812_v9  ;;  %v7827_v19 = vunpack.i.l.bf16 %v11529_v26 }
 0x162   :  { %v11793_v52 = vpop.permute.xlu1 %7955  ;;  %18369 = vst [vmem:[#allocation152_spill] sm:$0xff] %v11803_v62  ;;  %v11807_v12 = vsel %vm19_vm0, %v11803_v62, %v7697_v59  ;;  %v11809_v21 = vld [vmem:[#allocation2 + $0x2d8] sm:$0xff]  ;;  %v11827_v62 = vld [vmem:[#allocation2 + $0x2f0] sm:$0xff] }
 0x163   :  { %18366 = vst [vmem:[#allocation150_spill] sm:$0xff] %v11793_v52  ;;  %18370 = vst [vmem:[#allocation153_spill] sm:$0xff] %v11809_v21  ;;  %v11813_v20 = vsel %vm19_vm0, %v11809_v21, %v7703_v47  ;;  %v11815_v52 = vld [vmem:[#allocation2 + $0x2d0] sm:$0xff]  ;;  %v11825_v59 = vpop.permute.xlu0 %7960  ;;  %v11831_v47 = vsel %vm19_vm0, %v11827_v62, %v7708_v13  ;;  %v11833_v21 = vld [vmem:[#allocation2 + $0x2e8] sm:$0xff]  ;;  %v7818_v13 = vunpack.i.h.bf16 %v11519_v5 }
 0x164   :  { %18371 = vst [vmem:[#allocation154_spill] sm:$0xff] %v11815_v52  ;;  %v11819_v53 = vsel %vm19_vm0, %v11815_v52, %v7702_v30  ;;  %8245 = vrot.lane.b32.xlu1 %v18372_v45, %s10065_s30  ;;  %18373 = vst [vmem:[#allocation155_spill] sm:$0xff] %v11825_v59  ;;  %v11837_v30 = vsel %vm19_vm0, %v11833_v21, %v7707_v54  ;;  %v11839_v52 = vld [vmem:[#allocation2 + $0x308] sm:$0xff]  ;;  %v11845_v45 = vld [vmem:[#allocation2 + $0x300] sm:$0xff] }
 0x165   :  { %18374 = vst [vmem:[#allocation156_spill] sm:$0xff] %v11827_v62  ;;  %18375 = vst [vmem:[#allocation157_spill] sm:$0xff] %v11833_v21  ;;  %v11843_v61 = vsel %vm19_vm0, %v11839_v52, %v7713_v44  ;;  %v11849_v59 = vsel %vm19_vm0, %v11845_v45, %v7712_v16  ;;  %v7813_v62 = vunpack.i.h.bf16 %v11515_v56  ;;  %v18378_v21 = vld [vmem:[#allocation34_spill] sm:$0xff]  ;;  %v2759_v16 = vsel %vm2724_vm4, %v11631_v29, %v7807_v46 }
 0x166   :  { %18376 = vst [vmem:[#allocation158_spill] sm:$0xff] %v11839_v52  ;;  %18377 = vst [vmem:[#allocation159_spill] sm:$0xff] %v11845_v45  ;;  %v7966_v54 = vpop.permute.xlu1 %7965  ;;  %8250 = vrot.lane.b32.xlu0 %v18378_v21, %s10065_s30  ;;  %v7817_v45 = vunpack.i.l.bf16 %v11519_v5  ;;  %v18379_v56 = vld [vmem:[#allocation22_spill] sm:$0xff]  ;;  %v7823_v5 = vunpack.i.h.bf16 %v11525_v31  ;;  %v7822_v46 = vunpack.i.l.bf16 %v11525_v31  ;;  %v2764_v9 = vsel %vm2724_vm4, %v11666_v7, %v7818_v13 }
 0x167   :  { %v7968_v44 = vunpack.i.h.bf16 %v7966_v54  ;;  %v7967_v52 = vunpack.i.l.bf16 %v7966_v54  ;;  %v7971_v11 = vpop.permute.xlu0 %7970  ;;  %v2762_v29 = vsel %vm2724_vm4, %v11645_v57, %v7813_v62  ;;  %v7828_v31 = vunpack.i.h.bf16 %v11529_v26  ;;  %v18381_v62 = vld [vmem:[#allocation24_spill] sm:$0xff] }
 0x168   :  { %8255 = vrot.lane.b32.xlu1 %v18379_v56, %s10065_s30  ;;  %v7973_v54 = vunpack.i.h.bf16 %v7971_v11  ;;  %v7972_v27 = vunpack.i.l.bf16 %v7971_v11  ;;  %v18380_v56 = vld [vmem:[#allocation23_spill] sm:$0xff]  ;;  %v2763_v57 = vsel %vm2724_vm4, %v11675_v14, %v7817_v45  ;;  %v2765_v7 = vsel %vm2724_vm4, %v11687_v4, %v7822_v46 }
 0x169   :  { %v11866_v21 = vsel %vm2789_vm5, %v2759_v16, %v7967_v52  ;;  %v11869_v35 = vsel %vm2789_vm5, %v2760_v24, %v7968_v44  ;;  %v2766_v14 = vsel %vm2724_vm4, %v11681_v49, %v7823_v5  ;;  %v7833_v26 = vunpack.i.h.bf16 %v11535_v3 }
 0x16a   :  { %v7976_v48 = vpop.permute.xlu1 %7975  ;;  %8260 = vrot.lane.b32.xlu0 %v18380_v56, %s10065_s30  ;;  %v11880_v52 = vsel %vm2789_vm5, %v2761_v32, %v7972_v27  ;;  %v11883_v24 = vsel %vm2789_vm5, %v2762_v29, %v7973_v54  ;;  %v7832_v45 = vunpack.i.l.bf16 %v11535_v3  ;;  %v2768_v4 = vsel %vm2724_vm4, %v11698_v34, %v7828_v31 }
 0x16b   :  { %v7978_v11 = vunpack.i.h.bf16 %v7976_v48  ;;  %v7977_v44 = vunpack.i.l.bf16 %v7976_v48  ;;  %v7981_v27 = vpop.permute.xlu0 %7980  ;;  %v18382_v48 = vld [vmem:[#allocation25_spill] sm:$0xff]  ;;  %v2767_v49 = vsel %vm2724_vm4, %v11704_v10, %v7827_v19  ;;  %v7838_v3 = vunpack.i.h.bf16 %v11537_v6 }
 0x16c   :  { %8265 = vrot.lane.b32.xlu1 %v18381_v62, %s10065_s30  ;;  %v7983_v32 = vunpack.i.h.bf16 %v7981_v27  ;;  %v7982_v29 = vunpack.i.l.bf16 %v7981_v27  ;;  %v7837_v5 = vunpack.i.l.bf16 %v11537_v6  ;;  %v2769_v34 = vsel %vm2724_vm4, %v11725_v63, %v7832_v45  ;;  %v18384_v45 = vld [vmem:[#allocation26_spill] sm:$0xff] }
 0x16d   :  { %v11894_v16 = vsel %vm2789_vm5, %v2763_v57, %v7977_v44  ;;  %v11897_v54 = vsel %vm2789_vm5, %v2764_v9, %v7978_v11  ;;  %v2770_v10 = vsel %vm2724_vm4, %v11713_v39, %v7833_v26  ;;  %v7843_v6 = vunpack.i.h.bf16 %v11543_v42 }
 0x16e   :  { %v7986_v13 = vpop.permute.xlu1 %7985  ;;  %8270 = vrot.lane.b32.xlu0 %v18382_v48, %s10065_s30  ;;  %v11908_v44 = vsel %vm2789_vm5, %v2765_v7, %v7982_v29  ;;  %v11911_v11 = vsel %vm2789_vm5, %v2766_v14, %v7983_v32  ;;  %v7842_v31 = vunpack.i.l.bf16 %v11543_v42  ;;  %v18383_v14 = vld [vmem:[#allocation18_spill] sm:$0xff]  ;;  %v2772_v63 = vsel %vm2724_vm4, %v11731_v38, %v7838_v3 }
 0x16f   :  { %v7988_v9 = vunpack.i.h.bf16 %v7986_v13  ;;  %v7987_v57 = vunpack.i.l.bf16 %v7986_v13  ;;  %v7991_v46 = vpop.permute.xlu0 %7990  ;;  %v2771_v39 = vsel %vm2724_vm4, %v11737_v41, %v7837_v5  ;;  %v7848_v42 = vunpack.i.h.bf16 %v11545_v22 }
 0x170   :  { %8275 = vrot.lane.b32.xlu1 %v11707_v37, %s10065_s30  ;;  %v7993_v29 = vunpack.i.h.bf16 %v7991_v46  ;;  %v7992_v7 = vunpack.i.l.bf16 %v7991_v46  ;;  %v7847_v26 = vunpack.i.l.bf16 %v11545_v22  ;;  %v2773_v38 = vsel %vm2724_vm4, %v11755_v0, %v7842_v31  ;;  %v18386_v31 = vld [vmem:[#allocation28_spill] sm:$0xff] }
 0x171   :  { %v11922_v27 = vsel %vm2789_vm5, %v2767_v49, %v7987_v57  ;;  %v11925_v32 = vsel %vm2789_vm5, %v2768_v4, %v7988_v9  ;;  %v2774_v41 = vsel %vm2724_vm4, %v11743_v33, %v7843_v6  ;;  %v7853_v22 = vunpack.i.h.bf16 %v11551_v50 }
 0x172   :  { %v7996_v19 = vpop.permute.xlu1 %7995  ;;  %8280 = vrot.lane.b32.xlu0 %v18383_v14, %s10065_s30  ;;  %v11936_v13 = vsel %vm2789_vm5, %v2769_v34, %v7992_v7  ;;  %v11939_v9 = vsel %vm2789_vm5, %v2770_v10, %v7993_v29  ;;  %v7852_v3 = vunpack.i.l.bf16 %v11551_v50  ;;  %v18385_v10 = vld [vmem:[#allocation27_spill] sm:$0xff]  ;;  %v2776_v0 = vsel %vm2724_vm4, %v11764_v25, %v7848_v42 }
 0x173   :  { %v7998_v57 = vunpack.i.h.bf16 %v7996_v19  ;;  %v7997_v4 = vunpack.i.l.bf16 %v7996_v19  ;;  %v8001_v49 = vpop.permute.xlu0 %8000  ;;  %v2775_v33 = vsel %vm2724_vm4, %v11770_v15, %v7847_v26  ;;  %v7858_v50 = vunpack.i.h.bf16 %v11553_v2 }
 0x174   :  { %8285 = vrot.lane.b32.xlu1 %v18384_v45, %s10065_s30  ;;  %v8003_v7 = vunpack.i.h.bf16 %v8001_v49  ;;  %v8002_v34 = vunpack.i.l.bf16 %v8001_v49  ;;  %v7857_v6 = vunpack.i.l.bf16 %v11553_v2  ;;  %v2777_v25 = vsel %vm2724_vm4, %v11790_v58, %v7852_v3  ;;  %v18388_v3 = vld [vmem:[#allocation32_spill] sm:$0xff] }
 0x175   :  { %v11950_v46 = vsel %vm2789_vm5, %v2771_v39, %v7997_v4  ;;  %v11953_v29 = vsel %vm2789_vm5, %v2772_v63, %v7998_v57  ;;  %v2778_v15 = vsel %vm2724_vm4, %v11784_v36, %v7853_v22  ;;  %v7863_v2 = vunpack.i.h.bf16 %v11559_v23 }
 0x176   :  { %v8006_v5 = vpop.permute.xlu1 %8005  ;;  %8290 = vrot.lane.b32.xlu0 %v18385_v10, %s10065_s30  ;;  %v11964_v19 = vsel %vm2789_vm5, %v2773_v38, %v8002_v34  ;;  %v11967_v14 = vsel %vm2789_vm5, %v2774_v41, %v8003_v7  ;;  %v7862_v42 = vunpack.i.l.bf16 %v11559_v23  ;;  %v18387_v38 = vld [vmem:[#allocation31_spill] sm:$0xff]  ;;  %v2780_v58 = vsel %vm2724_vm4, %v11801_v18, %v7858_v50  ;;  %v18570_v10 = vld [vmem:[#allocation100_spill] sm:$0xff] }
 0x177   :  { %v8008_v57 = vunpack.i.h.bf16 %v8006_v5  ;;  %v8007_v4 = vunpack.i.l.bf16 %v8006_v5  ;;  %v8011_v63 = vpop.permute.xlu0 %8010  ;;  %v2779_v36 = vsel %vm2724_vm4, %v11807_v12, %v7857_v6  ;;  %v7868_v23 = vunpack.i.h.bf16 %v11561_v40 }
 0x178   :  { %8295 = vrot.lane.b32.xlu1 %v18386_v31, %s10065_s30  ;;  %v8013_v7 = vunpack.i.h.bf16 %v8011_v63  ;;  %v8012_v34 = vunpack.i.l.bf16 %v8011_v63  ;;  %v7867_v22 = vunpack.i.l.bf16 %v11561_v40  ;;  %v2781_v18 = vsel %vm2724_vm4, %v11819_v53, %v7862_v42  ;;  %v18511_v31 = vld [vmem:[#allocation54_spill] sm:$0xff] }
 0x179   :  { %v11978_v39 = vsel %vm2789_vm5, %v2775_v33, %v8007_v4  ;;  %v11981_v49 = vsel %vm2789_vm5, %v2776_v0, %v8008_v57  ;;  %v2782_v12 = vsel %vm2724_vm4, %v11813_v20, %v7863_v2  ;;  %v7873_v40 = vunpack.i.h.bf16 %v11567_v60 }
 0x17a   :  { %v8016_v26 = vpop.permute.xlu1 %8015  ;;  %8300 = vrot.lane.b32.xlu0 %v18387_v38, %s10065_s30  ;;  %v11992_v41 = vsel %vm2789_vm5, %v2777_v25, %v8012_v34  ;;  %v11995_v5 = vsel %vm2789_vm5, %v2778_v15, %v8013_v7  ;;  %v7872_v50 = vunpack.i.l.bf16 %v11567_v60  ;;  %v2784_v53 = vsel %vm2724_vm4, %v11831_v47, %v7868_v23  ;;  %v12039_v47 = vld [vmem:[#allocation2 + $0x320] sm:$0xff]  ;;  %v18508_v38 = vld [vmem:[#allocation61_spill] sm:$0xff] }
 0x17b   :  { %v8018_v57 = vunpack.i.h.bf16 %v8016_v26  ;;  %v8017_v4 = vunpack.i.l.bf16 %v8016_v26  ;;  %v8021_v0 = vpop.permute.xlu0 %8020  ;;  %v2783_v20 = vsel %vm2724_vm4, %v11837_v30, %v7867_v22  ;;  %v7878_v60 = vunpack.i.h.bf16 %v11569_v55 }
 0x17c   :  { %8305 = vrot.lane.b32.xlu1 %v18388_v3, %s10065_s30  ;;  %v8023_v7 = vunpack.i.h.bf16 %v8021_v0  ;;  %v8022_v34 = vunpack.i.l.bf16 %v8021_v0  ;;  %v7877_v2 = vunpack.i.l.bf16 %v11569_v55  ;;  %v18389_v30 = vunpack.i.h.bf16 %v11424_v43  ;;  %v12045_v55 = vld [vmem:[#allocation2 + $0x318] sm:$0xff] }
 0x17d   :  { %v12006_v33 = vsel %vm2789_vm5, %v2779_v36, %v8017_v4  ;;  %v12009_v63 = vsel %vm2789_vm5, %v2780_v58, %v8018_v57  ;;  %v18390_v22 = vunpack.i.l.bf16 %v11424_v43 }
 0x17e   :  { %v8026_v6 = vpop.permute.xlu1 %8025  ;;  %8310 = vrot.lane.b32.xlu0 %v11194_v51, %s10065_s30  ;;  %v12020_v25 = vsel %vm2789_vm5, %v2781_v18, %v8022_v34  ;;  %v12023_v15 = vsel %vm2789_vm5, %v2782_v12, %v8023_v7  ;;  %v2723_v23 = vsel %vm19_vm0, %v12039_v47, %v18389_v30  ;;  %v2785_v34 = vsel %vm2724_vm4, %v11849_v59, %v7872_v50 }
 0x17f   :  { %v8028_v26 = vunpack.i.h.bf16 %v8026_v6  ;;  %v8027_v57 = vunpack.i.l.bf16 %v8026_v6  ;;  %v8031_v42 = vpop.permute.xlu0 %8030  ;;  %v2722_v7 = vsel %vm19_vm0, %v12045_v55, %v18390_v22  ;;  %v2786_v18 = vsel %vm2724_vm4, %v11843_v61, %v7873_v40  ;;  %v18391_v6 = vld [vmem:[#allocation41_spill] sm:$0xff] }
 0x180   :  { %8315 = vrot.lane.b32.xlu1 %v11203_v17, %s10065_s30  ;;  %v8033_v36 = vunpack.i.h.bf16 %v8031_v42  ;;  %v8032_v0 = vunpack.i.l.bf16 %v8031_v42  ;;  %v2788_v42 = vsel %vm2724_vm4, %v2723_v23, %v7878_v60  ;;  %v2787_v59 = vsel %vm2724_vm4, %v2722_v7, %v7877_v2  ;;  %v18395_v60 = vld [vmem:[#allocation44_spill] sm:$0xff]  ;;  %v18396_v2 = vld [vmem:[#allocation46_spill] sm:$0xff] }
 0x181   :  { %v12034_v4 = vsel %vm2789_vm5, %v2783_v20, %v8027_v57  ;;  %v12037_v58 = vsel %vm2789_vm5, %v2784_v53, %v8028_v26  ;;  %v1861_v20 = vrot.slane %v11444_v8, 2  ;;  %v1862_v40 = vrot.slane %v11446_v28, 2 }
 0x182   :  { %v8036_v12 = vpop.permute.xlu1 %8035  ;;  %8320 = vrot.lane.b32.xlu0 %v18391_v6, %s10065_s30  ;;  %v12058_v26 = vsel %vm2789_vm5, %v2785_v34, %v8032_v0  ;;  %v12061_v57 = vsel %vm2789_vm5, %v2786_v18, %v8033_v36  ;;  %v18393_v0 = vld [vmem:[#allocation40_spill] sm:$0xff]  ;;  %v18400_v18 = vld [vmem:[#allocation50_spill] sm:$0xff] }
 0x183   :  { %v8038_v43 = vunpack.i.h.bf16 %v8036_v12  ;;  %v8037_v53 = vunpack.i.l.bf16 %v8036_v12  ;;  %v12068_v61 = vpop.permute.xlu0 %8040  ;;  %v1864_v30 = vrot.slane %v18393_v0, 2  ;;  %v1863_v28 = vsel %vm1103_vm3, %v1861_v20, %v1862_v40  ;;  %v18399_v34 = vld [vmem:[#allocation48_spill] sm:$0xff]  ;;  %v18408_v0 = vld [vmem:[#allocation59_spill] sm:$0xff] }
 0x184   :  { %8325 = vrot.lane.b32.xlu1 %v11223_v1, %s10065_s30  ;;  %18392 = vst [vmem:[#allocation23_spill] sm:$0xff] %v12068_v61  ;;  %v18430_v61 = vld [vmem:[#allocation98_spill] sm:$0xff] }
 0x185   :  { %v12072_v50 = vsel %vm2789_vm5, %v2787_v59, %v8037_v53  ;;  %v12075_v36 = vsel %vm2789_vm5, %v2788_v42, %v8038_v43  ;;  %v1865_v22 = vsel %vm1103_vm3, %v1862_v40, %v1864_v30  ;;  %v18404_v42 = vld [vmem:[#allocation53_spill] sm:$0xff]  ;;  %v18407_v40 = vld [vmem:[#allocation56_spill] sm:$0xff] }
 0x186   :  { %v12078_v8 = vpop.permute.xlu1 %8045  ;;  %8330 = vrot.lane.b32.xlu0 %v18395_v60, %s10065_s30  ;;  %v12096_v43 = vpack.i.bf16 %v1865_v22, %v1863_v28  ;;  %v18411_v22 = vld [vmem:[#allocation62_spill] sm:$0xff] }
 0x187   :  { %18394 = vst [vmem:[#allocation24_spill] sm:$0xff] %v12078_v8  ;;  %v12084_v23 = vpop.permute.xlu0 %8050 }
 0x188   :  { %8335 = vrot.lane.b32.xlu1 %v18396_v2, %s10065_s30  ;;  %18397 = vst [vmem:[#allocation25_spill] sm:$0xff] %v12084_v23  ;;  %18402 = vst [vmem:[#allocation160_spill] sm:$0xff] %v12096_v43  ;;  %v18429_v23 = vld [vmem:[#allocation97_spill] sm:$0xff]  ;;  %v18432_v2 = vld [vmem:[#allocation127_spill] sm:$0xff] }
 0x18a   :  { %v12088_v7 = vpop.permute.xlu1 %8055  ;;  %8340 = vrot.lane.b32.xlu0 %v18399_v34, %s10065_s30 }
 0x18b   :  { %18398 = vst [vmem:[#allocation18_spill] sm:$0xff] %v12088_v7  ;;  %v12094_v12 = vpop.permute.xlu0 %8060 }
 0x18c   :  { %8345 = vrot.lane.b32.xlu1 %v18400_v18, %s10065_s30  ;;  %18401 = vst [vmem:[#allocation40_spill] sm:$0xff] %v12094_v12  ;;  %v12158_v18 = vld [vmem:[#allocation2 + $0x198] sm:$0xff]  ;;  %v18428_v12 = vld [vmem:[#allocation96_spill] sm:$0xff] }
 0x18d   :  { %v2458_v7 = vrot.slane %v12158_v18, 2 }
 0x18e   :  { %v12098_v53 = vpop.permute.xlu1 %8065  ;;  %8350 = vrot.lane.b32.xlu0 %v18404_v42, %s10065_s30 }
 0x18f   :  { %18403 = vst [vmem:[#allocation161_spill] sm:$0xff] %v12098_v53  ;;  %v12104_v20 = vpop.permute.xlu0 %8070 }
 0x190   :  { %8355 = vrot.lane.b32.xlu1 %v12096_v43, %s10065_s30  ;;  %18405 = vst [vmem:[#allocation162_spill] sm:$0xff] %v12104_v20  ;;  %v18412_v43 = vld [vmem:[#allocation64_spill] sm:$0xff]  ;;  %v18415_v20 = vld [vmem:[#allocation67_spill] sm:$0xff] }
 0x192   :  { %v12106_v59 = vpop.permute.xlu1 %8075  ;;  %8360 = vrot.lane.b32.xlu0 %v18407_v40, %s10066_s5  ;;  %v18416_v40 = vld [vmem:[#allocation69_spill] sm:$0xff] }
 0x193   :  { %18406 = vst [vmem:[#allocation163_spill] sm:$0xff] %v12106_v59  ;;  %v12112_v30 = vpop.permute.xlu0 %8080 }
 0x194   :  { %8365 = vrot.lane.b32.xlu1 %v18408_v0, %s10066_s5  ;;  %18409 = vst [vmem:[#allocation56_spill] sm:$0xff] %v12112_v30 }
 0x196   :  { %v12114_v28 = vpop.permute.xlu1 %8085  ;;  %8370 = vrot.lane.b32.xlu0 %v18411_v22, %s10066_s5  ;;  %v18420_v22 = vld [vmem:[#allocation74_spill] sm:$0xff] }
 0x197   :  { %18410 = vst [vmem:[#allocation59_spill] sm:$0xff] %v12114_v28  ;;  %v12120_v42 = vpop.permute.xlu0 %8090  ;;  %v18419_v28 = vld [vmem:[#allocation72_spill] sm:$0xff] }
 0x198   :  { %8375 = vrot.lane.b32.xlu1 %v18412_v43, %s10066_s5  ;;  %18413 = vst [vmem:[#allocation62_spill] sm:$0xff] %v12120_v42 }
 0x19a   :  { %v12122_v59 = vpop.permute.xlu1 %8095  ;;  %8380 = vrot.lane.b32.xlu0 %v18415_v20, %s10066_s5  ;;  %v18424_v20 = vld [vmem:[#allocation80_spill] sm:$0xff] }
 0x19b   :  { %18414 = vst [vmem:[#allocation64_spill] sm:$0xff] %v12122_v59  ;;  %v12128_v0 = vpop.permute.xlu0 %8100  ;;  %v18423_v59 = vld [vmem:[#allocation78_spill] sm:$0xff] }
 0x19c   :  { %8385 = vrot.lane.b32.xlu1 %v18416_v40, %s10066_s5  ;;  %18417 = vst [vmem:[#allocation67_spill] sm:$0xff] %v12128_v0 }
 0x19e   :  { %v12130_v30 = vpop.permute.xlu1 %8105  ;;  %8390 = vrot.lane.b32.xlu0 %v18419_v28, %s10066_s5 }
 0x19f   :  { %18418 = vst [vmem:[#allocation69_spill] sm:$0xff] %v12130_v30  ;;  %v12136_v43 = vpop.permute.xlu0 %8110  ;;  %v18426_v30 = vld [vmem:[#allocation85_spill] sm:$0xff] }
 0x1a0   :  { %8395 = vrot.lane.b32.xlu1 %v18420_v22, %s10066_s5  ;;  %18421 = vst [vmem:[#allocation72_spill] sm:$0xff] %v12136_v43  ;;  %v18427_v22 = vld [vmem:[#allocation95_spill] sm:$0xff] }
 0x1a2   :  { %v12138_v42 = vpop.permute.xlu1 %8115  ;;  %8400 = vrot.lane.b32.xlu0 %v18423_v59, %s10066_s5 }
 0x1a3   :  { %18422 = vst [vmem:[#allocation74_spill] sm:$0xff] %v12138_v42  ;;  %v12144_v40 = vpop.permute.xlu0 %8120 }
 0x1a4   :  { %8405 = vrot.lane.b32.xlu1 %v18424_v20, %s10066_s5  ;;  %18425 = vst [vmem:[#allocation78_spill] sm:$0xff] %v12144_v40 }
 0x1a6   :  { %v8126_v0 = vpop.permute.xlu1 %8125  ;;  %8410 = vrot.lane.b32.xlu0 %v18426_v30, %s10066_s5  ;;  %v12160_v30 = vld [vmem:[#allocation2 + $0x1a0] sm:$0xff] }
 0x1a7   :  { %v8128_v28 = vunpack.i.h.bf16 %v8126_v0  ;;  %v8127_v53 = vunpack.i.l.bf16 %v8126_v0  ;;  %v8131_v43 = vpop.permute.xlu0 %8130  ;;  %v8434_v34 = vpack.i.bf16 %v12160_v30, %v12158_v18 }
 0x1a8   :  { %8415 = vrot.lane.b32.xlu1 %v18427_v22, %s10066_s5  ;;  %v8133_v20 = vunpack.i.h.bf16 %v8131_v43  ;;  %v8132_v40 = vunpack.i.l.bf16 %v8131_v43  ;;  %v2459_v22 = vrot.slane %v12160_v30, 2 }
 0x1a9   :  { %v12152_v42 = vsel %vm2854_vm6, %v11866_v21, %v8127_v53  ;;  %v12156_v59 = vsel %vm2854_vm6, %v11869_v35, %v8128_v28  ;;  %v12174_v28 = vld [vmem:[#allocation2 + $0x1a8] sm:$0x3] }
 0x1aa   :  { %v8136_v0 = vpop.permute.xlu1 %8135  ;;  %8420 = vrot.lane.b32.xlu0 %v18428_v12, %s10066_s5  ;;  %v12168_v21 = vsel %vm2854_vm6, %v11880_v52, %v8132_v40  ;;  %v12172_v35 = vsel %vm2854_vm6, %v11883_v24, %v8133_v20  ;;  %v2461_v8 = vrot.slane %v12174_v28, 2  ;;  %v12194_v1 = vsel %vm1103_vm3, %v2458_v7, %v2459_v22 }
 0x1ab   :  { %v8138_v53 = vunpack.i.h.bf16 %v8136_v0  ;;  %v8137_v43 = vunpack.i.l.bf16 %v8136_v0  ;;  %v8141_v12 = vpop.permute.xlu0 %8140  ;;  %18433 = vst [vmem:[#allocation80_spill] sm:$0xff] %v12194_v1  ;;  %v9913_v1 = vld [vmem:[#allocation2 + $0x170] sm:$0xff] }
 0x1ac   :  { %8425 = vrot.lane.b32.xlu1 %v18429_v23, %s10066_s5  ;;  %v8143_v40 = vunpack.i.h.bf16 %v8141_v12  ;;  %v8142_v20 = vunpack.i.l.bf16 %v8141_v12  ;;  %v18431_v23 = vld [vmem:[#allocation128_spill] sm:$0xff]  ;;  %v12197_v6 = vsel %vm1103_vm3, %v2459_v22, %v2461_v8  ;;  %v18436_v12 = vld [vmem:[#allocation130_spill] sm:$0xff] }
 0x1ad   :  { %v12183_v52 = vsel %vm2854_vm6, %v11894_v16, %v8137_v43  ;;  %v12187_v24 = vsel %vm2854_vm6, %v11897_v54, %v8138_v53  ;;  %v8439_v60 = vpack.i.bf16 %v18432_v2, %v18431_v23  ;;  %18434 = vst [vmem:[#allocation85_spill] sm:$0xff] %v12197_v6  ;;  %v18435_v2 = vld [vmem:[#allocation131_spill] sm:$0xff]  ;;  %v9914_v6 = vld [vmem:[#allocation2 + $0x168] sm:$0xff] }
 0x1ae   :  { %v8146_v0 = vpop.permute.xlu1 %8145  ;;  %8430 = vrot.lane.b32.xlu0 %v18430_v61, %s10066_s5  ;;  %v12201_v16 = vsel %vm2854_vm6, %v11908_v44, %v8142_v20  ;;  %v12205_v54 = vsel %vm2854_vm6, %v11911_v11, %v8143_v40  ;;  %v8444_v7 = vpack.i.bf16 %v18436_v12, %v18435_v2 }
 0x1af   :  { %v8148_v53 = vunpack.i.h.bf16 %v8146_v0  ;;  %v8147_v43 = vunpack.i.l.bf16 %v8146_v0  ;;  %v8151_v61 = vpop.permute.xlu0 %8150  ;;  %v18438_v0 = vld [vmem:[#allocation132_spill] sm:$0xff] }
 0x1b0   :  { %8435 = vrot.lane.b32.xlu1 %v8434_v34, %s10066_s5  ;;  %v8153_v11 = vunpack.i.h.bf16 %v8151_v61  ;;  %v8152_v40 = vunpack.i.l.bf16 %v8151_v61  ;;  %v18437_v34 = vld [vmem:[#allocation133_spill] sm:$0xff]  ;;  %v18440_v61 = vld [vmem:[#allocation135_spill] sm:$0xff] }
 0x1b1   :  { %v12214_v22 = vsel %vm2854_vm6, %v11922_v27, %v8147_v43  ;;  %v12218_v44 = vsel %vm2854_vm6, %v11925_v32, %v8148_v53  ;;  %v8449_v23 = vpack.i.bf16 %v18438_v0, %v18437_v34  ;;  %v18439_v53 = vld [vmem:[#allocation136_spill] sm:$0xff] }
 0x1b2   :  { %v8156_v20 = vpop.permute.xlu1 %8155  ;;  %8440 = vrot.lane.b32.xlu0 %v8439_v60, %s10066_s5  ;;  %v12225_v2 = vsel %vm2854_vm6, %v11936_v13, %v8152_v40  ;;  %v12229_v27 = vsel %vm2854_vm6, %v11939_v9, %v8153_v11  ;;  %v8454_v8 = vpack.i.bf16 %v18440_v61, %v18439_v53  ;;  %v18441_v11 = vld [vmem:[#allocation139_spill] sm:$0xff] }
 0x1b3   :  { %v8158_v43 = vunpack.i.h.bf16 %v8156_v20  ;;  %v8157_v12 = vunpack.i.l.bf16 %v8156_v20  ;;  %v8161_v32 = vpop.permute.xlu0 %8160  ;;  %v18442_v20 = vld [vmem:[#allocation137_spill] sm:$0xff] }
 0x1b4   :  { %8445 = vrot.lane.b32.xlu1 %v8444_v7, %s10066_s5  ;;  %v8163_v40 = vunpack.i.h.bf16 %v8161_v32  ;;  %v8162_v34 = vunpack.i.l.bf16 %v8161_v32  ;;  %v8459_v7 = vpack.i.bf16 %v18442_v20, %v18441_v11  ;;  %v18444_v32 = vld [vmem:[#allocation140_spill] sm:$0xff] }
 0x1b5   :  { %v12236_v60 = vsel %vm2854_vm6, %v11950_v46, %v8157_v12  ;;  %v12240_v13 = vsel %vm2854_vm6, %v11953_v29, %v8158_v43  ;;  %v18443_v43 = vld [vmem:[#allocation141_spill] sm:$0xff] }
 0x1b6   :  { %v8166_v9 = vpop.permute.xlu1 %8165  ;;  %8450 = vrot.lane.b32.xlu0 %v8449_v23, %s10066_s5  ;;  %v12247_v0 = vsel %vm2854_vm6, %v11964_v19, %v8162_v34  ;;  %v12251_v46 = vsel %vm2854_vm6, %v11967_v14, %v8163_v40  ;;  %v8464_v61 = vpack.i.bf16 %v18444_v32, %v18443_v43  ;;  %v18445_v40 = vld [vmem:[#allocation144_spill] sm:$0xff] }
 0x1b7   :  { %v8168_v12 = vunpack.i.h.bf16 %v8166_v9  ;;  %v8167_v53 = vunpack.i.l.bf16 %v8166_v9  ;;  %v8171_v29 = vpop.permute.xlu0 %8170  ;;  %v18446_v9 = vld [vmem:[#allocation142_spill] sm:$0xff] }
 0x1b8   :  { %8455 = vrot.lane.b32.xlu1 %v8454_v8, %s10066_s5  ;;  %v8173_v34 = vunpack.i.h.bf16 %v8171_v29  ;;  %v8172_v11 = vunpack.i.l.bf16 %v8171_v29  ;;  %v8469_v8 = vpack.i.bf16 %v18446_v9, %v18445_v40  ;;  %v18448_v29 = vld [vmem:[#allocation145_spill] sm:$0xff] }
 0x1b9   :  { %v12258_v23 = vsel %vm2854_vm6, %v11978_v39, %v8167_v53  ;;  %v12262_v19 = vsel %vm2854_vm6, %v11981_v49, %v8168_v12  ;;  %v18447_v12 = vld [vmem:[#allocation146_spill] sm:$0xff] }
 0x1ba   :  { %v8176_v14 = vpop.permute.xlu1 %8175  ;;  %8460 = vrot.lane.b32.xlu0 %v8459_v7, %s10066_s5  ;;  %v12269_v20 = vsel %vm2854_vm6, %v11992_v41, %v8172_v11  ;;  %v12273_v39 = vsel %vm2854_vm6, %v11995_v5, %v8173_v34  ;;  %v8474_v32 = vpack.i.bf16 %v18448_v29, %v18447_v12  ;;  %v18449_v34 = vld [vmem:[#allocation149_spill] sm:$0xff] }
 0x1bb   :  { %v8178_v53 = vunpack.i.h.bf16 %v8176_v14  ;;  %v8177_v43 = vunpack.i.l.bf16 %v8176_v14  ;;  %v8181_v49 = vpop.permute.xlu0 %8180  ;;  %v18450_v14 = vld [vmem:[#allocation148_spill] sm:$0xff] }
 0x1bc   :  { %8465 = vrot.lane.b32.xlu1 %v8464_v61, %s10066_s5  ;;  %v8183_v11 = vunpack.i.h.bf16 %v8181_v49  ;;  %v8182_v40 = vunpack.i.l.bf16 %v8181_v49  ;;  %v8479_v61 = vpack.i.bf16 %v18450_v14, %v18449_v34  ;;  %v18452_v49 = vld [vmem:[#allocation151_spill] sm:$0xff] }
 0x1bd   :  { %v12280_v7 = vsel %vm2854_vm6, %v12006_v33, %v8177_v43  ;;  %v12284_v41 = vsel %vm2854_vm6, %v12009_v63, %v8178_v53  ;;  %v18451_v53 = vld [vmem:[#allocation152_spill] sm:$0xff] }
 0x1be   :  { %v8186_v5 = vpop.permute.xlu1 %8185  ;;  %8470 = vrot.lane.b32.xlu0 %v8469_v8, %s10066_s5  ;;  %v12291_v9 = vsel %vm2854_vm6, %v12020_v25, %v8182_v40  ;;  %v12295_v33 = vsel %vm2854_vm6, %v12023_v15, %v8183_v11  ;;  %v8484_v29 = vpack.i.bf16 %v18452_v49, %v18451_v53  ;;  %v18453_v11 = vld [vmem:[#allocation154_spill] sm:$0xff] }
 0x1bf   :  { %v8188_v43 = vunpack.i.h.bf16 %v8186_v5  ;;  %v8187_v12 = vunpack.i.l.bf16 %v8186_v5  ;;  %v8191_v63 = vpop.permute.xlu0 %8190  ;;  %v18454_v5 = vld [vmem:[#allocation153_spill] sm:$0xff] }
 0x1c0   :  { %8475 = vrot.lane.b32.xlu1 %v8474_v32, %s10066_s5  ;;  %v8193_v40 = vunpack.i.h.bf16 %v8191_v63  ;;  %v8192_v34 = vunpack.i.l.bf16 %v8191_v63  ;;  %v8489_v32 = vpack.i.bf16 %v18454_v5, %v18453_v11  ;;  %v18457_v63 = vld [vmem:[#allocation156_spill] sm:$0xff]  ;;  %v8504_v11 = vpack.i.bf16 %v12039_v47, %v12045_v55  ;;  %v12344_v5 = vld [vmem:[#allocation2 + $0x350] sm:$0xff] }
 0x1c1   :  { %v12302_v8 = vsel %vm2854_vm6, %v12034_v4, %v8187_v12  ;;  %v12306_v25 = vsel %vm2854_vm6, %v12037_v58, %v8188_v43  ;;  %v18456_v43 = vld [vmem:[#allocation157_spill] sm:$0xff] }
 0x1c2   :  { %v8196_v15 = vpop.permute.xlu1 %8195  ;;  %8480 = vrot.lane.b32.xlu0 %v8479_v61, %s10066_s5  ;;  %v12313_v14 = vsel %vm2854_vm6, %v12058_v26, %v8192_v34  ;;  %v12317_v4 = vsel %vm2854_vm6, %v12061_v57, %v8193_v40  ;;  %v8494_v61 = vpack.i.bf16 %v18457_v63, %v18456_v43  ;;  %v18459_v57 = vld [vmem:[#allocation159_spill] sm:$0xff]  ;;  %v18460_v40 = vld [vmem:[#allocation158_spill] sm:$0xff]  ;;  %v2464_v43 = vrot.slane %v12344_v5, 2 }
 0x1c3   :  { %v8198_v12 = vunpack.i.h.bf16 %v8196_v15  ;;  %v8197_v53 = vunpack.i.l.bf16 %v8196_v15  ;;  %v12320_v58 = vpop.permute.xlu0 %8200 }
 0x1c4   :  { %8485 = vrot.lane.b32.xlu1 %v8484_v29, %s10066_s5  ;;  %18455 = vst [vmem:[#allocation95_spill] sm:$0xff] %v12320_v58  ;;  %v8499_v29 = vpack.i.bf16 %v18460_v40, %v18459_v57 }
 0x1c5   :  { %v12326_v49 = vsel %vm2854_vm6, %v12072_v50, %v8197_v53  ;;  %v12330_v26 = vsel %vm2854_vm6, %v12075_v36, %v8198_v12  ;;  %v12342_v50 = vld [vmem:[#allocation2 + $0x348] sm:$0xff]  ;;  %v9881_v12 = vld [vmem:[#allocation2 + $0x330] sm:$0xff] }
 0x1c6   :  { %v12332_v34 = vpop.permute.xlu1 %8205  ;;  %8490 = vrot.lane.b32.xlu0 %v8489_v32, %s10066_s5  ;;  %v9882_v32 = vld [vmem:[#allocation2 + $0x338] sm:$0xff]  ;;  %v2463_v63 = vrot.slane %v12342_v50, 2  ;;  %v8514_v55 = vpack.i.bf16 %v12344_v5, %v12342_v50 }
 0x1c7   :  { %18458 = vst [vmem:[#allocation96_spill] sm:$0xff] %v12332_v34  ;;  %v12338_v15 = vpop.permute.xlu0 %8210  ;;  %v8509_v53 = vpack.i.bf16 %v9882_v32, %v9881_v12  ;;  %v18490_v34 = vld [vmem:[#allocation38_spill] sm:$0xff] }
 0x1c8   :  { %8495 = vrot.lane.b32.xlu1 %v8494_v61, %s10066_s5  ;;  %18461 = vst [vmem:[#allocation97_spill] sm:$0xff] %v12338_v15  ;;  %v12351_v61 = vld [vmem:[#allocation2 + $0x358] sm:$0x3] }
 0x1c9   :  { %v2466_v57 = vrot.slane %v12351_v61, 2 }
 0x1ca   :  { %v12346_v36 = vpop.permute.xlu1 %8215  ;;  %8500 = vrot.lane.b32.xlu0 %v8499_v29, %s10066_s5  ;;  %v12363_v29 = vsel %vm1103_vm3, %v2463_v63, %v2464_v43 }
 0x1cb   :  { %18462 = vst [vmem:[#allocation98_spill] sm:$0xff] %v12346_v36  ;;  %v12354_v47 = vpop.permute.xlu0 %8220  ;;  %18465 = vst [vmem:[#allocation131_spill] sm:$0xff] %v12363_v29  ;;  %v12366_v12 = vsel %vm1103_vm3, %v2464_v43, %v2466_v57  ;;  %v18474_v57 = vld [vmem:[#allocation12_spill] sm:$0xff] }
 0x1cc   :  { %8505 = vrot.lane.b32.xlu1 %v8504_v11, %s10066_s5  ;;  %18463 = vst [vmem:[#allocation128_spill] sm:$0xff] %v12354_v47  ;;  %18466 = vst [vmem:[#allocation130_spill] sm:$0xff] %v12366_v12  ;;  %v18494_v12 = vld [vmem:[#allocation115_spill] sm:$0xff] }
 0x1ce   :  { %v12359_v40 = vpop.permute.xlu1 %8225  ;;  %8510 = vrot.lane.b32.xlu0 %v8509_v53, %s10066_s5  ;;  %v18470_v53 = vld [vmem:[#allocation10_spill] sm:$0xff] }
 0x1cf   :  { %18464 = vst [vmem:[#allocation127_spill] sm:$0xff] %v12359_v40  ;;  %v12369_v11 = vpop.permute.xlu0 %8230  ;;  %v18469_v40 = vld [vmem:[#allocation8_spill] sm:$0xff] }
 0x1d0   :  { %8515 = vrot.lane.b32.xlu1 %v8514_v55, %s10066_s5  ;;  %18467 = vst [vmem:[#allocation133_spill] sm:$0xff] %v12369_v11  ;;  %v18473_v55 = vld [vmem:[#allocation11_spill] sm:$0xff]  ;;  %v18477_v11 = vld [vmem:[#allocation14_spill] sm:$0xff] }
 0x1d2   :  { %v12373_v47 = vpop.permute.xlu1 %8235  ;;  %8520 = vrot.lane.b32.xlu0 %v18469_v40, %s10067_s6  ;;  %v18478_v40 = vld [vmem:[#allocation19_spill] sm:$0xff] }
 0x1d3   :  { %18468 = vst [vmem:[#allocation132_spill] sm:$0xff] %v12373_v47  ;;  %v12379_v63 = vpop.permute.xlu0 %8240 }
 0x1d4   :  { %8525 = vrot.lane.b32.xlu1 %v18470_v53, %s10067_s6  ;;  %18471 = vst [vmem:[#allocation136_spill] sm:$0xff] %v12379_v63 }
 0x1d6   :  { %v12381_v43 = vpop.permute.xlu1 %8245  ;;  %8530 = vrot.lane.b32.xlu0 %v18473_v55, %s10067_s6  ;;  %v18482_v55 = vld [vmem:[#allocation29_spill] sm:$0xff] }
 0x1d7   :  { %18472 = vst [vmem:[#allocation135_spill] sm:$0xff] %v12381_v43  ;;  %v18481_v43 = vld [vmem:[#allocation20_spill] sm:$0xff] }
 0x1d8   :  { %8535 = vrot.lane.b32.xlu1 %v18474_v57, %s10067_s6  ;;  %v12387_v32 = vpop.permute.xlu0 %8250 }
 0x1d9   :  { %18475 = vst [vmem:[#allocation139_spill] sm:$0xff] %v12387_v32 }
 0x1da   :  { %v12389_v47 = vpop.permute.xlu1 %8255  ;;  %8540 = vrot.lane.b32.xlu0 %v18477_v11, %s10067_s6  ;;  %v2257_v11 = vrot.slane %v12160_v30, 1 }
 0x1db   :  { %18476 = vst [vmem:[#allocation137_spill] sm:$0xff] %v12389_v47  ;;  %v18485_v47 = vld [vmem:[#allocation30_spill] sm:$0xff] }
 0x1dc   :  { %8545 = vrot.lane.b32.xlu1 %v18478_v40, %s10067_s6  ;;  %v12395_v53 = vpop.permute.xlu0 %8260  ;;  %v2256_v40 = vrot.slane %v12158_v18, 1 }
 0x1dd   :  { %18479 = vst [vmem:[#allocation141_spill] sm:$0xff] %v12395_v53  ;;  %v18486_v53 = vld [vmem:[#allocation35_spill] sm:$0xff] }
 0x1de   :  { %v12397_v63 = vpop.permute.xlu1 %8265  ;;  %8550 = vrot.lane.b32.xlu0 %v18481_v43, %s10067_s6  ;;  %v2259_v43 = vrot.slane %v12174_v28, 1  ;;  %v2258_v18 = vsel %vm750_vm2, %v2256_v40, %v2257_v11  ;;  %v18491_v40 = vld [vmem:[#allocation43_spill] sm:$0xff] }
 0x1df   :  { %18480 = vst [vmem:[#allocation140_spill] sm:$0xff] %v12397_v63 }
 0x1e0   :  { %8555 = vrot.lane.b32.xlu1 %v18482_v55, %s10067_s6  ;;  %v12403_v57 = vpop.permute.xlu0 %8270  ;;  %v18488_v55 = vld [vmem:[#allocation36_spill] sm:$0xff]  ;;  %v2260_v15 = vsel %vm750_vm2, %v2257_v11, %v2259_v43  ;;  %v7563_v43 = vunpack.i.h.bf16 %v18491_v40 }
 0x1e1   :  { %18483 = vst [vmem:[#allocation144_spill] sm:$0xff] %v12403_v57  ;;  %v8594_v58 = vpack.i.bf16 %v2260_v15, %v2258_v18 }
 0x1e2   :  { %v12405_v32 = vpop.permute.xlu1 %8275  ;;  %8560 = vrot.lane.b32.xlu0 %v18485_v47, %s10067_s6  ;;  %v18489_v47 = vld [vmem:[#allocation37_spill] sm:$0xff] }
 0x1e3   :  { %18484 = vst [vmem:[#allocation142_spill] sm:$0xff] %v12405_v32 }
 0x1e4   :  { %8565 = vrot.lane.b32.xlu1 %v18486_v53, %s10067_s6  ;;  %v12413_v63 = vpop.permute.xlu0 %8280 }
 0x1e5   :  { %18487 = vst [vmem:[#allocation146_spill] sm:$0xff] %v12413_v63 }
 0x1e6   :  { %v8286_v36 = vpop.permute.xlu1 %8285  ;;  %8570 = vrot.lane.b32.xlu0 %v18488_v55, %s10067_s6 }
 0x1e7   :  { %v8288_v57 = vunpack.i.h.bf16 %v8286_v36  ;;  %v8287_v32 = vunpack.i.l.bf16 %v8286_v36 }
 0x1e8   :  { %8575 = vrot.lane.b32.xlu1 %v18489_v47, %s10067_s6  ;;  %v8291_v30 = vpop.permute.xlu0 %8290 }
 0x1e9   :  { %v12424_v53 = vsel %vm2919_vm7, %v12152_v42, %v8287_v32  ;;  %v12428_v28 = vsel %vm2919_vm7, %v12156_v59, %v8288_v57  ;;  %v8293_v55 = vunpack.i.h.bf16 %v8291_v30  ;;  %v8292_v63 = vunpack.i.l.bf16 %v8291_v30  ;;  %v18492_v57 = vld [vmem:[#allocation39_spill] sm:$0xff] }
 0x1ea   :  { %v8296_v36 = vpop.permute.xlu1 %8295  ;;  %8580 = vrot.lane.b32.xlu0 %v18490_v34, %s10067_s6  ;;  %v7562_v59 = vunpack.i.l.bf16 %v18491_v40 }
 0x1eb   :  { %v12434_v47 = vsel %vm2919_vm7, %v12168_v21, %v8292_v63  ;;  %v12438_v11 = vsel %vm2919_vm7, %v12172_v35, %v8293_v55  ;;  %v8298_v42 = vunpack.i.h.bf16 %v8296_v36  ;;  %v8297_v32 = vunpack.i.l.bf16 %v8296_v36  ;;  %v18493_v55 = vld [vmem:[#allocation45_spill] sm:$0xff] }
 0x1ec   :  { %8585 = vrot.lane.b32.xlu1 %v18492_v57, %s10067_s6  ;;  %v8301_v30 = vpop.permute.xlu0 %8300  ;;  %v7573_v36 = vunpack.i.h.bf16 %v18493_v55  ;;  %v7572_v29 = vunpack.i.l.bf16 %v18493_v55  ;;  %v9884_v57 = vld [vmem:[#allocation2] sm:$0xff]  ;;  %v18497_v55 = vld [vmem:[#allocation47_spill] sm:$0xff] }
 0x1ed   :  { %v12446_v34 = vsel %vm2919_vm7, %v12183_v52, %v8297_v32  ;;  %v12450_v21 = vsel %vm2919_vm7, %v12187_v24, %v8298_v42  ;;  %v8303_v35 = vunpack.i.h.bf16 %v8301_v30  ;;  %v8302_v63 = vunpack.i.l.bf16 %v8301_v30  ;;  %v9883_v42 = vld [vmem:[#allocation2 + $0x8] sm:$0xff] }
 0x1ee   :  { %v8306_v40 = vpop.permute.xlu1 %8305  ;;  %8590 = vrot.lane.b32.xlu0 %v18494_v12, %s10067_s6  ;;  %v12465_v32 = vsel %vm19_vm0, %v9883_v42, %v7563_v43  ;;  %v12468_v30 = vsel %vm19_vm0, %v9884_v57, %v7562_v59  ;;  %v7568_v12 = vunpack.i.h.bf16 %v18497_v55  ;;  %v9886_v59 = vld [vmem:[#allocation2 + $0x30] sm:$0xff] }
 0x1ef   :  { %v12458_v15 = vsel %vm2919_vm7, %v12201_v16, %v8302_v63  ;;  %v12462_v52 = vsel %vm2919_vm7, %v12205_v54, %v8303_v35  ;;  %v8308_v24 = vunpack.i.h.bf16 %v8306_v40  ;;  %v8307_v18 = vunpack.i.l.bf16 %v8306_v40  ;;  %v9885_v40 = vld [vmem:[#allocation2 + $0x38] sm:$0xff] }
 0x1f0   :  { %18495 = vst [vmem:[#allocation145_spill] sm:$0xff] %v12458_v15  ;;  %18496 = vst [vmem:[#allocation149_spill] sm:$0xff] %v12462_v52  ;;  %8595 = vrot.lane.b32.xlu1 %v8594_v58, %s10067_s6  ;;  %v8311_v16 = vpop.permute.xlu0 %8310  ;;  %v12481_v42 = vsel %vm19_vm0, %v9885_v40, %v7573_v36  ;;  %v12484_v57 = vsel %vm19_vm0, %v9886_v59, %v7572_v29  ;;  %v7567_v58 = vunpack.i.l.bf16 %v18497_v55  ;;  %v18503_v40 = vld [vmem:[#allocation49_spill] sm:$0xff]  ;;  %v9915_v52 = vld [vmem:[#allocation2 + $0x1b8] sm:$0xff] }
 0x1f1   :  { %v12474_v63 = vsel %vm2919_vm7, %v12214_v22, %v8307_v18  ;;  %v12478_v54 = vsel %vm2919_vm7, %v12218_v44, %v8308_v24  ;;  %v8313_v35 = vunpack.i.h.bf16 %v8311_v16  ;;  %v8312_v43 = vunpack.i.l.bf16 %v8311_v16  ;;  %v18500_v22 = vld [vmem:[#allocation51_spill] sm:$0xff]  ;;  %v9887_v16 = vld [vmem:[#allocation2 + $0x20] sm:$0xff] }
 0x1f2   :  { %18498 = vst [vmem:[#allocation148_spill] sm:$0xff] %v12474_v63  ;;  %18499 = vst [vmem:[#allocation152_spill] sm:$0xff] %v12478_v54  ;;  %v8316_v17 = vpop.permute.xlu1 %8315  ;;  %8600 = vrot.lane.b32.xlu0 %v18500_v22, %s10067_s6  ;;  %v12498_v29 = vsel %vm19_vm0, %v9887_v16, %v7568_v12  ;;  %v7578_v55 = vunpack.i.h.bf16 %v18503_v40  ;;  %v7577_v59 = vunpack.i.l.bf16 %v18503_v40  ;;  %v18504_v22 = vld [vmem:[#allocation57_spill] sm:$0xff]  ;;  %v9888_v12 = vld [vmem:[#allocation2 + $0x18] sm:$0xff] }
 0x1f3   :  { %v12491_v44 = vsel %vm2919_vm7, %v12225_v2, %v8312_v43  ;;  %v12495_v24 = vsel %vm2919_vm7, %v12229_v27, %v8313_v35  ;;  %v8318_v36 = vunpack.i.h.bf16 %v8316_v17  ;;  %v8317_v18 = vunpack.i.l.bf16 %v8316_v17  ;;  %v18507_v16 = vld [vmem:[#allocation52_spill] sm:$0xff]  ;;  %v18574_v54 = vld [vmem:[#allocation103_spill] sm:$0xff] }
 0x1f4   :  { %18501 = vst [vmem:[#allocation151_spill] sm:$0xff] %v12491_v44  ;;  %18502 = vst [vmem:[#allocation154_spill] sm:$0xff] %v12495_v24  ;;  %8605 = vrot.lane.b32.xlu1 %v18504_v22, %s10067_s6  ;;  %v8321_v51 = vpop.permute.xlu0 %8320  ;;  %v12513_v43 = vsel %vm19_vm0, %v9888_v12, %v7567_v58  ;;  %v7583_v40 = vunpack.i.h.bf16 %v18507_v16  ;;  %v7582_v3 = vunpack.i.l.bf16 %v18507_v16  ;;  %v9889_v58 = vld [vmem:[#allocation2 + $0x50] sm:$0xff]  ;;  %v9890_v12 = vld [vmem:[#allocation2 + $0x48] sm:$0xff]  ;;  %v7728_v24 = vunpack.i.h.bf16 %v18570_v10 }
 0x1f5   :  { %v12506_v2 = vsel %vm2919_vm7, %v12236_v60, %v8317_v18  ;;  %v12510_v27 = vsel %vm2919_vm7, %v12240_v13, %v8318_v36  ;;  %v8323_v17 = vunpack.i.h.bf16 %v8321_v51  ;;  %v8322_v35 = vunpack.i.l.bf16 %v8321_v51  ;;  %v18571_v44 = vld [vmem:[#allocation101_spill] sm:$0xff] }
 0x1f6   :  { %18505 = vst [vmem:[#allocation153_spill] sm:$0xff] %v12506_v2  ;;  %18506 = vst [vmem:[#allocation157_spill] sm:$0xff] %v12510_v27  ;;  %v8326_v22 = vpop.permute.xlu1 %8325  ;;  %8610 = vrot.lane.b32.xlu0 %v18508_v38, %s10067_s6  ;;  %v12528_v18 = vsel %vm19_vm0, %v9889_v58, %v7578_v55  ;;  %v12531_v16 = vsel %vm19_vm0, %v9890_v12, %v7577_v59  ;;  %v7588_v38 = vunpack.i.h.bf16 %v18511_v31  ;;  %v18512_v27 = vld [vmem:[#allocation65_spill] sm:$0xff]  ;;  %v9892_v58 = vld [vmem:[#allocation2 + $0x60] sm:$0xff]  ;;  %v7733_v45 = vunpack.i.h.bf16 %v18571_v44 }
 0x1f7   :  { %v12521_v60 = vsel %vm2919_vm7, %v12247_v0, %v8322_v35  ;;  %v12525_v13 = vsel %vm2919_vm7, %v12251_v46, %v8323_v17  ;;  %v8328_v51 = vunpack.i.h.bf16 %v8326_v22  ;;  %v8327_v36 = vunpack.i.l.bf16 %v8326_v22  ;;  %v9891_v22 = vld [vmem:[#allocation2 + $0x68] sm:$0xff] }
 0x1f8   :  { %18509 = vst [vmem:[#allocation156_spill] sm:$0xff] %v12521_v60  ;;  %18510 = vst [vmem:[#allocation159_spill] sm:$0xff] %v12525_v13  ;;  %8615 = vrot.lane.b32.xlu1 %v18512_v27, %s10067_s6  ;;  %v8331_v0 = vpop.permute.xlu0 %8330  ;;  %v12545_v59 = vsel %vm19_vm0, %v9891_v22, %v7583_v40  ;;  %v12548_v12 = vsel %vm19_vm0, %v9892_v58, %v7582_v3  ;;  %v7587_v27 = vunpack.i.l.bf16 %v18511_v31  ;;  %v18518_v22 = vld [vmem:[#allocation55_spill] sm:$0xff]  ;;  %v7742_v63 = vunpack.i.l.bf16 %v18574_v54 }
 0x1f9   :  { %v12538_v46 = vsel %vm2919_vm7, %v12258_v23, %v8327_v36  ;;  %v12542_v17 = vsel %vm2919_vm7, %v12262_v19, %v8328_v51  ;;  %v8333_v55 = vunpack.i.h.bf16 %v8331_v0  ;;  %v8332_v35 = vunpack.i.l.bf16 %v8331_v0  ;;  %v18515_v23 = vld [vmem:[#allocation71_spill] sm:$0xff]  ;;  %v9893_v0 = vld [vmem:[#allocation2 + $0x80] sm:$0xff] }
 0x1fa   :  { %18513 = vst [vmem:[#allocation158_spill] sm:$0xff] %v12538_v46  ;;  %18514 = vst [vmem:[#allocation8_spill] sm:$0xff] %v12542_v17  ;;  %v8336_v13 = vpop.permute.xlu1 %8335  ;;  %8620 = vrot.lane.b32.xlu0 %v18515_v23, %s10067_s6  ;;  %v12562_v3 = vsel %vm19_vm0, %v9893_v0, %v7588_v38  ;;  %v7593_v31 = vunpack.i.h.bf16 %v18518_v22  ;;  %v7592_v58 = vunpack.i.l.bf16 %v18518_v22  ;;  %v18519_v23 = vld [vmem:[#allocation75_spill] sm:$0xff]  ;;  %v18522_v0 = vld [vmem:[#allocation58_spill] sm:$0xff] }
 0x1fb   :  { %v12555_v19 = vsel %vm2919_vm7, %v12269_v20, %v8332_v35  ;;  %v12559_v51 = vsel %vm2919_vm7, %v12273_v39, %v8333_v55  ;;  %v8338_v40 = vunpack.i.h.bf16 %v8336_v13  ;;  %v8337_v36 = vunpack.i.l.bf16 %v8336_v13  ;;  %v9894_v38 = vld [vmem:[#allocation2 + $0x78] sm:$0xff]  ;;  %v18527_v46 = vld [vmem:[#allocation81_spill] sm:$0xff] }
 0x1fc   :  { %18516 = vst [vmem:[#allocation10_spill] sm:$0xff] %v12555_v19  ;;  %18517 = vst [vmem:[#allocation11_spill] sm:$0xff] %v12559_v51  ;;  %8625 = vrot.lane.b32.xlu1 %v18519_v23, %s10067_s6  ;;  %v8341_v17 = vpop.permute.xlu0 %8340  ;;  %v12577_v35 = vsel %vm19_vm0, %v9894_v38, %v7587_v27  ;;  %v7598_v22 = vunpack.i.h.bf16 %v18522_v0  ;;  %v7597_v51 = vunpack.i.l.bf16 %v18522_v0  ;;  %v18523_v19 = vld [vmem:[#allocation77_spill] sm:$0xff]  ;;  %v9896_v0 = vld [vmem:[#allocation2 + $0x90] sm:$0xff] }
 0x1fd   :  { %v12570_v20 = vsel %vm2919_vm7, %v12280_v7, %v8337_v36  ;;  %v12574_v39 = vsel %vm2919_vm7, %v12284_v41, %v8338_v40  ;;  %v8343_v13 = vunpack.i.h.bf16 %v8341_v17  ;;  %v8342_v55 = vunpack.i.l.bf16 %v8341_v17  ;;  %v9799_v7 = vld [vmem:[%s17480_s1] sm:$0xff]   ;;  %v9895_v36 = vld [vmem:[#allocation2 + $0x98] sm:$0xff] }
 0x1fe   :  { %18520 = vst [vmem:[#allocation12_spill] sm:$0xff] %v12570_v20  ;;  %18521 = vst [vmem:[#allocation14_spill] sm:$0xff] %v12574_v39  ;;  %v8346_v23 = vpop.permute.xlu1 %8345  ;;  %8630 = vrot.lane.b32.xlu0 %v18523_v19, %s10067_s6  ;;  %v12595_v38 = vsel %vm19_vm0, %v9895_v36, %v7593_v31  ;;  %v12598_v19 = vsel %vm19_vm0, %v9896_v0, %v7592_v58  ;;  %v18526_v39 = vld [vmem:[#allocation60_spill] sm:$0xff]  ;;  %7374 = vmatprep.subr.bf16.mxu0 %v9799_v7  ;;  %v9897_v58 = vld [vmem:[#allocation2 + $0xb0] sm:$0xff] }
 0x1ff   :  { %v12588_v41 = vsel %vm2919_vm7, %v12291_v9, %v8342_v55  ;;  %v12592_v17 = vsel %vm2919_vm7, %v12295_v33, %v8343_v13  ;;  %v8348_v27 = vunpack.i.h.bf16 %v8346_v23  ;;  %v8347_v40 = vunpack.i.l.bf16 %v8346_v23  ;;  %7375 = vmatpush3.bf16.msra.mxu0 %v9799_v7  ;;  %v9898_v36 = vld [vmem:[#allocation2 + $0xa8] sm:$0xff] }
 0x200   :  { %18524 = vst [vmem:[#allocation19_spill] sm:$0xff] %v12588_v41  ;;  %18525 = vst [vmem:[#allocation20_spill] sm:$0xff] %v12592_v17  ;;  %8635 = vrot.lane.b32.xlu1 %v18527_v46, %s10067_s6  ;;  %v8351_v9 = vpop.permute.xlu0 %8350  ;;  %v12612_v23 = vsel %vm19_vm0, %v9897_v58, %v7598_v22  ;;  %v12615_v46 = vsel %vm19_vm0, %v9898_v36, %v7597_v51  ;;  %v18540_v36 = vld [vmem:[#allocation86_spill] sm:$0xff]  ;;  %v18543_v58 = vmov 0.0   ;;  %v18553_v17 = vunpack.i.l.bf16 %v18526_v39 }
 0x201   :  { %v12605_v33 = vsel %vm2919_vm7, %v12302_v8, %v8347_v40  ;;  %v12609_v13 = vsel %vm2919_vm7, %v12306_v25, %v8348_v27  ;;  %v8353_v31 = vunpack.i.h.bf16 %v8351_v9  ;;  %v8352_v55 = vunpack.i.l.bf16 %v8351_v9  ;;  %v18530_v8 = vld [vmem:[#allocation83_spill] sm:$0xff]  ;;  %v9800_v25 = vld [vmem:[%s17480_s1 + $0x8] sm:$0xff]   ;;  %130 = vst.msk [vmem:[#allocation3] sm:$0xff] %vm129_vm8, %v18543_v58  ;;  %131 = vst.msk [vmem:[#allocation3 + $0x8] sm:$0xff] %vm129_vm8, %v18543_v58 }
 0x202   :  { %18528 = vst [vmem:[#allocation29_spill] sm:$0xff] %v12605_v33  ;;  %18529 = vst [vmem:[#allocation30_spill] sm:$0xff] %v12609_v13  ;;  %v8356_v20 = vpop.permute.xlu1 %8355  ;;  %8640 = vrot.lane.b32.xlu0 %v18530_v8, %s10067_s6  ;;  %v18533_v40 = vld [vmem:[#allocation63_spill] sm:$0xff]  ;;  %v18534_v8 = vld [vmem:[#allocation84_spill] sm:$0xff]  ;;  %7376 = vmatprep.subr.bf16.mxu0 %v9800_v25 }
 0x203   :  { %v12625_v7 = vsel %vm2919_vm7, %v12313_v14, %v8352_v55  ;;  %v12629_v22 = vsel %vm2919_vm7, %v12317_v4, %v8353_v31  ;;  %v8358_v51 = vunpack.i.h.bf16 %v8356_v20  ;;  %v8357_v27 = vunpack.i.l.bf16 %v8356_v20  ;;  %7377 = vmatpush3.bf16.msra.mxu0 %v9800_v25  ;;  %v18538_v55 = vld [vmem:[#allocation66_spill] sm:$0xff]  ;;  %134 = vst.msk [vmem:[#allocation3 + $0x18] sm:$0xff] %vm129_vm8, %v18543_v58  ;;  %135 = vst.msk [vmem:[#allocation3 + $0x20] sm:$0xff] %vm129_vm8, %v18543_v58  ;;  %v18544_v31 = vld [vmem:[#allocation73_spill] sm:$0xff] }
 0x204   :  { %18531 = vst [vmem:[#allocation35_spill] sm:$0xff] %v12625_v7  ;;  %18532 = vst [vmem:[#allocation36_spill] sm:$0xff] %v12629_v22  ;;  %8645 = vrot.lane.b32.xlu1 %v18534_v8, %s10067_s6  ;;  %v12636_v0 = vpop.permute.xlu0 %8360  ;;  %v18542_v25 = vld [vmem:[#allocation70_spill] sm:$0xff]  ;;  %v18550_v7 = vrot.slane %v12351_v61, 1  ;;  %v9899_v13 = vld [vmem:[#allocation2 + $0xc8] sm:$0xff]  ;;  %v18554_v61 = vunpack.i.h.bf16 %v18533_v40 }
 0x205   :  { %18535 = vst [vmem:[#allocation37_spill] sm:$0xff] %v12636_v0  ;;  %v12641_v4 = vsel %vm2919_vm7, %v12326_v49, %v8357_v27  ;;  %v12645_v20 = vsel %vm2919_vm7, %v12330_v26, %v8358_v51  ;;  %v12657_v49 = vld [vmem:[%s17480_s1 + $0x10] ss:$0 sps:$4 sm:$0x33]   ;;  %v18541_v26 = vld [vmem:[#allocation68_spill] sm:$0xff]  ;;  %137 = vst.msk [vmem:[#allocation3 + $0x30] sm:$0xff] %vm129_vm8, %v18543_v58  ;;  %v7628_v27 = vunpack.i.h.bf16 %v18544_v31 }
 0x206   :  { %18536 = vst [vmem:[#allocation38_spill] sm:$0xff] %v12641_v4  ;;  %18537 = vst [vmem:[#allocation43_spill] sm:$0xff] %v12645_v20  ;;  %v12650_v9 = vpop.permute.xlu1 %8365  ;;  %8650 = vrot.lane.b32.xlu0 %v18540_v36, %s10067_s6  ;;  %v7622_v36 = vunpack.i.l.bf16 %v18542_v25  ;;  %v18545_v51 = vld [vmem:[#allocation87_spill] sm:$0xff]  ;;  %7544 = vmatprep.subr.msk.bf16.mxu0 %vm3328_vm9, %v12657_v49  ;;  %v3330_v14 = vsel %vm3328_vm9, %v12657_v49, 0  ;;  %v18547_v0 = vld [vmem:[#allocation76_spill] sm:$0xff]  ;;  %v18549_v4 = vrot.slane %v12342_v50, 1  ;;  %v18552_v49 = vunpack.i.h.bf16 %v18526_v39 }
 0x207   :  { %18539 = vst [vmem:[#allocation39_spill] sm:$0xff] %v12650_v9  ;;  %138 = vst.msk [vmem:[#allocation3 + $0x38] sm:$0xff] %vm129_vm8, %v18543_v58  ;;  %v7627_v9 = vunpack.i.l.bf16 %v18544_v31  ;;  %v7633_v20 = vunpack.i.h.bf16 %v18547_v0  ;;  %7379 = vmatpush3.bf16.msra.mxu0 %v3330_v14  ;;  %v9900_v33 = vld [vmem:[#allocation2 + $0xc0] sm:$0xff]  ;;  %v9903_v39 = vld [vmem:[#allocation2 + $0xf8] sm:$0xff]  ;;  %v18561_v41 = vunpack.i.l.bf16 %v18541_v26  ;;  %s10068_s1 = smov 32  }
 0x208   :  { %140 = vst.msk [vmem:[#allocation3 + $0x48] sm:$0xff] %vm129_vm8, %v18543_v58  ;;  %141 = vst.msk [vmem:[#allocation3 + $0x50] sm:$0xff] %vm129_vm8, %v18543_v58  ;;  %8655 = vrot.lane.b32.xlu1 %v18545_v51, %s10067_s6  ;;  %v12810_v8 = vpop.permute.xlu0 %8370  ;;  %v12829_v31 = vsel %vm19_vm0, %v9899_v13, %v18552_v49  ;;  %v12834_v50 = vsel %vm19_vm0, %v9900_v33, %v18553_v17  ;;  %v18556_v14 = vld [vmem:[#allocation88_spill] sm:$0xff]  ;;  %v18557_v13 = vunpack.i.l.bf16 %v18533_v40  ;;  %v18558_v17 = vunpack.i.h.bf16 %v18538_v55  ;;  %v9904_v49 = vld [vmem:[#allocation2 + $0xf0] sm:$0xff] }
 0x209   :  { %143 = vst.msk [vmem:[#allocation3 + $0x60] sm:$0xff] %vm129_vm8, %v18543_v58  ;;  %144 = vst.msk [vmem:[#allocation3 + $0x68] sm:$0xff] %vm129_vm8, %v18543_v58  ;;  %v18560_v40 = vunpack.i.h.bf16 %v18541_v26  ;;  %v9909_v26 = vld [vmem:[#allocation2 + $0x140] sm:$0xff] }
 0x20a   :  { %146 = vst.msk [vmem:[#allocation3 + $0x78] sm:$0xff] %vm129_vm8, %v18543_v58  ;;  %147 = vst.msk [vmem:[#allocation3 + $0x80] sm:$0xff] %vm129_vm8, %v18543_v58  ;;  %8660 = vrot.lane.b32.xlu0 %v18556_v14, %s10067_s6  ;;  %v12853_v33 = vsel %vm19_vm0, %v9903_v39, %v18558_v17  ;;  %v7632_v14 = vunpack.i.l.bf16 %v18547_v0  ;;  %v9907_v17 = vld [vmem:[#allocation2 + $0x128] sm:$0xff] }
 0x20b   :  { %149 = vst.msk [vmem:[#allocation3 + $0x90] sm:$0xff] %vm129_vm8, %v18543_v58  ;;  %150 = vst.msk [vmem:[#allocation3 + $0x98] sm:$0xff] %vm129_vm8, %v18543_v58  ;;  %v18563_v0 = vld [vmem:[#allocation89_spill] sm:$0xff] }
 0x20c   :  { %152 = vst.msk [vmem:[#allocation3 + $0xa8] sm:$0xff] %vm129_vm8, %v18543_v58  ;;  %153 = vst.msk [vmem:[#allocation3 + $0xb0] sm:$0xff] %vm129_vm8, %v18543_v58  ;;  %8665 = vrot.lane.b32.xlu1 %v18563_v0, %s10067_s6  ;;  %v18565_v0 = vld [vmem:[#allocation79_spill] sm:$0xff] }
 0x20d   :  { %155 = vst.msk [vmem:[#allocation3 + $0xc0] sm:$0xff] %vm129_vm8, %v18543_v58  ;;  %156 = vst.msk [vmem:[#allocation3 + $0xc8] sm:$0xff] %vm129_vm8, %v18543_v58  ;;  %v7638_v2 = vunpack.i.h.bf16 %v18565_v0 }
 0x20e   :  { %158 = vst.msk [vmem:[#allocation3 + $0xd8] sm:$0xff] %vm129_vm8, %v18543_v58  ;;  %159 = vst.msk [vmem:[#allocation3 + $0xe0] sm:$0xff] %vm129_vm8, %v18543_v58 }
 0x20f   :  { %161 = vst.msk [vmem:[#allocation3 + $0xf0] sm:$0xff] %vm129_vm8, %v18543_v58  ;;  %162 = vst.msk [vmem:[#allocation3 + $0xf8] sm:$0xff] %vm129_vm8, %v18543_v58 }
 0x210   :  { %164 = vst.msk [vmem:[#allocation3 + $0x108] sm:$0xff] %vm129_vm8, %v18543_v58  ;;  %165 = vst.msk [vmem:[#allocation3 + $0x110] sm:$0xff] %vm129_vm8, %v18543_v58 }
 0x211   :  { %167 = vst.msk [vmem:[#allocation3 + $0x120] sm:$0xff] %vm129_vm8, %v18543_v58  ;;  %168 = vst.msk [vmem:[#allocation3 + $0x128] sm:$0xff] %vm129_vm8, %v18543_v58 }
 0x212   :  { %170 = vst.msk [vmem:[#allocation3 + $0x138] sm:$0xff] %vm129_vm8, %v18543_v58  ;;  %171 = vst.msk [vmem:[#allocation3 + $0x140] sm:$0xff] %vm129_vm8, %v18543_v58 }
 0x213   :  { %173 = vst.msk [vmem:[#allocation3 + $0x150] sm:$0xff] %vm129_vm8, %v18543_v58  ;;  %174 = vst.msk [vmem:[#allocation3 + $0x158] sm:$0xff] %vm129_vm8, %v18543_v58 }
 0x214   :  { %176 = vst.msk [vmem:[#allocation3 + $0x168] sm:$0xff] %vm129_vm8, %v18543_v58  ;;  %177 = vst.msk [vmem:[#allocation3 + $0x170] sm:$0xff] %vm129_vm8, %v18543_v58 }
 0x215   :  { %179 = vst.msk [vmem:[#allocation3 + $0x180] sm:$0xff] %vm129_vm8, %v18543_v58  ;;  %180 = vst.msk [vmem:[#allocation3 + $0x188] sm:$0xff] %vm129_vm8, %v18543_v58 }
 0x216   :  { %182 = vst.msk [vmem:[#allocation3 + $0x198] sm:$0xff] %vm129_vm8, %v18543_v58  ;;  %183 = vst.msk [vmem:[#allocation3 + $0x1a0] sm:$0xff] %vm129_vm8, %v18543_v58 }
 0x217   :  { %185 = vst.msk [vmem:[#allocation3 + $0x1b0] sm:$0xff] %vm129_vm8, %v18543_v58  ;;  %186 = vst.msk [vmem:[#allocation3 + $0x1b8] sm:$0xff] %vm129_vm8, %v18543_v58 }
 0x218   :  { %188 = vst.msk [vmem:[#allocation3 + $0x1c8] sm:$0xff] %vm129_vm8, %v18543_v58  ;;  %189 = vst.msk [vmem:[#allocation3 + $0x1d0] sm:$0xff] %vm129_vm8, %v18543_v58 }
 0x219   :  { %191 = vst.msk [vmem:[#allocation3 + $0x1e0] sm:$0xff] %vm129_vm8, %v18543_v58  ;;  %192 = vst.msk [vmem:[#allocation3 + $0x1e8] sm:$0xff] %vm129_vm8, %v18543_v58 }
 0x21a   :  { %194 = vst.msk [vmem:[#allocation3 + $0x1f8] sm:$0xff] %vm129_vm8, %v18543_v58  ;;  %195 = vst.msk [vmem:[#allocation3 + $0x200] sm:$0xff] %vm129_vm8, %v18543_v58 }
 0x21b   :  { %197 = vst.msk [vmem:[#allocation3 + $0x210] sm:$0xff] %vm129_vm8, %v18543_v58  ;;  %198 = vst.msk [vmem:[#allocation3 + $0x218] sm:$0xff] %vm129_vm8, %v18543_v58 }
 0x21c   :  { %200 = vst.msk [vmem:[#allocation3 + $0x228] sm:$0xff] %vm129_vm8, %v18543_v58  ;;  %201 = vst.msk [vmem:[#allocation3 + $0x230] sm:$0xff] %vm129_vm8, %v18543_v58 }
 0x21d   :  { %203 = vst.msk [vmem:[#allocation3 + $0x240] sm:$0xff] %vm129_vm8, %v18543_v58  ;;  %204 = vst.msk [vmem:[#allocation3 + $0x248] sm:$0xff] %vm129_vm8, %v18543_v58 }
 0x21e   :  { %206 = vst.msk [vmem:[#allocation3 + $0x258] sm:$0xff] %vm129_vm8, %v18543_v58  ;;  %207 = vst.msk [vmem:[#allocation3 + $0x260] sm:$0xff] %vm129_vm8, %v18543_v58 }
 0x21f   :  { %209 = vst.msk [vmem:[#allocation3 + $0x270] sm:$0xff] %vm129_vm8, %v18543_v58  ;;  %210 = vst.msk [vmem:[#allocation3 + $0x278] sm:$0xff] %vm129_vm8, %v18543_v58 }
 0x220   :  { %212 = vst.msk [vmem:[#allocation3 + $0x288] sm:$0xff] %vm129_vm8, %v18543_v58  ;;  %213 = vst.msk [vmem:[#allocation3 + $0x290] sm:$0xff] %vm129_vm8, %v18543_v58 }
 0x221   :  { %215 = vst.msk [vmem:[#allocation3 + $0x2a0] sm:$0xff] %vm129_vm8, %v18543_v58  ;;  %216 = vst.msk [vmem:[#allocation3 + $0x2a8] sm:$0xff] %vm129_vm8, %v18543_v58 }
 0x222   :  { %218 = vst.msk [vmem:[#allocation3 + $0x2b8] sm:$0xff] %vm129_vm8, %v18543_v58  ;;  %219 = vst.msk [vmem:[#allocation3 + $0x2c0] sm:$0xff] %vm129_vm8, %v18543_v58 }
 0x223   :  { %221 = vst.msk [vmem:[#allocation3 + $0x2d0] sm:$0xff] %vm129_vm8, %v18543_v58  ;;  %222 = vst.msk [vmem:[#allocation3 + $0x2d8] sm:$0xff] %vm129_vm8, %v18543_v58 }
 0x224   :  { %224 = vst.msk [vmem:[#allocation3 + $0x2e8] sm:$0xff] %vm129_vm8, %v18543_v58  ;;  %225 = vst.msk [vmem:[#allocation3 + $0x2f0] sm:$0xff] %vm129_vm8, %v18543_v58 }
 0x225   :  { %227 = vst.msk [vmem:[#allocation3 + $0x300] sm:$0xff] %vm129_vm8, %v18543_v58  ;;  %228 = vst.msk [vmem:[#allocation3 + $0x308] sm:$0xff] %vm129_vm8, %v18543_v58 }
 0x226   :  { %230 = vst.msk [vmem:[#allocation3 + $0x318] sm:$0xff] %vm129_vm8, %v18543_v58  ;;  %231 = vst.msk [vmem:[#allocation3 + $0x320] sm:$0xff] %vm129_vm8, %v18543_v58 }
 0x227   :  { %233 = vst.msk [vmem:[#allocation3 + $0x330] sm:$0xff] %vm129_vm8, %v18543_v58  ;;  %234 = vst.msk [vmem:[#allocation3 + $0x338] sm:$0xff] %vm129_vm8, %v18543_v58 }
 0x228   :  { %236 = vst.msk [vmem:[#allocation3 + $0x348] sm:$0xff] %vm129_vm8, %v18543_v58  ;;  %237 = vst.msk [vmem:[#allocation3 + $0x350] sm:$0xff] %vm129_vm8, %v18543_v58  ;;  %v18548_v58 = vrot.slane %v12344_v5, 1 }
 0x229   :  { %18546 = vst [vmem:[#allocation45_spill] sm:$0xff] %v12810_v8 }
 0x22a   :  { %v2263_v22 = vsel %vm750_vm2, %v18549_v4, %v18548_v58  ;;  %v18551_v51 = vmov %v18548_v58  ;;  %v9901_v58 = vld [vmem:[#allocation2 + $0xe0] sm:$0xff]  ;;  %v9902_v4 = vld [vmem:[#allocation2 + $0xd8] sm:$0xff] }
 0x22b   :  { %v2265_v8 = vsel %vm750_vm2, %v18551_v51, %v18550_v7  ;;  %v12839_v5 = vsel %vm19_vm0, %v9901_v58, %v18554_v61  ;;  %v12841_v7 = vpop.permute.xlu1 %8375  ;;  %v12848_v51 = vsel %vm19_vm0, %v9902_v4, %v18557_v13  ;;  %v18559_v58 = vunpack.i.l.bf16 %v18538_v55  ;;  %v9906_v13 = vld [vmem:[#allocation2 + $0x108] sm:$0xff] }
 0x22c   :  { %18555 = vst [vmem:[#allocation115_spill] sm:$0xff] %v12841_v7  ;;  %v9905_v7 = vld [vmem:[#allocation2 + $0x110] sm:$0xff]  ;;  %v12869_v39 = vsel %vm19_vm0, %v9906_v13, %v18561_v41  ;;  %v18562_v55 = vunpack.i.h.bf16 %v18542_v25  ;;  %v8674_v60 = vpack.i.bf16 %v2265_v8, %v2263_v22  ;;  %v12884_v41 = vsel %vm19_vm0, %v9909_v26, %v7628_v27  ;;  %v9910_v13 = vld [vmem:[#allocation2 + $0x138] sm:$0xff] }
 0x22d   :  { %v12858_v61 = vsel %vm19_vm0, %v9904_v49, %v18559_v58  ;;  %v12864_v4 = vsel %vm19_vm0, %v9905_v7, %v18560_v40  ;;  %v12878_v58 = vpop.permute.xlu0 %8380  ;;  %v9908_v7 = vld [vmem:[#allocation2 + $0x120] sm:$0xff]  ;;  %v12887_v25 = vsel %vm19_vm0, %v9910_v13, %v7627_v9  ;;  %v7637_v22 = vunpack.i.l.bf16 %v18565_v0  ;;  %v18566_v8 = vld [vmem:[#allocation82_spill] sm:$0xff]  ;;  %v18569_v13 = vld [vmem:[#allocation99_spill] sm:$0xff] }
 0x22e   :  { %v12874_v49 = vsel %vm19_vm0, %v9907_v17, %v18562_v55  ;;  %18564 = vst [vmem:[#allocation47_spill] sm:$0xff] %v12878_v58  ;;  %v12881_v40 = vsel %vm19_vm0, %v9908_v7, %v7622_v36  ;;  %v9911_v17 = vld [vmem:[#allocation2 + $0x158] sm:$0xff]  ;;  %v7643_v58 = vunpack.i.h.bf16 %v18566_v8  ;;  %v18568_v7 = vld [vmem:[#allocation121_spill] sm:$0xff]  ;;  %v9912_v27 = vld [vmem:[#allocation2 + $0x150] sm:$0xff]  ;;  %v7642_v9 = vunpack.i.l.bf16 %v18566_v8  ;;  %8675 = vrot.lane.b32.xlu1 %v8674_v60, %s10067_s6 }
 0x22f   :  { %v12890_v55 = vsel %vm19_vm0, %v9911_v17, %v7633_v20  ;;  %v12895_v36 = vpop.permute.xlu1 %8385  ;;  %8670 = vrot.lane.b32.xlu0 %v18568_v7, %s10067_s6  ;;  %v12900_v26 = vsel %vm19_vm0, %v9912_v27, %v7632_v14  ;;  %v7723_v20 = vunpack.i.h.bf16 %v18569_v13  ;;  %v7722_v17 = vunpack.i.l.bf16 %v18569_v13  ;;  %v18573_v14 = vld [vmem:[#allocation102_spill] sm:$0xff] }
 0x230   :  { %18567 = vst [vmem:[#allocation51_spill] sm:$0xff] %v12895_v36  ;;  %v7727_v0 = vunpack.i.l.bf16 %v18570_v10  ;;  %v7732_v7 = vunpack.i.l.bf16 %v18571_v44  ;;  %v7738_v27 = vunpack.i.h.bf16 %v18573_v14  ;;  %v7737_v8 = vunpack.i.l.bf16 %v18573_v14  ;;  %v18576_v44 = vld [vmem:[#allocation90_spill] sm:$0xff] }
 0x231   :  { %v12909_v36 = vpop.permute.xlu0 %8390  ;;  %v12916_v13 = vsel %vm19_vm0, %v9913_v1, %v7638_v2  ;;  %v12919_v10 = vsel %vm19_vm0, %v9914_v6, %v7637_v22  ;;  %v12922_v60 = vsel %vm19_vm0, %v9915_v52, %v7643_v58  ;;  %v9916_v14 = vld [vmem:[#allocation2 + $0x1b0] sm:$0xff]  ;;  %v12933_v1 = vsel %vm2724_vm4, %v12468_v30, %v7722_v17  ;;  %v18577_v30 = vld [vmem:[#allocation91_spill] sm:$0xff] }
 0x232   :  { %18572 = vst [vmem:[#allocation49_spill] sm:$0xff] %v12909_v36  ;;  %v12929_v15 = vsel %vm19_vm0, %v9916_v14, %v7642_v9  ;;  %v12937_v6 = vsel %vm2724_vm4, %v12465_v32, %v7723_v20  ;;  %v7743_v52 = vunpack.i.h.bf16 %v18574_v54  ;;  %v12942_v2 = vsel %vm2724_vm4, %v12513_v43, %v7727_v0  ;;  %8685 = vrot.lane.b32.xlu1 %v18577_v30, %s10068_s1  ;;  %v18580_v20 = vld [vmem:[#allocation105_spill] sm:$0xff]  ;;  %v18582_v0 = vld [vmem:[#allocation92_spill] sm:$0xff]  ;;  %v18585_v14 = vld [vmem:[#allocation107_spill] sm:$0xff] }
 0x233   :  { %v12924_v36 = vpop.permute.xlu1 %8395  ;;  %8680 = vrot.lane.b32.xlu0 %v18576_v44, %s10068_s1  ;;  %v12946_v58 = vsel %vm2724_vm4, %v12498_v29, %v7728_v24  ;;  %v12950_v22 = vsel %vm2724_vm4, %v12481_v42, %v7733_v45  ;;  %v12958_v32 = vsel %vm2724_vm4, %v12484_v57, %v7732_v7  ;;  %v12962_v54 = vsel %vm2724_vm4, %v12528_v18, %v7738_v27  ;;  %v18579_v42 = vld [vmem:[#allocation104_spill] sm:$0xff]  ;;  %v18583_v7 = vld [vmem:[#allocation106_spill] sm:$0xff]  ;;  %v18584_v27 = vld [vmem:[#allocation9_spill] sm:$0xff] }
 0x234   :  { %18575 = vst [vmem:[#allocation57_spill] sm:$0xff] %v12924_v36  ;;  %v12966_v24 = vsel %vm2724_vm4, %v12531_v16, %v7737_v8  ;;  %v12970_v45 = vsel %vm2724_vm4, %v12548_v12, %v7742_v63  ;;  %v7748_v29 = vunpack.i.h.bf16 %v18579_v42  ;;  %v7747_v43 = vunpack.i.l.bf16 %v18579_v42  ;;  %v18586_v42 = vld [vmem:[#allocation93_spill] sm:$0xff] }
 0x235   :  { %v12954_v9 = vpop.permute.xlu0 %8400  ;;  %v7752_v17 = vunpack.i.l.bf16 %v18580_v20  ;;  %v12981_v18 = vsel %vm2724_vm4, %v12545_v59, %v7743_v52  ;;  %v7753_v16 = vunpack.i.h.bf16 %v18580_v20  ;;  %v7758_v63 = vunpack.i.h.bf16 %v18583_v7  ;;  %v18588_v52 = vld [vmem:[#allocation108_spill] sm:$0xff] }
 0x236   :  { %18578 = vst [vmem:[#allocation52_spill] sm:$0xff] %v12954_v9  ;;  %v7757_v12 = vunpack.i.l.bf16 %v18583_v7  ;;  %v7763_v8 = vunpack.i.h.bf16 %v18584_v27  ;;  %v7762_v44 = vunpack.i.l.bf16 %v18584_v27  ;;  %v7768_v30 = vunpack.i.h.bf16 %v18585_v14  ;;  %8695 = vrot.lane.b32.xlu1 %v18586_v42, %s10068_s1  ;;  %v18589_v9 = vld [vmem:[#allocation109_spill] sm:$0xff] }
 0x237   :  { %v12975_v57 = vpop.permute.xlu1 %8405  ;;  %8690 = vrot.lane.b32.xlu0 %v18582_v0, %s10068_s1  ;;  %v7767_v59 = vunpack.i.l.bf16 %v18585_v14  ;;  %v7772_v20 = vunpack.i.l.bf16 %v18588_v52  ;;  %v7778_v36 = vunpack.i.h.bf16 %v18589_v9  ;;  %v12999_v7 = vsel %vm2724_vm4, %v12562_v3, %v7748_v29  ;;  %v18591_v14 = vld [vmem:[#allocation94_spill] sm:$0xff] }
 0x238   :  { %18581 = vst [vmem:[#allocation61_spill] sm:$0xff] %v12975_v57  ;;  %v7773_v57 = vunpack.i.h.bf16 %v18588_v52  ;;  %v13003_v27 = vsel %vm2724_vm4, %v12577_v35, %v7747_v43  ;;  %v13007_v42 = vsel %vm2724_vm4, %v12598_v19, %v7752_v17  ;;  %v13015_v52 = vsel %vm2724_vm4, %v12595_v38, %v7753_v16 }
 0x239   :  { %v12991_v0 = vpop.permute.xlu0 %8410  ;;  %v13019_v3 = vsel %vm2724_vm4, %v12612_v23, %v7758_v63  ;;  %v13023_v35 = vsel %vm2724_vm4, %v12615_v46, %v7757_v12  ;;  %v7777_v19 = vunpack.i.l.bf16 %v18589_v9  ;;  %v13028_v29 = vsel %vm2724_vm4, %v12834_v50, %v7762_v44  ;;  %v18592_v23 = vld [vmem:[#allocation15_spill] sm:$0xff]  ;;  %v18594_v9 = vld [vmem:[#allocation110_spill] sm:$0xff]  ;;  %v18597_v44 = vld [vmem:[#allocation16_spill] sm:$0xff] }
 0x23a   :  { %18587 = vst [vmem:[#allocation54_spill] sm:$0xff] %v12991_v0  ;;  %v13032_v43 = vsel %vm2724_vm4, %v12829_v31, %v7763_v8  ;;  %v13036_v38 = vsel %vm2724_vm4, %v12839_v5, %v7768_v30  ;;  %8705 = vrot.lane.b32.xlu1 %v18592_v23, %s10068_s1  ;;  %v13044_v46 = vsel %vm2724_vm4, %v12848_v51, %v7767_v59  ;;  %v7783_v16 = vunpack.i.h.bf16 %v18594_v9  ;;  %v18595_v12 = vld [vmem:[#allocation111_spill] sm:$0xff]  ;;  %v18599_v30 = vld [vmem:[#allocation113_spill] sm:$0xff] }
 0x23b   :  { %v13009_v0 = vpop.permute.xlu1 %8415  ;;  %8700 = vrot.lane.b32.xlu0 %v18591_v14, %s10068_s1  ;;  %v13048_v50 = vsel %vm2724_vm4, %v12858_v61, %v7772_v20  ;;  %v13052_v31 = vsel %vm2724_vm4, %v12853_v33, %v7773_v57  ;;  %v13056_v5 = vsel %vm2724_vm4, %v12864_v4, %v7778_v36  ;;  %v7782_v63 = vunpack.i.l.bf16 %v18594_v9  ;;  %v18598_v57 = vld [vmem:[#allocation112_spill] sm:$0xff]  ;;  %v18600_v14 = vld [vmem:[#allocation114_spill] sm:$0xff]  ;;  %v18601_v9 = vld [vmem:[#allocation17_spill] sm:$0xff] }
 0x23c   :  { %18590 = vst [vmem:[#allocation65_spill] sm:$0xff] %v13009_v0  ;;  %v7788_v8 = vunpack.i.h.bf16 %v18595_v12  ;;  %v13067_v61 = vsel %vm2724_vm4, %v12869_v39, %v7777_v19  ;;  %v7787_v33 = vunpack.i.l.bf16 %v18595_v12  ;;  %v7793_v4 = vunpack.i.h.bf16 %v18598_v57  ;;  %v18603_v19 = vld [vmem:[#allocation116_spill] sm:$0xff] }
 0x23d   :  { %v13040_v17 = vpop.permute.xlu0 %8420  ;;  %v7792_v36 = vunpack.i.l.bf16 %v18598_v57  ;;  %v7798_v59 = vunpack.i.h.bf16 %v18599_v30  ;;  %v7797_v20 = vunpack.i.l.bf16 %v18599_v30  ;;  %v7802_v23 = vunpack.i.l.bf16 %v18600_v14 }
 0x23e   :  { %18593 = vst [vmem:[#allocation71_spill] sm:$0xff] %v13040_v17  ;;  %8715 = vrot.lane.b32.xlu1 %v18601_v9, %s10068_s1  ;;  %v7803_v39 = vunpack.i.h.bf16 %v18600_v14  ;;  %v7882_v12 = vunpack.i.l.bf16 %v18603_v19  ;;  %v18604_v17 = vld [vmem:[#allocation117_spill] sm:$0xff]  ;;  %v13085_v57 = vsel %vm2724_vm4, %v12881_v40, %v7782_v63  ;;  %v13089_v30 = vsel %vm2724_vm4, %v12874_v49, %v7783_v16 }
 0x23f   :  { %v13061_v51 = vpop.permute.xlu1 %8425  ;;  %8710 = vrot.lane.b32.xlu0 %v18597_v44, %s10068_s1  ;;  %v7887_v0 = vunpack.i.l.bf16 %v18604_v17  ;;  %v13093_v9 = vsel %vm2724_vm4, %v12884_v41, %v7788_v8  ;;  %v18606_v14 = vld [vmem:[#allocation21_spill] sm:$0xff]  ;;  %v13105_v40 = vsel %vm2724_vm4, %v12900_v26, %v7792_v36  ;;  %v13109_v49 = vsel %vm2724_vm4, %v12890_v55, %v7793_v4  ;;  %v18607_v26 = vld [vmem:[#allocation34_spill] sm:$0xff]  ;;  %v18610_v36 = vld [vmem:[#allocation119_spill] sm:$0xff] }
 0x240   :  { %18596 = vst [vmem:[#allocation55_spill] sm:$0xff] %v13061_v51  ;;  %v7883_v51 = vunpack.i.h.bf16 %v18603_v19  ;;  %v13101_v19 = vsel %vm2724_vm4, %v12887_v25, %v7787_v33  ;;  %v7888_v41 = vunpack.i.h.bf16 %v18604_v17  ;;  %v13114_v16 = vsel %vm2724_vm4, %v12916_v13, %v7798_v59  ;;  %v18609_v17 = vld [vmem:[#allocation118_spill] sm:$0xff] }
 0x241   :  { %v13077_v44 = vpop.permute.xlu0 %8430  ;;  %v13118_v63 = vsel %vm2724_vm4, %v12919_v10, %v7797_v20  ;;  %v13122_v25 = vsel %vm2724_vm4, %v12929_v15, %v7802_v23  ;;  %v13130_v55 = vsel %vm2724_vm4, %v12922_v60, %v7803_v39  ;;  %v13134_v13 = vsel %vm2789_vm5, %v12933_v1, %v7882_v12  ;;  %v18611_v20 = vld [vmem:[#allocation22_spill] sm:$0xff] }
 0x242   :  { %18602 = vst [vmem:[#allocation75_spill] sm:$0xff] %v13077_v44  ;;  %8725 = vrot.lane.b32.xlu1 %v18607_v26, %s10068_s1  ;;  %v13138_v10 = vsel %vm2789_vm5, %v12937_v6, %v7883_v51  ;;  %v13142_v15 = vsel %vm2789_vm5, %v12942_v2, %v7887_v0  ;;  %v7893_v33 = vunpack.i.h.bf16 %v18609_v17  ;;  %v7892_v4 = vunpack.i.l.bf16 %v18609_v17  ;;  %v18612_v2 = vld [vmem:[#allocation120_spill] sm:$0xff] }
 0x243   :  { %v13095_v44 = vpop.permute.xlu1 %8435  ;;  %8720 = vrot.lane.b32.xlu0 %v18606_v14, %s10068_s1  ;;  %v7897_v59 = vunpack.i.l.bf16 %v18610_v36  ;;  %v13151_v1 = vsel %vm2789_vm5, %v12946_v58, %v7888_v41  ;;  %v7898_v6 = vunpack.i.h.bf16 %v18610_v36  ;;  %v7903_v0 = vunpack.i.h.bf16 %v18612_v2 }
 0x244   :  { %18605 = vst [vmem:[#allocation58_spill] sm:$0xff] %v13095_v44  ;;  %v7902_v39 = vunpack.i.l.bf16 %v18612_v2  ;;  %v13168_v17 = vsel %vm2789_vm5, %v12958_v32, %v7892_v4  ;;  %v13172_v36 = vsel %vm2789_vm5, %v12950_v22, %v7893_v33  ;;  %v18640_v44 = vld [vmem:[#allocation156_spill] sm:$0xff] }
 0x245   :  { %v13126_v8 = vpop.permute.xlu0 %8440  ;;  %v13190_v22 = vsel %vm2789_vm5, %v12962_v54, %v7898_v6 }
 0x246   :  { %18608 = vst [vmem:[#allocation77_spill] sm:$0xff] %v13126_v8  ;;  %8735 = vrot.lane.b32.xlu1 %v18380_v56, %s10068_s1  ;;  %v13176_v56 = vsel %vm2789_vm5, %v12966_v24, %v7897_v59  ;;  %v13194_v24 = vsel %vm2789_vm5, %v12970_v45, %v7902_v39 }
 0x247   :  { %v8446_v60 = vpop.permute.xlu1 %8445  ;;  %8730 = vrot.lane.b32.xlu0 %v18611_v20, %s10068_s1 }
 0x248   :  { %v8448_v51 = vunpack.i.h.bf16 %v8446_v60  ;;  %v8447_v23 = vunpack.i.l.bf16 %v8446_v60 }
 0x249   :  { %v8451_v12 = vpop.permute.xlu0 %8450 }
 0x24a   :  { %v13160_v14 = vsel %vm2984_vm10, %v12424_v53, %v8447_v23  ;;  %v13164_v58 = vsel %vm2984_vm10, %v12428_v28, %v8448_v51  ;;  %v8453_v41 = vunpack.i.h.bf16 %v8451_v12  ;;  %v8452_v26 = vunpack.i.l.bf16 %v8451_v12  ;;  %8745 = vrot.lane.b32.xlu1 %v18382_v48, %s10068_s1  ;;  %v18615_v48 = vld [vmem:[#allocation145_spill] sm:$0xff] }
 0x24b   :  { %v8456_v53 = vpop.permute.xlu1 %8455  ;;  %8740 = vrot.lane.b32.xlu0 %v18381_v62, %s10068_s1  ;;  %v13198_v62 = vsel %vm2789_vm5, %v12981_v18, %v7903_v0  ;;  %v18614_v18 = vld [vmem:[#allocation123_spill] sm:$0xff]  ;;  %v18617_v0 = vld [vmem:[#allocation149_spill] sm:$0xff] }
 0x24c   :  { %v13182_v28 = vsel %vm2984_vm10, %v12434_v47, %v8452_v26  ;;  %v13186_v32 = vsel %vm2984_vm10, %v12438_v11, %v8453_v41  ;;  %v8458_v4 = vunpack.i.h.bf16 %v8456_v53  ;;  %v8457_v60 = vunpack.i.l.bf16 %v8456_v53  ;;  %v18613_v47 = vld [vmem:[#allocation122_spill] sm:$0xff]  ;;  %v18619_v26 = vld [vmem:[#allocation124_spill] sm:$0xff] }
 0x24d   :  { %v7907_v33 = vunpack.i.l.bf16 %v18613_v47  ;;  %v8461_v11 = vpop.permute.xlu0 %8460  ;;  %v7908_v6 = vunpack.i.h.bf16 %v18613_v47  ;;  %v7913_v51 = vunpack.i.h.bf16 %v18614_v18  ;;  %v7912_v23 = vunpack.i.l.bf16 %v18614_v18  ;;  %v18625_v18 = vld [vmem:[#allocation152_spill] sm:$0xff] }
 0x24e   :  { %v13205_v59 = vsel %vm2984_vm10, %v12446_v34, %v8457_v60  ;;  %v13209_v54 = vsel %vm2984_vm10, %v12450_v21, %v8458_v4  ;;  %v8463_v45 = vunpack.i.h.bf16 %v8461_v11  ;;  %v8462_v20 = vunpack.i.l.bf16 %v8461_v11  ;;  %v18621_v60 = vld [vmem:[#allocation80_spill] sm:$0xff] }
 0x24f   :  { %v8466_v2 = vpop.permute.xlu1 %8465  ;;  %8750 = vrot.lane.b32.xlu0 %v11707_v37, %s10068_s1  ;;  %v13226_v41 = vsel %vm2789_vm5, %v13003_v27, %v7907_v33  ;;  %v7918_v53 = vunpack.i.h.bf16 %v18619_v26  ;;  %v7917_v4 = vunpack.i.l.bf16 %v18619_v26  ;;  %v18620_v37 = vld [vmem:[#allocation85_spill] sm:$0xff]  ;;  %v13252_v26 = vsel %vm2789_vm5, %v13015_v52, %v7913_v51 }
 0x250   :  { %v13218_v34 = vsel %vm2984_vm10, %v18615_v48, %v8462_v20  ;;  %v13222_v21 = vsel %vm2984_vm10, %v18617_v0, %v8463_v45  ;;  %v8468_v39 = vunpack.i.h.bf16 %v8466_v2  ;;  %v8467_v12 = vunpack.i.l.bf16 %v8466_v2  ;;  %v18623_v20 = vld [vmem:[#allocation148_spill] sm:$0xff]  ;;  %v18632_v51 = vld [vmem:[#allocation125_spill] sm:$0xff] }
 0x251   :  { %18616 = vst [vmem:[#allocation60_spill] sm:$0xff] %v13218_v34  ;;  %18618 = vst [vmem:[#allocation81_spill] sm:$0xff] %v13222_v21  ;;  %v18622_v47 = vpack.i.bf16 %v18620_v37, %v18621_v60  ;;  %v8471_v11 = vpop.permute.xlu0 %8470  ;;  %v13244_v48 = vsel %vm2789_vm5, %v12999_v7, %v7908_v6  ;;  %v13248_v0 = vsel %vm2789_vm5, %v13007_v42, %v7912_v23  ;;  %v18627_v37 = vld [vmem:[#allocation26_spill] sm:$0xff]  ;;  %v7922_v23 = vunpack.i.l.bf16 %v18632_v51  ;;  %v18674_v34 = vld [vmem:[#allocation35_spill] sm:$0xff] }
 0x252   :  { %v13236_v45 = vsel %vm2984_vm10, %v18623_v20, %v8467_v12  ;;  %v13240_v2 = vsel %vm2984_vm10, %v18625_v18, %v8468_v39  ;;  %v8473_v27 = vunpack.i.h.bf16 %v8471_v11  ;;  %v8472_v33 = vunpack.i.l.bf16 %v8471_v11  ;;  %v18628_v39 = vld [vmem:[#allocation151_spill] sm:$0xff] }
 0x253   :  { %8755 = vrot.lane.b32.xlu1 %v18622_v47, %s10068_s1  ;;  %18624 = vst [vmem:[#allocation83_spill] sm:$0xff] %v13236_v45  ;;  %18626 = vst [vmem:[#allocation63_spill] sm:$0xff] %v13240_v2  ;;  %v8476_v12 = vpop.permute.xlu1 %8475  ;;  %8760 = vrot.lane.b32.xlu0 %v18627_v37, %s10068_s1  ;;  %v18630_v47 = vld [vmem:[#allocation154_spill] sm:$0xff]  ;;  %v13266_v42 = vsel %vm2789_vm5, %v13023_v35, %v7917_v4  ;;  %v13270_v52 = vsel %vm2789_vm5, %v13019_v3, %v7918_v53  ;;  %v18633_v20 = vld [vmem:[#allocation27_spill] sm:$0xff] }
 0x254   :  { %v13258_v60 = vsel %vm2984_vm10, %v18628_v39, %v8472_v33  ;;  %v13262_v7 = vsel %vm2984_vm10, %v18630_v47, %v8473_v27  ;;  %v8478_v6 = vunpack.i.h.bf16 %v8476_v12  ;;  %v8477_v11 = vunpack.i.l.bf16 %v8476_v12  ;;  %v18634_v33 = vld [vmem:[#allocation153_spill] sm:$0xff]  ;;  %v18638_v3 = vld [vmem:[#allocation126_spill] sm:$0xff] }
 0x255   :  { %18629 = vst [vmem:[#allocation84_spill] sm:$0xff] %v13258_v60  ;;  %18631 = vst [vmem:[#allocation66_spill] sm:$0xff] %v13262_v7  ;;  %v8481_v18 = vpop.permute.xlu0 %8480  ;;  %v18636_v37 = vld [vmem:[#allocation157_spill] sm:$0xff]  ;;  %v7923_v39 = vunpack.i.h.bf16 %v18632_v51  ;;  %v7928_v53 = vunpack.i.h.bf16 %v18638_v3  ;;  %v7927_v47 = vunpack.i.l.bf16 %v18638_v3  ;;  %v13298_v51 = vsel %vm2789_vm5, %v13028_v29, %v7922_v23 }
 0x256   :  { %v13277_v27 = vsel %vm2984_vm10, %v18634_v33, %v8477_v11  ;;  %v13281_v12 = vsel %vm2984_vm10, %v18636_v37, %v8478_v6  ;;  %v8483_v35 = vunpack.i.h.bf16 %v8481_v18  ;;  %v8482_v4 = vunpack.i.l.bf16 %v8481_v18  ;;  %v18642_v33 = vld [vmem:[#allocation159_spill] sm:$0xff]  ;;  %v18669_v60 = vld [vmem:[#allocation41_spill] sm:$0xff] }
 0x257   :  { %8765 = vrot.lane.b32.xlu1 %v18633_v20, %s10068_s1  ;;  %18635 = vst [vmem:[#allocation86_spill] sm:$0xff] %v13277_v27  ;;  %18637 = vst [vmem:[#allocation68_spill] sm:$0xff] %v13281_v12  ;;  %v8486_v8 = vpop.permute.xlu1 %8485  ;;  %v18639_v20 = vld [vmem:[#allocation28_spill] sm:$0xff]  ;;  %v18644_v12 = vld [vmem:[#allocation129_spill] sm:$0xff]  ;;  %v13314_v29 = vsel %vm2789_vm5, %v13032_v43, %v7923_v39  ;;  %v13318_v23 = vsel %vm2789_vm5, %v13044_v46, %v7927_v47 }
 0x258   :  { %8770 = vrot.lane.b32.xlu0 %v18639_v20, %s10068_s1  ;;  %v13290_v11 = vsel %vm2984_vm10, %v18640_v44, %v8482_v4  ;;  %v13294_v6 = vsel %vm2984_vm10, %v18642_v33, %v8483_v35  ;;  %v8488_v37 = vunpack.i.h.bf16 %v8486_v8  ;;  %v8487_v18 = vunpack.i.l.bf16 %v8486_v8  ;;  %v18645_v20 = vld [vmem:[#allocation31_spill] sm:$0xff]  ;;  %v18646_v44 = vld [vmem:[#allocation158_spill] sm:$0xff]  ;;  %v18648_v35 = vld [vmem:[#allocation8_spill] sm:$0xff] }
 0x259   :  { %18641 = vst [vmem:[#allocation70_spill] sm:$0xff] %v13290_v11  ;;  %18643 = vst [vmem:[#allocation73_spill] sm:$0xff] %v13294_v6  ;;  %v7933_v3 = vunpack.i.h.bf16 %v18644_v12  ;;  %v7932_v27 = vunpack.i.l.bf16 %v18644_v12  ;;  %v8491_v7 = vpop.permute.xlu0 %8490  ;;  %v13322_v12 = vsel %vm2789_vm5, %v13036_v38, %v7928_v53  ;;  %v18655_v53 = vld [vmem:[#allocation134_spill] sm:$0xff]  ;;  %v18668_v11 = vld [vmem:[#allocation147_spill] sm:$0xff] }
 0x25a   :  { %v13306_v4 = vsel %vm2984_vm10, %v18646_v44, %v8487_v18  ;;  %v13310_v33 = vsel %vm2984_vm10, %v18648_v35, %v8488_v37  ;;  %v8493_v8 = vunpack.i.h.bf16 %v8491_v7  ;;  %v8492_v6 = vunpack.i.l.bf16 %v8491_v7  ;;  %v18651_v37 = vld [vmem:[#allocation10_spill] sm:$0xff]  ;;  %v18653_v7 = vld [vmem:[#allocation11_spill] sm:$0xff]  ;;  %v18670_v2 = vld [vmem:[#allocation29_spill] sm:$0xff] }
 0x25b   :  { %8775 = vrot.lane.b32.xlu1 %v18645_v20, %s10068_s1  ;;  %18647 = vst [vmem:[#allocation87_spill] sm:$0xff] %v13306_v4  ;;  %18649 = vst [vmem:[#allocation76_spill] sm:$0xff] %v13310_v33  ;;  %v8496_v18 = vpop.permute.xlu1 %8495  ;;  %v18650_v20 = vld [vmem:[#allocation32_spill] sm:$0xff]  ;;  %v13336_v46 = vsel %vm2789_vm5, %v13048_v50, %v7932_v27  ;;  %v13340_v38 = vsel %vm2789_vm5, %v13052_v31, %v7933_v3  ;;  %v7938_v47 = vunpack.i.h.bf16 %v18655_v53  ;;  %v18661_v31 = vld [vmem:[#allocation138_spill] sm:$0xff] }
 0x25c   :  { %8780 = vrot.lane.b32.xlu0 %v18650_v20, %s10068_s1  ;;  %v13328_v44 = vsel %vm2984_vm10, %v18651_v37, %v8492_v6  ;;  %v13332_v43 = vsel %vm2984_vm10, %v18653_v7, %v8493_v8  ;;  %v8498_v39 = vunpack.i.h.bf16 %v8496_v18  ;;  %v8497_v35 = vunpack.i.l.bf16 %v8496_v18  ;;  %v18656_v20 = vld [vmem:[#allocation13_spill] sm:$0xff]  ;;  %v18657_v37 = vld [vmem:[#allocation12_spill] sm:$0xff]  ;;  %v18659_v7 = vld [vmem:[#allocation14_spill] sm:$0xff] }
 0x25d   :  { %18652 = vst [vmem:[#allocation88_spill] sm:$0xff] %v13328_v44  ;;  %18654 = vst [vmem:[#allocation89_spill] sm:$0xff] %v13332_v43  ;;  %v8501_v6 = vpop.permute.xlu0 %8500  ;;  %v7937_v43 = vunpack.i.l.bf16 %v18655_v53  ;;  %v7943_v3 = vunpack.i.h.bf16 %v18661_v31  ;;  %v7942_v44 = vunpack.i.l.bf16 %v18661_v31  ;;  %v18663_v4 = vld [vmem:[#allocation19_spill] sm:$0xff]  ;;  %v7953_v31 = vunpack.i.h.bf16 %v18668_v11 }
 0x25e   :  { %v13347_v8 = vsel %vm2984_vm10, %v18657_v37, %v8497_v35  ;;  %v13351_v18 = vsel %vm2984_vm10, %v18659_v7, %v8498_v39  ;;  %v8503_v50 = vunpack.i.h.bf16 %v8501_v6  ;;  %v8502_v27 = vunpack.i.l.bf16 %v8501_v6  ;;  %v18665_v37 = vld [vmem:[#allocation20_spill] sm:$0xff] }
 0x25f   :  { %8785 = vrot.lane.b32.xlu1 %v18656_v20, %s10068_s1  ;;  %18658 = vst [vmem:[#allocation79_spill] sm:$0xff] %v13347_v8  ;;  %18660 = vst [vmem:[#allocation82_spill] sm:$0xff] %v13351_v18  ;;  %v8506_v33 = vpop.permute.xlu1 %8505  ;;  %v18662_v20 = vld [vmem:[#allocation33_spill] sm:$0xff]  ;;  %v18667_v18 = vld [vmem:[#allocation143_spill] sm:$0xff] }
 0x260   :  { %8790 = vrot.lane.b32.xlu0 %v18662_v20, %s10068_s1  ;;  %v13360_v35 = vsel %vm2984_vm10, %v18663_v4, %v8502_v27  ;;  %v13364_v39 = vsel %vm2984_vm10, %v18665_v37, %v8503_v50  ;;  %v8508_v7 = vunpack.i.h.bf16 %v8506_v33  ;;  %v8507_v6 = vunpack.i.l.bf16 %v8506_v33  ;;  %v18671_v27 = vld [vmem:[#allocation30_spill] sm:$0xff] }
 0x261   :  { %18664 = vst [vmem:[#allocation121_spill] sm:$0xff] %v13360_v35  ;;  %18666 = vst [vmem:[#allocation99_spill] sm:$0xff] %v13364_v39  ;;  %v7948_v53 = vunpack.i.h.bf16 %v18667_v18  ;;  %v7947_v8 = vunpack.i.l.bf16 %v18667_v18  ;;  %v8511_v20 = vpop.permute.xlu0 %8510  ;;  %v7952_v39 = vunpack.i.l.bf16 %v18668_v11  ;;  %v18672_v35 = vld [vmem:[#allocation150_spill] sm:$0xff]  ;;  %v13394_v11 = vsel %vm2789_vm5, %v13067_v61, %v7937_v43 }
 0x262   :  { %v13373_v4 = vsel %vm2984_vm10, %v18670_v2, %v8507_v6  ;;  %v13377_v50 = vsel %vm2984_vm10, %v18671_v27, %v8508_v7  ;;  %v8513_v37 = vunpack.i.h.bf16 %v8511_v20  ;;  %v8512_v33 = vunpack.i.l.bf16 %v8511_v20  ;;  %v18676_v6 = vld [vmem:[#allocation36_spill] sm:$0xff]  ;;  %v18679_v43 = vld [vmem:[#allocation38_spill] sm:$0xff] }
 0x263   :  { %8795 = vrot.lane.b32.xlu1 %v18669_v60, %s10068_s1  ;;  %v7958_v18 = vunpack.i.h.bf16 %v18672_v35  ;;  %v7957_v45 = vunpack.i.l.bf16 %v18672_v35  ;;  %v8516_v21 = vpop.permute.xlu1 %8515  ;;  %v18673_v60 = vld [vmem:[#allocation42_spill] sm:$0xff]  ;;  %v13398_v35 = vsel %vm2789_vm5, %v13056_v5, %v7938_v47  ;;  %v13414_v61 = vsel %vm2789_vm5, %v13101_v19, %v7947_v8  ;;  %v18681_v47 = vld [vmem:[#allocation43_spill] sm:$0xff] }
 0x264   :  { %8800 = vrot.lane.b32.xlu0 %v18673_v60, %s10068_s1  ;;  %v13386_v2 = vsel %vm2984_vm10, %v18674_v34, %v8512_v33  ;;  %v13390_v7 = vsel %vm2984_vm10, %v18676_v6, %v8513_v37  ;;  %v8518_v27 = vunpack.i.h.bf16 %v8516_v21  ;;  %v8517_v20 = vunpack.i.l.bf16 %v8516_v21  ;;  %v18678_v34 = vld [vmem:[#allocation44_spill] sm:$0xff]  ;;  %v18686_v6 = vld [vmem:[#allocation23_spill] sm:$0xff] }
 0x265   :  { %18675 = vst [vmem:[#allocation100_spill] sm:$0xff] %v13386_v2  ;;  %18677 = vst [vmem:[#allocation101_spill] sm:$0xff] %v13390_v7  ;;  %v13402_v60 = vsel %vm2789_vm5, %v13085_v57, %v7942_v44  ;;  %v13406_v33 = vpop.permute.xlu0 %8520  ;;  %v13410_v21 = vsel %vm2789_vm5, %v13089_v30, %v7943_v3  ;;  %v13426_v44 = vsel %vm2789_vm5, %v13093_v9, %v7948_v53  ;;  %v18684_v3 = vld [vmem:[#allocation46_spill] sm:$0xff]  ;;  %v18685_v53 = vld [vmem:[#allocation155_spill] sm:$0xff] }
 0x266   :  { %v13418_v5 = vsel %vm2984_vm10, %v18679_v43, %v8517_v20  ;;  %v13422_v57 = vsel %vm2984_vm10, %v18681_v47, %v8518_v27  ;;  %v13430_v30 = vsel %vm2789_vm5, %v13105_v40, %v7952_v39  ;;  %v13434_v19 = vsel %vm2789_vm5, %v13109_v49, %v7953_v31  ;;  %v18687_v27 = vld [vmem:[#allocation24_spill] sm:$0xff]  ;;  %v18691_v47 = vld [vmem:[#allocation18_spill] sm:$0xff] }
 0x267   :  { %8805 = vrot.lane.b32.xlu1 %v18678_v34, %s10068_s1  ;;  %18680 = vst [vmem:[#allocation102_spill] sm:$0xff] %v13418_v5  ;;  %18682 = vst [vmem:[#allocation103_spill] sm:$0xff] %v13422_v57  ;;  %v13436_v8 = vpop.permute.xlu1 %8525  ;;  %v13442_v37 = vsel %vm2789_vm5, %v13118_v63, %v7957_v45  ;;  %v13446_v9 = vsel %vm2789_vm5, %v13114_v16, %v7958_v18  ;;  %v7963_v40 = vunpack.i.h.bf16 %v18685_v53  ;;  %v7962_v39 = vunpack.i.l.bf16 %v18685_v53  ;;  %v18688_v34 = vld [vmem:[#allocation48_spill] sm:$0xff]  ;;  %v18690_v45 = vld [vmem:[#allocation25_spill] sm:$0xff] }
 0x268   :  { %18683 = vst [vmem:[#allocation90_spill] sm:$0xff] %v13436_v8  ;;  %8810 = vrot.lane.b32.xlu0 %v18684_v3, %s10068_s1  ;;  %v8043_v49 = vunpack.i.h.bf16 %v18686_v6  ;;  %v8042_v31 = vunpack.i.l.bf16 %v18686_v6  ;;  %v8047_v20 = vunpack.i.l.bf16 %v18687_v27  ;;  %v8048_v63 = vunpack.i.h.bf16 %v18687_v27  ;;  %v18692_v57 = vld [vmem:[#allocation40_spill] sm:$0xff] }
 0x269   :  { %v13455_v43 = vpop.permute.xlu0 %8530  ;;  %v8053_v16 = vunpack.i.h.bf16 %v18690_v45  ;;  %v8052_v18 = vunpack.i.l.bf16 %v18690_v45  ;;  %v8057_v3 = vunpack.i.l.bf16 %v18691_v47  ;;  %v8058_v53 = vunpack.i.h.bf16 %v18691_v47 }
 0x26a   :  { %18689 = vst [vmem:[#allocation91_spill] sm:$0xff] %v13455_v43  ;;  %v8063_v5 = vunpack.i.h.bf16 %v18692_v57  ;;  %v8062_v6 = vunpack.i.l.bf16 %v18692_v57  ;;  %v13470_v27 = vsel %vm2789_vm5, %v13122_v25, %v7962_v39  ;;  %v13474_v45 = vsel %vm2789_vm5, %v13130_v55, %v7963_v40  ;;  %v18695_v43 = vld [vmem:[#allocation161_spill] sm:$0xff]  ;;  %v18696_v39 = vld [vmem:[#allocation162_spill] sm:$0xff] }
 0x26b   :  { %8815 = vrot.lane.b32.xlu1 %v18688_v34, %s10068_s1  ;;  %v13464_v7 = vpop.permute.xlu1 %8535  ;;  %v18694_v34 = vld [vmem:[#allocation50_spill] sm:$0xff]  ;;  %v8068_v2 = vunpack.i.h.bf16 %v18695_v43  ;;  %v8067_v47 = vunpack.i.l.bf16 %v18695_v43  ;;  %v13480_v57 = vsel %vm2854_vm6, %v13134_v13, %v8042_v31  ;;  %v13488_v25 = vsel %vm2854_vm6, %v13142_v15, %v8047_v20  ;;  %v18697_v55 = vld [vmem:[#allocation53_spill] sm:$0xff]  ;;  %v18700_v20 = vld [vmem:[#allocation160_spill] sm:$0xff] }
 0x26c   :  { %18693 = vst [vmem:[#allocation104_spill] sm:$0xff] %v13464_v7  ;;  %8820 = vrot.lane.b32.xlu0 %v18694_v34, %s10068_s1  ;;  %v13484_v7 = vsel %vm2854_vm6, %v13138_v10, %v8043_v49  ;;  %v8072_v34 = vunpack.i.l.bf16 %v18696_v39  ;;  %v13497_v43 = vsel %vm2854_vm6, %v13151_v1, %v8048_v63  ;;  %v13501_v13 = vsel %vm2854_vm6, %v13168_v17, %v8052_v18 }
 0x26d   :  { %v13493_v40 = vpop.permute.xlu0 %8540  ;;  %v13505_v10 = vsel %vm2854_vm6, %v13172_v36, %v8053_v16  ;;  %v13509_v15 = vsel %vm2854_vm6, %v13176_v56, %v8057_v3  ;;  %v13513_v49 = vsel %vm2854_vm6, %v13190_v22, %v8058_v53  ;;  %v13517_v1 = vsel %vm2854_vm6, %v13194_v24, %v8062_v6  ;;  %v18701_v24 = vld [vmem:[#allocation163_spill] sm:$0xff]  ;;  %v18702_v16 = vld [vmem:[#allocation56_spill] sm:$0xff] }
 0x26e   :  { %18698 = vst [vmem:[#allocation105_spill] sm:$0xff] %v13493_v40  ;;  %v13521_v17 = vsel %vm2854_vm6, %v13198_v62, %v8063_v5  ;;  %v8073_v31 = vunpack.i.h.bf16 %v18696_v39  ;;  %v13530_v56 = vsel %vm2854_vm6, %v13226_v41, %v8067_v47  ;;  %v13534_v22 = vsel %vm2854_vm6, %v13244_v48, %v8068_v2  ;;  %v18703_v53 = vld [vmem:[#allocation59_spill] sm:$0xff]  ;;  %v18704_v41 = vld [vmem:[#allocation130_spill] sm:$0xff] }
 0x26f   :  { %8825 = vrot.lane.b32.xlu1 %v18697_v55, %s10068_s1  ;;  %v13524_v36 = vpop.permute.xlu1 %8545  ;;  %v8078_v63 = vunpack.i.h.bf16 %v18701_v24  ;;  %v8077_v62 = vunpack.i.l.bf16 %v18701_v24  ;;  %v13540_v5 = vsel %vm2854_vm6, %v13248_v0, %v8072_v34  ;;  %v8083_v18 = vunpack.i.h.bf16 %v18702_v16  ;;  %v18705_v47 = vld [vmem:[#allocation131_spill] sm:$0xff]  ;;  %v18708_v55 = vld [vmem:[#allocation62_spill] sm:$0xff]  ;;  %v18709_v34 = vld [vmem:[#allocation64_spill] sm:$0xff] }
 0x270   :  { %18699 = vst [vmem:[#allocation92_spill] sm:$0xff] %v13524_v36  ;;  %8830 = vrot.lane.b32.xlu0 %v18700_v20, %s10068_s1  ;;  %v8082_v3 = vunpack.i.l.bf16 %v18702_v16  ;;  %v8087_v6 = vunpack.i.l.bf16 %v18703_v53  ;;  %v18706_v39 = vpack.i.bf16 %v18704_v41, %v18705_v47  ;;  %v8088_v2 = vunpack.i.h.bf16 %v18703_v53  ;;  %v18710_v40 = vld [vmem:[#allocation67_spill] sm:$0xff] }
 0x271   :  { %v13549_v48 = vpop.permute.xlu0 %8550  ;;  %v8093_v20 = vunpack.i.h.bf16 %v18708_v55  ;;  %v8092_v0 = vunpack.i.l.bf16 %v18708_v55  ;;  %v8097_v24 = vunpack.i.l.bf16 %v18709_v34  ;;  %v13557_v16 = vsel %vm2854_vm6, %v13252_v26, %v8073_v31  ;;  %v18712_v55 = vld [vmem:[#allocation69_spill] sm:$0xff] }
 0x272   :  { %18707 = vst [vmem:[#allocation106_spill] sm:$0xff] %v13549_v48  ;;  %v8098_v36 = vunpack.i.h.bf16 %v18709_v34  ;;  %v8103_v8 = vunpack.i.h.bf16 %v18710_v40  ;;  %v8102_v41 = vunpack.i.l.bf16 %v18710_v40  ;;  %v13566_v53 = vsel %vm2854_vm6, %v13266_v42, %v8077_v62  ;;  %v18713_v62 = vld [vmem:[#allocation72_spill] sm:$0xff] }
 0x273   :  { %8835 = vrot.lane.b32.xlu1 %v18706_v39, %s10068_s1  ;;  %v13562_v47 = vpop.permute.xlu1 %8555  ;;  %v13570_v39 = vsel %vm2854_vm6, %v13270_v52, %v8078_v63  ;;  %v8108_v48 = vunpack.i.h.bf16 %v18712_v55  ;;  %v8107_v26 = vunpack.i.l.bf16 %v18712_v55  ;;  %v13576_v31 = vsel %vm2854_vm6, %v13298_v51, %v8082_v3 }
 0x274   :  { %18711 = vst [vmem:[#allocation9_spill] sm:$0xff] %v13562_v47  ;;  %v13580_v40 = vsel %vm2854_vm6, %v13314_v29, %v8083_v18  ;;  %v13584_v42 = vsel %vm2854_vm6, %v13318_v23, %v8087_v6  ;;  %v8112_v34 = vunpack.i.l.bf16 %v18713_v62  ;;  %v13591_v63 = vsel %vm2854_vm6, %v13322_v12, %v8088_v2 }
 0x275   :  { %v13587_v52 = vpop.permute.xlu0 %8560  ;;  %v13595_v51 = vsel %vm2854_vm6, %v13336_v46, %v8092_v0  ;;  %v13599_v29 = vsel %vm2854_vm6, %v13340_v38, %v8093_v20  ;;  %v13603_v23 = vsel %vm2854_vm6, %v13394_v11, %v8097_v24  ;;  %v13607_v18 = vsel %vm2854_vm6, %v13398_v35, %v8098_v36  ;;  %v18716_v36 = vld [vmem:[#allocation74_spill] sm:$0xff]  ;;  %v18718_v0 = vld [vmem:[#allocation95_spill] sm:$0xff] }
 0x276   :  { %18714 = vst [vmem:[#allocation107_spill] sm:$0xff] %v13587_v52  ;;  %v13611_v12 = vsel %vm2854_vm6, %v13402_v60, %v8102_v41  ;;  %v13615_v46 = vsel %vm2854_vm6, %v13410_v21, %v8103_v8  ;;  %v8113_v3 = vunpack.i.h.bf16 %v18713_v62  ;;  %v13622_v11 = vsel %vm2854_vm6, %v13414_v61, %v8107_v26  ;;  %v18717_v8 = vld [vmem:[#allocation78_spill] sm:$0xff]  ;;  %v18721_v26 = vld [vmem:[#allocation97_spill] sm:$0xff] }
 0x277   :  { %v13618_v38 = vpop.permute.xlu1 %8565  ;;  %v13626_v35 = vsel %vm2854_vm6, %v13426_v44, %v8108_v48  ;;  %v8118_v6 = vunpack.i.h.bf16 %v18716_v36  ;;  %v8117_v60 = vunpack.i.l.bf16 %v18716_v36  ;;  %v13632_v21 = vsel %vm2854_vm6, %v13430_v30, %v8112_v34  ;;  %v18720_v44 = vld [vmem:[#allocation96_spill] sm:$0xff]  ;;  %v18722_v36 = vld [vmem:[#allocation98_spill] sm:$0xff] }
 0x278   :  { %18715 = vst [vmem:[#allocation93_spill] sm:$0xff] %v13618_v38  ;;  %v8123_v2 = vunpack.i.h.bf16 %v18717_v8  ;;  %v8122_v20 = vunpack.i.l.bf16 %v18717_v8  ;;  %v8202_v24 = vunpack.i.l.bf16 %v18718_v0  ;;  %v8203_v41 = vunpack.i.h.bf16 %v18718_v0 }
 0x279   :  { %v13637_v61 = vpop.permute.xlu0 %8570  ;;  %v8208_v48 = vunpack.i.h.bf16 %v18720_v44  ;;  %v8207_v55 = vunpack.i.l.bf16 %v18720_v44  ;;  %v8212_v62 = vunpack.i.l.bf16 %v18721_v26  ;;  %v13645_v30 = vsel %vm2854_vm6, %v13434_v19, %v8113_v3 }
 0x27a   :  { %18719 = vst [vmem:[#allocation108_spill] sm:$0xff] %v13637_v61  ;;  %v8213_v34 = vunpack.i.h.bf16 %v18721_v26  ;;  %v8218_v8 = vunpack.i.h.bf16 %v18722_v36  ;;  %v8217_v38 = vunpack.i.l.bf16 %v18722_v36  ;;  %v13654_v0 = vsel %vm2854_vm6, %v13442_v37, %v8117_v60  ;;  %v18724_v61 = vld [vmem:[#allocation128_spill] sm:$0xff]  ;;  %v18725_v60 = vld [vmem:[#allocation127_spill] sm:$0xff] }
 0x27b   :  { %v13650_v52 = vpop.permute.xlu1 %8575  ;;  %v13658_v44 = vsel %vm2854_vm6, %v13446_v9, %v8118_v6  ;;  %v8223_v47 = vunpack.i.h.bf16 %v18724_v61  ;;  %v8222_v19 = vunpack.i.l.bf16 %v18724_v61  ;;  %v13664_v3 = vsel %vm2854_vm6, %v13470_v27, %v8122_v20 }
 0x27c   :  { %18723 = vst [vmem:[#allocation109_spill] sm:$0xff] %v13650_v52  ;;  %v13668_v26 = vsel %vm2854_vm6, %v13474_v45, %v8123_v2  ;;  %v13672_v37 = vsel %vm2919_vm7, %v13480_v57, %v8202_v24  ;;  %v8227_v36 = vunpack.i.l.bf16 %v18725_v60  ;;  %v13679_v6 = vsel %vm2919_vm7, %v13484_v7, %v8203_v41  ;;  %v18728_v24 = vld [vmem:[#allocation133_spill] sm:$0xff] }
 0x27d   :  { %v13675_v9 = vpop.permute.xlu0 %8580  ;;  %v13683_v27 = vsel %vm2919_vm7, %v13488_v25, %v8207_v55  ;;  %v13687_v45 = vsel %vm2919_vm7, %v13497_v43, %v8208_v48  ;;  %v13691_v57 = vsel %vm2919_vm7, %v13501_v13, %v8212_v62  ;;  %v13695_v2 = vsel %vm2919_vm7, %v13505_v10, %v8213_v34  ;;  %v18730_v55 = vld [vmem:[#allocation136_spill] sm:$0xff] }
 0x27e   :  { %18726 = vst [vmem:[#allocation94_spill] sm:$0xff] %v13675_v9  ;;  %v13699_v7 = vsel %vm2919_vm7, %v13509_v15, %v8217_v38  ;;  %v13703_v25 = vsel %vm2919_vm7, %v13513_v49, %v8218_v8  ;;  %v8228_v20 = vunpack.i.h.bf16 %v18725_v60  ;;  %v13710_v13 = vsel %vm2919_vm7, %v13517_v1, %v8222_v19  ;;  %v18729_v38 = vld [vmem:[#allocation132_spill] sm:$0xff]  ;;  %v18733_v19 = vld [vmem:[#allocation139_spill] sm:$0xff] }
 0x27f   :  { %v13706_v43 = vpop.permute.xlu1 %8585  ;;  %v13714_v10 = vsel %vm2919_vm7, %v13521_v17, %v8223_v47  ;;  %v8233_v61 = vunpack.i.h.bf16 %v18728_v24  ;;  %v8232_v15 = vunpack.i.l.bf16 %v18728_v24  ;;  %v13720_v49 = vsel %vm2919_vm7, %v13530_v56, %v8227_v36  ;;  %v18732_v47 = vld [vmem:[#allocation135_spill] sm:$0xff]  ;;  %v18734_v24 = vld [vmem:[#allocation137_spill] sm:$0xff] }
 0x280   :  { %18727 = vst [vmem:[#allocation15_spill] sm:$0xff] %v13706_v43  ;;  %v8238_v41 = vunpack.i.h.bf16 %v18729_v38  ;;  %v8237_v48 = vunpack.i.l.bf16 %v18729_v38  ;;  %v8242_v62 = vunpack.i.l.bf16 %v18730_v55  ;;  %v8243_v17 = vunpack.i.h.bf16 %v18730_v55 }
 0x281   :  { %v13725_v1 = vpop.permute.xlu0 %8590  ;;  %v8248_v34 = vunpack.i.h.bf16 %v18732_v47  ;;  %v8247_v8 = vunpack.i.l.bf16 %v18732_v47  ;;  %v8252_v60 = vunpack.i.l.bf16 %v18733_v19  ;;  %v13733_v56 = vsel %vm2919_vm7, %v13534_v22, %v8228_v20 }
 0x282   :  { %18731 = vst [vmem:[#allocation110_spill] sm:$0xff] %v13725_v1  ;;  %v8253_v36 = vunpack.i.h.bf16 %v18733_v19  ;;  %v8258_v38 = vunpack.i.h.bf16 %v18734_v24  ;;  %v8257_v43 = vunpack.i.l.bf16 %v18734_v24  ;;  %v13742_v55 = vsel %vm2919_vm7, %v13540_v5, %v8232_v15  ;;  %v18735_v1 = vld [vmem:[#allocation141_spill] sm:$0xff]  ;;  %v18736_v15 = vld [vmem:[#allocation140_spill] sm:$0xff] }
 0x283   :  { %v13738_v9 = vpop.permute.xlu1 %8595  ;;  %v13746_v47 = vsel %vm2919_vm7, %v13557_v16, %v8233_v61  ;;  %v8263_v52 = vunpack.i.h.bf16 %v18735_v1  ;;  %v8262_v22 = vunpack.i.l.bf16 %v18735_v1  ;;  %v13752_v20 = vsel %vm2919_vm7, %v13566_v53, %v8237_v48 }
 0x284   :  { %v13756_v19 = vsel %vm2919_vm7, %v13570_v39, %v8238_v41  ;;  %v13760_v5 = vsel %vm2919_vm7, %v13576_v31, %v8242_v62  ;;  %v8267_v24 = vunpack.i.l.bf16 %v18736_v15  ;;  %v13767_v61 = vsel %vm2919_vm7, %v13580_v40, %v8243_v17 }
 0x285   :  { %v13763_v16 = vpop.permute.xlu0 %8600  ;;  %v13771_v53 = vsel %vm2919_vm7, %v13584_v42, %v8247_v8  ;;  %v13775_v39 = vsel %vm2919_vm7, %v13591_v63, %v8248_v34  ;;  %v13779_v31 = vsel %vm2919_vm7, %v13595_v51, %v8252_v60  ;;  %v13783_v41 = vsel %vm2919_vm7, %v13599_v29, %v8253_v36  ;;  %v18739_v34 = vld [vmem:[#allocation142_spill] sm:$0xff] }
 0x286   :  { %18737 = vst [vmem:[#allocation111_spill] sm:$0xff] %v13763_v16  ;;  %v13787_v40 = vsel %vm2919_vm7, %v13603_v23, %v8257_v43  ;;  %v13791_v42 = vsel %vm2919_vm7, %v13607_v18, %v8258_v38  ;;  %v8268_v48 = vunpack.i.h.bf16 %v18736_v15  ;;  %v13796_v62 = vsel %vm2919_vm7, %v13611_v12, %v8262_v22  ;;  %v18738_v43 = vld [vmem:[#allocation144_spill] sm:$0xff]  ;;  %v18740_v22 = vld [vmem:[#allocation146_spill] sm:$0xff] }
 0x287   :  { %v8606_v63 = vpop.permute.xlu1 %8605  ;;  %v13800_v51 = vsel %vm2919_vm7, %v13615_v46, %v8263_v52  ;;  %v13804_v23 = vsel %vm2919_vm7, %v13622_v11, %v8267_v24  ;;  %v8273_v18 = vunpack.i.h.bf16 %v18738_v43  ;;  %v8272_v17 = vunpack.i.l.bf16 %v18738_v43 }
 0x288   :  { %v8608_v29 = vunpack.i.h.bf16 %v8606_v63  ;;  %v8607_v1 = vunpack.i.l.bf16 %v8606_v63  ;;  %v8277_v8 = vunpack.i.l.bf16 %v18739_v34  ;;  %v13819_v11 = vsel %vm2919_vm7, %v13626_v35, %v8268_v48 }
 0x289   :  { %v8611_v60 = vpop.permute.xlu0 %8610  ;;  %v8278_v38 = vunpack.i.h.bf16 %v18739_v34  ;;  %v8283_v15 = vunpack.i.h.bf16 %v18740_v22  ;;  %v8282_v24 = vunpack.i.l.bf16 %v18740_v22  ;;  %v13834_v35 = vsel %vm2919_vm7, %v13632_v21, %v8272_v17  ;;  %v18748_v22 = vld [vmem:[#allocation81_spill] sm:$0xff] }
 0x28a   :  { %v13811_v12 = vsel %vm3049_vm11, %v13160_v14, %v8607_v1  ;;  %v13815_v52 = vsel %vm3049_vm11, %v13164_v58, %v8608_v29  ;;  %v8613_v46 = vunpack.i.h.bf16 %v8611_v60  ;;  %v8612_v36 = vunpack.i.l.bf16 %v8611_v60 }
 0x28b   :  { %v8616_v63 = vpop.permute.xlu1 %8615  ;;  %v13838_v48 = vsel %vm2919_vm7, %v13645_v30, %v8273_v18  ;;  %v13842_v43 = vsel %vm2919_vm7, %v13654_v0, %v8277_v8  ;;  %v13855_v30 = vsel %vm2919_vm7, %v13658_v44, %v8278_v38  ;;  %v13859_v0 = vsel %vm2919_vm7, %v13664_v3, %v8282_v24 }
 0x28c   :  { %v13826_v14 = vsel %vm3049_vm11, %v13182_v28, %v8612_v36  ;;  %v13830_v58 = vsel %vm3049_vm11, %v13186_v32, %v8613_v46  ;;  %v8618_v29 = vunpack.i.h.bf16 %v8616_v63  ;;  %v8617_v1 = vunpack.i.l.bf16 %v8616_v63  ;;  %v18743_v28 = vld [vmem:[#allocation37_spill] sm:$0xff]  ;;  %v18746_v36 = vld [vmem:[#allocation60_spill] sm:$0xff] }
 0x28d   :  { %18741 = vst [vmem:[#allocation16_spill] sm:$0xff] %v13826_v14  ;;  %18742 = vst [vmem:[#allocation112_spill] sm:$0xff] %v13830_v58  ;;  %v8362_v34 = vunpack.i.l.bf16 %v18743_v28  ;;  %v8621_v60 = vpop.permute.xlu0 %8620  ;;  %v13863_v18 = vsel %vm2919_vm7, %v13668_v26, %v8283_v15  ;;  %v18800_v58 = vld [vmem:[#allocation102_spill] sm:$0xff] }
 0x28e   :  { %v13847_v32 = vsel %vm3049_vm11, %v13205_v59, %v8617_v1  ;;  %v13851_v46 = vsel %vm3049_vm11, %v13209_v54, %v8618_v29  ;;  %v8623_v21 = vunpack.i.h.bf16 %v8621_v60  ;;  %v8622_v17 = vunpack.i.l.bf16 %v8621_v60  ;;  %v18750_v29 = vld [vmem:[#allocation39_spill] sm:$0xff]  ;;  %v18751_v1 = vld [vmem:[#allocation45_spill] sm:$0xff] }
 0x28f   :  { %18744 = vst [vmem:[#allocation113_spill] sm:$0xff] %v13847_v32  ;;  %18745 = vst [vmem:[#allocation114_spill] sm:$0xff] %v13851_v46  ;;  %v8363_v59 = vunpack.i.h.bf16 %v18743_v28  ;;  %v8626_v8 = vpop.permute.xlu1 %8625  ;;  %v8368_v3 = vunpack.i.h.bf16 %v18750_v29  ;;  %v8367_v24 = vunpack.i.l.bf16 %v18750_v29  ;;  %v8372_v26 = vunpack.i.l.bf16 %v18751_v1  ;;  %v18752_v60 = vld [vmem:[#allocation83_spill] sm:$0xff] }
 0x290   :  { %v13868_v54 = vsel %vm3049_vm11, %v18746_v36, %v8622_v17  ;;  %v13872_v63 = vsel %vm3049_vm11, %v18748_v22, %v8623_v21  ;;  %v8628_v44 = vunpack.i.h.bf16 %v8626_v8  ;;  %v8627_v38 = vunpack.i.l.bf16 %v8626_v8  ;;  %v18754_v36 = vld [vmem:[#allocation63_spill] sm:$0xff] }
 0x291   :  { %18747 = vst [vmem:[#allocation17_spill] sm:$0xff] %v13868_v54  ;;  %18749 = vst [vmem:[#allocation116_spill] sm:$0xff] %v13872_v63  ;;  %v8631_v15 = vpop.permute.xlu0 %8630  ;;  %v13879_v28 = vsel %vm2984_vm10, %v13672_v37, %v8362_v34  ;;  %v8373_v16 = vunpack.i.h.bf16 %v18751_v1  ;;  %v18756_v29 = vld [vmem:[#allocation115_spill] sm:$0xff]  ;;  %v13894_v37 = vsel %vm2984_vm10, %v13679_v6, %v8363_v59  ;;  %v18757_v34 = vld [vmem:[#allocation84_spill] sm:$0xff]  ;;  %v13906_v1 = vsel %vm2984_vm10, %v13683_v27, %v8367_v24 }
 0x292   :  { %v13883_v17 = vsel %vm3049_vm11, %v18752_v60, %v8627_v38  ;;  %v13887_v21 = vsel %vm3049_vm11, %v18754_v36, %v8628_v44  ;;  %v8633_v8 = vunpack.i.h.bf16 %v8631_v15  ;;  %v8632_v22 = vunpack.i.l.bf16 %v8631_v15  ;;  %v18759_v60 = vld [vmem:[#allocation66_spill] sm:$0xff]  ;;  %v18761_v59 = vld [vmem:[#allocation47_spill] sm:$0xff] }
 0x293   :  { %18753 = vst [vmem:[#allocation117_spill] sm:$0xff] %v13883_v17  ;;  %18755 = vst [vmem:[#allocation21_spill] sm:$0xff] %v13887_v21  ;;  %v8378_v63 = vunpack.i.h.bf16 %v18756_v29  ;;  %v8377_v54 = vunpack.i.l.bf16 %v18756_v29  ;;  %v8636_v46 = vpop.permute.xlu1 %8635  ;;  %v13910_v29 = vsel %vm2984_vm10, %v13687_v45, %v8368_v3  ;;  %v13914_v6 = vsel %vm2984_vm10, %v13691_v57, %v8372_v26  ;;  %v18777_v17 = vld [vmem:[#allocation88_spill] sm:$0xff] }
 0x294   :  { %v13898_v38 = vsel %vm3049_vm11, %v18757_v34, %v8632_v22  ;;  %v13902_v44 = vsel %vm3049_vm11, %v18759_v60, %v8633_v8  ;;  %v8638_v15 = vunpack.i.h.bf16 %v8636_v46  ;;  %v8637_v36 = vunpack.i.l.bf16 %v8636_v46  ;;  %v18764_v46 = vld [vmem:[#allocation68_spill] sm:$0xff] }
 0x295   :  { %18758 = vst [vmem:[#allocation34_spill] sm:$0xff] %v13898_v38  ;;  %18760 = vst [vmem:[#allocation118_spill] sm:$0xff] %v13902_v44  ;;  %v8382_v22 = vunpack.i.l.bf16 %v18761_v59  ;;  %v8641_v34 = vpop.permute.xlu0 %8640  ;;  %v18762_v38 = vld [vmem:[#allocation86_spill] sm:$0xff]  ;;  %v13927_v45 = vsel %vm2984_vm10, %v13695_v2, %v8373_v16  ;;  %v13931_v57 = vsel %vm2984_vm10, %v13699_v7, %v8377_v54  ;;  %v13935_v3 = vsel %vm2984_vm10, %v13703_v25, %v8378_v63  ;;  %v18770_v54 = vld [vmem:[#allocation51_spill] sm:$0xff] }
 0x296   :  { %v13919_v8 = vsel %vm3049_vm11, %v18762_v38, %v8637_v36  ;;  %v13923_v60 = vsel %vm3049_vm11, %v18764_v46, %v8638_v15  ;;  %v8643_v27 = vunpack.i.h.bf16 %v8641_v34  ;;  %v8642_v24 = vunpack.i.l.bf16 %v8641_v34  ;;  %v18766_v36 = vld [vmem:[#allocation70_spill] sm:$0xff]  ;;  %v18768_v34 = vld [vmem:[#allocation73_spill] sm:$0xff]  ;;  %v18772_v44 = vld [vmem:[#allocation87_spill] sm:$0xff] }
 0x297   :  { %18763 = vst [vmem:[#allocation119_spill] sm:$0xff] %v13919_v8  ;;  %18765 = vst [vmem:[#allocation22_spill] sm:$0xff] %v13923_v60  ;;  %v8383_v26 = vunpack.i.h.bf16 %v18761_v59  ;;  %v8646_v38 = vpop.permute.xlu1 %8645  ;;  %v13948_v7 = vsel %vm2984_vm10, %v13710_v13, %v8382_v22  ;;  %v8388_v25 = vunpack.i.h.bf16 %v18770_v54  ;;  %v8387_v63 = vunpack.i.l.bf16 %v18770_v54  ;;  %v18771_v59 = vld [vmem:[#allocation49_spill] sm:$0xff] }
 0x298   :  { %v13940_v15 = vsel %vm3049_vm11, %v18766_v36, %v8642_v24  ;;  %v13944_v46 = vsel %vm3049_vm11, %v18768_v34, %v8643_v27  ;;  %v8648_v2 = vunpack.i.h.bf16 %v8646_v38  ;;  %v8647_v16 = vunpack.i.l.bf16 %v8646_v38  ;;  %v18774_v36 = vld [vmem:[#allocation76_spill] sm:$0xff]  ;;  %v18776_v54 = vld [vmem:[#allocation57_spill] sm:$0xff] }
 0x299   :  { %18767 = vst [vmem:[#allocation120_spill] sm:$0xff] %v13940_v15  ;;  %18769 = vst [vmem:[#allocation122_spill] sm:$0xff] %v13944_v46  ;;  %v8392_v60 = vunpack.i.l.bf16 %v18771_v59  ;;  %v8651_v8 = vpop.permute.xlu0 %8650  ;;  %v13963_v13 = vsel %vm2984_vm10, %v13714_v10, %v8383_v26  ;;  %v8393_v22 = vunpack.i.h.bf16 %v18771_v59  ;;  %v8398_v46 = vunpack.i.h.bf16 %v18776_v54 }
 0x29a   :  { %v13955_v24 = vsel %vm3049_vm11, %v18772_v44, %v8647_v16  ;;  %v13959_v27 = vsel %vm3049_vm11, %v18774_v36, %v8648_v2  ;;  %v8653_v38 = vunpack.i.h.bf16 %v8651_v8  ;;  %v8652_v34 = vunpack.i.l.bf16 %v8651_v8  ;;  %v18779_v16 = vld [vmem:[#allocation89_spill] sm:$0xff] }
 0x29b   :  { %18773 = vst [vmem:[#allocation123_spill] sm:$0xff] %v13955_v24  ;;  %18775 = vst [vmem:[#allocation145_spill] sm:$0xff] %v13959_v27  ;;  %v8397_v15 = vunpack.i.l.bf16 %v18776_v54  ;;  %v8656_v21 = vpop.permute.xlu1 %8655  ;;  %v13978_v10 = vsel %vm2984_vm10, %v13720_v49, %v8387_v63  ;;  %v13982_v26 = vsel %vm2984_vm10, %v13733_v56, %v8388_v25  ;;  %v13986_v59 = vsel %vm2984_vm10, %v13742_v55, %v8392_v60  ;;  %v18791_v25 = vld [vmem:[#allocation54_spill] sm:$0xff] }
 0x29c   :  { %v13970_v44 = vsel %vm3049_vm11, %v18777_v17, %v8652_v34  ;;  %v13974_v2 = vsel %vm3049_vm11, %v18779_v16, %v8653_v38  ;;  %v8658_v8 = vunpack.i.h.bf16 %v8656_v21  ;;  %v8657_v36 = vunpack.i.l.bf16 %v8656_v21  ;;  %v18781_v17 = vld [vmem:[#allocation52_spill] sm:$0xff]  ;;  %v18784_v21 = vld [vmem:[#allocation82_spill] sm:$0xff] }
 0x29d   :  { %18778 = vst [vmem:[#allocation149_spill] sm:$0xff] %v13970_v44  ;;  %18780 = vst [vmem:[#allocation124_spill] sm:$0xff] %v13974_v2  ;;  %v8402_v34 = vunpack.i.l.bf16 %v18781_v17  ;;  %v8661_v54 = vpop.permute.xlu0 %8660  ;;  %v18782_v44 = vld [vmem:[#allocation79_spill] sm:$0xff]  ;;  %v13999_v56 = vsel %vm2984_vm10, %v13746_v47, %v8393_v22  ;;  %v14003_v55 = vsel %vm2984_vm10, %v13752_v20, %v8397_v15  ;;  %v14007_v60 = vsel %vm2984_vm10, %v13756_v19, %v8398_v46  ;;  %v18790_v19 = vld [vmem:[#allocation61_spill] sm:$0xff] }
 0x29e   :  { %v13991_v38 = vsel %vm3049_vm11, %v18782_v44, %v8657_v36  ;;  %v13995_v16 = vsel %vm3049_vm11, %v18784_v21, %v8658_v8  ;;  %v8663_v49 = vunpack.i.h.bf16 %v8661_v54  ;;  %v8662_v63 = vunpack.i.l.bf16 %v8661_v54  ;;  %v18786_v36 = vld [vmem:[#allocation121_spill] sm:$0xff]  ;;  %v18788_v54 = vld [vmem:[#allocation99_spill] sm:$0xff]  ;;  %v18795_v2 = vld [vmem:[#allocation100_spill] sm:$0xff] }
 0x29f   :  { %18783 = vst [vmem:[#allocation85_spill] sm:$0xff] %v13991_v38  ;;  %18785 = vst [vmem:[#allocation80_spill] sm:$0xff] %v13995_v16  ;;  %v8666_v44 = vpop.permute.xlu1 %8665  ;;  %v14020_v20 = vsel %vm2984_vm10, %v13760_v5, %v8402_v34  ;;  %v8408_v15 = vunpack.i.h.bf16 %v18790_v19  ;;  %v8407_v46 = vunpack.i.l.bf16 %v18790_v19  ;;  %v8413_v16 = vunpack.i.h.bf16 %v18791_v25 }
 0x2a0   :  { %v14012_v8 = vsel %vm3049_vm11, %v18786_v36, %v8662_v63  ;;  %v14016_v21 = vsel %vm3049_vm11, %v18788_v54, %v8663_v49  ;;  %v8668_v47 = vunpack.i.h.bf16 %v8666_v44  ;;  %v8667_v22 = vunpack.i.l.bf16 %v8666_v44  ;;  %v18794_v54 = vld [vmem:[#allocation90_spill] sm:$0xff] }
 0x2a1   :  { %18787 = vst [vmem:[#allocation148_spill] sm:$0xff] %v14012_v8  ;;  %18789 = vst [vmem:[#allocation152_spill] sm:$0xff] %v14016_v21  ;;  %v8671_v38 = vpop.permute.xlu0 %8670  ;;  %v8523_v5 = vunpack.i.h.bf16 %v13406_v33  ;;  %v8522_v34 = vunpack.i.l.bf16 %v13406_v33  ;;  %v8528_v21 = vunpack.i.h.bf16 %v18794_v54  ;;  %v8527_v19 = vunpack.i.l.bf16 %v18794_v54  ;;  %v18799_v33 = vld [vmem:[#allocation91_spill] sm:$0xff] }
 0x2a2   :  { %v14027_v63 = vsel %vm3049_vm11, %v13373_v4, %v8667_v22  ;;  %v14031_v49 = vsel %vm3049_vm11, %v13377_v50, %v8668_v47  ;;  %v8673_v44 = vunpack.i.h.bf16 %v8671_v38  ;;  %v8672_v36 = vunpack.i.l.bf16 %v8671_v38  ;;  %v18796_v4 = vld [vmem:[#allocation101_spill] sm:$0xff] }
 0x2a3   :  { %18792 = vst [vmem:[#allocation26_spill] sm:$0xff] %v14027_v63  ;;  %18793 = vst [vmem:[#allocation151_spill] sm:$0xff] %v14031_v49  ;;  %v8676_v8 = vpop.permute.xlu1 %8675  ;;  %v8412_v38 = vunpack.i.l.bf16 %v18791_v25  ;;  %v18798_v49 = vld [vmem:[#allocation65_spill] sm:$0xff]  ;;  %v8533_v24 = vunpack.i.h.bf16 %v18799_v33  ;;  %v8532_v32 = vunpack.i.l.bf16 %v18799_v33  ;;  %v3052_v25 = vsel %vm3049_vm11, %v13906_v1, %v8527_v19 }
 0x2a4   :  { %v14039_v27 = vsel %vm3049_vm11, %v18795_v2, %v8672_v36  ;;  %v14043_v22 = vsel %vm3049_vm11, %v18796_v4, %v8673_v44  ;;  %v8678_v50 = vunpack.i.h.bf16 %v8676_v8  ;;  %v8677_v47 = vunpack.i.l.bf16 %v8676_v8  ;;  %v18802_v2 = vld [vmem:[#allocation103_spill] sm:$0xff] }
 0x2a5   :  { %18797 = vst [vmem:[#allocation154_spill] sm:$0xff] %v14043_v22  ;;  %v8417_v63 = vunpack.i.l.bf16 %v18798_v49  ;;  %v8681_v54 = vpop.permute.xlu0 %8680  ;;  %v3053_v8 = vsel %vm3049_vm11, %v13910_v29, %v8528_v21  ;;  %v3050_v33 = vsel %vm3049_vm11, %v13879_v28, %v8522_v34  ;;  %v3055_v1 = vsel %vm3049_vm11, %v13927_v45, %v8533_v24  ;;  %v18804_v29 = vld [vmem:[#allocation104_spill] sm:$0xff] }
 0x2a6   :  { %v14051_v14 = vsel %vm3049_vm11, %v18800_v58, %v8677_v47  ;;  %v14055_v36 = vsel %vm3049_vm11, %v18802_v2, %v8678_v50  ;;  %v8683_v44 = vunpack.i.h.bf16 %v8681_v54  ;;  %v8682_v4 = vunpack.i.l.bf16 %v8681_v54 }
 0x2a7   :  { %18801 = vst [vmem:[#allocation125_spill] sm:$0xff] %v14051_v14  ;;  %18803 = vst [vmem:[#allocation27_spill] sm:$0xff] %v14055_v36  ;;  %v8686_v22 = vpop.permute.xlu1 %8685  ;;  %v3051_v58 = vsel %vm3049_vm11, %v13894_v37, %v8523_v5  ;;  %v3054_v54 = vsel %vm3049_vm11, %v13914_v6, %v8532_v32  ;;  %v8538_v21 = vunpack.i.h.bf16 %v18804_v29 }
 0x2a8   :  { %v8688_v47 = vunpack.i.h.bf16 %v8686_v22  ;;  %v8687_v14 = vunpack.i.l.bf16 %v8686_v22  ;;  %v3114_v50 = vsel %vm129_vm8, %v3050_v33, %v8682_v4  ;;  %v3115_v2 = vsel %vm129_vm8, %v3051_v58, %v8683_v44  ;;  %v18805_v4 = vld [vmem:[#allocation105_spill] sm:$0xff] }
 0x2a9   :  { %v8691_v19 = vpop.permute.xlu0 %8690  ;;  %v3178_v36 = vpack.c.bf16 %v3115_v2, %v3114_v50  ;;  %v8537_v22 = vunpack.i.l.bf16 %v18804_v29  ;;  %v8543_v44 = vunpack.i.h.bf16 %v18805_v4  ;;  %v8542_v33 = vunpack.i.l.bf16 %v18805_v4 }
 0x2aa   :  { %v3116_v28 = vsel %vm129_vm8, %v3052_v25, %v8687_v14  ;;  %v3117_v37 = vsel %vm129_vm8, %v3053_v8, %v8688_v47  ;;  %v8693_v5 = vunpack.i.h.bf16 %v8691_v19  ;;  %v8692_v34 = vunpack.i.l.bf16 %v8691_v19  ;;  %v18808_v19 = vld [vmem:[#allocation55_spill] sm:$0xff] }
 0x2ab   :  { %v8696_v32 = vpop.permute.xlu1 %8695  ;;  %7380 = vmatprep.mubr.msk.bf16.mxu0 %vm3231_vm12, %v3178_v36  ;;  %v3179_v6 = vpack.c.bf16 %v3117_v37, %v3116_v28  ;;  %v18806_v25 = vunpack.i.h.bf16 %v18781_v17  ;;  %v14088_v47 = vsel %vm2984_vm10, %v13771_v53, %v8407_v46  ;;  %v14092_v36 = vsel %vm2984_vm10, %v13775_v39, %v8408_v15  ;;  %v18809_v37 = vld [vmem:[#allocation75_spill] sm:$0xff] }
 0x2ac   :  { %v3118_v45 = vsel %vm129_vm8, %v3054_v54, %v8692_v34  ;;  %v3119_v24 = vsel %vm129_vm8, %v3055_v1, %v8693_v5  ;;  %v8698_v58 = vunpack.i.h.bf16 %v8696_v32  ;;  %v8697_v14 = vunpack.i.l.bf16 %v8696_v32  ;;  %v18810_v34 = vld [vmem:[#allocation92_spill] sm:$0xff] }
 0x2ad   :  { %v14084_v8 = vsel %vm2984_vm10, %v13767_v61, %v18806_v25  ;;  %v8701_v50 = vpop.permute.xlu0 %8700  ;;  %7381 = vmatmul.mubr.msk.bf16.vlgmr.msra.gmra.mrb[0].mxu0 %vm3231_vm12, %v3179_v6  ;;  %v3180_v2 = vpack.c.bf16 %v3119_v24, %v3118_v45  ;;  %v14097_v54 = vsel %vm2984_vm10, %v13779_v31, %v8412_v38  ;;  %v14101_v61 = vsel %vm2984_vm10, %v13783_v41, %v8413_v16 }
 0x2ae   :  { %v8703_v17 = vunpack.i.h.bf16 %v8701_v50  ;;  %v8702_v1 = vunpack.i.l.bf16 %v8701_v50  ;;  %v8418_v53 = vunpack.i.h.bf16 %v18798_v49  ;;  %v14106_v39 = vsel %vm2984_vm10, %v13787_v40, %v8417_v63  ;;  %v18807_v63 = vld [vmem:[#allocation71_spill] sm:$0xff] }
 0x2af   :  { %v3056_v15 = vsel %vm3049_vm11, %v13931_v57, %v8537_v22  ;;  %v3057_v46 = vsel %vm3049_vm11, %v13935_v3, %v8538_v21  ;;  %v8706_v31 = vpop.permute.xlu1 %8705  ;;  %7384 = vmatprep.mubr.msk.bf16.mxu0 %vm3231_vm12, %v3180_v2  ;;  %v3058_v41 = vsel %vm3049_vm11, %v13948_v7, %v8542_v33  ;;  %v3059_v16 = vsel %vm3049_vm11, %v13963_v13, %v8543_v44  ;;  %v18811_v44 = vld [vmem:[#allocation106_spill] sm:$0xff] }
 0x2b0   :  { %v3120_v49 = vsel %vm129_vm8, %v3056_v15, %v8697_v14  ;;  %v3121_v40 = vsel %vm129_vm8, %v3057_v46, %v8698_v58  ;;  %v8423_v38 = vunpack.i.h.bf16 %v18807_v63  ;;  %v8422_v57 = vunpack.i.l.bf16 %v18807_v63  ;;  %v18813_v63 = vld [vmem:[#allocation77_spill] sm:$0xff] }
 0x2b1   :  { %v3122_v29 = vsel %vm129_vm8, %v3058_v41, %v8702_v1  ;;  %v3123_v3 = vsel %vm129_vm8, %v3059_v16, %v8703_v17  ;;  %v8711_v21 = vpop.permute.xlu0 %8710  ;;  %v8428_v28 = vunpack.i.h.bf16 %v18808_v19  ;;  %v8427_v7 = vunpack.i.l.bf16 %v18808_v19 }
 0x2b2   :  { %v8433_v5 = vunpack.i.h.bf16 %v18809_v37  ;;  %v8432_v13 = vunpack.i.l.bf16 %v18809_v37  ;;  %v8548_v22 = vunpack.i.h.bf16 %v18810_v34  ;;  %v8547_v4 = vunpack.i.l.bf16 %v18810_v34 }
 0x2b3   :  { %v8553_v33 = vunpack.i.h.bf16 %v18811_v44  ;;  %v14130_v32 = vpop.permute.xlu1 %8715  ;;  %v3181_v6 = vpack.c.bf16 %v3121_v40, %v3120_v49  ;;  %v8552_v45 = vunpack.i.l.bf16 %v18811_v44  ;;  %v8708_v24 = vunpack.i.h.bf16 %v8706_v31 }
 0x2b4   :  { %v8707_v58 = vunpack.i.l.bf16 %v8706_v31  ;;  %v3182_v14 = vpack.c.bf16 %v3123_v3, %v3122_v29  ;;  %v14135_v25 = vsel %vm2984_vm10, %v13791_v42, %v8418_v53  ;;  %v14139_v50 = vsel %vm2984_vm10, %v13796_v62, %v8422_v57 }
 0x2b5   :  { %v8713_v2 = vunpack.i.h.bf16 %v8711_v21  ;;  %v8712_v17 = vunpack.i.l.bf16 %v8711_v21  ;;  %v8721_v1 = vpop.permute.xlu0 %8720  ;;  %7385 = vmatmul.mubr.msk.bf16.gmra.mrb[4].mxu0 %vm3231_vm12, %v3181_v6  ;;  %v14144_v15 = vsel %vm2984_vm10, %v13800_v51, %v8423_v38  ;;  %v14148_v46 = vsel %vm2984_vm10, %v13804_v23, %v8427_v7  ;;  %v18812_v51 = vld [vmem:[#allocation58_spill] sm:$0xff]  ;;  %v18815_v21 = vld [vmem:[#allocation107_spill] sm:$0xff]  ;;  %v18816_v7 = vld [vmem:[#allocation93_spill] sm:$0xff] }
 0x2b6   :  { %v14152_v42 = vsel %vm2984_vm10, %v13819_v11, %v8428_v28  ;;  %v14156_v62 = vsel %vm2984_vm10, %v13834_v35, %v8432_v13  ;;  %7388 = vmatprep.mubr.msk.bf16.mxu0 %vm3231_vm12, %v3182_v14  ;;  %v14161_v53 = vsel %vm2984_vm10, %v13838_v48, %v8433_v5  ;;  %v8437_v31 = vunpack.i.l.bf16 %v18812_v51 }
 0x2b7   :  { %v3060_v23 = vsel %vm3049_vm11, %v13978_v10, %v8547_v4  ;;  %v3061_v41 = vsel %vm3049_vm11, %v13982_v26, %v8548_v22  ;;  %v14168_v11 = vpop.permute.xlu1 %8725  ;;  %v3062_v35 = vsel %vm3049_vm11, %v13986_v59, %v8552_v45  ;;  %v3063_v16 = vsel %vm3049_vm11, %v13999_v56, %v8553_v33  ;;  %v18814_v59 = vld [vmem:[#allocation9_spill] sm:$0xff] }
 0x2b8   :  { %v3124_v49 = vsel %vm129_vm8, %v3060_v23, %v8707_v58  ;;  %v3125_v48 = vsel %vm129_vm8, %v3061_v41, %v8708_v24  ;;  %v8438_v40 = vunpack.i.h.bf16 %v18812_v51  ;;  %v8442_v38 = vunpack.i.l.bf16 %v18813_v63 }
 0x2b9   :  { %v3126_v10 = vsel %vm129_vm8, %v3062_v35, %v8712_v17  ;;  %v3127_v26 = vsel %vm129_vm8, %v3063_v16, %v8713_v2  ;;  %v14180_v57 = vpop.permute.xlu0 %8730  ;;  %v8443_v29 = vunpack.i.h.bf16 %v18813_v63  ;;  %v8558_v3 = vunpack.i.h.bf16 %v18814_v59  ;;  %v18819_v35 = vld [vmem:[#allocation94_spill] sm:$0xff] }
 0x2ba   :  { %v8557_v56 = vunpack.i.l.bf16 %v18814_v59  ;;  %v8562_v19 = vunpack.i.l.bf16 %v18815_v21  ;;  %v8563_v28 = vunpack.i.h.bf16 %v18815_v21  ;;  %v8568_v37 = vunpack.i.h.bf16 %v18816_v7 }
 0x2bb   :  { %v8567_v5 = vunpack.i.l.bf16 %v18816_v7  ;;  %v14189_v13 = vpop.permute.xlu1 %8735  ;;  %v3183_v34 = vpack.c.bf16 %v3125_v48, %v3124_v49  ;;  %v14193_v22 = vsel %vm2984_vm10, %v13842_v43, %v8437_v31  ;;  %v8718_v4 = vunpack.i.h.bf16 %v14130_v32  ;;  %v18818_v31 = vld [vmem:[#allocation109_spill] sm:$0xff] }
 0x2bc   :  { %v8717_v44 = vunpack.i.l.bf16 %v14130_v32  ;;  %v3184_v33 = vpack.c.bf16 %v3127_v26, %v3126_v10  ;;  %v14199_v6 = vsel %vm2984_vm10, %v13855_v30, %v8438_v40  ;;  %v14203_v45 = vsel %vm2984_vm10, %v13859_v0, %v8442_v38  ;;  %v18820_v40 = vld [vmem:[#allocation15_spill] sm:$0xff] }
 0x2bd   :  { %v8723_v24 = vunpack.i.h.bf16 %v8721_v1  ;;  %v8722_v58 = vunpack.i.l.bf16 %v8721_v1  ;;  %v14205_v14 = vpop.permute.xlu0 %8740  ;;  %7389 = vmatmul.mubr.msk.bf16.gmra.mrb[8].mxu0 %vm3231_vm12, %v3183_v34  ;;  %v14210_v43 = vsel %vm2984_vm10, %v13863_v18, %v8443_v29  ;;  %v3064_v32 = vsel %vm3049_vm11, %v14003_v55, %v8557_v56  ;;  %v18817_v1 = vld [vmem:[#allocation108_spill] sm:$0xff]  ;;  %v18821_v29 = vld [vmem:[#allocation110_spill] sm:$0xff] }
 0x2be   :  { %v3065_v30 = vsel %vm3049_vm11, %v14007_v60, %v8558_v3  ;;  %v3066_v0 = vsel %vm3049_vm11, %v14020_v20, %v8562_v19  ;;  %7392 = vmatprep.mubr.msk.bf16.mxu0 %vm3231_vm12, %v3184_v33  ;;  %v3067_v2 = vsel %vm3049_vm11, %v14084_v8, %v8563_v28  ;;  %v3068_v17 = vsel %vm3049_vm11, %v14088_v47, %v8567_v5 }
 0x2bf   :  { %v3069_v18 = vsel %vm3049_vm11, %v14092_v36, %v8568_v37  ;;  %v8573_v51 = vunpack.i.h.bf16 %v18817_v1  ;;  %v14226_v55 = vpop.permute.xlu1 %8745  ;;  %v8572_v60 = vunpack.i.l.bf16 %v18817_v1  ;;  %v8578_v23 = vunpack.i.h.bf16 %v18818_v31 }
 0x2c0   :  { %v3128_v20 = vsel %vm129_vm8, %v3064_v32, %v8717_v44  ;;  %v3129_v41 = vsel %vm129_vm8, %v3065_v30, %v8718_v4  ;;  %v8577_v8 = vunpack.i.l.bf16 %v18818_v31  ;;  %v8582_v16 = vunpack.i.l.bf16 %v18819_v35 }
 0x2c1   :  { %v3130_v47 = vsel %vm129_vm8, %v3066_v0, %v8722_v58  ;;  %v3131_v36 = vsel %vm129_vm8, %v3067_v2, %v8723_v24  ;;  %v14236_v49 = vpop.permute.xlu0 %8750  ;;  %v8583_v48 = vunpack.i.h.bf16 %v18819_v35  ;;  %v8587_v63 = vunpack.i.l.bf16 %v18820_v40 }
 0x2c2   :  { %v8728_v38 = vunpack.i.h.bf16 %v14168_v11  ;;  %v8727_v10 = vunpack.i.l.bf16 %v14168_v11  ;;  %v8588_v26 = vunpack.i.h.bf16 %v18820_v40  ;;  %v8593_v59 = vunpack.i.h.bf16 %v18821_v29  ;;  %v18824_v40 = vld [vmem:[#allocation113_spill] sm:$0xff] }
 0x2c3   :  { %v8592_v3 = vunpack.i.l.bf16 %v18821_v29  ;;  %v3185_v21 = vpack.c.bf16 %v3129_v41, %v3128_v20  ;;  %v3070_v19 = vsel %vm3049_vm11, %v14097_v54, %v8572_v60  ;;  %v8733_v28 = vunpack.i.h.bf16 %v14180_v57  ;;  %v18822_v20 = vld [vmem:[#allocation16_spill] sm:$0xff] }
 0x2c4   :  { %v8732_v7 = vunpack.i.l.bf16 %v14180_v57  ;;  %v3186_v37 = vpack.c.bf16 %v3131_v36, %v3130_v47  ;;  %v3071_v11 = vsel %vm3049_vm11, %v14101_v61, %v8573_v51  ;;  %v3072_v5 = vsel %vm3049_vm11, %v14106_v39, %v8577_v8 }
 0x2c5   :  { %v14245_v56 = vpop.permute.xlu1 %8755  ;;  %v3073_v34 = vsel %vm3049_vm11, %v14135_v25, %v8578_v23  ;;  %v3074_v4 = vsel %vm3049_vm11, %v14139_v50, %v8582_v16  ;;  %v14259_v44 = vpop.permute.xlu0 %8760  ;;  %7393 = vmatmul.mubr.msk.bf16.gmra.mrb[12].mxu0 %vm3231_vm12, %v3185_v21  ;;  %v3075_v54 = vsel %vm3049_vm11, %v14144_v15, %v8583_v48  ;;  %v14266_v57 = vsel %vm3049_vm11, %v14148_v46, %v8587_v63 }
 0x2c6   :  { %v3132_v61 = vsel %vm129_vm8, %v3068_v17, %v8727_v10  ;;  %v3133_v39 = vsel %vm129_vm8, %v3069_v18, %v8728_v38  ;;  %7396 = vmatprep.mubr.msk.bf16.mxu0 %vm3231_vm12, %v3186_v37  ;;  %v14273_v25 = vsel %vm3049_vm11, %v14152_v42, %v8588_v26  ;;  %v14277_v50 = vsel %vm3049_vm11, %v14156_v62, %v8592_v3  ;;  %v18825_v38 = vld [vmem:[#allocation114_spill] sm:$0xff]  ;;  %v18827_v37 = vld [vmem:[#allocation116_spill] sm:$0xff] }
 0x2c7   :  { %v14281_v15 = vsel %vm3049_vm11, %v14161_v53, %v8593_v59  ;;  %v8598_v46 = vunpack.i.h.bf16 %v13738_v9  ;;  %v3134_v24 = vsel %vm129_vm8, %v3070_v19, %v8732_v7  ;;  %v3135_v58 = vsel %vm129_vm8, %v3071_v11, %v8733_v28  ;;  %v18826_v28 = vld [vmem:[#allocation17_spill] sm:$0xff] }
 0x2c8   :  { %v8597_v42 = vunpack.i.l.bf16 %v13738_v9  ;;  %v8738_v0 = vunpack.i.h.bf16 %v14189_v13  ;;  %v8737_v62 = vunpack.i.l.bf16 %v14189_v13  ;;  %v3187_v17 = vpack.c.bf16 %v3133_v39, %v3132_v61 }
 0x2c9   :  { %v8766_v33 = vpop.permute.xlu1 %8765  ;;  %v8743_v60 = vunpack.i.h.bf16 %v14205_v14  ;;  %v8742_v9 = vunpack.i.l.bf16 %v14205_v14  ;;  %v3188_v23 = vpack.c.bf16 %v3135_v58, %v3134_v24  ;;  %v14329_v29 = vsel %vm3049_vm11, %v14199_v6, %v8598_v46  ;;  %v18828_v46 = vld [vmem:[#allocation117_spill] sm:$0xff] }
 0x2ca   :  { %v8768_v32 = vunpack.i.h.bf16 %v8766_v33  ;;  %v8767_v30 = vunpack.i.l.bf16 %v8766_v33  ;;  %v8771_v2 = vpop.permute.xlu0 %8770  ;;  %v14311_v16 = vsel %vm3049_vm11, %v14193_v22, %v8597_v42  ;;  %v3136_v14 = vsel %vm129_vm8, %v3072_v5, %v8737_v62  ;;  %v18829_v24 = vld [vmem:[#allocation21_spill] sm:$0xff] }
 0x2cb   :  { %v8773_v1 = vunpack.i.h.bf16 %v8771_v2  ;;  %v8772_v51 = vunpack.i.l.bf16 %v8771_v2  ;;  %v3137_v47 = vsel %vm129_vm8, %v3073_v34, %v8738_v0  ;;  %v3138_v59 = vsel %vm129_vm8, %v3074_v4, %v8742_v9 }
 0x2cc   :  { %v14291_v53 = vsel %vm129_vm8, %v13811_v12, %v8767_v30  ;;  %v14295_v18 = vsel %vm129_vm8, %v13815_v52, %v8768_v32  ;;  %v18823_v12 = vld [vmem:[#allocation112_spill] sm:$0xff]  ;;  %v3139_v3 = vsel %vm129_vm8, %v3075_v54, %v8743_v60  ;;  %v8748_v6 = vunpack.i.h.bf16 %v14226_v55 }
 0x2cd   :  { %v8776_v31 = vpop.permute.xlu1 %8775  ;;  %v3195_v13 = vpack.c.bf16 %v14295_v18, %v14291_v53  ;;  %v14303_v41 = vsel %vm129_vm8, %v18822_v20, %v8772_v51  ;;  %v14307_v8 = vsel %vm129_vm8, %v18823_v12, %v8773_v1  ;;  %7397 = vmatmul.mubr.msk.bf16.gmra.mrb[16].mxu0 %vm3231_vm12, %v3187_v17  ;;  %v8747_v4 = vunpack.i.l.bf16 %v14226_v55  ;;  %v18830_v17 = vld [vmem:[#allocation34_spill] sm:$0xff]  ;;  %v3788_v18 = vld [vmem:[#allocation3] sm:$0xff] }
 0x2ce   :  { %v8778_v52 = vunpack.i.h.bf16 %v8776_v31  ;;  %v8777_v35 = vunpack.i.l.bf16 %v8776_v31  ;;  %v8781_v36 = vpop.permute.xlu0 %8780  ;;  %v3196_v48 = vpack.c.bf16 %v14307_v8, %v14303_v41  ;;  %7400 = vmatprep.mubr.msk.bf16.mxu0 %vm3231_vm12, %v3188_v23  ;;  %v3189_v54 = vpack.c.bf16 %v3137_v47, %v3136_v14  ;;  %v18831_v51 = vld [vmem:[#allocation118_spill] sm:$0xff]  ;;  %v18832_v23 = vld [vmem:[#allocation111_spill] sm:$0xff] }
 0x2cf   :  { %v8783_v22 = vunpack.i.h.bf16 %v8781_v36  ;;  %v8782_v26 = vunpack.i.l.bf16 %v8781_v36  ;;  %v8753_v42 = vunpack.i.h.bf16 %v14236_v49  ;;  %v8752_v0 = vunpack.i.l.bf16 %v14236_v49  ;;  %v18833_v14 = vld [vmem:[#allocation119_spill] sm:$0xff]  ;;  %v18834_v36 = vld [vmem:[#allocation22_spill] sm:$0xff] }
 0x2d0   :  { %v14320_v63 = vsel %vm129_vm8, %v18824_v40, %v8777_v35  ;;  %v14324_v10 = vsel %vm129_vm8, %v18825_v38, %v8778_v52  ;;  %v3190_v62 = vpack.c.bf16 %v3139_v3, %v3138_v59  ;;  %v8603_v20 = vunpack.i.h.bf16 %v18832_v23 }
 0x2d1   :  { %v8786_v21 = vpop.permute.xlu1 %8785  ;;  %v3197_v19 = vpack.c.bf16 %v14324_v10, %v14320_v63  ;;  %v14337_v7 = vsel %vm129_vm8, %v18826_v28, %v8782_v26  ;;  %v14341_v11 = vsel %vm129_vm8, %v18827_v37, %v8783_v22  ;;  %v3140_v49 = vsel %vm129_vm8, %v14266_v57, %v8747_v4  ;;  %v18836_v37 = vld [vmem:[#allocation122_spill] sm:$0xff] }
 0x2d2   :  { %v8788_v5 = vunpack.i.h.bf16 %v8786_v21  ;;  %v8787_v34 = vunpack.i.l.bf16 %v8786_v21  ;;  %v8791_v61 = vpop.permute.xlu0 %8790  ;;  %v3198_v39 = vpack.c.bf16 %v14341_v11, %v14337_v7  ;;  %v3141_v12 = vsel %vm129_vm8, %v14273_v25, %v8748_v6  ;;  %v18835_v21 = vld [vmem:[#allocation120_spill] sm:$0xff] }
 0x2d3   :  { %v8793_v32 = vunpack.i.h.bf16 %v8791_v61  ;;  %v8792_v30 = vunpack.i.l.bf16 %v8791_v61  ;;  %v8602_v57 = vunpack.i.l.bf16 %v18832_v23  ;;  %v3142_v25 = vsel %vm129_vm8, %v14277_v50, %v8752_v0  ;;  %v18840_v23 = vld [vmem:[#allocation124_spill] sm:$0xff] }
 0x2d4   :  { %v14349_v33 = vsel %vm129_vm8, %v18828_v46, %v8787_v34  ;;  %v14353_v58 = vsel %vm129_vm8, %v18829_v24, %v8788_v5  ;;  %v3143_v26 = vsel %vm129_vm8, %v14281_v15, %v8753_v42  ;;  %v8758_v4 = vunpack.i.h.bf16 %v14245_v56  ;;  %v18837_v46 = vld [vmem:[#allocation123_spill] sm:$0xff]  ;;  %v14624_v11 = vld [vmem:[%s17482_s3] ss:$0 sm:$0xff] }
 0x2d5   :  { %v8796_v55 = vpop.permute.xlu1 %8795  ;;  %v3199_v2 = vpack.c.bf16 %v14353_v58, %v14349_v33  ;;  %v14361_v1 = vsel %vm129_vm8, %v18830_v17, %v8792_v30  ;;  %v14365_v60 = vsel %vm129_vm8, %v18831_v51, %v8793_v32  ;;  %7401 = vmatmul.mubr.msk.bf16.gmra.mrb[20].mxu0 %vm3231_vm12, %v3189_v54  ;;  %v8757_v50 = vunpack.i.l.bf16 %v14245_v56  ;;  %v18838_v32 = vld [vmem:[#allocation145_spill] sm:$0xff] }
 0x2d6   :  { %v8798_v9 = vunpack.i.h.bf16 %v8796_v55  ;;  %v8797_v31 = vunpack.i.l.bf16 %v8796_v55  ;;  %v8801_v52 = vpop.permute.xlu0 %8800  ;;  %v3200_v35 = vpack.c.bf16 %v14365_v60, %v14361_v1  ;;  %7404 = vmatprep.mubr.msk.bf16.mxu0 %vm3231_vm12, %v3190_v62  ;;  %v3191_v15 = vpack.c.bf16 %v3141_v12, %v3140_v49 }
 0x2d7   :  { %v8803_v38 = vunpack.i.h.bf16 %v8801_v52  ;;  %v8802_v22 = vunpack.i.l.bf16 %v8801_v52  ;;  %v8763_v55 = vunpack.i.h.bf16 %v14259_v44  ;;  %v8762_v62 = vunpack.i.l.bf16 %v14259_v44 }
 0x2d8   :  { %v14377_v47 = vsel %vm129_vm8, %v18833_v14, %v8797_v31  ;;  %v14381_v40 = vsel %vm129_vm8, %v18834_v36, %v8798_v9  ;;  %v3192_v17 = vpack.c.bf16 %v3143_v26, %v3142_v25  ;;  %v18839_v9 = vld [vmem:[#allocation149_spill] sm:$0xff]  ;;  %v3082_v14 = vsel %vm3049_vm11, %v14203_v45, %v8602_v57 }
 0x2d9   :  { %v8806_v59 = vpop.permute.xlu1 %8805  ;;  %v3201_v3 = vpack.c.bf16 %v14381_v40, %v14377_v47  ;;  %v14393_v28 = vsel %vm129_vm8, %v18835_v21, %v8802_v22  ;;  %v14397_v5 = vsel %vm129_vm8, %v18836_v37, %v8803_v38  ;;  %v3083_v44 = vsel %vm3049_vm11, %v14210_v43, %v8603_v20  ;;  %v18841_v25 = vld [vmem:[#allocation85_spill] sm:$0xff] }
 0x2da   :  { %v8808_v34 = vunpack.i.h.bf16 %v8806_v59  ;;  %v8807_v6 = vunpack.i.l.bf16 %v8806_v59  ;;  %v8811_v61 = vpop.permute.xlu0 %8810  ;;  %v3202_v54 = vpack.c.bf16 %v14397_v5, %v14393_v28  ;;  %v3144_v36 = vsel %vm129_vm8, %v14311_v16, %v8757_v50  ;;  %v18842_v59 = vld [vmem:[#allocation80_spill] sm:$0xff] }
 0x2db   :  { %v8813_v42 = vunpack.i.h.bf16 %v8811_v61  ;;  %v8812_v0 = vunpack.i.l.bf16 %v8811_v61  ;;  %v3145_v43 = vsel %vm129_vm8, %v14329_v29, %v8758_v4  ;;  %v3146_v16 = vsel %vm129_vm8, %v3082_v14, %v8762_v62  ;;  %v18844_v61 = vld [vmem:[#allocation152_spill] sm:$0xff]  ;;  %v18845_v4 = vld [vmem:[#allocation26_spill] sm:$0xff] }
 0x2dc   :  { %v14405_v24 = vsel %vm129_vm8, %v18837_v46, %v8807_v6  ;;  %v14409_v30 = vsel %vm129_vm8, %v18838_v32, %v8808_v34  ;;  %v3147_v20 = vsel %vm129_vm8, %v3083_v44, %v8763_v55  ;;  %v18843_v6 = vld [vmem:[#allocation148_spill] sm:$0xff]  ;;  %v18846_v55 = vld [vmem:[#allocation151_spill] sm:$0xff]  ;;  %v18847_v44 = vld [vmem:[#allocation154_spill] sm:$0xff]  ;;  %v18850_v53 = vmov 0.0  }
 0x2dd   :  { %v8816_v56 = vpop.permute.xlu1 %8815  ;;  %v3203_v51 = vpack.c.bf16 %v14409_v30, %v14405_v24  ;;  %v14417_v31 = vsel %vm129_vm8, %v18839_v9, %v8812_v0  ;;  %v14421_v49 = vsel %vm129_vm8, %v18840_v23, %v8813_v42  ;;  %7405 = vmatmul.mubr.msk.bf16.gmra.mrb[24].mxu0 %vm3231_vm12, %v3191_v15  ;;  %v3193_v23 = vpack.c.bf16 %v3145_v43, %v3144_v36  ;;  %v18848_v36 = vld [vmem:[#allocation125_spill] sm:$0xff]  ;;  %v18849_v43 = vld [vmem:[#allocation27_spill] sm:$0xff] }
 0x2de   :  { %v8818_v12 = vunpack.i.h.bf16 %v8816_v56  ;;  %v8817_v52 = vunpack.i.l.bf16 %v8816_v56  ;;  %v8821_v38 = vpop.permute.xlu0 %8820  ;;  %v3204_v22 = vpack.c.bf16 %v14421_v49, %v14417_v31  ;;  %7408 = vmatprep.mubr.msk.bf16.mxu0 %vm3231_vm12, %v3192_v17  ;;  %139 = vst.msk [vmem:[#allocation3 + $0x40] sm:$0x3] %vm132_vm13, %v18850_v53  ;;  %133 = vst.msk [vmem:[#allocation3 + $0x10] sm:$0x3] %vm132_vm13, %v18850_v53  ;;  %v3992_v8 = vrot.slane %v3788_v18, 1 }
 0x2df   :  { %v8823_v45 = vunpack.i.h.bf16 %v8821_v38  ;;  %v8822_v57 = vunpack.i.l.bf16 %v8821_v38  ;;  %136 = vst.msk [vmem:[#allocation3 + $0x28] sm:$0x3] %vm132_vm13, %v18850_v53  ;;  %142 = vst.msk [vmem:[#allocation3 + $0x58] sm:$0x3] %vm132_vm13, %v18850_v53 }
 0x2e0   :  { %v14434_v26 = vsel %vm129_vm8, %v18841_v25, %v8817_v52  ;;  %v14438_v21 = vsel %vm129_vm8, %v18842_v59, %v8818_v12  ;;  %v3194_v12 = vpack.c.bf16 %v3147_v20, %v3146_v16  ;;  %145 = vst.msk [vmem:[#allocation3 + $0x70] sm:$0x3] %vm132_vm13, %v18850_v53  ;;  %148 = vst.msk [vmem:[#allocation3 + $0x88] sm:$0x3] %vm132_vm13, %v18850_v53 }
 0x2e1   :  { %v8826_v37 = vpop.permute.xlu1 %8825  ;;  %v3205_v34 = vpack.c.bf16 %v14438_v21, %v14434_v26  ;;  %v14449_v50 = vsel %vm129_vm8, %v18843_v6, %v8822_v57  ;;  %v14453_v15 = vsel %vm129_vm8, %v18844_v61, %v8823_v45  ;;  %151 = vst.msk [vmem:[#allocation3 + $0xa0] sm:$0x3] %vm132_vm13, %v18850_v53  ;;  %154 = vst.msk [vmem:[#allocation3 + $0xb8] sm:$0x3] %vm132_vm13, %v18850_v53 }
 0x2e2   :  { %v8828_v46 = vunpack.i.h.bf16 %v8826_v37  ;;  %v8827_v32 = vunpack.i.l.bf16 %v8826_v37  ;;  %v8831_v42 = vpop.permute.xlu0 %8830  ;;  %v3206_v29 = vpack.c.bf16 %v14453_v15, %v14449_v50  ;;  %157 = vst.msk [vmem:[#allocation3 + $0xd0] sm:$0x3] %vm132_vm13, %v18850_v53  ;;  %160 = vst.msk [vmem:[#allocation3 + $0xe8] sm:$0x3] %vm132_vm13, %v18850_v53 }
 0x2e3   :  { %v8833_v56 = vunpack.i.h.bf16 %v8831_v42  ;;  %v8832_v17 = vunpack.i.l.bf16 %v8831_v42  ;;  %163 = vst.msk [vmem:[#allocation3 + $0x100] sm:$0x3] %vm132_vm13, %v18850_v53  ;;  %166 = vst.msk [vmem:[#allocation3 + $0x118] sm:$0x3] %vm132_vm13, %v18850_v53 }
 0x2e4   :  { %v14459_v0 = vsel %vm129_vm8, %v18845_v4, %v8827_v32  ;;  %v14463_v62 = vsel %vm129_vm8, %v18846_v55, %v8828_v46  ;;  %169 = vst.msk [vmem:[#allocation3 + $0x130] sm:$0x3] %vm132_vm13, %v18850_v53  ;;  %172 = vst.msk [vmem:[#allocation3 + $0x148] sm:$0x3] %vm132_vm13, %v18850_v53 }
 0x2e5   :  { %v8836_v9 = vpop.permute.xlu1 %8835  ;;  %v3207_v52 = vpack.c.bf16 %v14463_v62, %v14459_v0  ;;  %v14469_v14 = vsel %vm129_vm8, %v14039_v27, %v8832_v17  ;;  %v14473_v38 = vsel %vm129_vm8, %v18847_v44, %v8833_v56  ;;  %7409 = vmatmul.mubr.msk.bf16.gmra.mrb[28].mxu0 %vm3231_vm12, %v3193_v23  ;;  %175 = vst.msk [vmem:[#allocation3 + $0x160] sm:$0x3] %vm132_vm13, %v18850_v53  ;;  %178 = vst.msk [vmem:[#allocation3 + $0x178] sm:$0x3] %vm132_vm13, %v18850_v53  ;;  %v3790_v41 = vld [vmem:[#allocation3 + $0x10] sm:$0x3] }
 0x2e6   :  { %v8838_v25 = vunpack.i.h.bf16 %v8836_v9  ;;  %v8837_v59 = vunpack.i.l.bf16 %v8836_v9  ;;  %v3208_v45 = vpack.c.bf16 %v14473_v38, %v14469_v14  ;;  %7412 = vmatprep.mubr.msk.bf16.mxu0 %vm3231_vm12, %v3194_v12  ;;  %181 = vst.msk [vmem:[#allocation3 + $0x190] sm:$0x3] %vm132_vm13, %v18850_v53  ;;  %184 = vst.msk [vmem:[#allocation3 + $0x1a8] sm:$0x3] %vm132_vm13, %v18850_v53  ;;  %v3995_v63 = vrot.slane %v3790_v41, 1 }
 0x2e7   :  { %187 = vst.msk [vmem:[#allocation3 + $0x1c0] sm:$0x3] %vm132_vm13, %v18850_v53  ;;  %190 = vst.msk [vmem:[#allocation3 + $0x1d8] sm:$0x3] %vm132_vm13, %v18850_v53 }
 0x2e8   :  { %v14480_v57 = vsel %vm129_vm8, %v18848_v36, %v8837_v59  ;;  %v14484_v16 = vsel %vm129_vm8, %v18849_v43, %v8838_v25  ;;  %193 = vst.msk [vmem:[#allocation3 + $0x1f0] sm:$0x3] %vm132_vm13, %v18850_v53  ;;  %196 = vst.msk [vmem:[#allocation3 + $0x208] sm:$0x3] %vm132_vm13, %v18850_v53 }
 0x2e9   :  { %v3209_v27 = vpack.c.bf16 %v14484_v16, %v14480_v57  ;;  %199 = vst.msk [vmem:[#allocation3 + $0x220] sm:$0x3] %vm132_vm13, %v18850_v53  ;;  %202 = vst.msk [vmem:[#allocation3 + $0x238] sm:$0x3] %vm132_vm13, %v18850_v53 }
 0x2ea   :  { %205 = vst.msk [vmem:[#allocation3 + $0x250] sm:$0x3] %vm132_vm13, %v18850_v53  ;;  %208 = vst.msk [vmem:[#allocation3 + $0x268] sm:$0x3] %vm132_vm13, %v18850_v53 }
 0x2eb   :  { %211 = vst.msk [vmem:[#allocation3 + $0x280] sm:$0x3] %vm132_vm13, %v18850_v53  ;;  %214 = vst.msk [vmem:[#allocation3 + $0x298] sm:$0x3] %vm132_vm13, %v18850_v53 }
 0x2ec   :  { %217 = vst.msk [vmem:[#allocation3 + $0x2b0] sm:$0x3] %vm132_vm13, %v18850_v53  ;;  %220 = vst.msk [vmem:[#allocation3 + $0x2c8] sm:$0x3] %vm132_vm13, %v18850_v53 }
 0x2ed   :  { %7413 = vmatmul.mubr.msk.bf16.gmra.mrb[32].mxu0 %vm3231_vm12, %v3195_v13  ;;  %223 = vst.msk [vmem:[#allocation3 + $0x2e0] sm:$0x3] %vm132_vm13, %v18850_v53  ;;  %226 = vst.msk [vmem:[#allocation3 + $0x2f8] sm:$0x3] %vm132_vm13, %v18850_v53  ;;  %v3789_v13 = vld [vmem:[#allocation3 + $0x8] sm:$0xff] }
 0x2ee   :  { %7416 = vmatprep.mubr.msk.bf16.mxu0 %vm3231_vm12, %v3196_v48  ;;  %229 = vst.msk [vmem:[#allocation3 + $0x310] sm:$0x3] %vm132_vm13, %v18850_v53  ;;  %232 = vst.msk [vmem:[#allocation3 + $0x328] sm:$0x3] %vm132_vm13, %v18850_v53  ;;  %v3993_v48 = vrot.slane %v3789_v13, 1 }
 0x2ef   :  { %235 = vst.msk [vmem:[#allocation3 + $0x340] sm:$0x3] %vm132_vm13, %v18850_v53  ;;  %238 = vst.msk [vmem:[#allocation3 + $0x358] sm:$0x3] %vm132_vm13, %v18850_v53 }
 0x2f0   :  { %v3994_v10 = vsel %vm750_vm2, %v3992_v8, %v3993_v48 }
 0x2f5   :  { %7417 = vmatmul.mubr.msk.bf16.gmra.mrb[36].mxu0 %vm3231_vm12, %v3197_v19  ;;  %v3996_v19 = vsel %vm750_vm2, %v3993_v48, %v3995_v63 }
 0x2f6   :  { %7420 = vmatprep.mubr.msk.bf16.mxu0 %vm3231_vm12, %v3198_v39  ;;  %v8839_v7 = vpack.i.bf16 %v3996_v19, %v3994_v10 }
 0x2f8   :  { %8840 = vrot.lane.b32.xlu0 %v8839_v7, %s10068_s1 }
 0x2fd   :  { %7421 = vmatmul.mubr.msk.bf16.gmra.mrb[40].mxu0 %vm3231_vm12, %v3199_v2 }
 0x2fe   :  { %7424 = vmatprep.mubr.msk.bf16.mxu0 %vm3231_vm12, %v3200_v35 }
 0x305   :  { %7425 = vmatmul.mubr.msk.bf16.gmra.mrb[44].mxu0 %vm3231_vm12, %v3201_v3 }
 0x306   :  { %7428 = vmatprep.mubr.msk.bf16.mxu0 %vm3231_vm12, %v3202_v54 }
 0x30d   :  { %7429 = vmatmul.mubr.msk.bf16.gmra.mrb[48].mxu0 %vm3231_vm12, %v3203_v51 }
 0x30e   :  { %7432 = vmatprep.mubr.msk.bf16.mxu0 %vm3231_vm12, %v3204_v22 }
 0x315   :  { %7433 = vmatmul.mubr.msk.bf16.gmra.mrb[52].mxu0 %vm3231_vm12, %v3205_v34 }
 0x316   :  { %7436 = vmatprep.mubr.msk.bf16.mxu0 %vm3231_vm12, %v3206_v29 }
 0x31d   :  { %7437 = vmatmul.mubr.msk.bf16.gmra.mrb[56].mxu0 %vm3231_vm12, %v3207_v52 }
 0x31e   :  { %7440 = vmatprep.mubr.msk.bf16.mxu0 %vm3231_vm12, %v3208_v45 }
 0x325   :  { %7441 = vmatmul.mubr.msk.bf16.gmra.mrb[60].mxu0 %vm3231_vm12, %v3209_v27 }
 0x380   :  { %v7382_v39 = vpop.f32.mrb[0].mxu0 }
 0x381   :  { %v3375_v33 = vadd.f32 %v7382_v39, %v14624_v11  ;;  %v3366_v58 = vpop.f32.mrb[1].mxu0 }
 0x382   :  { %v3367_v2 = vadd.f32 %v14624_v11, %v3366_v58  ;;  %v7383_v1 = vpop.f32.mrb[2].mxu0 }
 0x383   :  { %v3623_v60 = vmax.f32 %v3375_v33, 0.0  ;;  %v3378_v35 = vadd.f32 %v7383_v1, %v14624_v11  ;;  %v3369_v47 = vpop.f32.mrb[3].mxu0 }
 0x384   :  { %v3621_v40 = vmax.f32 %v3367_v2, 0.0  ;;  %v3370_v3 = vadd.f32 %v14624_v11, %v3369_v47 }
 0x385   :  { %3688 = vst.msk [vmem:[#allocation3 + $0x31] sm:$0xff] %vm129_vm8, %v3623_v60  ;;  %v3624_v28 = vmax.f32 %v3378_v35, 0.0 }
 0x386   :  { %3686 = vst.msk [vmem:[#allocation3 + $0x19] sm:$0xff] %vm129_vm8, %v3621_v40  ;;  %v3622_v5 = vmax.f32 %v3370_v3, 0.0 }
 0x387   :  { %3689 = vst.msk [vmem:[#allocation3 + $0x39] sm:$0xff] %vm129_vm8, %v3624_v28 }
 0x388   :  { %3687 = vst.msk [vmem:[#allocation3 + $0x21] sm:$0xff] %vm129_vm8, %v3622_v5  ;;  %v7386_v54 = vpop.f32.mrb[4].mxu0 }
 0x389   :  { %v3391_v24 = vadd.f32 %v7386_v54, %v14624_v11  ;;  %v3382_v30 = vpop.f32.mrb[5].mxu0 }
 0x38a   :  { %v3383_v51 = vadd.f32 %v14624_v11, %v3382_v30  ;;  %v7387_v31 = vpop.f32.mrb[6].mxu0 }
 0x38b   :  { %v3627_v49 = vmax.f32 %v3391_v24, 0.0  ;;  %v3394_v22 = vadd.f32 %v7387_v31, %v14624_v11  ;;  %v3385_v26 = vpop.f32.mrb[7].mxu0 }
 0x38c   :  { %v3625_v21 = vmax.f32 %v3383_v51, 0.0  ;;  %v3386_v20 = vadd.f32 %v14624_v11, %v3385_v26  ;;  %v3794_v37 = vld [vmem:[#allocation3 + $0x30] sm:$0xff] }
 0x38d   :  { %3692 = vst.msk [vmem:[#allocation3 + $0x61] sm:$0xff] %vm129_vm8, %v3627_v49  ;;  %v3628_v34 = vmax.f32 %v3394_v22, 0.0  ;;  %v3791_v6 = vld [vmem:[#allocation3 + $0x18] sm:$0xff]  ;;  %v4002_v46 = vrot.slane %v3794_v37, 1 }
 0x38e   :  { %3690 = vst.msk [vmem:[#allocation3 + $0x49] sm:$0xff] %vm129_vm8, %v3625_v21  ;;  %v3626_v50 = vmax.f32 %v3386_v20, 0.0  ;;  %v14640_v61 = vld [vmem:[#allocation3 + $0x38] sm:$0xff]  ;;  %v3796_v15 = vld [vmem:[#allocation3 + $0x40] sm:$0x3]  ;;  %v3997_v55 = vrot.slane %v3791_v6, 1 }
 0x38f   :  { %3693 = vst.msk [vmem:[#allocation3 + $0x69] sm:$0xff] %vm129_vm8, %v3628_v34  ;;  %v4003_v32 = vrot.slane %v14640_v61, 1  ;;  %v4005_v42 = vrot.slane %v3796_v15, 1  ;;  %v3792_v29 = vld [vmem:[#allocation3 + $0x20] sm:$0xff]  ;;  %v3793_v4 = vld [vmem:[#allocation3 + $0x28] sm:$0x3] }
 0x390   :  { %3691 = vst.msk [vmem:[#allocation3 + $0x51] sm:$0xff] %vm129_vm8, %v3626_v50  ;;  %v7390_v0 = vpop.f32.mrb[8].mxu0  ;;  %v3998_v62 = vrot.slane %v3792_v29, 1  ;;  %v4000_v56 = vrot.slane %v3793_v4, 1 }
 0x391   :  { %v3407_v17 = vadd.f32 %v7390_v0, %v14624_v11  ;;  %v3398_v9 = vpop.f32.mrb[9].mxu0  ;;  %v14647_v23 = vsel %vm750_vm2, %v4002_v46, %v4003_v32  ;;  %v14650_v12 = vsel %vm750_vm2, %v4003_v32, %v4005_v42 }
 0x392   :  { %18851 = vst [vmem:[#allocation153_spill] sm:$0xff] %v14647_v23  ;;  %18852 = vst [vmem:[#allocation157_spill] sm:$0xff] %v14650_v12  ;;  %v3399_v52 = vadd.f32 %v14624_v11, %v3398_v9  ;;  %v7391_v14 = vpop.f32.mrb[10].mxu0  ;;  %v14655_v44 = vpack.i.bf16 %v14650_v12, %v14647_v23  ;;  %v14658_v38 = vsel %vm750_vm2, %v3997_v55, %v3998_v62 }
 0x393   :  { %18854 = vst [vmem:[#allocation28_spill] sm:$0xff] %v14658_v38  ;;  %v14661_v25 = vsel %vm750_vm2, %v3998_v62, %v4000_v56  ;;  %v3631_v59 = vmax.f32 %v3407_v17, 0.0  ;;  %v3410_v45 = vadd.f32 %v7391_v14, %v14624_v11  ;;  %v3401_v36 = vpop.f32.mrb[11].mxu0 }
 0x394   :  { %18853 = vst [vmem:[#allocation126_spill] sm:$0xff] %v14655_v44  ;;  %18855 = vst [vmem:[#allocation156_spill] sm:$0xff] %v14661_v25  ;;  %v8844_v57 = vpack.i.bf16 %v14661_v25, %v14658_v38  ;;  %v3629_v43 = vmax.f32 %v3399_v52, 0.0  ;;  %v3402_v16 = vadd.f32 %v14624_v11, %v3401_v36  ;;  %8850 = vrot.lane.b32.xlu0 %v14655_v44, %s10068_s1  ;;  %v3800_v27 = vld [vmem:[#allocation3 + $0x60] sm:$0xff]  ;;  %v14887_v25 = vld [vmem:[#allocation3 + $0x1b0] sm:$0xff] }
 0x395   :  { %3696 = vst.msk [vmem:[#allocation3 + $0x91] sm:$0xff] %vm129_vm8, %v3631_v59  ;;  %v3632_v53 = vmax.f32 %v3410_v45, 0.0  ;;  %v3797_v18 = vld [vmem:[#allocation3 + $0x48] sm:$0xff]  ;;  %v4012_v48 = vrot.slane %v3800_v27, 1 }
 0x396   :  { %8845 = vrot.lane.b32.xlu1 %v8844_v57, %s10068_s1  ;;  %3694 = vst.msk [vmem:[#allocation3 + $0x79] sm:$0xff] %vm129_vm8, %v3629_v43  ;;  %v3630_v13 = vmax.f32 %v3402_v16, 0.0  ;;  %v14672_v41 = vld [vmem:[#allocation3 + $0x68] sm:$0xff]  ;;  %v14674_v8 = vld [vmem:[#allocation3 + $0x70] sm:$0x3]  ;;  %v4007_v33 = vrot.slane %v3797_v18, 1 }
 0x397   :  { %3697 = vst.msk [vmem:[#allocation3 + $0x99] sm:$0xff] %vm129_vm8, %v3632_v53  ;;  %v4013_v63 = vrot.slane %v14672_v41, 1  ;;  %v4015_v10 = vrot.slane %v14674_v8, 1  ;;  %v3798_v19 = vld [vmem:[#allocation3 + $0x50] sm:$0xff]  ;;  %v3799_v7 = vld [vmem:[#allocation3 + $0x58] sm:$0x3] }
 0x398   :  { %3695 = vst.msk [vmem:[#allocation3 + $0x81] sm:$0xff] %vm129_vm8, %v3630_v13  ;;  %v7394_v39 = vpop.f32.mrb[12].mxu0  ;;  %v4008_v58 = vrot.slane %v3798_v19, 1  ;;  %v4010_v2 = vrot.slane %v3799_v7, 1 }
 0x399   :  { %v3423_v1 = vadd.f32 %v7394_v39, %v14624_v11  ;;  %v3414_v60 = vpop.f32.mrb[13].mxu0  ;;  %v14682_v35 = vsel %vm750_vm2, %v4012_v48, %v4013_v63  ;;  %v14685_v47 = vsel %vm750_vm2, %v4013_v63, %v4015_v10 }
 0x39a   :  { %18856 = vst [vmem:[#allocation159_spill] sm:$0xff] %v14682_v35  ;;  %18857 = vst [vmem:[#allocation129_spill] sm:$0xff] %v14685_v47  ;;  %v3415_v40 = vadd.f32 %v14624_v11, %v3414_v60  ;;  %v7395_v3 = vpop.f32.mrb[14].mxu0  ;;  %v14690_v28 = vpack.i.bf16 %v14685_v47, %v14682_v35  ;;  %v14693_v5 = vsel %vm750_vm2, %v4007_v33, %v4008_v58 }
 0x39b   :  { %18859 = vst [vmem:[#allocation158_spill] sm:$0xff] %v14693_v5  ;;  %v14696_v54 = vsel %vm750_vm2, %v4008_v58, %v4010_v2  ;;  %v3635_v24 = vmax.f32 %v3423_v1, 0.0  ;;  %v3426_v30 = vadd.f32 %v7395_v3, %v14624_v11  ;;  %v3417_v51 = vpop.f32.mrb[15].mxu0 }
 0x39c   :  { %18858 = vst [vmem:[#allocation31_spill] sm:$0xff] %v14690_v28  ;;  %18860 = vst [vmem:[#allocation8_spill] sm:$0xff] %v14696_v54  ;;  %v14701_v31 = vpack.i.bf16 %v14696_v54, %v14693_v5  ;;  %v3633_v49 = vmax.f32 %v3415_v40, 0.0  ;;  %v3418_v22 = vadd.f32 %v14624_v11, %v3417_v51  ;;  %8860 = vrot.lane.b32.xlu0 %v14690_v28, %s10068_s1  ;;  %v14706_v26 = vld [vmem:[#allocation3 + $0x90] sm:$0xff] }
 0x39d   :  { %3700 = vst.msk [vmem:[#allocation3 + $0xc1] sm:$0xff] %vm129_vm8, %v3635_v24  ;;  %v3636_v21 = vmax.f32 %v3426_v30, 0.0  ;;  %v14711_v20 = vld [vmem:[#allocation3 + $0x78] sm:$0xff]  ;;  %v4022_v50 = vrot.slane %v14706_v26, 1 }
 0x39e   :  { %18861 = vst [vmem:[#allocation32_spill] sm:$0xff] %v14701_v31  ;;  %8855 = vrot.lane.b32.xlu1 %v14701_v31, %s10068_s1  ;;  %3698 = vst.msk [vmem:[#allocation3 + $0xa9] sm:$0xff] %vm129_vm8, %v3633_v49  ;;  %v3634_v37 = vmax.f32 %v3418_v22, 0.0  ;;  %v14714_v34 = vld [vmem:[#allocation3 + $0x98] sm:$0xff]  ;;  %v14716_v6 = vld [vmem:[#allocation3 + $0xa0] sm:$0x3] }
 0x39f   :  { %3701 = vst.msk [vmem:[#allocation3 + $0xc9] sm:$0xff] %vm129_vm8, %v3636_v21  ;;  %v4023_v15 = vrot.slane %v14714_v34, 1  ;;  %v4025_v46 = vrot.slane %v14716_v6, 1  ;;  %v14722_v32 = vld [vmem:[#allocation3 + $0x80] sm:$0xff]  ;;  %v14724_v42 = vld [vmem:[#allocation3 + $0x88] sm:$0x3] }
 0x3a0   :  { %3699 = vst.msk [vmem:[#allocation3 + $0xb1] sm:$0xff] %vm129_vm8, %v3634_v37  ;;  %v7398_v29 = vpop.f32.mrb[16].mxu0  ;;  %v4017_v4 = vrot.slane %v14711_v20, 1  ;;  %v4018_v0 = vrot.slane %v14722_v32, 1  ;;  %v4020_v55 = vrot.slane %v14724_v42, 1 }
 0x3a1   :  { %v3439_v62 = vadd.f32 %v7398_v29, %v14624_v11  ;;  %v3430_v56 = vpop.f32.mrb[17].mxu0  ;;  %v14732_v17 = vsel %vm750_vm2, %v4022_v50, %v4023_v15  ;;  %v14735_v9 = vsel %vm750_vm2, %v4023_v15, %v4025_v46 }
 0x3a2   :  { %18862 = vst [vmem:[#allocation10_spill] sm:$0xff] %v14732_v17  ;;  %18863 = vst [vmem:[#allocation11_spill] sm:$0xff] %v14735_v9  ;;  %v3431_v52 = vadd.f32 %v14624_v11, %v3430_v56  ;;  %v7399_v14 = vpop.f32.mrb[18].mxu0  ;;  %v14740_v59 = vpack.i.bf16 %v14735_v9, %v14732_v17  ;;  %v14743_v45 = vsel %vm750_vm2, %v4017_v4, %v4018_v0 }
 0x3a3   :  { %18865 = vst [vmem:[#allocation13_spill] sm:$0xff] %v14743_v45  ;;  %v14746_v36 = vsel %vm750_vm2, %v4018_v0, %v4020_v55  ;;  %v3639_v57 = vmax.f32 %v3439_v62, 0.0  ;;  %v3442_v43 = vadd.f32 %v7399_v14, %v14624_v11  ;;  %v3433_v16 = vpop.f32.mrb[19].mxu0 }
 0x3a4   :  { %18864 = vst [vmem:[#allocation134_spill] sm:$0xff] %v14740_v59  ;;  %18866 = vst [vmem:[#allocation12_spill] sm:$0xff] %v14746_v36  ;;  %v14751_v27 = vpack.i.bf16 %v14746_v36, %v14743_v45  ;;  %v3637_v53 = vmax.f32 %v3431_v52, 0.0  ;;  %v3434_v18 = vadd.f32 %v14624_v11, %v3433_v16  ;;  %8870 = vrot.lane.b32.xlu0 %v14740_v59, %s10068_s1  ;;  %v14756_v13 = vld [vmem:[#allocation3 + $0xc0] sm:$0xff] }
 0x3a5   :  { %3704 = vst.msk [vmem:[#allocation3 + $0xf1] sm:$0xff] %vm129_vm8, %v3639_v57  ;;  %v3640_v48 = vmax.f32 %v3442_v43, 0.0  ;;  %v14761_v63 = vld [vmem:[#allocation3 + $0xa8] sm:$0xff]  ;;  %v4032_v39 = vrot.slane %v14756_v13, 1 }
 0x3a6   :  { %18867 = vst [vmem:[#allocation14_spill] sm:$0xff] %v14751_v27  ;;  %8865 = vrot.lane.b32.xlu1 %v14751_v27, %s10068_s1  ;;  %3702 = vst.msk [vmem:[#allocation3 + $0xd9] sm:$0xff] %vm129_vm8, %v3637_v53  ;;  %v3638_v10 = vmax.f32 %v3434_v18, 0.0  ;;  %v14764_v19 = vld [vmem:[#allocation3 + $0xc8] sm:$0xff]  ;;  %v14766_v7 = vld [vmem:[#allocation3 + $0xd0] sm:$0x3] }
 0x3a7   :  { %3705 = vst.msk [vmem:[#allocation3 + $0xf9] sm:$0xff] %vm129_vm8, %v3640_v48  ;;  %v4033_v33 = vrot.slane %v14764_v19, 1  ;;  %v4035_v58 = vrot.slane %v14766_v7, 1  ;;  %v14772_v2 = vld [vmem:[#allocation3 + $0xb0] sm:$0xff]  ;;  %v14774_v1 = vld [vmem:[#allocation3 + $0xb8] sm:$0x3] }
 0x3a8   :  { %3703 = vst.msk [vmem:[#allocation3 + $0xe1] sm:$0xff] %vm129_vm8, %v3638_v10  ;;  %v7402_v60 = vpop.f32.mrb[20].mxu0  ;;  %v4027_v40 = vrot.slane %v14761_v63, 1  ;;  %v4028_v3 = vrot.slane %v14772_v2, 1  ;;  %v4030_v24 = vrot.slane %v14774_v1, 1 }
 0x3a9   :  { %v3455_v30 = vadd.f32 %v7402_v60, %v14624_v11  ;;  %v3446_v51 = vpop.f32.mrb[21].mxu0  ;;  %v14782_v49 = vsel %vm750_vm2, %v4032_v39, %v4033_v33  ;;  %v14785_v22 = vsel %vm750_vm2, %v4033_v33, %v4035_v58 }
 0x3aa   :  { %18868 = vst [vmem:[#allocation138_spill] sm:$0xff] %v14782_v49  ;;  %18869 = vst [vmem:[#allocation33_spill] sm:$0xff] %v14785_v22  ;;  %v3447_v21 = vadd.f32 %v14624_v11, %v3446_v51  ;;  %v7403_v37 = vpop.f32.mrb[22].mxu0  ;;  %v14790_v50 = vpack.i.bf16 %v14785_v22, %v14782_v49  ;;  %v14793_v15 = vsel %vm750_vm2, %v4027_v40, %v4028_v3 }
 0x3ab   :  { %18871 = vst [vmem:[#allocation20_spill] sm:$0xff] %v14793_v15  ;;  %v14796_v46 = vsel %vm750_vm2, %v4028_v3, %v4030_v24  ;;  %v3643_v29 = vmax.f32 %v3455_v30, 0.0  ;;  %v3458_v4 = vadd.f32 %v7403_v37, %v14624_v11  ;;  %v3449_v0 = vpop.f32.mrb[23].mxu0 }
 0x3ac   :  { %18870 = vst [vmem:[#allocation19_spill] sm:$0xff] %v14790_v50  ;;  %18872 = vst [vmem:[#allocation143_spill] sm:$0xff] %v14796_v46  ;;  %v14801_v55 = vpack.i.bf16 %v14796_v46, %v14793_v15  ;;  %v3641_v62 = vmax.f32 %v3447_v21, 0.0  ;;  %v3450_v56 = vadd.f32 %v14624_v11, %v3449_v0  ;;  %8880 = vrot.lane.b32.xlu0 %v14790_v50, %s10068_s1  ;;  %v14806_v52 = vld [vmem:[#allocation3 + $0xf0] sm:$0xff] }
 0x3ad   :  { %3708 = vst.msk [vmem:[#allocation3 + $0x121] sm:$0xff] %vm129_vm8, %v3643_v29  ;;  %v3644_v14 = vmax.f32 %v3458_v4, 0.0  ;;  %v14811_v57 = vld [vmem:[#allocation3 + $0xd8] sm:$0xff]  ;;  %v4042_v18 = vrot.slane %v14806_v52, 1 }
 0x3ae   :  { %18873 = vst [vmem:[#allocation147_spill] sm:$0xff] %v14801_v55  ;;  %8875 = vrot.lane.b32.xlu1 %v14801_v55, %s10068_s1  ;;  %3706 = vst.msk [vmem:[#allocation3 + $0x109] sm:$0xff] %vm129_vm8, %v3641_v62  ;;  %v3642_v43 = vmax.f32 %v3450_v56, 0.0  ;;  %v14814_v16 = vld [vmem:[#allocation3 + $0xf8] sm:$0xff]  ;;  %v14816_v53 = vld [vmem:[#allocation3 + $0x100] sm:$0x3] }
 0x3af   :  { %3709 = vst.msk [vmem:[#allocation3 + $0x129] sm:$0xff] %vm129_vm8, %v3644_v14  ;;  %v4043_v48 = vrot.slane %v14814_v16, 1  ;;  %v4045_v10 = vrot.slane %v14816_v53, 1  ;;  %v14822_v39 = vld [vmem:[#allocation3 + $0xe0] sm:$0xff]  ;;  %v14824_v33 = vld [vmem:[#allocation3 + $0xe8] sm:$0x3] }
 0x3b0   :  { %3707 = vst.msk [vmem:[#allocation3 + $0x111] sm:$0xff] %vm129_vm8, %v3642_v43  ;;  %v7406_v58 = vpop.f32.mrb[24].mxu0  ;;  %v4037_v60 = vrot.slane %v14811_v57, 1  ;;  %v4038_v40 = vrot.slane %v14822_v39, 1  ;;  %v4040_v3 = vrot.slane %v14824_v33, 1 }
 0x3b1   :  { %v3471_v24 = vadd.f32 %v7406_v58, %v14624_v11  ;;  %v3462_v30 = vpop.f32.mrb[25].mxu0  ;;  %v14832_v51 = vsel %vm750_vm2, %v4042_v18, %v4043_v48  ;;  %v14835_v21 = vsel %vm750_vm2, %v4043_v48, %v4045_v10 }
 0x3b2   :  { %18874 = vst [vmem:[#allocation41_spill] sm:$0xff] %v14832_v51  ;;  %18875 = vst [vmem:[#allocation29_spill] sm:$0xff] %v14835_v21  ;;  %v3463_v37 = vadd.f32 %v14624_v11, %v3462_v30  ;;  %v7407_v29 = vpop.f32.mrb[26].mxu0  ;;  %v14840_v4 = vpack.i.bf16 %v14835_v21, %v14832_v51  ;;  %v14843_v0 = vsel %vm750_vm2, %v4037_v60, %v4038_v40  ;;  %v14889_v51 = vld [vmem:[#allocation3 + $0x1b8] sm:$0xff] }
 0x3b3   :  { %18877 = vst [vmem:[#allocation150_spill] sm:$0xff] %v14843_v0  ;;  %v14846_v62 = vsel %vm750_vm2, %v4038_v40, %v4040_v3  ;;  %v3647_v56 = vmax.f32 %v3471_v24, 0.0  ;;  %v3474_v14 = vadd.f32 %v7407_v29, %v14624_v11  ;;  %v3465_v43 = vpop.f32.mrb[27].mxu0 }
 0x3b4   :  { %18876 = vst [vmem:[#allocation30_spill] sm:$0xff] %v14840_v4  ;;  %18878 = vst [vmem:[#allocation42_spill] sm:$0xff] %v14846_v62  ;;  %v14851_v18 = vpack.i.bf16 %v14846_v62, %v14843_v0  ;;  %v3645_v48 = vmax.f32 %v3463_v37, 0.0  ;;  %v3466_v10 = vadd.f32 %v14624_v11, %v3465_v43  ;;  %8890 = vrot.lane.b32.xlu0 %v14840_v4, %s10068_s1  ;;  %v14856_v58 = vld [vmem:[#allocation3 + $0x120] sm:$0xff] }
 0x3b5   :  { %3712 = vst.msk [vmem:[#allocation3 + $0x151] sm:$0xff] %vm129_vm8, %v3647_v56  ;;  %v3648_v60 = vmax.f32 %v3474_v14, 0.0  ;;  %v14861_v40 = vld [vmem:[#allocation3 + $0x108] sm:$0xff]  ;;  %v4052_v37 = vrot.slane %v14856_v58, 1  ;;  %v14902_v62 = vld [vmem:[#allocation3 + $0x1c0] sm:$0x3] }
 0x3b6   :  { %18879 = vst [vmem:[#allocation35_spill] sm:$0xff] %v14851_v18  ;;  %8885 = vrot.lane.b32.xlu1 %v14851_v18, %s10068_s1  ;;  %3710 = vst.msk [vmem:[#allocation3 + $0x139] sm:$0xff] %vm129_vm8, %v3645_v48  ;;  %v3646_v3 = vmax.f32 %v3466_v10, 0.0  ;;  %v14864_v24 = vld [vmem:[#allocation3 + $0x128] sm:$0xff]  ;;  %v14866_v30 = vld [vmem:[#allocation3 + $0x130] sm:$0x3] }
 0x3b7   :  { %3713 = vst.msk [vmem:[#allocation3 + $0x159] sm:$0xff] %vm129_vm8, %v3648_v60  ;;  %v4053_v29 = vrot.slane %v14864_v24, 1  ;;  %v4055_v56 = vrot.slane %v14866_v30, 1  ;;  %v14872_v14 = vld [vmem:[#allocation3 + $0x110] sm:$0xff]  ;;  %v14874_v43 = vld [vmem:[#allocation3 + $0x118] sm:$0x3] }
 0x3b8   :  { %3711 = vst.msk [vmem:[#allocation3 + $0x141] sm:$0xff] %vm129_vm8, %v3646_v3  ;;  %v7410_v48 = vpop.f32.mrb[28].mxu0  ;;  %v4047_v10 = vrot.slane %v14861_v40, 1  ;;  %v4048_v5 = vrot.slane %v14872_v14, 1  ;;  %v4050_v54 = vrot.slane %v14874_v43, 1 }
 0x3b9   :  { %v3487_v60 = vadd.f32 %v7410_v48, %v14624_v11  ;;  %v3478_v23 = vpop.f32.mrb[29].mxu0  ;;  %v14882_v12 = vsel %vm750_vm2, %v4052_v37, %v4053_v29  ;;  %v14885_v38 = vsel %vm750_vm2, %v4053_v29, %v4055_v56 }
 0x3ba   :  { %18880 = vst [vmem:[#allocation36_spill] sm:$0xff] %v14882_v12  ;;  %18881 = vst [vmem:[#allocation44_spill] sm:$0xff] %v14885_v38  ;;  %v3479_v3 = vadd.f32 %v14624_v11, %v3478_v23  ;;  %v7411_v21 = vpop.f32.mrb[30].mxu0  ;;  %v14894_v0 = vpack.i.bf16 %v14885_v38, %v14882_v12  ;;  %v14897_v48 = vsel %vm750_vm2, %v4047_v10, %v4048_v5 }
 0x3bb   :  { %18883 = vst [vmem:[#allocation43_spill] sm:$0xff] %v14897_v48  ;;  %v14900_v37 = vsel %vm750_vm2, %v4048_v5, %v4050_v54  ;;  %v3651_v29 = vmax.f32 %v3487_v60, 0.0  ;;  %v3490_v56 = vadd.f32 %v7411_v21, %v14624_v11  ;;  %v3481_v49 = vpop.f32.mrb[31].mxu0  ;;  %v4072_v5 = vrot.slane %v14887_v25, 1 }
 0x3bc   :  { %18882 = vst [vmem:[#allocation38_spill] sm:$0xff] %v14894_v0  ;;  %18884 = vst [vmem:[#allocation46_spill] sm:$0xff] %v14900_v37  ;;  %v14907_v23 = vpack.i.bf16 %v14900_v37, %v14897_v48  ;;  %v3649_v22 = vmax.f32 %v3479_v3, 0.0  ;;  %v3482_v12 = vadd.f32 %v14624_v11, %v3481_v49  ;;  %8900 = vrot.lane.b32.xlu0 %v14894_v0, %s10068_s1  ;;  %v14912_v10 = vld [vmem:[#allocation3 + $0x150] sm:$0xff]  ;;  %v4073_v54 = vrot.slane %v14889_v51, 1 }
 0x3bd   :  { %3716 = vst.msk [vmem:[#allocation3 + $0x181] sm:$0xff] %vm129_vm8, %v3651_v29  ;;  %v3652_v21 = vmax.f32 %v3490_v56, 0.0  ;;  %v14919_v60 = vld [vmem:[#allocation3 + $0x138] sm:$0xff]  ;;  %v4075_v3 = vrot.slane %v14902_v62, 1  ;;  %v4062_v37 = vrot.slane %v14912_v10, 1 }
 0x3be   :  { %18885 = vst [vmem:[#allocation155_spill] sm:$0xff] %v14907_v23  ;;  %8895 = vrot.lane.b32.xlu1 %v14907_v23, %s10068_s1  ;;  %3714 = vst.msk [vmem:[#allocation3 + $0x169] sm:$0xff] %vm129_vm8, %v3649_v22  ;;  %v3650_v49 = vmax.f32 %v3482_v12, 0.0  ;;  %v14923_v38 = vld [vmem:[#allocation3 + $0x158] sm:$0xff]  ;;  %v14925_v48 = vld [vmem:[#allocation3 + $0x160] sm:$0x3] }
 0x3bf   :  { %3717 = vst.msk [vmem:[#allocation3 + $0x189] sm:$0xff] %vm129_vm8, %v3652_v21  ;;  %v4063_v29 = vrot.slane %v14923_v38, 1  ;;  %v4065_v56 = vrot.slane %v14925_v48, 1  ;;  %v14931_v15 = vld [vmem:[#allocation3 + $0x140] sm:$0xff]  ;;  %v14933_v46 = vld [vmem:[#allocation3 + $0x148] sm:$0x3]  ;;  %v4074_v21 = vsel %vm750_vm2, %v4072_v5, %v4073_v54 }
 0x3c0   :  { %3715 = vst.msk [vmem:[#allocation3 + $0x171] sm:$0xff] %vm129_vm8, %v3650_v49  ;;  %v7414_v22 = vpop.f32.mrb[32].mxu0  ;;  %v4057_v12 = vrot.slane %v14919_v60, 1  ;;  %v4058_v17 = vrot.slane %v14931_v15, 1  ;;  %v4060_v9 = vrot.slane %v14933_v46, 1  ;;  %v4076_v49 = vsel %vm750_vm2, %v4073_v54, %v4075_v3 }
 0x3c1   :  { %v3503_v45 = vadd.f32 %v7414_v22, %v14624_v11  ;;  %v3494_v36 = vpop.f32.mrb[33].mxu0  ;;  %v14942_v47 = vsel %vm750_vm2, %v4062_v37, %v4063_v29  ;;  %v14945_v35 = vsel %vm750_vm2, %v4063_v29, %v4065_v56  ;;  %v8919_v56 = vpack.i.bf16 %v4076_v49, %v4074_v21 }
 0x3c2   :  { %18886 = vst [vmem:[#allocation23_spill] sm:$0xff] %v14942_v47  ;;  %18887 = vst [vmem:[#allocation24_spill] sm:$0xff] %v14945_v35  ;;  %v3495_v28 = vadd.f32 %v14624_v11, %v3494_v36  ;;  %v7415_v31 = vpop.f32.mrb[34].mxu0  ;;  %v14951_v44 = vpack.i.bf16 %v14945_v35, %v14942_v47  ;;  %v14954_v5 = vsel %vm750_vm2, %v4057_v12, %v4058_v17 }
 0x3c3   :  { %18889 = vst [vmem:[#allocation25_spill] sm:$0xff] %v14954_v5  ;;  %v14957_v22 = vsel %vm750_vm2, %v4058_v17, %v4060_v9  ;;  %v3655_v37 = vmax.f32 %v3503_v45, 0.0  ;;  %v3506_v0 = vadd.f32 %v7415_v31, %v14624_v11  ;;  %v3497_v29 = vpop.f32.mrb[35].mxu0 }
 0x3c4   :  { %18888 = vst [vmem:[#allocation48_spill] sm:$0xff] %v14951_v44  ;;  %18890 = vst [vmem:[#allocation18_spill] sm:$0xff] %v14957_v22  ;;  %v14962_v54 = vpack.i.bf16 %v14957_v22, %v14954_v5  ;;  %v3653_v36 = vmax.f32 %v3495_v28, 0.0  ;;  %v3498_v3 = vadd.f32 %v14624_v11, %v3497_v29  ;;  %8910 = vrot.lane.b32.xlu0 %v14951_v44, %s10068_s1 }
 0x3c5   :  { %3720 = vst.msk [vmem:[#allocation3 + $0x1e1] sm:$0xff] %vm129_vm8, %v3655_v37  ;;  %v3656_v12 = vmax.f32 %v3506_v0, 0.0  ;;  %v14970_v17 = vld [vmem:[#allocation3 + $0x168] sm:$0xff] }
 0x3c6   :  { %18891 = vst [vmem:[#allocation40_spill] sm:$0xff] %v14962_v54  ;;  %8905 = vrot.lane.b32.xlu1 %v14962_v54, %s10068_s1  ;;  %3718 = vst.msk [vmem:[#allocation3 + $0x1c9] sm:$0xff] %vm129_vm8, %v3653_v36  ;;  %v3654_v31 = vmax.f32 %v3498_v3, 0.0  ;;  %v4067_v21 = vrot.slane %v14970_v17, 1 }
 0x3c7   :  { %3721 = vst.msk [vmem:[#allocation3 + $0x1e9] sm:$0xff] %vm129_vm8, %v3656_v12  ;;  %v14974_v28 = vld [vmem:[#allocation3 + $0x170] sm:$0xff]  ;;  %v14976_v9 = vld [vmem:[#allocation3 + $0x178] sm:$0x3] }
 0x3c8   :  { %3719 = vst.msk [vmem:[#allocation3 + $0x1d1] sm:$0xff] %vm129_vm8, %v3654_v31  ;;  %v7418_v45 = vpop.f32.mrb[36].mxu0  ;;  %v4068_v0 = vrot.slane %v14974_v28, 1  ;;  %v4070_v49 = vrot.slane %v14976_v9, 1  ;;  %8920 = vrot.lane.b32.xlu0 %v8919_v56, %s10068_s1 }
 0x3c9   :  { %v3519_v37 = vadd.f32 %v7418_v45, %v14624_v11  ;;  %v3510_v29 = vpop.f32.mrb[37].mxu0 }
 0x3ca   :  { %v3511_v36 = vadd.f32 %v14624_v11, %v3510_v29  ;;  %v7419_v3 = vpop.f32.mrb[38].mxu0  ;;  %v14986_v12 = vsel %vm750_vm2, %v4067_v21, %v4068_v0  ;;  %v14989_v31 = vsel %vm750_vm2, %v4068_v0, %v4070_v49 }
 0x3cb   :  { %18892 = vst [vmem:[#allocation50_spill] sm:$0xff] %v14986_v12  ;;  %18893 = vst [vmem:[#allocation161_spill] sm:$0xff] %v14989_v31  ;;  %v3659_v47 = vmax.f32 %v3519_v37, 0.0  ;;  %v3522_v35 = vadd.f32 %v7419_v3, %v14624_v11  ;;  %v3513_v5 = vpop.f32.mrb[39].mxu0  ;;  %v14994_v22 = vpack.i.bf16 %v14989_v31, %v14986_v12 }
 0x3cc   :  { %v3657_v56 = vmax.f32 %v3511_v36, 0.0  ;;  %v3514_v45 = vadd.f32 %v14624_v11, %v3513_v5  ;;  %v14997_v44 = vld [vmem:[#allocation3 + $0x1e0] sm:$0xff] }
 0x3cd   :  { %18894 = vst [vmem:[#allocation162_spill] sm:$0xff] %v14994_v22  ;;  %3724 = vst.msk [vmem:[#allocation3 + $0x211] sm:$0xff] %vm129_vm8, %v3659_v47  ;;  %v3660_v21 = vmax.f32 %v3522_v35, 0.0  ;;  %8915 = vrot.lane.b32.xlu1 %v14994_v22, %s10068_s1  ;;  %v15002_v0 = vld [vmem:[#allocation3 + $0x1c8] sm:$0xff]  ;;  %v4082_v5 = vrot.slane %v14997_v44, 1 }
 0x3ce   :  { %18895 = vst [vmem:[#allocation53_spill] sm:$0xff] %v15002_v0  ;;  %3722 = vst.msk [vmem:[#allocation3 + $0x1f9] sm:$0xff] %vm129_vm8, %v3657_v56  ;;  %v3658_v49 = vmax.f32 %v3514_v45, 0.0  ;;  %v15005_v37 = vld [vmem:[#allocation3 + $0x1e8] sm:$0xff]  ;;  %v15007_v29 = vld [vmem:[#allocation3 + $0x1f0] sm:$0x3] }
 0x3cf   :  { %3725 = vst.msk [vmem:[#allocation3 + $0x219] sm:$0xff] %vm129_vm8, %v3660_v21  ;;  %v4083_v36 = vrot.slane %v15005_v37, 1  ;;  %v4085_v35 = vrot.slane %v15007_v29, 1  ;;  %v15013_v47 = vld [vmem:[#allocation3 + $0x1d0] sm:$0xff]  ;;  %v15015_v3 = vld [vmem:[#allocation3 + $0x1d8] sm:$0x3] }
 0x3d0   :  { %18896 = vst [vmem:[#allocation160_spill] sm:$0xff] %v15015_v3  ;;  %3723 = vst.msk [vmem:[#allocation3 + $0x201] sm:$0xff] %vm129_vm8, %v3658_v49  ;;  %v7422_v56 = vpop.f32.mrb[40].mxu0  ;;  %v4077_v45 = vrot.slane %v15002_v0, 1  ;;  %v4078_v12 = vrot.slane %v15013_v47, 1  ;;  %v4080_v31 = vrot.slane %v15015_v3, 1 }
 0x3d1   :  { %v3535_v21 = vadd.f32 %v7422_v56, %v14624_v11  ;;  %v3526_v22 = vpop.f32.mrb[41].mxu0  ;;  %v15023_v54 = vsel %vm750_vm2, %v4082_v5, %v4083_v36  ;;  %v15026_v23 = vsel %vm750_vm2, %v4083_v36, %v4085_v35 }
 0x3d2   :  { %18897 = vst [vmem:[#allocation163_spill] sm:$0xff] %v15023_v54  ;;  %18898 = vst [vmem:[#allocation56_spill] sm:$0xff] %v15026_v23  ;;  %v3527_v4 = vadd.f32 %v14624_v11, %v3526_v22  ;;  %v7423_v18 = vpop.f32.mrb[42].mxu0  ;;  %v15031_v49 = vpack.i.bf16 %v15026_v23, %v15023_v54  ;;  %v15034_v50 = vsel %vm750_vm2, %v4077_v45, %v4078_v12 }
 0x3d3   :  { %18900 = vst [vmem:[#allocation130_spill] sm:$0xff] %v15034_v50  ;;  %v15037_v55 = vsel %vm750_vm2, %v4078_v12, %v4080_v31  ;;  %v3663_v56 = vmax.f32 %v3535_v21, 0.0  ;;  %v3538_v5 = vadd.f32 %v7423_v18, %v14624_v11  ;;  %v3529_v59 = vpop.f32.mrb[43].mxu0 }
 0x3d4   :  { %18899 = vst [vmem:[#allocation59_spill] sm:$0xff] %v15031_v49  ;;  %18901 = vst [vmem:[#allocation131_spill] sm:$0xff] %v15037_v55  ;;  %v8924_v36 = vpack.i.bf16 %v15037_v55, %v15034_v50  ;;  %v3661_v35 = vmax.f32 %v3527_v4, 0.0  ;;  %v3530_v22 = vadd.f32 %v14624_v11, %v3529_v59  ;;  %8930 = vrot.lane.b32.xlu0 %v15031_v49, %s10068_s1  ;;  %v15045_v54 = vld [vmem:[#allocation3 + $0x210] sm:$0xff] }
 0x3d5   :  { %18902 = vst [vmem:[#allocation62_spill] sm:$0xff] %v15045_v54  ;;  %3728 = vst.msk [vmem:[#allocation3 + $0x241] sm:$0xff] %vm129_vm8, %v3663_v56  ;;  %v3664_v45 = vmax.f32 %v3538_v5, 0.0  ;;  %v15049_v12 = vld [vmem:[#allocation3 + $0x1f8] sm:$0xff]  ;;  %v4092_v59 = vrot.slane %v15045_v54, 1 }
 0x3d6   :  { %8925 = vrot.lane.b32.xlu1 %v8924_v36, %s10068_s1  ;;  %18903 = vst [vmem:[#allocation64_spill] sm:$0xff] %v15049_v12  ;;  %3726 = vst.msk [vmem:[#allocation3 + $0x229] sm:$0xff] %vm129_vm8, %v3661_v35  ;;  %v3662_v18 = vmax.f32 %v3530_v22, 0.0  ;;  %v15052_v31 = vld [vmem:[#allocation3 + $0x218] sm:$0xff]  ;;  %v15054_v4 = vld [vmem:[#allocation3 + $0x220] sm:$0x3] }
 0x3d7   :  { %3729 = vst.msk [vmem:[#allocation3 + $0x249] sm:$0xff] %vm129_vm8, %v3664_v45  ;;  %v4093_v21 = vrot.slane %v15052_v31, 1  ;;  %v4095_v56 = vrot.slane %v15054_v4, 1  ;;  %v15060_v5 = vld [vmem:[#allocation3 + $0x200] sm:$0xff]  ;;  %v15062_v36 = vld [vmem:[#allocation3 + $0x208] sm:$0x3] }
 0x3d8   :  { %18904 = vst [vmem:[#allocation67_spill] sm:$0xff] %v15060_v5  ;;  %18905 = vst [vmem:[#allocation69_spill] sm:$0xff] %v15062_v36  ;;  %v7426_v35 = vpop.f32.mrb[44].mxu0  ;;  %v4087_v22 = vrot.slane %v15049_v12, 1  ;;  %v4088_v23 = vrot.slane %v15060_v5, 1  ;;  %v4090_v50 = vrot.slane %v15062_v36, 1 }
 0x3d9   :  { %3727 = vst.msk [vmem:[#allocation3 + $0x231] sm:$0xff] %vm129_vm8, %v3662_v18  ;;  %v3551_v45 = vadd.f32 %v7426_v35, %v14624_v11  ;;  %v3542_v55 = vpop.f32.mrb[45].mxu0  ;;  %v15070_v49 = vsel %vm750_vm2, %v4092_v59, %v4093_v21  ;;  %v15073_v27 = vsel %vm750_vm2, %v4093_v21, %v4095_v56 }
 0x3da   :  { %18906 = vst [vmem:[#allocation72_spill] sm:$0xff] %v15070_v49  ;;  %18907 = vst [vmem:[#allocation74_spill] sm:$0xff] %v15073_v27  ;;  %v3543_v54 = vadd.f32 %v14624_v11, %v3542_v55  ;;  %v7427_v0 = vpop.f32.mrb[46].mxu0  ;;  %v15078_v18 = vpack.i.bf16 %v15073_v27, %v15070_v49  ;;  %v15081_v12 = vsel %vm750_vm2, %v4087_v22, %v4088_v23 }
 0x3db   :  { %18909 = vst [vmem:[#allocation95_spill] sm:$0xff] %v15081_v12  ;;  %v15084_v36 = vsel %vm750_vm2, %v4088_v23, %v4090_v50  ;;  %v3667_v35 = vmax.f32 %v3551_v45, 0.0  ;;  %v3554_v59 = vadd.f32 %v7427_v0, %v14624_v11  ;;  %v3545_v5 = vpop.f32.mrb[47].mxu0 }
 0x3dc   :  { %18908 = vst [vmem:[#allocation78_spill] sm:$0xff] %v15078_v18  ;;  %18910 = vst [vmem:[#allocation96_spill] sm:$0xff] %v15084_v36  ;;  %v15089_v21 = vpack.i.bf16 %v15084_v36, %v15081_v12  ;;  %v3665_v55 = vmax.f32 %v3543_v54, 0.0  ;;  %v3546_v56 = vadd.f32 %v14624_v11, %v3545_v5  ;;  %8940 = vrot.lane.b32.xlu0 %v15078_v18, %s10068_s1  ;;  %v15094_v49 = vld [vmem:[#allocation3 + $0x240] sm:$0xff] }
 0x3dd   :  { %18912 = vst [vmem:[#allocation98_spill] sm:$0xff] %v15094_v49  ;;  %3732 = vst.msk [vmem:[#allocation3 + $0x271] sm:$0xff] %vm129_vm8, %v3667_v35  ;;  %v3668_v50 = vmax.f32 %v3554_v59, 0.0  ;;  %v15099_v23 = vld [vmem:[#allocation3 + $0x228] sm:$0xff]  ;;  %v4102_v5 = vrot.slane %v15094_v49, 1 }
 0x3de   :  { %18911 = vst [vmem:[#allocation97_spill] sm:$0xff] %v15089_v21  ;;  %8935 = vrot.lane.b32.xlu1 %v15089_v21, %s10068_s1  ;;  %18913 = vst [vmem:[#allocation128_spill] sm:$0xff] %v15099_v23  ;;  %v3666_v0 = vmax.f32 %v3546_v56, 0.0  ;;  %v15102_v22 = vld [vmem:[#allocation3 + $0x248] sm:$0xff]  ;;  %v15104_v54 = vld [vmem:[#allocation3 + $0x250] sm:$0x3] }
 0x3df   :  { %3730 = vst.msk [vmem:[#allocation3 + $0x259] sm:$0xff] %vm129_vm8, %v3665_v55  ;;  %18914 = vst [vmem:[#allocation127_spill] sm:$0xff] %v15102_v22  ;;  %v4103_v45 = vrot.slane %v15102_v22, 1  ;;  %v4105_v35 = vrot.slane %v15104_v54, 1  ;;  %v4097_v56 = vrot.slane %v15099_v23, 1 }
 0x3e0   :  { %18915 = vst [vmem:[#allocation133_spill] sm:$0xff] %v15104_v54  ;;  %3733 = vst.msk [vmem:[#allocation3 + $0x279] sm:$0xff] %vm129_vm8, %v3668_v50  ;;  %v15110_v59 = vld [vmem:[#allocation3 + $0x230] sm:$0xff]  ;;  %v15112_v27 = vld [vmem:[#allocation3 + $0x238] sm:$0x3]  ;;  %v7430_v55 = vpop.f32.mrb[48].mxu0 }
 0x3e1   :  { %18916 = vst [vmem:[#allocation132_spill] sm:$0xff] %v15110_v59  ;;  %18917 = vst [vmem:[#allocation136_spill] sm:$0xff] %v15112_v27  ;;  %v4098_v12 = vrot.slane %v15110_v59, 1  ;;  %v4100_v36 = vrot.slane %v15112_v27, 1  ;;  %v3567_v50 = vadd.f32 %v7430_v55, %v14624_v11  ;;  %v3558_v18 = vpop.f32.mrb[49].mxu0  ;;  %v15120_v21 = vsel %vm750_vm2, %v4102_v5, %v4103_v45 }
 0x3e2   :  { %3731 = vst.msk [vmem:[#allocation3 + $0x261] sm:$0xff] %vm129_vm8, %v3666_v0  ;;  %18918 = vst [vmem:[#allocation135_spill] sm:$0xff] %v15120_v21  ;;  %v15123_v49 = vsel %vm750_vm2, %v4103_v45, %v4105_v35  ;;  %v3559_v54 = vadd.f32 %v14624_v11, %v3558_v18  ;;  %v7431_v22 = vpop.f32.mrb[50].mxu0 }
 0x3e3   :  { %18919 = vst [vmem:[#allocation139_spill] sm:$0xff] %v15123_v49  ;;  %v15128_v0 = vpack.i.bf16 %v15123_v49, %v15120_v21  ;;  %v15131_v59 = vsel %vm750_vm2, %v4097_v56, %v4098_v12  ;;  %v15134_v27 = vsel %vm750_vm2, %v4098_v12, %v4100_v36  ;;  %v3671_v55 = vmax.f32 %v3567_v50, 0.0  ;;  %v3561_v23 = vpop.f32.mrb[51].mxu0 }
 0x3e4   :  { %18921 = vst [vmem:[#allocation141_spill] sm:$0xff] %v15131_v59  ;;  %18922 = vst [vmem:[#allocation140_spill] sm:$0xff] %v15134_v27  ;;  %v3570_v5 = vadd.f32 %v7431_v22, %v14624_v11  ;;  %v15139_v45 = vpack.i.bf16 %v15134_v27, %v15131_v59  ;;  %v3669_v18 = vmax.f32 %v3559_v54, 0.0  ;;  %v3562_v35 = vadd.f32 %v14624_v11, %v3561_v23  ;;  %v15144_v21 = vld [vmem:[#allocation3 + $0x270] sm:$0xff] }
 0x3e5   :  { %18920 = vst [vmem:[#allocation137_spill] sm:$0xff] %v15128_v0  ;;  %8950 = vrot.lane.b32.xlu0 %v15128_v0, %s10068_s1  ;;  %18924 = vst [vmem:[#allocation142_spill] sm:$0xff] %v15144_v21  ;;  %v4112_v23 = vrot.slane %v15144_v21, 1 }
 0x3e6   :  { %18923 = vst [vmem:[#allocation144_spill] sm:$0xff] %v15139_v45  ;;  %3736 = vst.msk [vmem:[#allocation3 + $0x2a1] sm:$0xff] %vm129_vm8, %v3671_v55  ;;  %v3672_v12 = vmax.f32 %v3570_v5, 0.0  ;;  %8945 = vrot.lane.b32.xlu1 %v15139_v45, %s10068_s1  ;;  %v15149_v36 = vld [vmem:[#allocation3 + $0x258] sm:$0xff]  ;;  %v3670_v22 = vmax.f32 %v3562_v35, 0.0 }
 0x3e7   :  { %18925 = vst [vmem:[#allocation146_spill] sm:$0xff] %v15149_v36  ;;  %3734 = vst.msk [vmem:[#allocation3 + $0x289] sm:$0xff] %vm129_vm8, %v3669_v18  ;;  %v15152_v56 = vld [vmem:[#allocation3 + $0x278] sm:$0xff]  ;;  %v15154_v54 = vld [vmem:[#allocation3 + $0x280] sm:$0x3]  ;;  %v4107_v35 = vrot.slane %v15149_v36, 1 }
 0x3e8   :  { %18926 = vst [vmem:[#allocation37_spill] sm:$0xff] %v15152_v56  ;;  %18927 = vst [vmem:[#allocation60_spill] sm:$0xff] %v15154_v54  ;;  %v4113_v50 = vrot.slane %v15152_v56, 1  ;;  %v4115_v55 = vrot.slane %v15154_v54, 1  ;;  %v7434_v18 = vpop.f32.mrb[52].mxu0 }
 0x3e9   :  { %3737 = vst.msk [vmem:[#allocation3 + $0x2a9] sm:$0xff] %vm129_vm8, %v3672_v12  ;;  %v15160_v5 = vld [vmem:[#allocation3 + $0x260] sm:$0xff]  ;;  %v15162_v49 = vld [vmem:[#allocation3 + $0x268] sm:$0x3]  ;;  %3735 = vst.msk [vmem:[#allocation3 + $0x291] sm:$0xff] %vm129_vm8, %v3670_v22  ;;  %v3583_v12 = vadd.f32 %v7434_v18, %v14624_v11  ;;  %v3574_v0 = vpop.f32.mrb[53].mxu0 }
 0x3ea   :  { %18928 = vst [vmem:[#allocation81_spill] sm:$0xff] %v15160_v5  ;;  %18929 = vst [vmem:[#allocation39_spill] sm:$0xff] %v15162_v49  ;;  %v4108_v59 = vrot.slane %v15160_v5, 1  ;;  %v4110_v27 = vrot.slane %v15162_v49, 1  ;;  %v15170_v45 = vsel %vm750_vm2, %v4112_v23, %v4113_v50  ;;  %v15173_v21 = vsel %vm750_vm2, %v4113_v50, %v4115_v55  ;;  %v7435_v56 = vpop.f32.mrb[54].mxu0 }
 0x3eb   :  { %18930 = vst [vmem:[#allocation45_spill] sm:$0xff] %v15170_v45  ;;  %18931 = vst [vmem:[#allocation83_spill] sm:$0xff] %v15173_v21  ;;  %v3575_v54 = vadd.f32 %v14624_v11, %v3574_v0  ;;  %v15178_v22 = vpack.i.bf16 %v15173_v21, %v15170_v45  ;;  %v3675_v18 = vmax.f32 %v3583_v12, 0.0  ;;  %v3586_v23 = vadd.f32 %v7435_v56, %v14624_v11  ;;  %v3577_v5 = vpop.f32.mrb[55].mxu0 }
 0x3ec   :  { %v15181_v36 = vsel %vm750_vm2, %v4107_v35, %v4108_v59  ;;  %v15184_v49 = vsel %vm750_vm2, %v4108_v59, %v4110_v27  ;;  %v3578_v55 = vadd.f32 %v14624_v11, %v3577_v5 }
 0x3ed   :  { %18932 = vst [vmem:[#allocation63_spill] sm:$0xff] %v15178_v22  ;;  %18933 = vst [vmem:[#allocation115_spill] sm:$0xff] %v15181_v36  ;;  %v15189_v50 = vpack.i.bf16 %v15184_v49, %v15181_v36  ;;  %v3673_v0 = vmax.f32 %v3575_v54, 0.0  ;;  %8960 = vrot.lane.b32.xlu0 %v15178_v22, %s10068_s1  ;;  %v15194_v45 = vld [vmem:[#allocation3 + $0x2a0] sm:$0xff]  ;;  %v3676_v27 = vmax.f32 %v3586_v23, 0.0 }
 0x3ee   :  { %18934 = vst [vmem:[#allocation84_spill] sm:$0xff] %v15184_v49  ;;  %18936 = vst [vmem:[#allocation47_spill] sm:$0xff] %v15194_v45  ;;  %v15199_v59 = vld [vmem:[#allocation3 + $0x288] sm:$0xff]  ;;  %v3674_v56 = vmax.f32 %v3578_v55, 0.0  ;;  %v4122_v5 = vrot.slane %v15194_v45, 1 }
 0x3ef   :  { %18935 = vst [vmem:[#allocation66_spill] sm:$0xff] %v15189_v50  ;;  %3740 = vst.msk [vmem:[#allocation3 + $0x2d1] sm:$0xff] %vm129_vm8, %v3675_v18  ;;  %8955 = vrot.lane.b32.xlu1 %v15189_v50, %s10068_s1  ;;  %v4117_v55 = vrot.slane %v15199_v59, 1 }
 0x3f0   :  { %18937 = vst [vmem:[#allocation86_spill] sm:$0xff] %v15199_v59  ;;  %3738 = vst.msk [vmem:[#allocation3 + $0x2b9] sm:$0xff] %vm129_vm8, %v3673_v0  ;;  %v15202_v35 = vld [vmem:[#allocation3 + $0x2a8] sm:$0xff]  ;;  %v15204_v54 = vld [vmem:[#allocation3 + $0x2b0] sm:$0x3]  ;;  %v7438_v0 = vpop.f32.mrb[56].mxu0 }
 0x3f1   :  { %18938 = vst [vmem:[#allocation68_spill] sm:$0xff] %v15202_v35  ;;  %18939 = vst [vmem:[#allocation70_spill] sm:$0xff] %v15204_v54  ;;  %v4123_v12 = vrot.slane %v15202_v35, 1  ;;  %v4125_v18 = vrot.slane %v15204_v54, 1  ;;  %v15210_v23 = vld [vmem:[#allocation3 + $0x290] sm:$0xff]  ;;  %v3590_v22 = vpop.f32.mrb[57].mxu0 }
 0x3f2   :  { %3741 = vst.msk [vmem:[#allocation3 + $0x2d9] sm:$0xff] %vm129_vm8, %v3676_v27  ;;  %18940 = vst [vmem:[#allocation73_spill] sm:$0xff] %v15210_v23  ;;  %v15212_v21 = vld [vmem:[#allocation3 + $0x298] sm:$0x3]  ;;  %v4118_v36 = vrot.slane %v15210_v23, 1  ;;  %v3599_v27 = vadd.f32 %v7438_v0, %v14624_v11  ;;  %v3591_v54 = vadd.f32 %v14624_v11, %v3590_v22  ;;  %v7439_v35 = vpop.f32.mrb[58].mxu0 }
 0x3f3   :  { %18941 = vst [vmem:[#allocation51_spill] sm:$0xff] %v15212_v21  ;;  %3739 = vst.msk [vmem:[#allocation3 + $0x2c1] sm:$0xff] %vm129_vm8, %v3674_v56  ;;  %v4120_v49 = vrot.slane %v15212_v21, 1  ;;  %v15220_v50 = vsel %vm750_vm2, %v4122_v5, %v4123_v12  ;;  %v15223_v45 = vsel %vm750_vm2, %v4123_v12, %v4125_v18  ;;  %v3602_v5 = vadd.f32 %v7439_v35, %v14624_v11  ;;  %v3593_v23 = vpop.f32.mrb[59].mxu0 }
 0x3f4   :  { %18942 = vst [vmem:[#allocation49_spill] sm:$0xff] %v15220_v50  ;;  %18943 = vst [vmem:[#allocation87_spill] sm:$0xff] %v15223_v45  ;;  %v15228_v56 = vpack.i.bf16 %v15223_v45, %v15220_v50  ;;  %v15231_v59 = vsel %vm750_vm2, %v4117_v55, %v4118_v36  ;;  %v3679_v0 = vmax.f32 %v3599_v27, 0.0  ;;  %v3677_v22 = vmax.f32 %v3591_v54, 0.0 }
 0x3f5   :  { %18945 = vst [vmem:[#allocation57_spill] sm:$0xff] %v15231_v59  ;;  %v15234_v21 = vsel %vm750_vm2, %v4118_v36, %v4120_v49  ;;  %v3594_v18 = vadd.f32 %v14624_v11, %v3593_v23  ;;  %v3680_v49 = vmax.f32 %v3602_v5, 0.0 }
 0x3f6   :  { %18944 = vst [vmem:[#allocation76_spill] sm:$0xff] %v15228_v56  ;;  %18946 = vst [vmem:[#allocation88_spill] sm:$0xff] %v15234_v21  ;;  %v15239_v12 = vpack.i.bf16 %v15234_v21, %v15231_v59  ;;  %8970 = vrot.lane.b32.xlu0 %v15228_v56, %s10068_s1  ;;  %v15244_v50 = vld [vmem:[#allocation3 + $0x2d0] sm:$0xff] }
 0x3f7   :  { %18948 = vst [vmem:[#allocation52_spill] sm:$0xff] %v15244_v50  ;;  %3744 = vst.msk [vmem:[#allocation3 + $0x301] sm:$0xff] %vm129_vm8, %v3679_v0  ;;  %v15249_v36 = vld [vmem:[#allocation3 + $0x2b8] sm:$0xff]  ;;  %v3678_v35 = vmax.f32 %v3594_v18, 0.0  ;;  %v4132_v11 = vrot.slane %v15244_v50, 1 }
 0x3f8   :  { %18947 = vst [vmem:[#allocation89_spill] sm:$0xff] %v15239_v12  ;;  %8965 = vrot.lane.b32.xlu1 %v15239_v12, %s10068_s1  ;;  %18949 = vst [vmem:[#allocation79_spill] sm:$0xff] %v15249_v36  ;;  %v4127_v18 = vrot.slane %v15249_v36, 1 }
 0x3f9   :  { %3742 = vst.msk [vmem:[#allocation3 + $0x2e9] sm:$0xff] %vm129_vm8, %v3677_v22  ;;  %v15252_v55 = vld [vmem:[#allocation3 + $0x2d8] sm:$0xff]  ;;  %v15254_v54 = vld [vmem:[#allocation3 + $0x2e0] sm:$0x3]  ;;  %3745 = vst.msk [vmem:[#allocation3 + $0x309] sm:$0xff] %vm129_vm8, %v3680_v49  ;;  %v7442_v22 = vpop.f32.mrb[60].mxu0 }
 0x3fa   :  { %18950 = vst [vmem:[#allocation82_spill] sm:$0xff] %v15252_v55  ;;  %18951 = vst [vmem:[#allocation121_spill] sm:$0xff] %v15254_v54  ;;  %v4133_v23 = vrot.slane %v15252_v55, 1  ;;  %v4135_v27 = vrot.slane %v15254_v54, 1  ;;  %v15260_v0 = vld [vmem:[#allocation3 + $0x2c0] sm:$0xff]  ;;  %v3606_v56 = vpop.f32.mrb[61].mxu0 }
 0x3fb   :  { %18952 = vst [vmem:[#allocation99_spill] sm:$0xff] %v15260_v0  ;;  %v15262_v5 = vld [vmem:[#allocation3 + $0x2c8] sm:$0x3]  ;;  %3743 = vst.msk [vmem:[#allocation3 + $0x2f1] sm:$0xff] %vm129_vm8, %v3678_v35  ;;  %v4128_v45 = vrot.slane %v15260_v0, 1  ;;  %v7443_v54 = vpop.f32.mrb[62].mxu0 }
 0x3fc   :  { %18953 = vst [vmem:[#allocation61_spill] sm:$0xff] %v15262_v5  ;;  %v4130_v59 = vrot.slane %v15262_v5, 1  ;;  %v9917_v49 = vld [vmem:[%s17482_s3] ss:$0 sm:$0xff]  ;;  %v15272_v12 = vsel %vm750_vm2, %v4132_v11, %v4133_v23  ;;  %v15275_v50 = vsel %vm750_vm2, %v4133_v23, %v4135_v27  ;;  %v3609_v3 = vpop.f32.mrb[63].mxu0 }
 0x3fd   :  { %v3615_v21 = vadd.f32 %v9917_v49, %v7442_v22  ;;  %18954 = vst [vmem:[#allocation54_spill] sm:$0xff] %v15272_v12  ;;  %18955 = vst [vmem:[#allocation90_spill] sm:$0xff] %v15275_v50  ;;  %v3607_v35 = vadd.f32 %v9917_v49, %v3606_v56  ;;  %v15279_v36 = vpack.i.bf16 %v15275_v50, %v15272_v12  ;;  %v9920_v50 = vld [vmem:[#allocation3 + $0x10] sm:$0x3] }
 0x3fe   :  { %v15282_v5 = vsel %vm750_vm2, %v4127_v18, %v4128_v45  ;;  %v15285_v0 = vsel %vm750_vm2, %v4128_v45, %v4130_v59  ;;  %v3618_v55 = vadd.f32 %v9917_v49, %v7443_v54  ;;  %v3610_v56 = vadd.f32 %v9917_v49, %v3609_v3  ;;  %v15293_v27 = vld [vmem:[#allocation3 + $0x300] sm:$0xff]  ;;  %v9919_v54 = vld [vmem:[#allocation3 + $0x8] sm:$0xff] }
 0x3ff   :  { %18956 = vst [vmem:[#allocation100_spill] sm:$0xff] %v15279_v36  ;;  %18957 = vst [vmem:[#allocation101_spill] sm:$0xff] %v15282_v5  ;;  %v3683_v22 = vmax.f32 %v3615_v21, 0.0  ;;  %v15289_v11 = vpack.i.bf16 %v15285_v0, %v15282_v5  ;;  %v3681_v23 = vmax.f32 %v3607_v35, 0.0  ;;  %8980 = vrot.lane.b32.xlu0 %v15279_v36, %s10068_s1  ;;  %v9918_v45 = vld [vmem:[#allocation3] sm:$0xff]  ;;  %v4345_v12 = vrot.slane %v9919_v54, 2 }
 0x400   :  { %18958 = vst [vmem:[#allocation65_spill] sm:$0xff] %v15285_v0  ;;  %18960 = vst [vmem:[#allocation102_spill] sm:$0xff] %v15293_v27  ;;  %v3684_v18 = vmax.f32 %v3618_v55, 0.0  ;;  %v15298_v21 = vld [vmem:[#allocation3 + $0x2e8] sm:$0xff]  ;;  %v4344_v59 = vrot.slane %v9918_v45, 2  ;;  %v4347_v35 = vrot.slane %v9920_v50, 2 }
 0x401   :  { %18959 = vst [vmem:[#allocation91_spill] sm:$0xff] %v15289_v11  ;;  %3748 = vst.msk [vmem:[#allocation3 + $0x331] sm:$0xff] %vm129_vm8, %v3683_v22  ;;  %8975 = vrot.lane.b32.xlu1 %v15289_v11, %s10068_s1  ;;  %v3682_v3 = vmax.f32 %v3610_v56, 0.0  ;;  %v15301_v49 = vld [vmem:[#allocation3 + $0x308] sm:$0xff]  ;;  %v15303_v5 = vld [vmem:[#allocation3 + $0x310] sm:$0x3] }
 0x402   :  { %18961 = vst [vmem:[#allocation103_spill] sm:$0xff] %v15298_v21  ;;  %3746 = vst.msk [vmem:[#allocation3 + $0x319] sm:$0xff] %vm129_vm8, %v3681_v23  ;;  %v4355_v55 = vrot.slane %v14640_v61, 2  ;;  %v4142_v22 = vrot.slane %v15293_v27, 1  ;;  %v4143_v0 = vrot.slane %v15301_v49, 1  ;;  %v4145_v45 = vrot.slane %v15303_v5, 1 }
 0x403   :  { %18962 = vst [vmem:[#allocation104_spill] sm:$0xff] %v15301_v49  ;;  %18963 = vst [vmem:[#allocation105_spill] sm:$0xff] %v15303_v5  ;;  %v15310_v54 = vld [vmem:[#allocation3 + $0x2f0] sm:$0xff]  ;;  %v15312_v50 = vld [vmem:[#allocation3 + $0x2f8] sm:$0x3]  ;;  %v4137_v23 = vrot.slane %v15298_v21, 1  ;;  %v4346_v5 = vsel %vm1103_vm3, %v4344_v59, %v4345_v12  ;;  %v4348_v49 = vsel %vm1103_vm3, %v4345_v12, %v4347_v35 }
 0x404   :  { %3749 = vst.msk [vmem:[#allocation3 + $0x339] sm:$0xff] %vm129_vm8, %v3684_v18  ;;  %18964 = vst [vmem:[#allocation71_spill] sm:$0xff] %v15312_v50  ;;  %v4138_v56 = vrot.slane %v15310_v54, 1  ;;  %v4140_v61 = vrot.slane %v15312_v50, 1  ;;  %v9921_v36 = vld [vmem:[#allocation3 + $0x40] sm:$0x3]  ;;  %v15319_v11 = vsel %vm750_vm2, %v4142_v22, %v4143_v0  ;;  %v15322_v27 = vsel %vm750_vm2, %v4143_v0, %v4145_v45 }
 0x405   :  { %3747 = vst.msk [vmem:[#allocation3 + $0x321] sm:$0xff] %vm129_vm8, %v3682_v3  ;;  %v4357_v18 = vrot.slane %v9921_v36, 2  ;;  %18965 = vst [vmem:[#allocation55_spill] sm:$0xff] %v15319_v11  ;;  %v15328_v3 = vpack.i.bf16 %v15322_v27, %v15319_v11  ;;  %v15336_v36 = vld [vmem:[#allocation3 + $0x30] sm:$0xff]  ;;  %v8999_v12 = vpack.i.bf16 %v4348_v49, %v4346_v5  ;;  %v15351_v45 = vld [vmem:[#allocation3 + $0x20] sm:$0xff]  ;;  %v4367_v11 = vrot.slane %v14674_v8, 2 }
 0x406   :  { %18966 = vst [vmem:[#allocation75_spill] sm:$0xff] %v15322_v27  ;;  %v15331_v21 = vsel %vm750_vm2, %v4137_v23, %v4138_v56  ;;  %v15334_v50 = vsel %vm750_vm2, %v4138_v56, %v4140_v61  ;;  %18970 = vst [vmem:[#allocation77_spill] sm:$0xff] %v15336_v36  ;;  %v4354_v22 = vrot.slane %v15336_v36, 2  ;;  %v4350_v23 = vrot.slane %v15351_v45, 2  ;;  %v9924_v5 = vld [vmem:[#allocation3 + $0x28] sm:$0x3] }
 0x407   :  { %18967 = vst [vmem:[#allocation92_spill] sm:$0xff] %v15328_v3  ;;  %18968 = vst [vmem:[#allocation106_spill] sm:$0xff] %v15331_v21  ;;  %v15341_v0 = vpack.i.bf16 %v15334_v50, %v15331_v21  ;;  %8990 = vrot.lane.b32.xlu0 %v15328_v3, %s10068_s1  ;;  %v15349_v35 = vsel %vm1103_vm3, %v4355_v55, %v4357_v18  ;;  %v4365_v61 = vrot.slane %v14672_v41, 2  ;;  %v4352_v49 = vrot.slane %v9924_v5, 2 }
 0x408   :  { %18969 = vst [vmem:[#allocation58_spill] sm:$0xff] %v15334_v50  ;;  %v15346_v59 = vsel %vm1103_vm3, %v4354_v22, %v4355_v55  ;;  %18973 = vst [vmem:[#allocation93_spill] sm:$0xff] %v15349_v35  ;;  %v15360_v22 = vld [vmem:[#allocation3 + $0x18] sm:$0xff]  ;;  %v15371_v50 = vld [vmem:[#allocation3 + $0x60] sm:$0xff] }
 0x409   :  { %18971 = vst [vmem:[#allocation9_spill] sm:$0xff] %v15341_v0  ;;  %18972 = vst [vmem:[#allocation107_spill] sm:$0xff] %v15346_v59  ;;  %8985 = vrot.lane.b32.xlu1 %v15341_v0, %s10068_s1  ;;  %v15356_v56 = vld [vmem:[#allocation3 + $0x318] sm:$0xff]  ;;  %v4349_v55 = vrot.slane %v15360_v22, 2  ;;  %v15365_v18 = vpack.i.bf16 %v15349_v35, %v15346_v59  ;;  %v4364_v41 = vrot.slane %v15371_v50, 2  ;;  %v15383_v0 = vsel %vm1103_vm3, %v4365_v61, %v4367_v11 }
 0x40a   :  { %18974 = vst [vmem:[#allocation108_spill] sm:$0xff] %v15351_v45  ;;  %18975 = vst [vmem:[#allocation109_spill] sm:$0xff] %v15356_v56  ;;  %v4147_v8 = vrot.slane %v15356_v56, 1  ;;  %v4353_v36 = vsel %vm1103_vm3, %v4350_v23, %v4352_v49  ;;  %v9928_v56 = vld [vmem:[#allocation3 + $0x58] sm:$0x3]  ;;  %v15404_v49 = vld [vmem:[#allocation3 + $0x48] sm:$0xff] }
 0x40b   :  { %18976 = vst [vmem:[#allocation94_spill] sm:$0xff] %v15360_v22  ;;  %18977 = vst [vmem:[#allocation15_spill] sm:$0xff] %v15371_v50  ;;  %9000 = vrot.lane.b32.xlu0 %v8999_v12, %s10069_s17  ;;  %v4351_v35 = vsel %vm1103_vm3, %v4349_v55, %v4350_v23  ;;  %v15380_v59 = vsel %vm1103_vm3, %v4364_v41, %v4365_v61  ;;  %v15386_v50 = vld [vmem:[#allocation3 + $0x50] sm:$0xff]  ;;  %v4375_v55 = vrot.slane %v14714_v34, 2  ;;  %v4362_v41 = vrot.slane %v9928_v56, 2 }
 0x40c   :  { %v15367_v27 = vld [vmem:[#allocation3 + $0x320] sm:$0xff]  ;;  %v15369_v21 = vld [vmem:[#allocation3 + $0x328] sm:$0x3]  ;;  %18978 = vst [vmem:[#allocation110_spill] sm:$0xff] %v15380_v59  ;;  %18979 = vst [vmem:[#allocation16_spill] sm:$0xff] %v15383_v0  ;;  %v4360_v12 = vrot.slane %v15386_v50, 2  ;;  %v15411_v34 = vpack.i.bf16 %v15383_v0, %v15380_v59  ;;  %v15413_v56 = vpack.i.bf16 %v4353_v36, %v4351_v35 }
 0x40d   :  { %v4148_v5 = vrot.slane %v15367_v27, 1  ;;  %v4150_v3 = vrot.slane %v15369_v21, 1  ;;  %v4377_v23 = vrot.slane %v14716_v6, 2  ;;  %v4374_v61 = vrot.slane %v14706_v26, 2 }
 0x40e   :  { %v15422_v26 = vsel %vm1103_vm3, %v4360_v12, %v4362_v41  ;;  %v4387_v0 = vrot.slane %v14766_v7, 2  ;;  %v4372_v36 = vrot.slane %v14724_v42, 2  ;;  %v4369_v35 = vrot.slane %v14711_v20, 2 }
 0x40f   :  { %v15390_v45 = vsel %vm750_vm2, %v4147_v8, %v4148_v5  ;;  %v15393_v22 = vsel %vm750_vm2, %v4148_v5, %v4150_v3  ;;  %9010 = vrot.lane.b32.xlu0 %v15365_v18, %s10069_s17  ;;  %v4359_v3 = vrot.slane %v15404_v49, 2  ;;  %v15416_v6 = vsel %vm1103_vm3, %v4374_v61, %v4375_v55  ;;  %18985 = vst [vmem:[#allocation117_spill] sm:$0xff] %v15422_v26 }
 0x410   :  { %18980 = vst [vmem:[#allocation112_spill] sm:$0xff] %v15390_v45  ;;  %18981 = vst [vmem:[#allocation113_spill] sm:$0xff] %v15393_v22  ;;  %v15398_v11 = vpack.i.bf16 %v15393_v22, %v15390_v45  ;;  %v4370_v5 = vrot.slane %v14722_v32, 2  ;;  %v15426_v45 = vsel %vm1103_vm3, %v4375_v55, %v4377_v23  ;;  %v4385_v22 = vrot.slane %v14764_v19, 2  ;;  %v9802_v32 = vld [vmem:[%s17481_s2] sm:$0xff]  }
 0x411   :  { %18983 = vst [vmem:[#allocation17_spill] sm:$0xff] %v15416_v6  ;;  %v15419_v8 = vsel %vm1103_vm3, %v4359_v3, %v4360_v12  ;;  %18986 = vst [vmem:[#allocation21_spill] sm:$0xff] %v15426_v45  ;;  %v4395_v61 = vrot.slane %v14814_v16, 2  ;;  %v4384_v42 = vrot.slane %v14756_v13, 2  ;;  %v4397_v7 = vrot.slane %v14816_v53, 2 }
 0x412   :  { %18982 = vst [vmem:[#allocation114_spill] sm:$0xff] %v15398_v11  ;;  %8995 = vrot.lane.b32.xlu1 %v15398_v11, %s10068_s1  ;;  %18984 = vst [vmem:[#allocation116_spill] sm:$0xff] %v15419_v8  ;;  %v15442_v19 = vpack.i.bf16 %v15422_v26, %v15419_v8  ;;  %v15448_v20 = vpack.i.bf16 %v15426_v45, %v15416_v6  ;;  %v15451_v16 = vsel %vm1103_vm3, %v4369_v35, %v4370_v5  ;;  %v17966_v53 = vmov 0   ;;  %v3892_v6 = vld [vmem:[#allocation3 + $0x340] sm:$0x3]  ;;  %v15986_v8 = vld [vmem:[#allocation3 + $0xa8] sm:$0xff] }
 0x413   :  { %9020 = vrot.lane.b32.xlu0 %v15411_v34, %s10069_s17  ;;  %18987 = vst [vmem:[#allocation34_spill] sm:$0xff] %v15451_v16  ;;  %v4394_v12 = vrot.slane %v14806_v52, 2  ;;  %v15455_v55 = vsel %vm1103_vm3, %v4384_v42, %v4385_v22  ;;  %v15458_v41 = vsel %vm1103_vm3, %v4385_v22, %v4387_v0  ;;  %v15461_v23 = vsel %vm1103_vm3, %v4370_v5, %v4372_v36  ;;  %v16008_v11 = vld [vmem:[#allocation3 + $0xc8] sm:$0xff] }
 0x414   :  { %18988 = vst [vmem:[#allocation118_spill] sm:$0xff] %v15455_v55  ;;  %18989 = vst [vmem:[#allocation111_spill] sm:$0xff] %v15458_v41  ;;  %v4380_v13 = vrot.slane %v14772_v2, 2  ;;  %7512 = vmatprep.subr.bf16.mxu1 %v17966_v53  ;;  %v4379_v52 = vrot.slane %v14761_v63, 2  ;;  %v4382_v35 = vrot.slane %v14774_v1, 2  ;;  %v4390_v0 = vrot.slane %v14822_v39, 2  ;;  %6336 = vmatprep.subr.bf16.mxu0 %v17966_v53 }
 0x415   :  { %18990 = vst [vmem:[#allocation119_spill] sm:$0xff] %v15461_v23  ;;  %v15468_v3 = vsel %vm1103_vm3, %v4394_v12, %v4395_v61  ;;  %7528 = vmatpush1.bf16.msra.mxu1 %v9802_v32  ;;  %v9803_v2 = vld [vmem:[%s17481_s2 + $0x8] sm:$0xff]   ;;  %v15479_v22 = vsel %vm1103_vm3, %v4395_v61, %v4397_v7  ;;  %v4405_v5 = vrot.slane %v14864_v24, 2  ;;  %v4407_v36 = vrot.slane %v14866_v30, 2  ;;  %6337 = vmatpush1.bf16.msra.mxu0 %v9802_v32  ;;  %v9804_v7 = vld [vmem:[%s17481_s2 + $0x10] sm:$0xff]  }
 0x416   :  { %9005 = vrot.lane.b32.xlu1 %v15413_v56, %s10069_s17  ;;  %18991 = vst [vmem:[#allocation22_spill] sm:$0xff] %v15468_v3  ;;  %18992 = vst [vmem:[#allocation120_spill] sm:$0xff] %v15479_v22  ;;  %v4392_v63 = vrot.slane %v14824_v33, 2  ;;  %7513 = vmatprep.subr.bf16.mxu1 %v17966_v53  ;;  %v15487_v1 = vpack.i.bf16 %v15458_v41, %v15455_v55  ;;  %v4389_v39 = vrot.slane %v14811_v57, 2  ;;  %v4404_v30 = vrot.slane %v14856_v58, 2  ;;  %v19057_v41 = vld [vmem:[#allocation51_spill] sm:$0xff] }
 0x417   :  { %9030 = vrot.lane.b32.xlu0 %v15448_v20, %s10069_s17  ;;  %v15493_v61 = vpack.i.bf16 %v15461_v23, %v15451_v16  ;;  %v15496_v24 = vsel %vm1103_vm3, %v4379_v52, %v4380_v13  ;;  %v15503_v33 = vpack.i.bf16 %v15479_v22, %v15468_v3  ;;  %v15506_v57 = vsel %vm1103_vm3, %v4380_v13, %v4382_v35  ;;  %v3890_v23 = vld [vmem:[#allocation3 + $0x330] sm:$0xff] }
 0x418   :  { %18993 = vst [vmem:[#allocation122_spill] sm:$0xff] %v15496_v24  ;;  %18994 = vst [vmem:[#allocation123_spill] sm:$0xff] %v15506_v57  ;;  %v15509_v42 = vsel %vm1103_vm3, %v4389_v39, %v4390_v0  ;;  %v15517_v58 = vsel %vm1103_vm3, %v4404_v30, %v4405_v5  ;;  %v15520_v32 = vsel %vm1103_vm3, %v4405_v5, %v4407_v36  ;;  %v4415_v13 = vrot.slane %v14923_v38, 2 }
 0x419   :  { %18995 = vst [vmem:[#allocation145_spill] sm:$0xff] %v15509_v42  ;;  %7529 = vmatpush1.bf16.msra.mxu1 %v9803_v2  ;;  %18996 = vst [vmem:[#allocation149_spill] sm:$0xff] %v15517_v58  ;;  %v15523_v12 = vsel %vm1103_vm3, %v4390_v0, %v4392_v63  ;;  %v4417_v52 = vrot.slane %v14925_v48, 2  ;;  %v4400_v35 = vrot.slane %v14872_v14, 2  ;;  %v4402_v39 = vrot.slane %v14874_v43, 2  ;;  %6338 = vmatprep.subr.bf16.mxu0 %v17966_v53  ;;  %v9805_v43 = vld [vmem:[%s17481_s2 + $0x18] sm:$0xff]  }
 0x41a   :  { %9015 = vrot.lane.b32.xlu1 %v15442_v19, %s10069_s17  ;;  %18997 = vst [vmem:[#allocation124_spill] sm:$0xff] %v15520_v32  ;;  %18998 = vst [vmem:[#allocation85_spill] sm:$0xff] %v15523_v12  ;;  %7514 = vmatprep.subr.bf16.mxu1 %v17966_v53  ;;  %v15533_v30 = vpack.i.bf16 %v15506_v57, %v15496_v24  ;;  %v4424_v5 = vrot.slane %v14887_v25, 2  ;;  %v4425_v0 = vrot.slane %v14889_v51, 2  ;;  %v4427_v36 = vrot.slane %v14902_v62, 2 }
 0x41b   :  { %9040 = vrot.lane.b32.xlu0 %v15487_v1, %s10069_s17  ;;  %6339 = vmatpush1.bf16.msra.mxu0 %v9803_v2  ;;  %v4414_v38 = vrot.slane %v14912_v10, 2  ;;  %v4399_v14 = vrot.slane %v14861_v40, 2  ;;  %v15549_v25 = vpack.i.bf16 %v15520_v32, %v15517_v58  ;;  %v15553_v51 = vpack.i.bf16 %v15523_v12, %v15509_v42  ;;  %v19056_v12 = vld [vmem:[#allocation73_spill] sm:$0xff] }
 0x41c   :  { %v15560_v40 = vsel %vm1103_vm3, %v4415_v13, %v4417_v52  ;;  %v15566_v10 = vsel %vm1103_vm3, %v4400_v35, %v4402_v39  ;;  %6340 = vmatprep.subr.bf16.mxu0 %v17966_v53  ;;  %v4426_v2 = vsel %vm1103_vm3, %v4424_v5, %v4425_v0  ;;  %v4428_v63 = vsel %vm1103_vm3, %v4425_v0, %v4427_v36 }
 0x41d   :  { %7530 = vmatpush1.bf16.msra.mxu1 %v9804_v7  ;;  %v15557_v62 = vsel %vm1103_vm3, %v4414_v38, %v4415_v13  ;;  %19000 = vst [vmem:[#allocation148_spill] sm:$0xff] %v15560_v40  ;;  %v15563_v48 = vsel %vm1103_vm3, %v4399_v14, %v4400_v35  ;;  %19002 = vst [vmem:[#allocation26_spill] sm:$0xff] %v15566_v10  ;;  %v4410_v32 = vrot.slane %v14931_v15, 2  ;;  %v4412_v38 = vrot.slane %v14933_v46, 2  ;;  %v9806_v13 = vld [vmem:[%s17481_s2 + $0x20] sm:$0xff]  }
 0x41e   :  { %9025 = vrot.lane.b32.xlu1 %v15493_v61, %s10069_s17  ;;  %7515 = vmatprep.subr.bf16.mxu1 %v17966_v53  ;;  %18999 = vst [vmem:[#allocation80_spill] sm:$0xff] %v15557_v62  ;;  %19001 = vst [vmem:[#allocation152_spill] sm:$0xff] %v15563_v48  ;;  %v15582_v52 = vpack.i.bf16 %v15560_v40, %v15557_v62  ;;  %v15586_v15 = vpack.i.bf16 %v15566_v10, %v15563_v48  ;;  %v4409_v46 = vrot.slane %v14919_v60, 2  ;;  %v19019_v62 = vld [vmem:[#allocation71_spill] sm:$0xff] }
 0x41f   :  { %9050 = vrot.lane.b32.xlu0 %v15503_v33, %s10069_s17  ;;  %6341 = vmatpush1.bf16.msra.mxu0 %v9804_v7  ;;  %v4420_v7 = vrot.slane %v14974_v28, 2  ;;  %v9079_v35 = vpack.i.bf16 %v4428_v63, %v4426_v2  ;;  %v4435_v39 = vrot.slane %v15005_v37, 2  ;;  %v4437_v5 = vrot.slane %v15007_v29, 2  ;;  %v19005_v2 = vld [vmem:[#allocation160_spill] sm:$0xff]  ;;  %v19040_v48 = vld [vmem:[#allocation39_spill] sm:$0xff] }
 0x420   :  { %v4422_v0 = vrot.slane %v14976_v9, 2  ;;  %6342 = vmatprep.subr.bf16.mxu0 %v17966_v53  ;;  %v15596_v36 = vsel %vm1103_vm3, %v4409_v46, %v4410_v32  ;;  %v15599_v14 = vsel %vm1103_vm3, %v4410_v32, %v4412_v38  ;;  %v4419_v60 = vrot.slane %v14970_v17, 2  ;;  %v9807_v32 = vld [vmem:[%s17481_s2 + $0x28] sm:$0xff]   ;;  %v19011_v38 = vld [vmem:[#allocation62_spill] sm:$0xff] }
 0x421   :  { %7531 = vmatpush1.bf16.msra.mxu1 %v9805_v43  ;;  %19003 = vst [vmem:[#allocation151_spill] sm:$0xff] %v15596_v36  ;;  %19004 = vst [vmem:[#allocation154_spill] sm:$0xff] %v15599_v14  ;;  %v4430_v28 = vrot.slane %v15013_v47, 2  ;;  %v4434_v37 = vrot.slane %v14997_v44, 2  ;;  %v4445_v9 = vrot.slane %v15052_v31, 2  ;;  %v4447_v29 = vrot.slane %v15054_v4, 2 }
 0x422   :  { %9035 = vrot.lane.b32.xlu1 %v15533_v30, %s10069_s17  ;;  %7516 = vmatprep.subr.bf16.mxu1 %v17966_v53  ;;  %v4432_v63 = vrot.slane %v19005_v2, 2  ;;  %v15615_v17 = vsel %vm1103_vm3, %v4419_v60, %v4420_v7  ;;  %v19007_v47 = vld [vmem:[#allocation53_spill] sm:$0xff]  ;;  %v15623_v31 = vsel %vm1103_vm3, %v4435_v39, %v4437_v5  ;;  %v15626_v4 = vsel %vm1103_vm3, %v4420_v7, %v4422_v0  ;;  %v19014_v5 = vld [vmem:[#allocation67_spill] sm:$0xff] }
 0x423   :  { %9060 = vrot.lane.b32.xlu0 %v15549_v25, %s10069_s17  ;;  %6343 = vmatpush1.bf16.msra.mxu0 %v9805_v43  ;;  %19006 = vst [vmem:[#allocation125_spill] sm:$0xff] %v15615_v17  ;;  %v4429_v43 = vrot.slane %v19007_v47, 2  ;;  %v15620_v44 = vsel %vm1103_vm3, %v4434_v37, %v4435_v39  ;;  %19009 = vst [vmem:[#allocation160_spill] sm:$0xff] %v15623_v31  ;;  %v4444_v46 = vrot.slane %v19011_v38, 2  ;;  %v4440_v0 = vrot.slane %v19014_v5, 2  ;;  %v9808_v47 = vld [vmem:[%s17481_s2 + $0x30] sm:$0xff]  }
 0x424   :  { %19008 = vst [vmem:[#allocation27_spill] sm:$0xff] %v15620_v44  ;;  %19010 = vst [vmem:[#allocation53_spill] sm:$0xff] %v15626_v4  ;;  %6344 = vmatprep.subr.bf16.mxu0 %v17966_v53  ;;  %v15632_v60 = vpack.i.bf16 %v15599_v14, %v15596_v36  ;;  %v15640_v39 = vsel %vm1103_vm3, %v4445_v9, %v4447_v29  ;;  %v4433_v7 = vsel %vm1103_vm3, %v4430_v28, %v4432_v63  ;;  %v19016_v29 = vld [vmem:[#allocation69_spill] sm:$0xff]  ;;  %v19025_v36 = vld [vmem:[#allocation103_spill] sm:$0xff] }
 0x425   :  { %7532 = vmatpush1.bf16.msra.mxu1 %v9806_v13  ;;  %v4431_v2 = vsel %vm1103_vm3, %v4429_v43, %v4430_v28  ;;  %v15637_v37 = vsel %vm1103_vm3, %v4444_v46, %v4445_v9  ;;  %19013 = vst [vmem:[#allocation164_spill] sm:$0xff] %v15640_v39  ;;  %v19015_v9 = vld [vmem:[#allocation64_spill] sm:$0xff]  ;;  %v4442_v63 = vrot.slane %v19016_v29, 2  ;;  %v19017_v43 = vld [vmem:[#allocation127_spill] sm:$0xff]  ;;  %v19018_v46 = vld [vmem:[#allocation133_spill] sm:$0xff]  ;;  %v4490_v40 = vrot.slane %v15310_v54, 2 }
 0x426   :  { %9045 = vrot.lane.b32.xlu1 %v15553_v51, %s10069_s17  ;;  %7517 = vmatprep.subr.bf16.mxu1 %v17966_v53  ;;  %19012 = vst [vmem:[#allocation62_spill] sm:$0xff] %v15637_v37  ;;  %v4439_v28 = vrot.slane %v19015_v9, 2  ;;  %v4455_v38 = vrot.slane %v19017_v43, 2  ;;  %v4457_v5 = vrot.slane %v19018_v46, 2  ;;  %v4492_v14 = vrot.slane %v19019_v62, 2  ;;  %v19020_v9 = vld [vmem:[#allocation98_spill] sm:$0xff] }
 0x427   :  { %9070 = vrot.lane.b32.xlu0 %v15582_v52, %s10069_s17  ;;  %6345 = vmatpush1.bf16.msra.mxu0 %v9806_v13  ;;  %v15651_v13 = vpack.i.bf16 %v15623_v31, %v15620_v44  ;;  %v15667_v31 = vpack.i.bf16 %v15640_v39, %v15637_v37  ;;  %v15669_v44 = vpack.i.bf16 %v4433_v7, %v4431_v2  ;;  %v4454_v29 = vrot.slane %v19020_v9, 2  ;;  %v19023_v62 = vld [vmem:[#allocation60_spill] sm:$0xff]  ;;  %v9809_v2 = vld [vmem:[%s17481_s2 + $0x38] sm:$0xff]  }
 0x428   :  { %6346 = vmatprep.subr.bf16.mxu0 %v17966_v53  ;;  %v15676_v54 = vsel %vm1103_vm3, %v4439_v28, %v4440_v0  ;;  %v4467_v43 = vrot.slane %v19023_v62, 2  ;;  %v19024_v46 = vld [vmem:[#allocation128_spill] sm:$0xff]  ;;  %v4489_v39 = vrot.slane %v19025_v36, 2  ;;  %v4500_v28 = vrot.slane %v15367_v27, 2 }
 0x429   :  { %7533 = vmatpush1.bf16.msra.mxu1 %v9807_v32  ;;  %19022 = vst [vmem:[#allocation67_spill] sm:$0xff] %v15676_v54  ;;  %v4502_v9 = vrot.slane %v15369_v21, 2  ;;  %v19028_v62 = vmov 0   ;;  %v15694_v36 = vsel %vm1103_vm3, %v4454_v29, %v4455_v38  ;;  %v19034_v21 = vld [vmem:[#allocation132_spill] sm:$0xff]  ;;  %v19036_v29 = vld [vmem:[#allocation109_spill] sm:$0xff]  ;;  %v4470_v42 = vrot.slane %v19056_v12, 2 }
 0x42a   :  { %9055 = vrot.lane.b32.xlu1 %v15586_v15, %s10069_s17  ;;  %7518 = vmatprep.subr.bf16.mxu1 %v17966_v53  ;;  %v4449_v53 = vrot.slane %v19024_v46, 2  ;;  %19029 = vst [vmem:[#allocation69_spill] sm:$0xff] %v15694_v36  ;;  %v15697_v46 = vsel %vm1103_vm3, %v4455_v38, %v4457_v5  ;;  %v15700_v37 = vsel %vm1103_vm3, %v4489_v39, %v4490_v40  ;;  %v4499_v10 = vrot.slane %v19036_v29, 2  ;;  %v19039_v38 = vld [vmem:[#allocation81_spill] sm:$0xff] }
 0x42b   :  { %9080 = vrot.lane.b32.xlu0 %v9079_v35, %s10069_s17  ;;  %v15655_v35 = vpack.i.bf16 %v15626_v4, %v15615_v17  ;;  %v19021_v4 = vld [vmem:[#allocation37_spill] sm:$0xff]  ;;  %6347 = vmatpush1.bf16.msra.mxu0 %v9807_v32  ;;  %v15687_v32 = vsel %vm1103_vm3, %v4440_v0, %v4442_v63  ;;  %19030 = vst [vmem:[#allocation127_spill] sm:$0xff] %v15697_v46  ;;  %19031 = vst [vmem:[#allocation133_spill] sm:$0xff] %v15700_v37  ;;  %v4450_v63 = vrot.slane %v19034_v21, 2  ;;  %v9810_v21 = vld [vmem:[%s17481_s2 + $0x40] sm:$0xff]  }
 0x42c   :  { %v4465_v17 = vrot.slane %v19021_v4, 2  ;;  %19026 = vst [vmem:[#allocation64_spill] sm:$0xff] %v15687_v32  ;;  %v19027_v4 = vld [vmem:[#allocation142_spill] sm:$0xff]  ;;  %v15703_v0 = vsel %vm1103_vm3, %v4490_v40, %v4492_v14  ;;  %6348 = vmatprep.subr.bf16.mxu0 %v19028_v62  ;;  %v19038_v40 = vld [vmem:[#allocation68_spill] sm:$0xff]  ;;  %v4460_v5 = vrot.slane %v19039_v38, 2  ;;  %v15727_v29 = vsel %vm1103_vm3, %v4499_v10, %v4500_v28 }
 0x42d   :  { %7534 = vmatpush1.bf16.msra.mxu1 %v9808_v47  ;;  %v4464_v7 = vrot.slane %v19027_v4, 2  ;;  %19032 = vst [vmem:[#allocation71_spill] sm:$0xff] %v15703_v0  ;;  %v19035_v4 = vld [vmem:[#allocation136_spill] sm:$0xff]  ;;  %v4475_v14 = vrot.slane %v19038_v40, 2  ;;  %19042 = vst [vmem:[#allocation60_spill] sm:$0xff] %v15727_v29  ;;  %v19045_v40 = vld [vmem:[#allocation146_spill] sm:$0xff]  ;;  %v15745_v10 = vpack.i.bf16 %v15687_v32, %v15676_v54 }
 0x42e   :  { %9065 = vrot.lane.b32.xlu1 %v15632_v60, %s10069_s17  ;;  %7519 = vmatprep.subr.bf16.mxu1 %v19028_v62  ;;  %v4452_v58 = vrot.slane %v19035_v4, 2  ;;  %v15715_v39 = vsel %vm1103_vm3, %v4465_v17, %v4467_v43  ;;  %v15739_v43 = vpack.i.bf16 %v15697_v46, %v15694_v36  ;;  %v4459_v38 = vrot.slane %v19045_v40, 2  ;;  %v15763_v36 = vld [vmem:[#allocation3 + $0x188] sm:$0xff] }
 0x42f   :  { %9090 = vrot.lane.b32.xlu0 %v15651_v13, %s10069_s17  ;;  %v15707_v27 = vsel %vm1103_vm3, %v4464_v7, %v4465_v17  ;;  %6349 = vmatpush1.bf16.msra.mxu0 %v9808_v47  ;;  %19037 = vst [vmem:[#allocation37_spill] sm:$0xff] %v15715_v39  ;;  %v4462_v7 = vrot.slane %v19040_v48, 2  ;;  %v19041_v47 = vld [vmem:[#allocation70_spill] sm:$0xff]  ;;  %v15730_v17 = vsel %vm1103_vm3, %v4500_v28, %v4502_v9  ;;  %v19055_v54 = vld [vmem:[#allocation121_spill] sm:$0xff]  ;;  %v4472_v55 = vrot.slane %v19057_v41, 2 }
 0x430   :  { %19033 = vst [vmem:[#allocation98_spill] sm:$0xff] %v15707_v27  ;;  %v4477_v4 = vrot.slane %v19041_v47, 2  ;;  %19043 = vst [vmem:[#allocation128_spill] sm:$0xff] %v15730_v17  ;;  %v15735_v48 = vpack.i.bf16 %v15703_v0, %v15700_v37  ;;  %6350 = vmatprep.subr.bf16.mxu0 %v19028_v62  ;;  %v15748_v28 = vsel %vm1103_vm3, %v4449_v53, %v4450_v63  ;;  %v19048_v47 = vld [vmem:[#allocation47_spill] sm:$0xff]  ;;  %v15765_v53 = vld [vmem:[#allocation3 + $0x190] sm:$0x3] }
 0x431   :  { %7535 = vmatpush1.bf16.msra.mxu1 %v9809_v2  ;;  %19046 = vst [vmem:[#allocation142_spill] sm:$0xff] %v15748_v28  ;;  %v15751_v9 = vsel %vm1103_vm3, %v4450_v63, %v4452_v58  ;;  %v4474_v22 = vrot.slane %v19048_v47, 2  ;;  %v15758_v40 = vpack.i.bf16 %v15715_v39, %v15707_v27  ;;  %v15761_v46 = vsel %vm1103_vm3, %v4459_v38, %v4460_v5  ;;  %v9811_v58 = vld [vmem:[%s17481_s2 + $0x48] sm:$0xff]   ;;  %v15786_v39 = vpop.permute.xlu0 %8840  ;;  %v19054_v27 = vld [vmem:[#allocation82_spill] sm:$0xff] }
 0x432   :  { %9075 = vrot.lane.b32.xlu1 %v15655_v35, %s10069_s17  ;;  %7520 = vmatprep.subr.bf16.mxu1 %v19028_v62  ;;  %19044 = vst [vmem:[#allocation103_spill] sm:$0xff] %v15735_v48  ;;  %19047 = vst [vmem:[#allocation132_spill] sm:$0xff] %v15751_v9  ;;  %v15780_v38 = vsel %vm1103_vm3, %v4475_v14, %v4477_v4  ;;  %v15783_v47 = vsel %vm1103_vm3, %v4460_v5, %v4462_v7  ;;  %v4485_v32 = vrot.slane %v19054_v27, 2  ;;  %v19059_v27 = vld [vmem:[#allocation86_spill] sm:$0xff] }
 0x433   :  { %9100 = vrot.lane.b32.xlu0 %v15667_v31, %s10069_s17  ;;  %6351 = vmatpush1.bf16.msra.mxu0 %v9809_v2  ;;  %19049 = vst [vmem:[#allocation136_spill] sm:$0xff] %v15761_v46  ;;  %v15772_v2 = vpack.i.bf16 %v15730_v17, %v15727_v29  ;;  %v15777_v63 = vsel %vm1103_vm3, %v4474_v22, %v4475_v14  ;;  %19052 = vst [vmem:[#allocation81_spill] sm:$0xff] %v15780_v38  ;;  %v4487_v3 = vrot.slane %v19055_v54, 2  ;;  %v15792_v22 = vld [vmem:[#allocation3 + $0x180] sm:$0xff]  ;;  %v9812_v4 = vld [vmem:[%s17481_s2 + $0x50] sm:$0xff]  }
 0x434   :  { %19051 = vst [vmem:[#allocation68_spill] sm:$0xff] %v15777_v63  ;;  %19053 = vst [vmem:[#allocation39_spill] sm:$0xff] %v15783_v47  ;;  %6352 = vmatprep.subr.bf16.mxu0 %v19028_v62  ;;  %v15797_v14 = vpack.i.bf16 %v15751_v9, %v15748_v28  ;;  %v4969_v5 = vrot.slane %v15763_v36, 2  ;;  %v4971_v7 = vrot.slane %v15765_v53, 2  ;;  %v19058_v54 = vld [vmem:[#allocation52_spill] sm:$0xff]  ;;  %v4469_v41 = vrot.slane %v19059_v27, 2 }
 0x435   :  { %7536 = vmatpush1.bf16.msra.mxu1 %v9810_v21  ;;  %19050 = vst [vmem:[#allocation109_spill] sm:$0xff] %v15772_v2  ;;  %v4484_v12 = vrot.slane %v19058_v54, 2  ;;  %v15812_v9 = vpack.i.bf16 %v15780_v38, %v15777_v63  ;;  %v4968_v54 = vrot.slane %v15792_v22, 2  ;;  %v15824_v28 = vsel %vm1103_vm3, %v4485_v32, %v4487_v3  ;;  %v19065_v63 = vld [vmem:[#allocation104_spill] sm:$0xff]  ;;  %v15841_v3 = vpop.permute.xlu0 %8850  ;;  %v15953_v29 = vld [vmem:[#allocation3 + $0x68] sm:$0xff]  ;;  %v19087_v17 = vld [vmem:[#allocation15_spill] sm:$0xff] }
 0x436   :  { %9085 = vrot.lane.b32.xlu1 %v15669_v44, %s10069_s17  ;;  %7521 = vmatprep.subr.bf16.mxu1 %v19028_v62  ;;  %19062 = vst [vmem:[#allocation47_spill] sm:$0xff] %v15824_v28  ;;  %v15827_v57 = vsel %vm1103_vm3, %v4469_v41, %v4470_v42  ;;  %v15830_v38 = vsel %vm1103_vm3, %v4470_v42, %v4472_v55  ;;  %19069 = vst [vmem:[#allocation52_spill] sm:$0xff] %v15841_v3  ;;  %v19070_v55 = vld [vmem:[#allocation99_spill] sm:$0xff] }
 0x437   :  { %9110 = vrot.lane.b32.xlu0 %v15739_v43, %s10069_s17  ;;  %6353 = vmatpush1.bf16.msra.mxu0 %v9810_v21  ;;  %19060 = vst [vmem:[#allocation70_spill] sm:$0xff] %v15812_v9  ;;  %v15816_v21 = vpack.i.bf16 %v15783_v47, %v15761_v46  ;;  %v15821_v27 = vsel %vm1103_vm3, %v4484_v12, %v4485_v32  ;;  %19063 = vst [vmem:[#allocation82_spill] sm:$0xff] %v15827_v57  ;;  %v4495_v47 = vrot.slane %v19065_v63, 2  ;;  %v19066_v46 = vld [vmem:[#allocation105_spill] sm:$0xff]  ;;  %v3891_v63 = vld [vmem:[#allocation3 + $0x338] sm:$0xff] }
 0x438   :  { %19061 = vst [vmem:[#allocation146_spill] sm:$0xff] %v15821_v27  ;;  %19064 = vst [vmem:[#allocation121_spill] sm:$0xff] %v15830_v38  ;;  %6354 = vmatprep.subr.bf16.mxu0 %v19028_v62  ;;  %v4497_v24 = vrot.slane %v19066_v46, 2  ;;  %v15836_v45 = vsel %vm1103_vm3, %v4968_v54, %v4969_v5  ;;  %v15839_v12 = vsel %vm1103_vm3, %v4969_v5, %v4971_v7  ;;  %v4480_v42 = vrot.slane %v19070_v55, 2  ;;  %v19071_v32 = vld [vmem:[#allocation61_spill] sm:$0xff]  ;;  %v19072_v46 = vld [vmem:[#allocation102_spill] sm:$0xff] }
 0x439   :  { %7537 = vmatpush1.bf16.msra.mxu1 %v9811_v58  ;;  %19067 = vst [vmem:[#allocation73_spill] sm:$0xff] %v15836_v45  ;;  %19068 = vst [vmem:[#allocation51_spill] sm:$0xff] %v15839_v12  ;;  %v4482_v41 = vrot.slane %v19071_v32, 2  ;;  %v4494_v54 = vrot.slane %v19072_v46, 2  ;;  %v15857_v5 = vpack.i.bf16 %v15830_v38, %v15827_v57  ;;  %v19075_v7 = vld [vmem:[#allocation79_spill] sm:$0xff]  ;;  %v4976_v38 = vrot.slane %v3892_v6, 2 }
 0x43a   :  { %9095 = vrot.lane.b32.xlu1 %v15745_v10, %s10069_s17  ;;  %7522 = vmatprep.subr.bf16.mxu1 %v19028_v62  ;;  %v4479_v55 = vrot.slane %v19075_v7, 2  ;;  %v9813_v32 = vld [vmem:[%s17481_s2 + $0x58] sm:$0xff]   ;;  %v15872_v7 = vpop.permute.xlu0 %8860  ;;  %v4973_v6 = vrot.slane %v3890_v23, 2  ;;  %v15937_v46 = vld [vmem:[#allocation3 + $0x80] sm:$0xff]  ;;  %v9179_v37 = vpack.i.bf16 %v15953_v29, %v19087_v17 }
 0x43b   :  { %9120 = vrot.lane.b32.xlu0 %v15758_v40, %s10069_s17  ;;  %6355 = vmatpush1.bf16.msra.mxu0 %v9811_v58  ;;  %v15853_v58 = vpack.i.bf16 %v15824_v28, %v15821_v27  ;;  %19074 = vst [vmem:[#allocation104_spill] sm:$0xff] %v15857_v5  ;;  %v15867_v16 = vsel %vm1103_vm3, %v4494_v54, %v4495_v47  ;;  %v4974_v27 = vrot.slane %v3891_v63, 2  ;;  %v9815_v54 = vld [vmem:[%s17481_s2 + $0x68] sm:$0xff]  }
 0x43c   :  { %6356 = vmatprep.subr.bf16.mxu0 %v19028_v62  ;;  %19076 = vst [vmem:[#allocation105_spill] sm:$0xff] %v15867_v16  ;;  %v15870_v28 = vsel %vm1103_vm3, %v4495_v47, %v4497_v24  ;;  %v15877_v57 = vsel %vm1103_vm3, %v4479_v55, %v4480_v42  ;;  %v15880_v59 = vsel %vm1103_vm3, %v4480_v42, %v4482_v41  ;;  %v9814_v24 = vld [vmem:[%s17481_s2 + $0x60] sm:$0xff]   ;;  %v9817_v55 = vld [vmem:[%s17481_s2 + $0x78] sm:$0xff]  }
 0x43d   :  { %7538 = vmatpush1.bf16.msra.mxu1 %v9812_v4  ;;  %19073 = vst [vmem:[#allocation86_spill] sm:$0xff] %v15853_v58  ;;  %19077 = vst [vmem:[#allocation99_spill] sm:$0xff] %v15870_v28  ;;  %v15890_v47 = vpack.i.bf16 %v15870_v28, %v15867_v16  ;;  %v15897_v42 = vpack.i.bf16 %v15880_v59, %v15877_v57  ;;  %v15900_v41 = vsel %vm1103_vm3, %v4973_v6, %v4974_v27 }
 0x43e   :  { %9105 = vrot.lane.b32.xlu1 %v15797_v14, %s10069_s17  ;;  %7523 = vmatprep.subr.bf16.mxu1 %v19028_v62  ;;  %19078 = vst [vmem:[#allocation61_spill] sm:$0xff] %v15877_v57  ;;  %19079 = vst [vmem:[#allocation102_spill] sm:$0xff] %v15880_v59  ;;  %v15903_v63 = vsel %vm1103_vm3, %v4974_v27, %v4976_v38  ;;  %v15905_v23 = vpop.permute.xlu0 %8870  ;;  %v19085_v38 = vld [vmem:[#allocation94_spill] sm:$0xff]  ;;  %v19086_v27 = vld [vmem:[#allocation108_spill] sm:$0xff] }
 0x43f   :  { %9130 = vrot.lane.b32.xlu0 %v15812_v9, %s10069_s17  ;;  %6357 = vmatpush1.bf16.msra.mxu0 %v9812_v4  ;;  %19080 = vst [vmem:[#allocation79_spill] sm:$0xff] %v15890_v47  ;;  %v15893_v4 = vpop.permute.xlu1 %8845  ;;  %19082 = vst [vmem:[#allocation166_spill] sm:$0xff] %v15897_v42  ;;  %v15966_v59 = vld [vmem:[#allocation3 + $0x90] sm:$0xff]  ;;  %v15968_v57 = vld [vmem:[#allocation3 + $0x98] sm:$0xff] }
 0x440   :  { %6358 = vmatprep.subr.bf16.mxu0 %v19028_v62  ;;  %19081 = vst [vmem:[#allocation165_spill] sm:$0xff] %v15893_v4  ;;  %19083 = vst [vmem:[#allocation167_spill] sm:$0xff] %v15900_v41  ;;  %v9189_v17 = vpack.i.bf16 %v15968_v57, %v15966_v59  ;;  %v9948_v4 = vld [vmem:[#allocation3 + $0x140] sm:$0xff] }
 0x441   :  { %7539 = vmatpush1.bf16.msra.mxu1 %v9813_v32  ;;  %19084 = vst [vmem:[#allocation168_spill] sm:$0xff] %v15903_v63  ;;  %v15988_v63 = vld [vmem:[#allocation3 + $0xb0] sm:$0xff] }
 0x442   :  { %9115 = vrot.lane.b32.xlu1 %v15816_v21, %s10069_s17  ;;  %7524 = vmatprep.subr.bf16.mxu1 %v19028_v62  ;;  %v15926_v16 = vpop.permute.xlu0 %8880 }
 0x443   :  { %9140 = vrot.lane.b32.xlu0 %v15853_v58, %s10069_s17  ;;  %6359 = vmatpush1.bf16.msra.mxu0 %v9813_v32  ;;  %v9159_v32 = vpack.i.bf16 %v19086_v27, %v19085_v38  ;;  %v15924_v28 = vpop.permute.xlu1 %8855  ;;  %v9816_v38 = vld [vmem:[%s17481_s2 + $0x70] sm:$0xff]   ;;  %v15935_v27 = vld [vmem:[#allocation3 + $0x78] sm:$0xff] }
 0x444   :  { %6360 = vmatprep.subr.bf16.mxu0 %v19028_v62 }
 0x445   :  { %7540 = vmatpush1.bf16.msra.mxu1 %v9814_v24 }
 0x446   :  { %9125 = vrot.lane.b32.xlu1 %v15857_v5, %s10069_s17  ;;  %7525 = vmatprep.subr.bf16.mxu1 %v19028_v62  ;;  %v15944_v6 = vpop.permute.xlu0 %8890 }
 0x447   :  { %9150 = vrot.lane.b32.xlu0 %v15890_v47, %s10069_s17  ;;  %6361 = vmatpush1.bf16.msra.mxu0 %v9814_v24  ;;  %v9169_v24 = vpack.i.bf16 %v15937_v46, %v15935_v27 }
 0x448   :  { %6362 = vmatprep.subr.bf16.mxu0 %v19028_v62 }
 0x449   :  { %7541 = vmatpush1.bf16.msra.mxu1 %v9815_v54 }
 0x44a   :  { %9135 = vrot.lane.b32.xlu1 %v15897_v42, %s10069_s17  ;;  %7526 = vmatprep.subr.bf16.mxu1 %v19028_v62  ;;  %v15960_v0 = vpop.permute.xlu0 %8900 }
 0x44b   :  { %9160 = vrot.lane.b32.xlu0 %v9159_v32, %s10071_s22  ;;  %v15942_v32 = vpop.permute.xlu1 %8865  ;;  %6363 = vmatpush1.bf16.msra.mxu0 %v9815_v54  ;;  %19088 = vst [vmem:[#allocation94_spill] sm:$0xff] %v15960_v0 }
 0x44c   :  { %6364 = vmatprep.subr.bf16.mxu0 %v19028_v62 }
 0x44d   :  { %7542 = vmatpush1.bf16.msra.mxu1 %v9816_v38 }
 0x44e   :  { %9145 = vrot.lane.b32.xlu1 %v15735_v48, %s10069_s17  ;;  %7527 = vmatprep.subr.bf16.mxu1 %v19028_v62 }
 0x44f   :  { %9170 = vrot.lane.b32.xlu0 %v9169_v24, %s10069_s17  ;;  %v15958_v54 = vpop.permute.xlu1 %8875  ;;  %6365 = vmatpush1.bf16.msra.mxu0 %v9816_v38  ;;  %v15974_v38 = vpop.permute.xlu0 %8910 }
 0x450   :  { %6366 = vmatprep.subr.bf16.mxu0 %v19028_v62  ;;  %19089 = vst [vmem:[#allocation108_spill] sm:$0xff] %v15974_v38 }
 0x451   :  { %7543 = vmatpush1.bf16.msra.mxu1 %v9817_v55 }
 0x452   :  { %9155 = vrot.lane.b32.xlu1 %v15772_v2, %s10069_s17  ;;  %v16006_v2 = vld [vmem:[#allocation3 + $0xc0] sm:$0xff] }
 0x453   :  { %9180 = vrot.lane.b32.xlu0 %v9179_v37, %s10071_s22  ;;  %v15972_v26 = vpop.permute.xlu1 %8885  ;;  %6367 = vmatpush1.bf16.msra.mxu0 %v9817_v55  ;;  %v19090_v37 = vld [vmem:[#allocation14_spill] sm:$0xff]  ;;  %v15981_v62 = vpop.permute.xlu0 %8920  ;;  %v9209_v55 = vpack.i.bf16 %v15988_v63, %v15986_v8  ;;  %v9229_v47 = vpack.i.bf16 %v16008_v11, %v16006_v2 }
 0x454   :  { %19091 = vst [vmem:[#allocation15_spill] sm:$0xff] %v15981_v62 }
 0x456   :  { %9165 = vrot.lane.b32.xlu1 %v15411_v34, %s10068_s1 }
 0x457   :  { %9190 = vrot.lane.b32.xlu0 %v9189_v17, %s10069_s17  ;;  %v15979_v34 = vpop.permute.xlu1 %8895  ;;  %v15997_v62 = vpop.permute.xlu0 %8930 }
 0x45a   :  { %9175 = vrot.lane.b32.xlu1 %v19090_v37, %s10071_s22  ;;  %v19093_v37 = vld [vmem:[#allocation134_spill] sm:$0xff] }
 0x45b   :  { %9200 = vrot.lane.b32.xlu0 %v9169_v24, %s10071_s22  ;;  %v15992_v41 = vpop.permute.xlu1 %8905  ;;  %19094 = vst [vmem:[#allocation134_spill] sm:$0xff] %v15997_v62 }
 0x45c   :  { %19092 = vst [vmem:[#allocation14_spill] sm:$0xff] %v15992_v41 }
 0x45e   :  { %9185 = vrot.lane.b32.xlu1 %v15493_v61, %s10068_s1  ;;  %v16004_v61 = vpop.permute.xlu0 %8940 }
 0x45f   :  { %9210 = vrot.lane.b32.xlu0 %v9209_v55, %s10069_s17  ;;  %v15999_v24 = vpop.permute.xlu1 %8915  ;;  %19096 = vst [vmem:[#allocation170_spill] sm:$0xff] %v16004_v61  ;;  %v16026_v61 = vld [vmem:[#allocation3 + $0xd8] sm:$0xff] }
 0x460   :  { %19095 = vst [vmem:[#allocation169_spill] sm:$0xff] %v15999_v24  ;;  %v16028_v24 = vld [vmem:[#allocation3 + $0xe0] sm:$0xff] }
 0x462   :  { %9195 = vrot.lane.b32.xlu1 %v19093_v37, %s10071_s22  ;;  %v19098_v37 = vld [vmem:[#allocation147_spill] sm:$0xff] }
 0x463   :  { %9220 = vrot.lane.b32.xlu0 %v9189_v17, %s10071_s22  ;;  %v16012_v48 = vpop.permute.xlu1 %8925  ;;  %v16017_v17 = vpop.permute.xlu0 %8950 }
 0x464   :  { %19097 = vst [vmem:[#allocation171_spill] sm:$0xff] %v16012_v48  ;;  %19099 = vst [vmem:[#allocation147_spill] sm:$0xff] %v16017_v17  ;;  %v9249_v48 = vpack.i.bf16 %v16028_v24, %v16026_v61 }
 0x466   :  { %9205 = vrot.lane.b32.xlu1 %v15448_v20, %s10068_s1 }
 0x467   :  { %9230 = vrot.lane.b32.xlu0 %v9229_v47, %s10069_s17  ;;  %v16019_v62 = vpop.permute.xlu1 %8935  ;;  %v16024_v20 = vpop.permute.xlu0 %8960 }
 0x468   :  { %19100 = vst [vmem:[#allocation172_spill] sm:$0xff] %v16019_v62  ;;  %19101 = vst [vmem:[#allocation173_spill] sm:$0xff] %v16024_v20  ;;  %v16046_v20 = vld [vmem:[#allocation3 + $0xf0] sm:$0xff]  ;;  %v16048_v62 = vld [vmem:[#allocation3 + $0xf8] sm:$0xff] }
 0x46a   :  { %9215 = vrot.lane.b32.xlu1 %v19098_v37, %s10071_s22  ;;  %v19103_v37 = vld [vmem:[#allocation19_spill] sm:$0xff] }
 0x46b   :  { %9240 = vrot.lane.b32.xlu0 %v9209_v55, %s10071_s22  ;;  %v16032_v38 = vpop.permute.xlu1 %8945  ;;  %v16037_v55 = vpop.permute.xlu0 %8970 }
 0x46c   :  { %19102 = vst [vmem:[#allocation174_spill] sm:$0xff] %v16032_v38  ;;  %19104 = vst [vmem:[#allocation19_spill] sm:$0xff] %v16037_v55  ;;  %v9269_v38 = vpack.i.bf16 %v16048_v62, %v16046_v20 }
 0x46e   :  { %9225 = vrot.lane.b32.xlu1 %v15533_v30, %s10068_s1 }
 0x46f   :  { %9250 = vrot.lane.b32.xlu0 %v9249_v48, %s10069_s17  ;;  %v16039_v17 = vpop.permute.xlu1 %8955 }
 0x470   :  { %19105 = vst [vmem:[#allocation175_spill] sm:$0xff] %v16039_v17  ;;  %v16068_v17 = vld [vmem:[#allocation3 + $0x110] sm:$0xff] }
 0x471   :  { %v16044_v30 = vpop.permute.xlu0 %8980  ;;  %19113 = vst [vmem:[#allocation181_spill] sm:$0xff] %v16068_v17 }
 0x472   :  { %9235 = vrot.lane.b32.xlu1 %v19103_v37, %s10071_s22  ;;  %19106 = vst [vmem:[#allocation176_spill] sm:$0xff] %v16044_v30  ;;  %v19108_v37 = vld [vmem:[#allocation35_spill] sm:$0xff]  ;;  %v16066_v30 = vld [vmem:[#allocation3 + $0x108] sm:$0xff] }
 0x473   :  { %9260 = vrot.lane.b32.xlu0 %v9229_v47, %s10071_s22  ;;  %v16052_v58 = vpop.permute.xlu1 %8965  ;;  %19112 = vst [vmem:[#allocation180_spill] sm:$0xff] %v16066_v30 }
 0x474   :  { %19107 = vst [vmem:[#allocation177_spill] sm:$0xff] %v16052_v58  ;;  %v9289_v58 = vpack.i.bf16 %v16068_v17, %v16066_v30 }
 0x476   :  { %9245 = vrot.lane.b32.xlu1 %v15487_v1, %s10068_s1 }
 0x477   :  { %9270 = vrot.lane.b32.xlu0 %v9269_v38, %s10069_s17  ;;  %v16059_v55 = vpop.permute.xlu1 %8975 }
 0x478   :  { %19110 = vst [vmem:[#allocation178_spill] sm:$0xff] %v16059_v55  ;;  %v16086_v55 = vld [vmem:[#allocation3 + $0x120] sm:$0xff] }
 0x479   :  { %v16057_v47 = vpop.permute.xlu0 %8990  ;;  %19118 = vst [vmem:[#allocation184_spill] sm:$0xff] %v16086_v55 }
 0x47a   :  { %9255 = vrot.lane.b32.xlu1 %v19108_v37, %s10071_s22  ;;  %19109 = vst [vmem:[#allocation35_spill] sm:$0xff] %v16057_v47  ;;  %v19115_v37 = vld [vmem:[#allocation30_spill] sm:$0xff] }
 0x47b   :  { %9280 = vrot.lane.b32.xlu0 %v9249_v48, %s10071_s22  ;;  %v16072_v42 = vpop.permute.xlu1 %8985 }
 0x47c   :  { %19114 = vst [vmem:[#allocation182_spill] sm:$0xff] %v16072_v42 }
 0x47d   :  { %v16064_v1 = vpop.permute.xlu0 %9000 }
 0x47e   :  { %9265 = vrot.lane.b32.xlu1 %v15553_v51, %s10068_s1  ;;  %19111 = vst [vmem:[#allocation179_spill] sm:$0xff] %v16064_v1  ;;  %v16088_v1 = vld [vmem:[#allocation3 + $0x128] sm:$0xff] }
 0x47f   :  { %9290 = vrot.lane.b32.xlu0 %v9289_v58, %s10069_s17  ;;  %19119 = vst [vmem:[#allocation185_spill] sm:$0xff] %v16088_v1  ;;  %v9309_v42 = vpack.i.bf16 %v16088_v1, %v16086_v55 }
 0x481   :  { %v16077_v48 = vpop.permute.xlu0 %9010 }
 0x482   :  { %9275 = vrot.lane.b32.xlu1 %v19115_v37, %s10071_s22  ;;  %19116 = vst [vmem:[#allocation30_spill] sm:$0xff] %v16077_v48  ;;  %v19121_v37 = vld [vmem:[#allocation155_spill] sm:$0xff] }
 0x483   :  { %9300 = vrot.lane.b32.xlu0 %v9269_v38, %s10071_s22  ;;  %v9947_v48 = vld [vmem:[#allocation3 + $0x138] sm:$0xff] }
 0x484   :  { %v16079_v47 = vpop.permute.xlu1 %8995  ;;  %v9329_v9 = vpack.i.bf16 %v9948_v4, %v9947_v48  ;;  %v9950_v4 = vld [vmem:[#allocation3 + $0x158] sm:$0xff] }
 0x485   :  { %19117 = vst [vmem:[#allocation183_spill] sm:$0xff] %v16079_v47  ;;  %v16084_v51 = vpop.permute.xlu0 %9020 }
 0x486   :  { %9285 = vrot.lane.b32.xlu1 %v15503_v33, %s10068_s1 }
 0x487   :  { %9310 = vrot.lane.b32.xlu0 %v9309_v42, %s10069_s17 }
 0x488   :  { %v16092_v41 = vpop.permute.xlu1 %9005 }
 0x489   :  { %19120 = vst [vmem:[#allocation186_spill] sm:$0xff] %v16092_v41  ;;  %v16097_v38 = vpop.permute.xlu0 %9030 }
 0x48a   :  { %9295 = vrot.lane.b32.xlu1 %v19121_v37, %s10071_s22  ;;  %v19122_v37 = vld [vmem:[#allocation38_spill] sm:$0xff] }
 0x48b   :  { %9320 = vrot.lane.b32.xlu0 %v9289_v58, %s10071_s22  ;;  %v9949_v58 = vld [vmem:[#allocation3 + $0x150] sm:$0xff] }
 0x48c   :  { %v16099_v47 = vpop.permute.xlu1 %9015  ;;  %v9349_v48 = vpack.i.bf16 %v9950_v4, %v9949_v58  ;;  %v19129_v58 = vld [vmem:[#allocation48_spill] sm:$0xff] }
 0x48d   :  { %v16104_v33 = vpop.permute.xlu0 %9040 }
 0x48e   :  { %9305 = vrot.lane.b32.xlu1 %v15586_v15, %s10068_s1 }
 0x48f   :  { %9330 = vrot.lane.b32.xlu0 %v9329_v9, %s10069_s17 }
 0x490   :  { %v16106_v41 = vpop.permute.xlu1 %9025 }
 0x491   :  { %v16111_v55 = vpop.permute.xlu0 %9050 }
 0x492   :  { %9315 = vrot.lane.b32.xlu1 %v19122_v37, %s10071_s22  ;;  %v19124_v37 = vld [vmem:[#allocation40_spill] sm:$0xff] }
 0x493   :  { %9340 = vrot.lane.b32.xlu0 %v9309_v42, %s10071_s22 }
 0x494   :  { %v16113_v1 = vpop.permute.xlu1 %9035 }
 0x495   :  { %v16118_v15 = vpop.permute.xlu0 %9060 }
 0x496   :  { %9325 = vrot.lane.b32.xlu1 %v15549_v25, %s10068_s1  ;;  %19123 = vst [vmem:[#allocation155_spill] sm:$0xff] %v16118_v15 }
 0x497   :  { %9350 = vrot.lane.b32.xlu0 %v9349_v48, %s10069_s17 }
 0x498   :  { %v16120_v3 = vpop.permute.xlu1 %9045 }
 0x499   :  { %v16125_v0 = vpop.permute.xlu0 %9070 }
 0x49a   :  { %9335 = vrot.lane.b32.xlu1 %v19124_v37, %s10071_s22  ;;  %19125 = vst [vmem:[#allocation38_spill] sm:$0xff] %v16125_v0  ;;  %v9951_v37 = vld [vmem:[#allocation3 + $0x38] sm:$0xff]  ;;  %v19131_v0 = vld [vmem:[#allocation77_spill] sm:$0xff] }
 0x49b   :  { %9360 = vrot.lane.b32.xlu0 %v9329_v9, %s10071_s22  ;;  %v9379_v15 = vpack.i.bf16 %v9951_v37, %v19131_v0 }
 0x49c   :  { %v16127_v5 = vpop.permute.xlu1 %9055 }
 0x49d   :  { %19126 = vst [vmem:[#allocation40_spill] sm:$0xff] %v16127_v5  ;;  %v16132_v25 = vpop.permute.xlu0 %9080 }
 0x49e   :  { %9345 = vrot.lane.b32.xlu1 %v15632_v60, %s10068_s1  ;;  %19127 = vst [vmem:[#allocation187_spill] sm:$0xff] %v16132_v25  ;;  %v9953_v25 = vld [vmem:[#allocation3 + $0x170] sm:$0xff] }
 0x49f   :  { %9370 = vrot.lane.b32.xlu0 %v15413_v56, %s10068_s1  ;;  %v9952_v56 = vld [vmem:[#allocation3 + $0x168] sm:$0xff] }
 0x4a0   :  { %v16134_v42 = vpop.permute.xlu1 %9065 }
 0x4a1   :  { %19128 = vst [vmem:[#allocation188_spill] sm:$0xff] %v16134_v42  ;;  %v16140_v4 = vpop.permute.xlu0 %9090  ;;  %v9374_v42 = vpack.i.bf16 %v9953_v25, %v9952_v56  ;;  %v4894_v25 = vrot.slane %v15792_v22, 1 }
 0x4a2   :  { %9355 = vrot.lane.b32.xlu1 %v19129_v58, %s10071_s22  ;;  %19130 = vst [vmem:[#allocation48_spill] sm:$0xff] %v16140_v4  ;;  %v4897_v4 = vrot.slane %v15765_v53, 1 }
 0x4a3   :  { %9380 = vrot.lane.b32.xlu0 %v9379_v15, %s10069_s17  ;;  %v4895_v15 = vrot.slane %v15763_v36, 1 }
 0x4a4   :  { %v16143_v17 = vpop.permute.xlu1 %9075 }
 0x4a5   :  { %19132 = vst [vmem:[#allocation77_spill] sm:$0xff] %v16143_v17  ;;  %v16148_v60 = vpop.permute.xlu0 %9100  ;;  %v16177_v53 = vsel %vm750_vm2, %v4895_v15, %v4897_v4 }
 0x4a6   :  { %9365 = vrot.lane.b32.xlu1 %v15582_v52, %s10068_s1  ;;  %19133 = vst [vmem:[#allocation189_spill] sm:$0xff] %v16148_v60  ;;  %v19137_v52 = vld [vmem:[#allocation162_spill] sm:$0xff]  ;;  %v16174_v60 = vsel %vm750_vm2, %v4894_v25, %v4895_v15  ;;  %19141 = vst [vmem:[#allocation195_spill] sm:$0xff] %v16177_v53  ;;  %v16194_v15 = vld [vmem:[#allocation3 + $0x198] sm:$0xff] }
 0x4a7   :  { %9390 = vrot.lane.b32.xlu0 %v9349_v48, %s10071_s22  ;;  %v16169_v48 = vpack.i.bf16 %v15763_v36, %v15792_v22  ;;  %19140 = vst [vmem:[#allocation194_spill] sm:$0xff] %v16174_v60  ;;  %v9419_v36 = vpack.i.bf16 %v16177_v53, %v16174_v60  ;;  %19146 = vst [vmem:[#allocation198_spill] sm:$0xff] %v16194_v15  ;;  %v16196_v25 = vld [vmem:[#allocation3 + $0x1a0] sm:$0xff] }
 0x4a8   :  { %v16150_v9 = vpop.permute.xlu1 %9085 }
 0x4a9   :  { %19134 = vst [vmem:[#allocation190_spill] sm:$0xff] %v16150_v9  ;;  %v16154_v58 = vpop.permute.xlu0 %9110 }
 0x4aa   :  { %9375 = vrot.lane.b32.xlu1 %v9374_v42, %s10069_s17  ;;  %19135 = vst [vmem:[#allocation191_spill] sm:$0xff] %v16154_v58 }
 0x4ab   :  { %9400 = vrot.lane.b32.xlu0 %v15655_v35, %s10068_s1  ;;  %v19142_v35 = vld [vmem:[#allocation126_spill] sm:$0xff] }
 0x4ac   :  { %v16156_v0 = vpop.permute.xlu1 %9095 }
 0x4ad   :  { %19136 = vst [vmem:[#allocation192_spill] sm:$0xff] %v16156_v0  ;;  %v16165_v56 = vpop.permute.xlu0 %9120  ;;  %v9439_v0 = vpack.i.bf16 %v15839_v12, %v15836_v45  ;;  %v9954_v12 = vld [vmem:[#allocation3 + $0x30] sm:$0xff] }
 0x4ae   :  { %9385 = vrot.lane.b32.xlu1 %v19137_v52, %s10071_s22  ;;  %19138 = vst [vmem:[#allocation162_spill] sm:$0xff] %v16165_v56  ;;  %v16198_v56 = vld [vmem:[#allocation3 + $0x1a8] sm:$0x3]  ;;  %v9434_v9 = vpack.i.bf16 %v9951_v37, %v9954_v12  ;;  %v9955_v12 = vld [vmem:[#allocation3 + $0x60] sm:$0xff] }
 0x4af   :  { %9410 = vrot.lane.b32.xlu0 %v16169_v48, %s10069_s17  ;;  %19147 = vst [vmem:[#allocation199_spill] sm:$0xff] %v16198_v56  ;;  %v9454_v37 = vpack.i.bf16 %v15953_v29, %v9955_v12 }
 0x4b0   :  { %v16171_v58 = vpop.permute.xlu1 %9105 }
 0x4b1   :  { %19139 = vst [vmem:[#allocation193_spill] sm:$0xff] %v16171_v58  ;;  %v16183_v52 = vpop.permute.xlu0 %9130 }
 0x4b2   :  { %9395 = vrot.lane.b32.xlu1 %v19142_v35, %s10071_s22  ;;  %19143 = vst [vmem:[#allocation126_spill] sm:$0xff] %v16183_v52  ;;  %v9414_v52 = vpack.i.bf16 %v15386_v50, %v15404_v49  ;;  %v9818_v50 = vld [vmem:[%s17481_s2 + $0x80] sm:$0xff]  }
 0x4b3   :  { %9420 = vrot.lane.b32.xlu0 %v9419_v36, %s10071_s22  ;;  %v5368_v36 = vrot.slane %v16194_v15, 1  ;;  %7444 = vmatprep.subr.bf16.mxu0 %v9818_v50 }
 0x4b4   :  { %v16187_v22 = vpop.permute.xlu1 %9115 }
 0x4b5   :  { %19144 = vst [vmem:[#allocation196_spill] sm:$0xff] %v16187_v22  ;;  %v16192_v4 = vpop.permute.xlu0 %9140  ;;  %v19149_v22 = vld [vmem:[#allocation32_spill] sm:$0xff] }
 0x4b6   :  { %9405 = vrot.lane.b32.xlu1 %v15365_v18, %s10068_s1  ;;  %19145 = vst [vmem:[#allocation197_spill] sm:$0xff] %v16192_v4  ;;  %v5369_v18 = vrot.slane %v16196_v25, 1  ;;  %v5371_v4 = vrot.slane %v16198_v56, 1  ;;  %v19157_v56 = vld [vmem:[#allocation129_spill] sm:$0xff] }
 0x4b7   :  { %9430 = vrot.lane.b32.xlu0 %v19149_v22, %s10071_s22 }
 0x4b8   :  { %v16200_v35 = vpop.permute.xlu1 %9125  ;;  %v5370_v22 = vsel %vm750_vm2, %v5368_v36, %v5369_v18 }
 0x4b9   :  { %19148 = vst [vmem:[#allocation200_spill] sm:$0xff] %v16200_v35  ;;  %v16210_v58 = vpop.permute.xlu0 %9150 }
 0x4ba   :  { %9415 = vrot.lane.b32.xlu1 %v9414_v52, %s10069_s17  ;;  %19150 = vst [vmem:[#allocation32_spill] sm:$0xff] %v16210_v58  ;;  %v9449_v52 = vpack.i.bf16 %v16196_v25, %v16194_v15  ;;  %v5372_v58 = vsel %vm750_vm2, %v5369_v18, %v5371_v4  ;;  %v8857_v4 = vunpack.i.l.bf16 %v15924_v28 }
 0x4bb   :  { %9440 = vrot.lane.b32.xlu0 %v9439_v0, %s10068_s1 }
 0x4bc   :  { %v16217_v49 = vpop.permute.xlu1 %9135 }
 0x4bd   :  { %19151 = vst [vmem:[#allocation201_spill] sm:$0xff] %v16217_v49  ;;  %v16225_v35 = vpop.permute.xlu0 %9160  ;;  %v9459_v49 = vpack.i.bf16 %v5372_v58, %v5370_v22  ;;  %v9018_v58 = vunpack.i.h.bf16 %v16099_v47  ;;  %v9956_v22 = vld [vmem:[#allocation3 + $0x50] sm:$0xff] }
 0x4be   :  { %9425 = vrot.lane.b32.xlu1 %v9374_v42, %s10071_s22  ;;  %19152 = vst [vmem:[#allocation202_spill] sm:$0xff] %v16225_v35  ;;  %v8858_v42 = vunpack.i.h.bf16 %v15924_v28  ;;  %v19156_v35 = vld [vmem:[#allocation159_spill] sm:$0xff] }
 0x4bf   :  { %9450 = vrot.lane.b32.xlu0 %v9449_v52, %s10069_s17 }
 0x4c0   :  { %v16227_v45 = vpop.permute.xlu1 %9145 }
 0x4c1   :  { %19153 = vst [vmem:[#allocation203_spill] sm:$0xff] %v16227_v45  ;;  %v9171_v0 = vpop.permute.xlu0 %9170  ;;  %v9957_v45 = vld [vmem:[#allocation3 + $0x48] sm:$0xff] }
 0x4c2   :  { %9435 = vrot.lane.b32.xlu1 %v9434_v9, %s10071_s22  ;;  %v9017_v9 = vunpack.i.l.bf16 %v16099_v47  ;;  %v5650_v60 = vsel %vm129_vm8, %v9957_v45, %v8857_v4  ;;  %v9172_v30 = vunpack.i.l.bf16 %v9171_v0 }
 0x4c3   :  { %9460 = vrot.lane.b32.xlu0 %v9459_v49, %s10071_s22  ;;  %v19155_v49 = vld [vmem:[#allocation31_spill] sm:$0xff] }
 0x4c4   :  { %v16231_v17 = vpop.permute.xlu1 %9155 }
 0x4c5   :  { %19154 = vst [vmem:[#allocation204_spill] sm:$0xff] %v16231_v17  ;;  %v9181_v18 = vpop.permute.xlu0 %9180  ;;  %v5651_v17 = vsel %vm129_vm8, %v9956_v22, %v8858_v42 }
 0x4c6   :  { %9445 = vrot.lane.b32.xlu1 %v15442_v19, %s10068_s1  ;;  %v9183_v19 = vunpack.i.h.bf16 %v9181_v18  ;;  %v9182_v28 = vunpack.i.l.bf16 %v9181_v18  ;;  %v5715_v18 = vsel %vm5708_vm14, %v5650_v60, %v9017_v9  ;;  %v5716_v4 = vsel %vm5708_vm14, %v5651_v17, %v9018_v58 }
 0x4c7   :  { %9470 = vrot.lane.b32.xlu0 %v19155_v49, %s10071_s22  ;;  %v9173_v49 = vunpack.i.h.bf16 %v9171_v0  ;;  %v8862_v17 = vunpack.i.l.bf16 %v15872_v7  ;;  %v9023_v58 = vunpack.i.h.bf16 %v16084_v51  ;;  %v9474_v9 = vpack.i.bf16 %v9956_v22, %v9957_v45  ;;  %v19160_v22 = vld [vmem:[#allocation13_spill] sm:$0xff] }
 0x4c8   :  { %v9166_v36 = vpop.permute.xlu1 %9165  ;;  %v5781_v0 = vsel %vm5773_vm15, %v5716_v4, %v9183_v19  ;;  %v19158_v19 = vld [vmem:[#allocation59_spill] sm:$0xff] }
 0x4c9   :  { %v9168_v50 = vunpack.i.h.bf16 %v9166_v36  ;;  %v9167_v52 = vunpack.i.l.bf16 %v9166_v36  ;;  %v9191_v53 = vpop.permute.xlu0 %9190  ;;  %v5652_v4 = vsel %vm129_vm8, %v9955_v12, %v8862_v17 }
 0x4ca   :  { %9455 = vrot.lane.b32.xlu1 %v9454_v37, %s10069_s17  ;;  %v5780_v37 = vsel %vm5773_vm15, %v5715_v18, %v9182_v28 }
 0x4cb   :  { %v5844_v47 = vsel %vm129_vm8, %v19156_v35, %v9167_v52  ;;  %v5845_v36 = vsel %vm129_vm8, %v19157_v56, %v9168_v50  ;;  %9480 = vrot.lane.b32.xlu0 %v15669_v44, %s10068_s1  ;;  %v9022_v52 = vunpack.i.l.bf16 %v16084_v51 }
 0x4cc   :  { %v9176_v5 = vpop.permute.xlu1 %9175  ;;  %v5908_v35 = vsel %vm5708_vm14, %v5844_v47, %v9172_v30  ;;  %v5909_v56 = vsel %vm5708_vm14, %v5845_v36, %v9173_v49  ;;  %v6039_v36 = vpack.c.bf16 %v5781_v0, %v5780_v37  ;;  %v9958_v0 = vld [vmem:[#allocation3 + $0x1e0] sm:$0xff] }
 0x4cd   :  { %v9178_v42 = vunpack.i.h.bf16 %v9176_v5  ;;  %v9177_v15 = vunpack.i.l.bf16 %v9176_v5  ;;  %v8863_v5 = vunpack.i.h.bf16 %v15872_v7  ;;  %v9201_v50 = vpop.permute.xlu0 %9200 }
 0x4ce   :  { %9465 = vrot.lane.b32.xlu1 %v16169_v48, %s10071_s22  ;;  %v9203_v49 = vunpack.i.h.bf16 %v9201_v50  ;;  %v9202_v18 = vunpack.i.l.bf16 %v9201_v50  ;;  %v9959_v50 = vld [vmem:[#allocation3 + $0x1e8] sm:$0xff] }
 0x4cf   :  { %v5972_v44 = vsel %vm5773_vm15, %v5908_v35, %v9177_v15  ;;  %v5973_v60 = vsel %vm5773_vm15, %v5909_v56, %v9178_v42  ;;  %9490 = vrot.lane.b32.xlu0 %v19158_v19, %s10071_s22  ;;  %v5653_v7 = vsel %vm129_vm8, %v15953_v29, %v8863_v5  ;;  %v19159_v15 = vld [vmem:[#allocation12_spill] sm:$0xff]  ;;  %v9193_v35 = vunpack.i.h.bf16 %v9191_v53 }
 0x4d0   :  { %v9186_v48 = vpop.permute.xlu1 %9185  ;;  %v6040_v30 = vpack.c.bf16 %v5973_v60, %v5972_v44  ;;  %v9192_v56 = vunpack.i.l.bf16 %v9191_v53  ;;  %v16276_v44 = vpack.i.bf16 %v9959_v50, %v9958_v0  ;;  %v5717_v29 = vsel %vm5708_vm14, %v5652_v4, %v9022_v52  ;;  %v19163_v50 = vld [vmem:[#allocation10_spill] sm:$0xff] }
 0x4d1   :  { %v9188_v47 = vunpack.i.h.bf16 %v9186_v48  ;;  %v9187_v28 = vunpack.i.l.bf16 %v9186_v48  ;;  %v9211_v42 = vpop.permute.xlu0 %9210  ;;  %v5718_v5 = vsel %vm5708_vm14, %v5653_v7, %v9023_v58  ;;  %v5782_v17 = vsel %vm5773_vm15, %v5717_v29, %v9202_v18  ;;  %v9961_v7 = vld [vmem:[#allocation3 + $0x1d0] sm:$0xff] }
 0x4d2   :  { %9475 = vrot.lane.b32.xlu1 %v9474_v9, %s10071_s22  ;;  %6392 = vmatprep.mubr.bf16.mxu1 %v6040_v30  ;;  %v5783_v9 = vsel %vm5773_vm15, %v5718_v5, %v9203_v49  ;;  %v8868_v30 = vunpack.i.h.bf16 %v15942_v32  ;;  %v8867_v58 = vunpack.i.l.bf16 %v15942_v32  ;;  %v9027_v18 = vunpack.i.l.bf16 %v16106_v41 }
 0x4d3   :  { %v5847_v45 = vsel %vm129_vm8, %v19159_v15, %v9188_v47  ;;  %v5846_v51 = vsel %vm129_vm8, %v19160_v22, %v9187_v28  ;;  %6393 = vmatmul.mubr.bf16.vlgmr.msra.gmra.mrb[0].mxu1 %v6039_v36  ;;  %9500 = vrot.lane.b32.xlu0 %v15651_v13, %s10068_s1  ;;  %v9028_v28 = vunpack.i.h.bf16 %v16106_v41  ;;  %v9960_v36 = vld [vmem:[#allocation3 + $0x1c8] sm:$0xff]  ;;  %v6042_v4 = vpack.c.bf16 %v5783_v9, %v5782_v17  ;;  %v9963_v17 = vld [vmem:[#allocation3 + $0x200] sm:$0xff] }
 0x4d4   :  { %v9196_v37 = vpop.permute.xlu1 %9195  ;;  %v5910_v12 = vsel %vm5708_vm14, %v5846_v51, %v9192_v56  ;;  %v5911_v53 = vsel %vm5708_vm14, %v5847_v45, %v9193_v35  ;;  %v9494_v15 = vpack.i.bf16 %v9961_v7, %v9960_v36  ;;  %v19161_v51 = vld [vmem:[#allocation97_spill] sm:$0xff]  ;;  %v5655_v32 = vsel %vm129_vm8, %v15937_v46, %v8868_v30 }
 0x4d5   :  { %v9198_v60 = vunpack.i.h.bf16 %v9196_v37  ;;  %v9197_v48 = vunpack.i.l.bf16 %v9196_v37  ;;  %v9221_v47 = vpop.permute.xlu0 %9220  ;;  %v19162_v37 = vld [vmem:[#allocation11_spill] sm:$0xff]  ;;  %v9213_v29 = vunpack.i.h.bf16 %v9211_v42  ;;  %v9212_v5 = vunpack.i.l.bf16 %v9211_v42 }
 0x4d6   :  { %9485 = vrot.lane.b32.xlu1 %v16276_v44, %s10069_s17  ;;  %v9223_v35 = vunpack.i.h.bf16 %v9221_v47  ;;  %v9222_v56 = vunpack.i.l.bf16 %v9221_v47 }
 0x4d7   :  { %v5974_v13 = vsel %vm5773_vm15, %v5910_v12, %v9197_v48  ;;  %v5975_v52 = vsel %vm5773_vm15, %v5911_v53, %v9198_v60  ;;  %9510 = vrot.lane.b32.xlu0 %v19161_v51, %s10071_s22  ;;  %v5654_v48 = vsel %vm129_vm8, %v15935_v27, %v8867_v58  ;;  %v9962_v53 = vld [vmem:[#allocation3 + $0x1f8] sm:$0xff] }
 0x4d8   :  { %v9206_v19 = vpop.permute.xlu1 %9205  ;;  %v6043_v45 = vpack.c.bf16 %v5975_v52, %v5974_v13  ;;  %v16305_v9 = vpack.i.bf16 %v9963_v17, %v9962_v53  ;;  %v5719_v30 = vsel %vm5708_vm14, %v5654_v48, %v9027_v18  ;;  %v5720_v13 = vsel %vm5708_vm14, %v5655_v32, %v9028_v28  ;;  %v9964_v53 = vld [vmem:[#allocation3 + $0x210] sm:$0xff] }
 0x4d9   :  { %v9208_v22 = vunpack.i.h.bf16 %v9206_v19  ;;  %v9207_v49 = vunpack.i.l.bf16 %v9206_v19  ;;  %v9231_v60 = vpop.permute.xlu0 %9230  ;;  %v5784_v52 = vsel %vm5773_vm15, %v5719_v30, %v9222_v56  ;;  %v5785_v58 = vsel %vm5773_vm15, %v5720_v13, %v9223_v35 }
 0x4da   :  { %9495 = vrot.lane.b32.xlu1 %v9494_v15, %s10071_s22  ;;  %6400 = vmatprep.mubr.bf16.mxu1 %v6043_v45  ;;  %v8873_v19 = vunpack.i.h.bf16 %v15905_v23  ;;  %v8872_v28 = vunpack.i.l.bf16 %v15905_v23  ;;  %v9033_v15 = vunpack.i.h.bf16 %v16097_v38  ;;  %v6045_v35 = vpack.c.bf16 %v5785_v58, %v5784_v52 }
 0x4db   :  { %v5849_v0 = vsel %vm129_vm8, %v19162_v37, %v9208_v22  ;;  %v5848_v41 = vsel %vm129_vm8, %v19163_v50, %v9207_v49  ;;  %6401 = vmatmul.mubr.bf16.gmra.mrb[4].mxu1 %v6042_v4  ;;  %9520 = vrot.lane.b32.xlu0 %v15745_v10, %s10068_s1  ;;  %v9032_v22 = vunpack.i.l.bf16 %v16097_v38  ;;  %v19164_v4 = vld [vmem:[#allocation78_spill] sm:$0xff]  ;;  %v19165_v37 = vld [vmem:[#allocation143_spill] sm:$0xff]  ;;  %v19166_v50 = vld [vmem:[#allocation20_spill] sm:$0xff] }
 0x4dc   :  { %v9216_v12 = vpop.permute.xlu1 %9215  ;;  %v5912_v27 = vsel %vm5708_vm14, %v5848_v41, %v9212_v5  ;;  %v5913_v42 = vsel %vm5708_vm14, %v5849_v0, %v9213_v29  ;;  %v5657_v23 = vsel %vm129_vm8, %v15968_v57, %v8873_v19  ;;  %v5656_v48 = vsel %vm129_vm8, %v15966_v59, %v8872_v28 }
 0x4dd   :  { %v9218_v47 = vunpack.i.h.bf16 %v9216_v12  ;;  %v9217_v46 = vunpack.i.l.bf16 %v9216_v12  ;;  %v9241_v36 = vpop.permute.xlu0 %9240  ;;  %v9233_v29 = vunpack.i.h.bf16 %v9231_v60  ;;  %v9232_v5 = vunpack.i.l.bf16 %v9231_v60 }
 0x4de   :  { %9505 = vrot.lane.b32.xlu1 %v16305_v9, %s10069_s17  ;;  %v9243_v56 = vunpack.i.h.bf16 %v9241_v36  ;;  %v9242_v32 = vunpack.i.l.bf16 %v9241_v36  ;;  %v5722_v30 = vsel %vm5708_vm14, %v5657_v23, %v9033_v15  ;;  %v8877_v19 = vunpack.i.l.bf16 %v15958_v54 }
 0x4df   :  { %v5976_v10 = vsel %vm5773_vm15, %v5912_v27, %v9217_v46  ;;  %v5977_v7 = vsel %vm5773_vm15, %v5913_v42, %v9218_v47  ;;  %9530 = vrot.lane.b32.xlu0 %v19164_v4, %s10071_s22  ;;  %v5721_v46 = vsel %vm5708_vm14, %v5656_v48, %v9032_v22  ;;  %v8878_v42 = vunpack.i.h.bf16 %v15958_v54  ;;  %v9966_v48 = vld [vmem:[#allocation3 + $0x228] sm:$0xff] }
 0x4e0   :  { %v9226_v45 = vpop.permute.xlu1 %9225  ;;  %v6046_v18 = vpack.c.bf16 %v5977_v7, %v5976_v10  ;;  %v5786_v13 = vsel %vm5773_vm15, %v5721_v46, %v9242_v32  ;;  %v5787_v27 = vsel %vm5773_vm15, %v5722_v30, %v9243_v56  ;;  %v9038_v36 = vunpack.i.h.bf16 %v16113_v1  ;;  %v19169_v56 = vld [vmem:[#allocation138_spill] sm:$0xff] }
 0x4e1   :  { %v9228_v49 = vunpack.i.h.bf16 %v9226_v45  ;;  %v9227_v51 = vunpack.i.l.bf16 %v9226_v45  ;;  %v9251_v41 = vpop.permute.xlu0 %9250  ;;  %v9037_v28 = vunpack.i.l.bf16 %v16113_v1  ;;  %v6048_v22 = vpack.c.bf16 %v5787_v27, %v5786_v13 }
 0x4e2   :  { %9515 = vrot.lane.b32.xlu1 %v16276_v44, %s10071_s22  ;;  %6408 = vmatprep.mubr.bf16.mxu1 %v6046_v18  ;;  %v9965_v44 = vld [vmem:[#allocation3 + $0x218] sm:$0xff]  ;;  %v19167_v18 = vld [vmem:[#allocation144_spill] sm:$0xff]  ;;  %v5659_v54 = vsel %vm129_vm8, %v15988_v63, %v8878_v42  ;;  %v9042_v42 = vunpack.i.l.bf16 %v16104_v33 }
 0x4e3   :  { %v5851_v0 = vsel %vm129_vm8, %v19165_v37, %v9228_v49  ;;  %v5850_v38 = vsel %vm129_vm8, %v19166_v50, %v9227_v51  ;;  %6409 = vmatmul.mubr.bf16.gmra.mrb[8].mxu1 %v6045_v35  ;;  %v16335_v17 = vpack.i.bf16 %v9965_v44, %v9964_v53  ;;  %9540 = vrot.lane.b32.xlu0 %v15667_v31, %s10068_s1  ;;  %v8843_v49 = vunpack.i.h.bf16 %v15786_v39  ;;  %v19168_v35 = vld [vmem:[#allocation33_spill] sm:$0xff] }
 0x4e4   :  { %v9236_v12 = vpop.permute.xlu1 %9235  ;;  %v5914_v59 = vsel %vm5708_vm14, %v5850_v38, %v9232_v5  ;;  %v5915_v60 = vsel %vm5708_vm14, %v5851_v0, %v9233_v29  ;;  %v5658_v37 = vsel %vm129_vm8, %v15986_v8, %v8877_v19  ;;  %v9253_v0 = vunpack.i.h.bf16 %v9251_v41 }
 0x4e5   :  { %v9238_v47 = vunpack.i.h.bf16 %v9236_v12  ;;  %v9237_v57 = vunpack.i.l.bf16 %v9236_v12  ;;  %v9261_v52 = vpop.permute.xlu0 %9260  ;;  %v9252_v50 = vunpack.i.l.bf16 %v9251_v41  ;;  %v5723_v12 = vsel %vm5708_vm14, %v5658_v37, %v9037_v28 }
 0x4e6   :  { %9525 = vrot.lane.b32.xlu1 %v16335_v17, %s10069_s17  ;;  %v9263_v51 = vunpack.i.h.bf16 %v9261_v52  ;;  %v9262_v4 = vunpack.i.l.bf16 %v9261_v52  ;;  %v5724_v53 = vsel %vm5708_vm14, %v5659_v54, %v9038_v36  ;;  %v9968_v36 = vld [vmem:[#allocation3 + $0x8] sm:$0xff] }
 0x4e7   :  { %v5978_v31 = vsel %vm5773_vm15, %v5914_v59, %v9237_v57  ;;  %v5979_v58 = vsel %vm5773_vm15, %v5915_v60, %v9238_v47  ;;  %9550 = vrot.lane.b32.xlu0 %v19167_v18, %s10071_s22  ;;  %v8883_v57 = vunpack.i.h.bf16 %v15926_v16  ;;  %v8882_v59 = vunpack.i.l.bf16 %v15926_v16  ;;  %v19172_v18 = vld [vmem:[#allocation150_spill] sm:$0xff] }
 0x4e8   :  { %v9246_v10 = vpop.permute.xlu1 %9245  ;;  %v6049_v7 = vpack.c.bf16 %v5979_v58, %v5978_v31  ;;  %v5788_v44 = vsel %vm5773_vm15, %v5723_v12, %v9262_v4  ;;  %v5789_v47 = vsel %vm5773_vm15, %v5724_v53, %v9263_v51  ;;  %v9043_v60 = vunpack.i.h.bf16 %v16104_v33  ;;  %v19170_v58 = vld [vmem:[#allocation137_spill] sm:$0xff] }
 0x4e9   :  { %v9248_v15 = vunpack.i.h.bf16 %v9246_v10  ;;  %v9247_v45 = vunpack.i.l.bf16 %v9246_v10  ;;  %v9271_v23 = vpop.permute.xlu0 %9270  ;;  %v6051_v19 = vpack.c.bf16 %v5789_v47, %v5788_v44  ;;  %v16387_v10 = vsel %vm129_vm8, %v9968_v36, %v8843_v49 }
 0x4ea   :  { %9535 = vrot.lane.b32.xlu1 %v16305_v9, %s10071_s22  ;;  %6416 = vmatprep.mubr.bf16.mxu1 %v6049_v7  ;;  %v9967_v9 = vld [vmem:[#allocation3 + $0x230] sm:$0xff]  ;;  %v8842_v7 = vunpack.i.l.bf16 %v15786_v39  ;;  %v5661_v33 = vsel %vm129_vm8, %v16008_v11, %v8883_v57  ;;  %v5660_v49 = vsel %vm129_vm8, %v16006_v2, %v8882_v59  ;;  %v9273_v4 = vunpack.i.h.bf16 %v9271_v23  ;;  %v9978_v39 = vld [vmem:[#allocation3 + $0x2a0] sm:$0xff] }
 0x4eb   :  { %v5853_v1 = vsel %vm129_vm8, %v19168_v35, %v9248_v15  ;;  %v5852_v32 = vsel %vm129_vm8, %v19169_v56, %v9247_v45  ;;  %6417 = vmatmul.mubr.bf16.gmra.mrb[12].mxu1 %v6048_v22  ;;  %v16366_v29 = vpack.i.bf16 %v9967_v9, %v9966_v48  ;;  %9560 = vrot.lane.b32.xlu0 %v15797_v14, %s10068_s1  ;;  %v19171_v15 = vld [vmem:[#allocation42_spill] sm:$0xff]  ;;  %v9272_v54 = vunpack.i.l.bf16 %v9271_v23 }
 0x4ec   :  { %v9256_v38 = vpop.permute.xlu1 %9255  ;;  %v5916_v8 = vsel %vm5708_vm14, %v5852_v32, %v9252_v50  ;;  %v5917_v41 = vsel %vm5708_vm14, %v5853_v1, %v9253_v0  ;;  %v9969_v1 = vld [vmem:[#allocation3 + $0x240] sm:$0xff]  ;;  %v5725_v37 = vsel %vm5708_vm14, %v5660_v49, %v9042_v42  ;;  %v5726_v0 = vsel %vm5708_vm14, %v5661_v33, %v9043_v60  ;;  %v19173_v57 = vld [vmem:[#allocation66_spill] sm:$0xff] }
 0x4ed   :  { %v9258_v5 = vunpack.i.h.bf16 %v9256_v38  ;;  %v9257_v63 = vunpack.i.l.bf16 %v9256_v38  ;;  %v9281_v46 = vpop.permute.xlu0 %9280  ;;  %v9048_v12 = vunpack.i.h.bf16 %v16120_v3 }
 0x4ee   :  { %9545 = vrot.lane.b32.xlu1 %v16366_v29, %s10069_s17  ;;  %v9283_v28 = vunpack.i.h.bf16 %v9281_v46  ;;  %v9282_v16 = vunpack.i.l.bf16 %v9281_v46 }
 0x4ef   :  { %v5980_v14 = vsel %vm5773_vm15, %v5916_v8, %v9257_v63  ;;  %v5981_v30 = vsel %vm5773_vm15, %v5917_v41, %v9258_v5  ;;  %9570 = vrot.lane.b32.xlu0 %v19170_v58, %s10071_s22  ;;  %v8888_v5 = vunpack.i.h.bf16 %v15972_v26  ;;  %v8887_v63 = vunpack.i.l.bf16 %v15972_v26  ;;  %v19174_v26 = vld [vmem:[#allocation29_spill] sm:$0xff] }
 0x4f0   :  { %v9266_v13 = vpop.permute.xlu1 %9265  ;;  %v6052_v27 = vpack.c.bf16 %v5981_v30, %v5980_v14  ;;  %v5790_v50 = vsel %vm5773_vm15, %v5725_v37, %v9282_v16  ;;  %v5791_v38 = vsel %vm5773_vm15, %v5726_v0, %v9283_v28  ;;  %v9047_v41 = vunpack.i.l.bf16 %v16120_v3  ;;  %v19175_v3 = vld [vmem:[#allocation41_spill] sm:$0xff]  ;;  %v19176_v0 = vld [vmem:[#allocation63_spill] sm:$0xff] }
 0x4f1   :  { %v9268_v52 = vunpack.i.h.bf16 %v9266_v13  ;;  %v9267_v31 = vunpack.i.l.bf16 %v9266_v13  ;;  %v9291_v51 = vpop.permute.xlu0 %9290  ;;  %v6054_v46 = vpack.c.bf16 %v5791_v38, %v5790_v50  ;;  %v8893_v14 = vunpack.i.h.bf16 %v15944_v6  ;;  %v9973_v50 = vld [vmem:[#allocation3 + $0x270] sm:$0xff] }
 0x4f2   :  { %9555 = vrot.lane.b32.xlu1 %v16335_v17, %s10071_s22  ;;  %6424 = vmatprep.mubr.bf16.mxu1 %v6052_v27  ;;  %v9970_v17 = vld [vmem:[#allocation3 + $0x248] sm:$0xff]  ;;  %v8892_v30 = vunpack.i.l.bf16 %v15944_v6  ;;  %v5663_v6 = vsel %vm129_vm8, %v16028_v24, %v8888_v5  ;;  %v9292_v36 = vunpack.i.l.bf16 %v9291_v51 }
 0x4f3   :  { %v5855_v45 = vsel %vm129_vm8, %v19171_v15, %v9268_v52  ;;  %v5854_v22 = vsel %vm129_vm8, %v19172_v18, %v9267_v31  ;;  %6425 = vmatmul.mubr.bf16.gmra.mrb[16].mxu1 %v6051_v19  ;;  %v16400_v56 = vpack.i.bf16 %v9970_v17, %v9969_v1  ;;  %9580 = vrot.lane.b32.xlu0 %v15739_v43, %s10068_s1  ;;  %v9971_v52 = vld [vmem:[#allocation3 + $0x258] sm:$0xff]  ;;  %v9972_v31 = vld [vmem:[#allocation3 + $0x260] sm:$0xff] }
 0x4f4   :  { %v9276_v35 = vpop.permute.xlu1 %9275  ;;  %v5918_v2 = vsel %vm5708_vm14, %v5854_v22, %v9272_v54  ;;  %v5919_v23 = vsel %vm5708_vm14, %v5855_v45, %v9273_v4  ;;  %v16428_v58 = vpack.i.bf16 %v9972_v31, %v9971_v52  ;;  %v5662_v19 = vsel %vm129_vm8, %v16026_v61, %v8887_v63 }
 0x4f5   :  { %v9278_v32 = vunpack.i.h.bf16 %v9276_v35  ;;  %v9277_v11 = vunpack.i.l.bf16 %v9276_v35  ;;  %v9301_v48 = vpop.permute.xlu0 %9300  ;;  %v5727_v15 = vsel %vm5708_vm14, %v5662_v19, %v9047_v41  ;;  %v5728_v45 = vsel %vm5708_vm14, %v5663_v6, %v9048_v12  ;;  %v9975_v19 = vld [vmem:[#allocation3 + $0x288] sm:$0xff] }
 0x4f6   :  { %9565 = vrot.lane.b32.xlu1 %v16400_v56, %s10069_s17  ;;  %v9303_v59 = vunpack.i.h.bf16 %v9301_v48  ;;  %v9302_v60 = vunpack.i.l.bf16 %v9301_v48  ;;  %v5664_v54 = vsel %vm129_vm8, %v16046_v20, %v8892_v30  ;;  %v9053_v35 = vunpack.i.h.bf16 %v16111_v55  ;;  %v9974_v20 = vld [vmem:[#allocation3 + $0x278] sm:$0xff]  ;;  %v19177_v48 = vld [vmem:[#allocation46_spill] sm:$0xff] }
 0x4f7   :  { %v5982_v9 = vsel %vm5773_vm15, %v5918_v2, %v9277_v11  ;;  %v5983_v43 = vsel %vm5773_vm15, %v5919_v23, %v9278_v32  ;;  %9590 = vrot.lane.b32.xlu0 %v19173_v57, %s10071_s22  ;;  %v9052_v32 = vunpack.i.l.bf16 %v16111_v55  ;;  %v16456_v38 = vpack.i.bf16 %v9974_v20, %v9973_v50  ;;  %v19178_v55 = vld [vmem:[#allocation43_spill] sm:$0xff] }
 0x4f8   :  { %v9286_v53 = vpop.permute.xlu1 %9285  ;;  %v6055_v8 = vpack.c.bf16 %v5983_v43, %v5982_v9  ;;  %v5792_v61 = vsel %vm5773_vm15, %v5727_v15, %v9302_v60  ;;  %v5793_v22 = vsel %vm5773_vm15, %v5728_v45, %v9303_v59  ;;  %v8897_v63 = vunpack.i.l.bf16 %v15979_v34  ;;  %v19179_v60 = vld [vmem:[#allocation198_spill] sm:$0xff] }
 0x4f9   :  { %v9288_v44 = vunpack.i.h.bf16 %v9286_v53  ;;  %v9287_v47 = vunpack.i.l.bf16 %v9286_v53  ;;  %v9311_v42 = vpop.permute.xlu0 %9310  ;;  %v5571_v59 = vrot.slane %v16196_v25, 2 }
 0x4fa   :  { %9575 = vrot.lane.b32.xlu1 %v16366_v29, %s10071_s22  ;;  %6432 = vmatprep.mubr.bf16.mxu1 %v6055_v8  ;;  %v9293_v29 = vunpack.i.h.bf16 %v9291_v51  ;;  %v5665_v51 = vsel %vm129_vm8, %v16048_v62, %v8893_v14  ;;  %v6057_v62 = vpack.c.bf16 %v5793_v22, %v5792_v61  ;;  %v9313_v12 = vunpack.i.h.bf16 %v9311_v42  ;;  %v19183_v61 = vld [vmem:[#allocation44_spill] sm:$0xff] }
 0x4fb   :  { %v5857_v13 = vsel %vm129_vm8, %v19174_v26, %v9288_v44  ;;  %v5856_v27 = vsel %vm129_vm8, %v19175_v3, %v9287_v47  ;;  %6433 = vmatmul.mubr.bf16.gmra.mrb[20].mxu1 %v6054_v46  ;;  %9600 = vrot.lane.b32.xlu0 %v15816_v21, %s10068_s1  ;;  %v9312_v53 = vunpack.i.l.bf16 %v9311_v42  ;;  %v5729_v44 = vsel %vm5708_vm14, %v5664_v54, %v9052_v32  ;;  %v19180_v42 = vld [vmem:[#allocation40_spill] sm:$0xff]  ;;  %v19185_v54 = vld [vmem:[#allocation181_spill] sm:$0xff] }
 0x4fc   :  { %v9296_v28 = vpop.permute.xlu1 %9295  ;;  %v5920_v24 = vsel %vm5708_vm14, %v5856_v27, %v9292_v36  ;;  %v5921_v18 = vsel %vm5708_vm14, %v5857_v13, %v9293_v29  ;;  %v5730_v47 = vsel %vm5708_vm14, %v5665_v51, %v9053_v35  ;;  %v5570_v26 = vrot.slane %v19179_v60, 2  ;;  %v9976_v29 = vld [vmem:[#allocation3 + $0x290] sm:$0xff]  ;;  %v19184_v51 = vld [vmem:[#allocation36_spill] sm:$0xff] }
 0x4fd   :  { %v9298_v16 = vunpack.i.h.bf16 %v9296_v28  ;;  %v9297_v33 = vunpack.i.l.bf16 %v9296_v28  ;;  %v9321_v49 = vpop.permute.xlu0 %9320  ;;  %v8898_v27 = vunpack.i.h.bf16 %v15979_v34  ;;  %v9057_v52 = vunpack.i.l.bf16 %v19180_v42  ;;  %v19182_v34 = vld [vmem:[#allocation180_spill] sm:$0xff] }
 0x4fe   :  { %9585 = vrot.lane.b32.xlu1 %v16428_v58, %s10069_s17  ;;  %v9323_v2 = vunpack.i.h.bf16 %v9321_v49  ;;  %v9322_v23 = vunpack.i.l.bf16 %v9321_v49  ;;  %v16479_v36 = vpack.i.bf16 %v9976_v29, %v9975_v19  ;;  %v9058_v28 = vunpack.i.h.bf16 %v19180_v42  ;;  %v19190_v60 = vld [vmem:[#allocation76_spill] sm:$0xff] }
 0x4ff   :  { %v5984_v21 = vsel %vm5773_vm15, %v5920_v24, %v9297_v33  ;;  %v5985_v4 = vsel %vm5773_vm15, %v5921_v18, %v9298_v16  ;;  %9610 = vrot.lane.b32.xlu0 %v19176_v0, %s10071_s22  ;;  %v19181_v33 = vld [vmem:[#allocation89_spill] sm:$0xff]  ;;  %v5666_v18 = vsel %vm129_vm8, %v19182_v34, %v8897_v63  ;;  %v5667_v35 = vsel %vm129_vm8, %v19185_v54, %v8898_v27  ;;  %v19186_v0 = vld [vmem:[#allocation104_spill] sm:$0xff] }
 0x500   :  { %v9306_v1 = vpop.permute.xlu1 %9305  ;;  %v6058_v17 = vpack.c.bf16 %v5985_v4, %v5984_v21  ;;  %v5794_v14 = vsel %vm5773_vm15, %v5729_v44, %v9322_v23  ;;  %v5795_v30 = vsel %vm5773_vm15, %v5730_v47, %v9323_v2  ;;  %v16493_v4 = vsel %vm1103_vm3, %v5570_v26, %v5571_v59  ;;  %v19187_v2 = vld [vmem:[#allocation199_spill] sm:$0xff] }
 0x501   :  { %v9308_v11 = vunpack.i.h.bf16 %v9306_v1  ;;  %v9307_v37 = vunpack.i.l.bf16 %v9306_v1  ;;  %v9331_v5 = vpop.permute.xlu0 %9330  ;;  %v6060_v15 = vpack.c.bf16 %v5795_v30, %v5794_v14  ;;  %v5731_v32 = vsel %vm5708_vm14, %v5666_v18, %v9057_v52  ;;  %v19192_v52 = vld [vmem:[#allocation18_spill] sm:$0xff] }
 0x502   :  { %9595 = vrot.lane.b32.xlu1 %v16400_v56, %s10071_s22  ;;  %6440 = vmatprep.mubr.bf16.mxu1 %v6058_v17  ;;  %v9333_v1 = vunpack.i.h.bf16 %v9331_v5  ;;  %v5573_v23 = vrot.slane %v19187_v2, 2  ;;  %v19198_v2 = vld [vmem:[#allocation14_spill] sm:$0xff] }
 0x503   :  { %v5859_v9 = vsel %vm129_vm8, %v19177_v48, %v9308_v11  ;;  %v5858_v43 = vsel %vm129_vm8, %v19178_v55, %v9307_v37  ;;  %6441 = vmatmul.mubr.bf16.gmra.mrb[24].mxu1 %v6057_v62  ;;  %9620 = vrot.lane.b32.xlu0 %v15758_v40, %s10068_s1  ;;  %v5732_v62 = vsel %vm5708_vm14, %v5667_v35, %v9058_v28  ;;  %v19188_v55 = vld [vmem:[#allocation94_spill] sm:$0xff] }
 0x504   :  { %v9316_v8 = vpop.permute.xlu1 %9315  ;;  %v5922_v57 = vsel %vm5708_vm14, %v5858_v43, %v9312_v53  ;;  %v5923_v46 = vsel %vm5708_vm14, %v5859_v9, %v9313_v12  ;;  %v8903_v43 = vunpack.i.h.bf16 %v19188_v55  ;;  %v16512_v53 = vsel %vm1103_vm3, %v5571_v59, %v5573_v23 }
 0x505   :  { %v9318_v41 = vunpack.i.h.bf16 %v9316_v8  ;;  %v9317_v56 = vunpack.i.l.bf16 %v9316_v8  ;;  %v9341_v40 = vpop.permute.xlu0 %9340  ;;  %v8902_v8 = vunpack.i.l.bf16 %v19188_v55  ;;  %v8908_v23 = vunpack.i.h.bf16 %v19198_v2  ;;  %v9981_v55 = vld [vmem:[#allocation3 + $0x2c0] sm:$0xff] }
 0x506   :  { %9605 = vrot.lane.b32.xlu1 %v16456_v38, %s10069_s17  ;;  %v9343_v45 = vunpack.i.h.bf16 %v9341_v40  ;;  %v9342_v24 = vunpack.i.l.bf16 %v9341_v40  ;;  %v9977_v40 = vld [vmem:[#allocation3] sm:$0xff] }
 0x507   :  { %v5986_v13 = vsel %vm5773_vm15, %v5922_v57, %v9317_v56  ;;  %v5987_v3 = vsel %vm5773_vm15, %v5923_v46, %v9318_v41  ;;  %9630 = vrot.lane.b32.xlu0 %v19181_v33, %s10071_s22  ;;  %v19189_v41 = vld [vmem:[#allocation155_spill] sm:$0xff]  ;;  %v6077_v57 = vpack.c.bf16 %v16512_v53, %v16493_v4  ;;  %v16524_v59 = vsel %vm129_vm8, %v9977_v40, %v8842_v7  ;;  %v9979_v7 = vld [vmem:[#allocation3 + $0x2a8] sm:$0xff]  ;;  %v19195_v33 = vld [vmem:[#allocation184_spill] sm:$0xff] }
 0x508   :  { %v9326_v31 = vpop.permute.xlu1 %9325  ;;  %v6061_v6 = vpack.c.bf16 %v5987_v3, %v5986_v13  ;;  %v5796_v48 = vsel %vm5773_vm15, %v5731_v32, %v9342_v24  ;;  %v5797_v9 = vsel %vm5773_vm15, %v5732_v62, %v9343_v45  ;;  %v9063_v56 = vunpack.i.h.bf16 %v19189_v41  ;;  %v19191_v13 = vld [vmem:[#allocation52_spill] sm:$0xff] }
 0x509   :  { %v9328_v25 = vunpack.i.h.bf16 %v9326_v31  ;;  %v9327_v16 = vunpack.i.l.bf16 %v9326_v31  ;;  %v9351_v21 = vpop.permute.xlu0 %9350  ;;  %v9062_v46 = vunpack.i.l.bf16 %v19189_v41  ;;  %v6063_v26 = vpack.c.bf16 %v5797_v9, %v5796_v48  ;;  %v9980_v9 = vld [vmem:[#allocation3 + $0x2b8] sm:$0xff] }
 0x50a   :  { %9615 = vrot.lane.b32.xlu1 %v16428_v58, %s10071_s22  ;;  %6448 = vmatprep.mubr.bf16.mxu1 %v6061_v6  ;;  %v9332_v58 = vunpack.i.l.bf16 %v9331_v5  ;;  %v8853_v3 = vunpack.i.h.bf16 %v19191_v13  ;;  %v19193_v6 = vld [vmem:[#allocation25_spill] sm:$0xff]  ;;  %v16535_v28 = vpack.i.bf16 %v9979_v7, %v9978_v39  ;;  %v9352_v45 = vunpack.i.l.bf16 %v9351_v21  ;;  %v19203_v39 = vld [vmem:[#allocation166_spill] sm:$0xff] }
 0x50b   :  { %v5861_v22 = vsel %vm129_vm8, %v19183_v61, %v9328_v25  ;;  %v5860_v49 = vsel %vm129_vm8, %v19184_v51, %v9327_v16  ;;  %6449 = vmatmul.mubr.bf16.gmra.mrb[28].mxu1 %v6060_v15  ;;  %9640 = vrot.lane.b32.xlu0 %v19186_v0, %s10068_s1  ;;  %v19194_v25 = vld [vmem:[#allocation185_spill] sm:$0xff]  ;;  %v9353_v15 = vunpack.i.h.bf16 %v9351_v21  ;;  %v19196_v61 = vld [vmem:[#allocation70_spill] sm:$0xff] }
 0x50c   :  { %v9336_v17 = vpop.permute.xlu1 %9335  ;;  %v5924_v50 = vsel %vm5708_vm14, %v5860_v49, %v9332_v58  ;;  %v5925_v20 = vsel %vm5708_vm14, %v5861_v22, %v9333_v1  ;;  %v5669_v16 = vsel %vm129_vm8, %v19194_v25, %v8903_v43  ;;  %v8852_v1 = vunpack.i.l.bf16 %v19191_v13 }
 0x50d   :  { %v9338_v11 = vunpack.i.h.bf16 %v9336_v17  ;;  %v9337_v37 = vunpack.i.l.bf16 %v9336_v17  ;;  %v9361_v5 = vpop.permute.xlu0 %9360  ;;  %v5734_v51 = vsel %vm5708_vm14, %v5669_v16, %v9063_v56  ;;  %v16561_v43 = vpack.i.bf16 %v9981_v55, %v9980_v9 }
 0x50e   :  { %9625 = vrot.lane.b32.xlu1 %v16479_v36, %s10069_s17  ;;  %v9363_v27 = vunpack.i.h.bf16 %v9361_v5  ;;  %v9362_v42 = vunpack.i.l.bf16 %v9361_v5  ;;  %v19200_v5 = vld [vmem:[#allocation179_spill] sm:$0xff] }
 0x50f   :  { %v5988_v63 = vsel %vm5773_vm15, %v5924_v50, %v9337_v37  ;;  %v5989_v12 = vsel %vm5773_vm15, %v5925_v20, %v9338_v11  ;;  %9650 = vrot.lane.b32.xlu0 %v19190_v60, %s10071_s22  ;;  %v19197_v11 = vld [vmem:[#allocation165_spill] sm:$0xff]  ;;  %v8907_v50 = vunpack.i.l.bf16 %v19198_v2  ;;  %v19199_v20 = vld [vmem:[#allocation91_spill] sm:$0xff] }
 0x510   :  { %v9346_v44 = vpop.permute.xlu1 %9345  ;;  %v6064_v47 = vpack.c.bf16 %v5989_v12, %v5988_v63  ;;  %v5799_v21 = vsel %vm5773_vm15, %v5734_v51, %v9363_v27  ;;  %v8848_v37 = vunpack.i.h.bf16 %v19197_v11  ;;  %v9003_v63 = vunpack.i.h.bf16 %v19200_v5 }
 0x511   :  { %v9348_v14 = vunpack.i.h.bf16 %v9346_v44  ;;  %v9347_v30 = vunpack.i.l.bf16 %v9346_v44  ;;  %v16533_v29 = vpop.permute.xlu0 %9370  ;;  %v9002_v12 = vunpack.i.l.bf16 %v19200_v5  ;;  %v19208_v5 = vld [vmem:[#allocation28_spill] sm:$0xff] }
 0x512   :  { %9635 = vrot.lane.b32.xlu1 %v16456_v38, %s10071_s22  ;;  %6456 = vmatprep.mubr.bf16.mxu1 %v6064_v47  ;;  %v5668_v38 = vsel %vm129_vm8, %v19195_v33, %v8902_v8  ;;  %v19201_v8 = vld [vmem:[#allocation188_spill] sm:$0xff]  ;;  %v9982_v47 = vld [vmem:[#allocation3 + $0x2d0] sm:$0xff]  ;;  %v5710_v7 = vsel %vm5708_vm14, %v16387_v10, %v9003_v63  ;;  %v9372_v10 = vunpack.i.l.bf16 %v16533_v29 }
 0x513   :  { %v5863_v31 = vsel %vm129_vm8, %v19192_v52, %v9348_v14  ;;  %v5862_v19 = vsel %vm129_vm8, %v19193_v6, %v9347_v30  ;;  %6457 = vmatmul.mubr.bf16.gmra.mrb[32].mxu1 %v6063_v26  ;;  %9660 = vrot.lane.b32.xlu0 %v19196_v61, %s10068_s1  ;;  %v5733_v22 = vsel %vm5708_vm14, %v5668_v38, %v9062_v46  ;;  %v9068_v41 = vunpack.i.h.bf16 %v19201_v8  ;;  %v9983_v46 = vld [vmem:[#allocation3 + $0x2d8] sm:$0xff]  ;;  %v19202_v30 = vld [vmem:[#allocation202_spill] sm:$0xff] }
 0x514   :  { %v9356_v24 = vpop.permute.xlu1 %9355  ;;  %v5926_v49 = vsel %vm5708_vm14, %v5862_v19, %v9352_v45  ;;  %v5927_v54 = vsel %vm5708_vm14, %v5863_v31, %v9353_v15  ;;  %v5798_v35 = vsel %vm5773_vm15, %v5733_v22, %v9362_v42  ;;  %v9067_v56 = vunpack.i.l.bf16 %v19201_v8  ;;  %v9984_v42 = vld [vmem:[#allocation3 + $0x140] sm:$0xff]  ;;  %v19205_v22 = vld [vmem:[#allocation23_spill] sm:$0xff] }
 0x515   :  { %v9358_v34 = vunpack.i.h.bf16 %v9356_v24  ;;  %v9357_v18 = vunpack.i.l.bf16 %v9356_v24  ;;  %v16552_v58 = vpop.permute.xlu0 %9380  ;;  %v6066_v48 = vpack.c.bf16 %v5799_v21, %v5798_v35  ;;  %v16569_v14 = vpack.i.bf16 %v9983_v46, %v9982_v47  ;;  %v19206_v21 = vld [vmem:[#allocation100_spill] sm:$0xff]  ;;  %v19209_v46 = vld [vmem:[#allocation86_spill] sm:$0xff] }
 0x516   :  { %9645 = vrot.lane.b32.xlu1 %v16535_v28, %s10069_s17  ;;  %v9163_v60 = vunpack.i.h.bf16 %v19202_v30  ;;  %v5671_v52 = vsel %vm129_vm8, %v9984_v42, %v8908_v23  ;;  %v5709_v25 = vsel %vm5708_vm14, %v16524_v59, %v9002_v12  ;;  %v9162_v38 = vunpack.i.l.bf16 %v19202_v30  ;;  %v19204_v59 = vld [vmem:[#allocation24_spill] sm:$0xff] }
 0x517   :  { %v5990_v17 = vsel %vm5773_vm15, %v5926_v49, %v9357_v18  ;;  %v5991_v32 = vsel %vm5773_vm15, %v5927_v54, %v9358_v34  ;;  %9670 = vrot.lane.b32.xlu0 %v19199_v20, %s10071_s22  ;;  %v9373_v15 = vunpack.i.h.bf16 %v16533_v29  ;;  %v5736_v34 = vsel %vm5708_vm14, %v5671_v52, %v9068_v41  ;;  %v19207_v23 = vld [vmem:[#allocation156_spill] sm:$0xff] }
 0x518   :  { %v9366_v0 = vpop.permute.xlu1 %9365  ;;  %v6067_v62 = vpack.c.bf16 %v5991_v32, %v5990_v17  ;;  %v16587_v18 = vsel %vm5773_vm15, %v5710_v7, %v9163_v60  ;;  %v9382_v29 = vunpack.i.l.bf16 %v16552_v58  ;;  %v5838_v63 = vsel %vm129_vm8, %v19208_v5, %v9372_v10 }
 0x519   :  { %v9391_v44 = vpop.permute.xlu0 %9390  ;;  %v9368_v26 = vunpack.i.h.bf16 %v9366_v0  ;;  %v9367_v40 = vunpack.i.l.bf16 %v9366_v0  ;;  %v9383_v0 = vunpack.i.h.bf16 %v16552_v58  ;;  %v8847_v30 = vunpack.i.l.bf16 %v19197_v11  ;;  %v9992_v11 = vld [vmem:[%s17481_s2 + $0x80] sm:$0xff]  }
 0x51a   :  { %9655 = vrot.lane.b32.xlu1 %v16479_v36, %s10071_s22  ;;  %6464 = vmatprep.mubr.bf16.mxu1 %v6067_v62  ;;  %v9985_v36 = vld [vmem:[#allocation3 + $0x138] sm:$0xff]  ;;  %v9393_v6 = vunpack.i.h.bf16 %v9391_v44  ;;  %v9392_v19 = vunpack.i.l.bf16 %v9391_v44  ;;  %v5774_v60 = vsel %vm5773_vm15, %v5709_v25, %v9162_v38 }
 0x51b   :  { %6465 = vmatmul.mubr.bf16.gmra.mrb[36].mxu1 %v6066_v48  ;;  %v5670_v31 = vsel %vm129_vm8, %v9985_v36, %v8907_v50  ;;  %9680 = vrot.lane.b32.xlu0 %v19203_v39, %s10068_s1  ;;  %v5865_v61 = vsel %vm129_vm8, %v19204_v59, %v9368_v26  ;;  %v5864_v51 = vsel %vm129_vm8, %v19205_v22, %v9367_v40 }
 0x51c   :  { %v9376_v27 = vpop.permute.xlu1 %9375  ;;  %v5735_v24 = vsel %vm5708_vm14, %v5670_v31, %v9067_v56  ;;  %v5801_v32 = vsel %vm5773_vm15, %v5736_v34, %v9393_v6  ;;  %v5839_v50 = vsel %vm129_vm8, %v19207_v23, %v9373_v15  ;;  %v5902_v26 = vsel %vm5708_vm14, %v5838_v63, %v9382_v29  ;;  %v19211_v6 = vld [vmem:[#allocation50_spill] sm:$0xff]  ;;  %v19217_v63 = vld [vmem:[#allocation153_spill] sm:$0xff] }
 0x51d   :  { %v9378_v16 = vunpack.i.h.bf16 %v9376_v27  ;;  %v9377_v33 = vunpack.i.l.bf16 %v9376_v27  ;;  %v9401_v45 = vpop.permute.xlu0 %9400  ;;  %v5800_v17 = vsel %vm5773_vm15, %v5735_v24, %v9392_v19  ;;  %v5903_v40 = vsel %vm5708_vm14, %v5839_v50, %v9383_v0  ;;  %v19210_v27 = vld [vmem:[#allocation161_spill] sm:$0xff] }
 0x51e   :  { %9665 = vrot.lane.b32.xlu1 %v16561_v43, %s10069_s17  ;;  %v9403_v20 = vunpack.i.h.bf16 %v9401_v45  ;;  %v9402_v58 = vunpack.i.l.bf16 %v9401_v45  ;;  %v6069_v41 = vpack.c.bf16 %v5801_v32, %v5800_v17  ;;  %v19212_v45 = vld [vmem:[#allocation9_spill] sm:$0xff]  ;;  %v9989_v17 = vld [vmem:[#allocation3 + $0x18] sm:$0xff] }
 0x51f   :  { %9690 = vrot.lane.b32.xlu0 %v19206_v21, %s10071_s22  ;;  %v5928_v62 = vsel %vm5708_vm14, %v5864_v51, %v9377_v33  ;;  %v5929_v2 = vsel %vm5708_vm14, %v5865_v61, %v9378_v16  ;;  %v6030_v33 = vpack.c.bf16 %v16587_v18, %v5774_v60  ;;  %v9819_v18 = vld [vmem:[%s17481_s2 + $0x88] sm:$0xff]   ;;  %v9986_v61 = vld [vmem:[#allocation3 + $0x38] sm:$0xff]  ;;  %v9987_v51 = vld [vmem:[#allocation3 + $0x30] sm:$0xff]  ;;  %v16652_v32 = vsel %vm129_vm8, %v9989_v17, %v8847_v30 }
 0x520   :  { %v9386_v49 = vpop.permute.xlu1 %9385  ;;  %v5867_v42 = vsel %vm129_vm8, %v19210_v27, %v9403_v20  ;;  %v5866_v19 = vsel %vm129_vm8, %v19211_v6, %v9402_v58  ;;  %v16639_v22 = vsel %vm129_vm8, %v9986_v61, %v8853_v3  ;;  %v19213_v3 = vld [vmem:[#allocation108_spill] sm:$0xff]  ;;  %v9995_v27 = vld [vmem:[#allocation3 + $0x150] sm:$0xff] }
 0x521   :  { %v9388_v54 = vunpack.i.h.bf16 %v9386_v49  ;;  %v9387_v35 = vunpack.i.l.bf16 %v9386_v49  ;;  %v9411_v48 = vpop.permute.xlu0 %9410  ;;  %v9988_v49 = vld [vmem:[#allocation3 + $0x20] sm:$0xff]  ;;  %v8913_v0 = vunpack.i.h.bf16 %v19213_v3  ;;  %v8912_v13 = vunpack.i.l.bf16 %v19213_v3  ;;  %v19220_v3 = vld [vmem:[#allocation79_spill] sm:$0xff] }
 0x522   :  { %9675 = vrot.lane.b32.xlu1 %v16535_v28, %s10071_s22  ;;  %v9413_v56 = vunpack.i.h.bf16 %v9411_v48  ;;  %v9412_v44 = vunpack.i.l.bf16 %v9411_v48 }
 0x523   :  { %v5992_v9 = vsel %vm5773_vm15, %v5928_v62, %v9387_v35  ;;  %v5993_v55 = vsel %vm5773_vm15, %v5929_v2, %v9388_v54  ;;  %9700 = vrot.lane.b32.xlu0 %v19209_v46, %s10068_s1  ;;  %v16649_v54 = vsel %vm129_vm8, %v9988_v49, %v8848_v37  ;;  %v9991_v62 = vld [vmem:[#allocation3 + $0x2f0] sm:$0xff]  ;;  %v9994_v46 = vld [vmem:[#allocation3 + $0x158] sm:$0xff] }
 0x524   :  { %v9396_v12 = vpop.permute.xlu1 %9395  ;;  %v6070_v8 = vpack.c.bf16 %v5993_v55, %v5992_v9  ;;  %v5930_v38 = vsel %vm5708_vm14, %v5866_v19, %v9412_v44  ;;  %v5931_v15 = vsel %vm5708_vm14, %v5867_v42, %v9413_v56  ;;  %v19214_v37 = vld [vmem:[#allocation38_spill] sm:$0xff]  ;;  %v19215_v9 = vld [vmem:[#allocation103_spill] sm:$0xff]  ;;  %v19216_v55 = vld [vmem:[#allocation157_spill] sm:$0xff]  ;;  %v5673_v30 = vsel %vm129_vm8, %v9994_v46, %v8913_v0 }
 0x525   :  { %v9398_v47 = vunpack.i.h.bf16 %v9396_v12  ;;  %v9397_v28 = vunpack.i.l.bf16 %v9396_v12  ;;  %v9421_v52 = vpop.permute.xlu0 %9420  ;;  %v9073_v23 = vunpack.i.h.bf16 %v19214_v37  ;;  %v9072_v50 = vunpack.i.l.bf16 %v19214_v37  ;;  %v19219_v19 = vld [vmem:[#allocation186_spill] sm:$0xff] }
 0x526   :  { %9685 = vrot.lane.b32.xlu1 %v16569_v14, %s10069_s17  ;;  %6472 = vmatprep.mubr.bf16.mxu1 %v6070_v8  ;;  %v9423_v39 = vunpack.i.h.bf16 %v9421_v52  ;;  %v9422_v7 = vunpack.i.l.bf16 %v9421_v52  ;;  %v5672_v42 = vsel %vm129_vm8, %v9995_v27, %v8912_v13  ;;  %v16720_v46 = vld [vmem:[#allocation3 + $0x350] sm:$0xff]  ;;  %v16726_v27 = vld [vmem:[#allocation3 + $0x358] sm:$0x3] }
 0x527   :  { %6473 = vmatmul.mubr.bf16.gmra.mrb[40].mxu1 %v6069_v41  ;;  %v5966_v36 = vsel %vm5773_vm15, %v5902_v26, %v9397_v28  ;;  %v5967_v31 = vsel %vm5773_vm15, %v5903_v40, %v9398_v47  ;;  %9710 = vrot.lane.b32.xlu0 %v19212_v45, %s10071_s22  ;;  %v16673_v47 = vld [vmem:[#allocation3 + $0x330] sm:$0xff] }
 0x528   :  { %v9406_v25 = vpop.permute.xlu1 %9405  ;;  %v6031_v16 = vpack.c.bf16 %v5967_v31, %v5966_v36  ;;  %v5994_v10 = vsel %vm5773_vm15, %v5930_v38, %v9422_v7  ;;  %v5995_v59 = vsel %vm5773_vm15, %v5931_v15, %v9423_v39  ;;  %v4899_v28 = vrot.slane %v16673_v47, 1  ;;  %v19218_v31 = vld [vmem:[#allocation92_spill] sm:$0xff] }
 0x529   :  { %v9408_v24 = vunpack.i.h.bf16 %v9406_v25  ;;  %v9407_v34 = vunpack.i.l.bf16 %v9406_v25  ;;  %v9431_v35 = vpop.permute.xlu0 %9430  ;;  %v6073_v21 = vpack.c.bf16 %v5995_v59, %v5994_v10  ;;  %v9008_v39 = vunpack.i.h.bf16 %v19219_v19  ;;  %v9996_v10 = vld [vmem:[#allocation3 + $0x300] sm:$0xff]  ;;  %v9997_v59 = vld [vmem:[#allocation3 + $0x308] sm:$0xff] }
 0x52a   :  { %9695 = vrot.lane.b32.xlu1 %v16561_v43, %s10071_s22  ;;  %6368 = vmatprep.mubr.bf16.mxu0 %v6031_v16  ;;  %v16644_v43 = vsel %vm129_vm8, %v9987_v51, %v8852_v1  ;;  %v9990_v1 = vld [vmem:[#allocation3 + $0x2e8] sm:$0xff]  ;;  %v9433_v12 = vunpack.i.h.bf16 %v9431_v35  ;;  %v9432_v8 = vunpack.i.l.bf16 %v9431_v35  ;;  %v9007_v7 = vunpack.i.l.bf16 %v19219_v19  ;;  %v16692_v51 = vld [vmem:[#allocation3 + $0x338] sm:$0xff] }
 0x52b   :  { %6369 = vmatmul.mubr.bf16.vlgmr.msra.gmra.mrb[64].mxu0 %v6030_v33  ;;  %v16656_v2 = vpack.i.bf16 %v9991_v62, %v9990_v1  ;;  %9720 = vrot.lane.b32.xlu0 %v19215_v9, %s10068_s1  ;;  %v5841_v5 = vsel %vm129_vm8, %v19216_v55, %v9408_v24  ;;  %v5840_v58 = vsel %vm129_vm8, %v19217_v63, %v9407_v34  ;;  %v19221_v62 = vld [vmem:[#allocation195_spill] sm:$0xff]  ;;  %v19225_v19 = vld [vmem:[#allocation77_spill] sm:$0xff] }
 0x52c   :  { %v9416_v29 = vpop.permute.xlu1 %9415  ;;  %7445 = vmatpush3.bf16.msra.mxu0 %v9992_v11  ;;  %6480 = vmatprep.mubr.bf16.mxu1 %v6073_v21  ;;  %v5737_v25 = vsel %vm5708_vm14, %v5672_v42, %v9072_v50  ;;  %v5738_v16 = vsel %vm5708_vm14, %v5673_v30, %v9073_v23  ;;  %v5711_v0 = vsel %vm5708_vm14, %v16652_v32, %v9007_v7  ;;  %v19224_v42 = vld [vmem:[#allocation169_spill] sm:$0xff] }
 0x52d   :  { %v9418_v20 = vunpack.i.h.bf16 %v9416_v29  ;;  %v9417_v48 = vunpack.i.l.bf16 %v9416_v29  ;;  %7446 = vmatprep.subr.bf16.mxu0 %v9819_v18  ;;  %v9441_v44 = vpop.permute.xlu0 %9440  ;;  %v5712_v13 = vsel %vm5708_vm14, %v16649_v54, %v9008_v39  ;;  %v9999_v29 = vld [vmem:[#allocation3 + $0x340] sm:$0x3]  ;;  %v9078_v39 = vunpack.i.h.bf16 %v19225_v19 }
 0x52e   :  { %9705 = vrot.lane.b32.xlu1 %v16656_v2, %s10069_s17  ;;  %v9443_v33 = vunpack.i.h.bf16 %v9441_v44  ;;  %v9442_v24 = vunpack.i.l.bf16 %v9441_v44  ;;  %v4902_v1 = vrot.slane %v9999_v29, 1  ;;  %v16718_v44 = vld [vmem:[#allocation3 + $0x348] sm:$0xff] }
 0x52f   :  { %v5904_v41 = vsel %vm5708_vm14, %v5840_v58, %v9417_v48  ;;  %v5905_v56 = vsel %vm5708_vm14, %v5841_v5, %v9418_v20  ;;  %9730 = vrot.lane.b32.xlu0 %v19218_v31, %s10071_s22  ;;  %v19222_v20 = vld [vmem:[#allocation194_spill] sm:$0xff] }
 0x530   :  { %v9426_v60 = vpop.permute.xlu1 %9425  ;;  %v5968_v26 = vsel %vm5773_vm15, %v5904_v41, %v9432_v8  ;;  %v5969_v40 = vsel %vm5773_vm15, %v5905_v56, %v9433_v12  ;;  %7447 = vmatpush3.bf16.msra.mxu0 %v9819_v18  ;;  %v16690_v18 = vpack.i.bf16 %v9997_v59, %v9996_v10  ;;  %v5869_v11 = vsel %vm129_vm8, %v19221_v62, %v9443_v33  ;;  %v19223_v58 = vld [vmem:[#allocation114_spill] sm:$0xff]  ;;  %v10000_v12 = vld [vmem:[#allocation3 + $0x318] sm:$0xff]  ;;  %v10001_v8 = vld [vmem:[#allocation3 + $0x320] sm:$0xff] }
 0x531   :  { %v9428_v52 = vunpack.i.h.bf16 %v9426_v60  ;;  %v9427_v36 = vunpack.i.l.bf16 %v9426_v60  ;;  %v6034_v6 = vpack.c.bf16 %v5969_v40, %v5968_v26  ;;  %v9451_v38 = vpop.permute.xlu0 %9450  ;;  %v5868_v48 = vsel %vm129_vm8, %v19222_v20, %v9442_v24  ;;  %v19227_v24 = vld [vmem:[#allocation8_spill] sm:$0xff]  ;;  %v19228_v10 = vld [vmem:[#allocation158_spill] sm:$0xff] }
 0x532   :  { %9715 = vrot.lane.b32.xlu1 %v16569_v14, %s10071_s22  ;;  %v4900_v14 = vrot.slane %v16692_v51, 1  ;;  %v9453_v49 = vunpack.i.h.bf16 %v9451_v38  ;;  %v9452_v35 = vunpack.i.l.bf16 %v9451_v38  ;;  %v16713_v41 = vpack.i.bf16 %v10001_v8, %v10000_v12  ;;  %v19231_v12 = vld [vmem:[#allocation168_spill] sm:$0xff] }
 0x533   :  { %6376 = vmatprep.mubr.bf16.mxu0 %v6034_v6  ;;  %v5802_v15 = vsel %vm5773_vm15, %v5737_v25, %v9427_v36  ;;  %v5803_v45 = vsel %vm5773_vm15, %v5738_v16, %v9428_v52  ;;  %9740 = vrot.lane.b32.xlu0 %v19220_v3, %s10068_s1  ;;  %v8918_v52 = vunpack.i.h.bf16 %v19224_v42  ;;  %v8917_v6 = vunpack.i.l.bf16 %v19224_v42 }
 0x534   :  { %v9436_v34 = vpop.permute.xlu1 %9435  ;;  %v6072_v61 = vpack.c.bf16 %v5803_v45, %v5802_v15  ;;  %v5932_v63 = vsel %vm5708_vm14, %v5868_v48, %v9452_v35  ;;  %v5933_v54 = vsel %vm5708_vm14, %v5869_v11, %v9453_v49  ;;  %v16716_v56 = vsel %vm750_vm2, %v4899_v28, %v4900_v14  ;;  %v19226_v15 = vld [vmem:[#allocation109_spill] sm:$0xff]  ;;  %v10002_v49 = vld [vmem:[#allocation3 + $0x170] sm:$0xff] }
 0x535   :  { %v9438_v21 = vunpack.i.h.bf16 %v9436_v34  ;;  %v9437_v17 = vunpack.i.l.bf16 %v9436_v34  ;;  %v9461_v37 = vpop.permute.xlu0 %9460  ;;  %v16730_v31 = vsel %vm750_vm2, %v4900_v14, %v4902_v1  ;;  %v5373_v25 = vrot.slane %v16718_v44, 1 }
 0x536   :  { %9725 = vrot.lane.b32.xlu1 %v16690_v18, %s10069_s17  ;;  %6481 = vmatmul.mubr.bf16.gmra.mrb[44].mxu1 %v6072_v61  ;;  %v9463_v9 = vunpack.i.h.bf16 %v9461_v37  ;;  %v9462_v55 = vunpack.i.l.bf16 %v9461_v37  ;;  %v9077_v16 = vunpack.i.l.bf16 %v19225_v19  ;;  %v5376_v45 = vrot.slane %v16726_v27, 1 }
 0x537   :  { %v5776_v23 = vsel %vm5773_vm15, %v5711_v0, %v9437_v17  ;;  %v5777_v50 = vsel %vm5773_vm15, %v5712_v13, %v9438_v21  ;;  %9750 = vrot.lane.b32.xlu0 %v19223_v58, %s10071_s22  ;;  %v5675_v35 = vsel %vm129_vm8, %v10002_v49, %v8918_v52  ;;  %v9769_v0 = vpack.i.bf16 %v16730_v31, %v16716_v56  ;;  %v10003_v13 = vld [vmem:[#allocation3 + $0x168] sm:$0xff]  ;;  %v19230_v58 = vld [vmem:[#allocation167_spill] sm:$0xff] }
 0x538   :  { %v9446_v5 = vpop.permute.xlu1 %9445  ;;  %v6033_v32 = vpack.c.bf16 %v5777_v50, %v5776_v23  ;;  %v5996_v26 = vsel %vm5773_vm15, %v5932_v63, %v9462_v55  ;;  %v5997_v40 = vsel %vm5773_vm15, %v5933_v54, %v9463_v9  ;;  %v5674_v29 = vsel %vm129_vm8, %v10003_v13, %v8917_v6  ;;  %v19229_v9 = vld [vmem:[#allocation30_spill] sm:$0xff]  ;;  %v19233_v52 = vld [vmem:[#allocation93_spill] sm:$0xff] }
 0x539   :  { %v9448_v30 = vunpack.i.h.bf16 %v9446_v5  ;;  %v9447_v60 = vunpack.i.l.bf16 %v9446_v5  ;;  %v9471_v28 = vpop.permute.xlu0 %9470  ;;  %v6076_v36 = vpack.c.bf16 %v5997_v40, %v5996_v26  ;;  %v9013_v55 = vunpack.i.h.bf16 %v19229_v9 }
 0x53a   :  { %9735 = vrot.lane.b32.xlu1 %v16656_v2, %s10071_s22  ;;  %6377 = vmatmul.mubr.bf16.gmra.mrb[68].mxu0 %v6033_v32  ;;  %v5374_v2 = vrot.slane %v16720_v46, 1  ;;  %v9473_v61 = vunpack.i.h.bf16 %v9471_v28  ;;  %v9472_v14 = vunpack.i.l.bf16 %v9471_v28  ;;  %v9012_v5 = vunpack.i.l.bf16 %v19229_v9 }
 0x53b   :  { %9760 = vrot.lane.b32.xlu0 %v19226_v15, %s10068_s1  ;;  %6488 = vmatprep.mubr.bf16.mxu1 %v6076_v36  ;;  %v5843_v34 = vsel %vm129_vm8, %v19227_v24, %v9448_v30  ;;  %v5842_v59 = vsel %vm129_vm8, %v19228_v10, %v9447_v60  ;;  %v5739_v32 = vsel %vm5708_vm14, %v5674_v29, %v9077_v16  ;;  %v19234_v16 = vld [vmem:[#allocation15_spill] sm:$0xff] }
 0x53c   :  { %v9456_v7 = vpop.permute.xlu1 %9455  ;;  %v5375_v37 = vsel %vm750_vm2, %v5373_v25, %v5374_v2  ;;  %v5377_v48 = vsel %vm750_vm2, %v5374_v2, %v5376_v45  ;;  %v5740_v63 = vsel %vm5708_vm14, %v5675_v35, %v9078_v39  ;;  %v9779_v8 = vpack.i.bf16 %v19231_v12, %v19230_v58  ;;  %v19237_v35 = vld [vmem:[#allocation130_spill] sm:$0xff] }
 0x53d   :  { %v9458_v33 = vunpack.i.h.bf16 %v9456_v7  ;;  %v9457_v38 = vunpack.i.l.bf16 %v9456_v7  ;;  %v9481_v3 = vpop.permute.xlu0 %9480  ;;  %v16767_v30 = vpack.i.bf16 %v16692_v51, %v16673_v47  ;;  %v9789_v36 = vpack.i.bf16 %v5377_v48, %v5375_v37 }
 0x53e   :  { %9745 = vrot.lane.b32.xlu1 %v16713_v41, %s10069_s17  ;;  %v9483_v6 = vunpack.i.h.bf16 %v9481_v3  ;;  %v9482_v19 = vunpack.i.l.bf16 %v9481_v3  ;;  %v5713_v47 = vsel %vm5708_vm14, %v16644_v43, %v9012_v5  ;;  %v5714_v51 = vsel %vm5708_vm14, %v16639_v22, %v9013_v55 }
 0x53f   :  { %v5906_v21 = vsel %vm5708_vm14, %v5842_v59, %v9457_v38  ;;  %v5907_v17 = vsel %vm5708_vm14, %v5843_v34, %v9458_v33  ;;  %9770 = vrot.lane.b32.xlu0 %v9769_v0, %s10071_s22  ;;  %v5576_v2 = vrot.slane %v16720_v46, 2  ;;  %v5575_v25 = vrot.slane %v16718_v44, 2  ;;  %v19235_v34 = vld [vmem:[#allocation187_spill] sm:$0xff] }
 0x540   :  { %v9466_v1 = vpop.permute.xlu1 %9465  ;;  %v5970_v62 = vsel %vm5773_vm15, %v5906_v21, %v9472_v14  ;;  %v5971_v11 = vsel %vm5773_vm15, %v5907_v17, %v9473_v61  ;;  %v8923_v33 = vunpack.i.h.bf16 %v19234_v16  ;;  %v8922_v38 = vunpack.i.l.bf16 %v19234_v16  ;;  %v19236_v14 = vld [vmem:[#allocation131_spill] sm:$0xff] }
 0x541   :  { %v9468_v23 = vunpack.i.h.bf16 %v9466_v1  ;;  %v9467_v50 = vunpack.i.l.bf16 %v9466_v1  ;;  %v6037_v20 = vpack.c.bf16 %v5971_v11, %v5970_v62  ;;  %v9491_v54 = vpop.permute.xlu0 %9490  ;;  %v9083_v10 = vunpack.i.h.bf16 %v19235_v34 }
 0x542   :  { %9755 = vrot.lane.b32.xlu1 %v16690_v18, %s10071_s22  ;;  %v19232_v18 = vld [vmem:[#allocation107_spill] sm:$0xff]  ;;  %v9082_v43 = vunpack.i.l.bf16 %v19235_v34  ;;  %v9784_v22 = vpack.i.bf16 %v16720_v46, %v16718_v44  ;;  %v5871_v49 = vsel %vm129_vm8, %v19236_v14, %v9483_v6  ;;  %v5870_v21 = vsel %vm129_vm8, %v19237_v35, %v9482_v19  ;;  %v10004_v46 = vld [vmem:[#allocation3 + $0x1b0] sm:$0xff] }
 0x543   :  { %6384 = vmatprep.mubr.bf16.mxu0 %v6037_v20  ;;  %v5804_v60 = vsel %vm5773_vm15, %v5739_v32, %v9467_v50  ;;  %v5805_v26 = vsel %vm5773_vm15, %v5740_v63, %v9468_v23  ;;  %v6032_v28 = vpack.c.bf16 %v19233_v52, %v19232_v18  ;;  %9780 = vrot.lane.b32.xlu0 %v9779_v8, %s10068_s1  ;;  %v9493_v0 = vunpack.i.h.bf16 %v9491_v54  ;;  %v10005_v23 = vld [vmem:[#allocation3 + $0x1b8] sm:$0xff] }
 0x544   :  { %v9476_v40 = vpop.permute.xlu1 %9475  ;;  %v6075_v42 = vpack.c.bf16 %v5805_v26, %v5804_v60  ;;  %v9492_v13 = vunpack.i.l.bf16 %v9491_v54  ;;  %v16798_v29 = vsel %vm1103_vm3, %v5575_v25, %v5576_v2  ;;  %v5578_v44 = vrot.slane %v16726_v27, 2  ;;  %v19238_v26 = vld [vmem:[#allocation116_spill] sm:$0xff]  ;;  %v19243_v25 = vld [vmem:[#allocation190_spill] sm:$0xff]  ;;  %v19245_v34 = vld [vmem:[#allocation163_spill] sm:$0xff] }
 0x545   :  { %v9478_v39 = vunpack.i.h.bf16 %v9476_v40  ;;  %v9477_v7 = vunpack.i.l.bf16 %v9476_v40  ;;  %v9501_v15 = vpop.permute.xlu0 %9500  ;;  %v5676_v1 = vsel %vm129_vm8, %v10004_v46, %v8922_v38  ;;  %v5677_v50 = vsel %vm129_vm8, %v10005_v23, %v8923_v33  ;;  %v19239_v40 = vld [vmem:[#allocation117_spill] sm:$0xff] }
 0x546   :  { %9765 = vrot.lane.b32.xlu1 %v16767_v30, %s10069_s17  ;;  %6489 = vmatmul.mubr.bf16.gmra.mrb[48].mxu1 %v6075_v42  ;;  %v5741_v27 = vsel %vm5708_vm14, %v5676_v1, %v9082_v43  ;;  %v16810_v32 = vsel %vm1103_vm3, %v5576_v2, %v5578_v44  ;;  %v9503_v63 = vunpack.i.h.bf16 %v9501_v15  ;;  %v9502_v54 = vunpack.i.l.bf16 %v9501_v15 }
 0x547   :  { %v5778_v45 = vsel %vm5773_vm15, %v5713_v47, %v9477_v7  ;;  %v5779_v24 = vsel %vm5773_vm15, %v5714_v51, %v9478_v39  ;;  %9790 = vrot.lane.b32.xlu0 %v9789_v36, %s10071_s22  ;;  %v5742_v8 = vsel %vm5708_vm14, %v5677_v50, %v9083_v10  ;;  %v6125_v60 = vpack.c.bf16 %v16810_v32, %v16798_v29  ;;  %v19240_v36 = vld [vmem:[#allocation171_spill] sm:$0xff]  ;;  %v19241_v47 = vld [vmem:[#allocation110_spill] sm:$0xff]  ;;  %v19242_v51 = vld [vmem:[#allocation16_spill] sm:$0xff] }
 0x548   :  { %v9486_v59 = vpop.permute.xlu1 %9485  ;;  %v6036_v61 = vpack.c.bf16 %v5779_v24, %v5778_v45  ;;  %v6035_v42 = vpack.c.bf16 %v19239_v40, %v19238_v26  ;;  %v8928_v6 = vunpack.i.h.bf16 %v19240_v36  ;;  %v8927_v19 = vunpack.i.l.bf16 %v19240_v36  ;;  %v19244_v45 = vld [vmem:[#allocation56_spill] sm:$0xff]  ;;  %v19250_v26 = vld [vmem:[#allocation21_spill] sm:$0xff] }
 0x549   :  { %v9488_v17 = vunpack.i.h.bf16 %v9486_v59  ;;  %v9487_v3 = vunpack.i.l.bf16 %v9486_v59  ;;  %v9511_v37 = vpop.permute.xlu0 %9510  ;;  %v6038_v2 = vpack.c.bf16 %v19242_v51, %v19241_v47  ;;  %v9088_v16 = vunpack.i.h.bf16 %v19243_v25 }
 0x54a   :  { %9775 = vrot.lane.b32.xlu1 %v16713_v41, %s10071_s22  ;;  %6385 = vmatmul.mubr.bf16.gmra.mrb[72].mxu0 %v6036_v61  ;;  %v9087_v33 = vunpack.i.l.bf16 %v19243_v25  ;;  %v5873_v24 = vsel %vm129_vm8, %v19244_v45, %v9503_v63  ;;  %v5872_v10 = vsel %vm129_vm8, %v19245_v34, %v9502_v54  ;;  %v9513_v43 = vunpack.i.h.bf16 %v9511_v37  ;;  %v10009_v34 = vld [vmem:[#allocation3 + $0x1e0] sm:$0xff] }
 0x54b   :  { %v5935_v62 = vsel %vm5708_vm14, %v5871_v49, %v9488_v17  ;;  %v5934_v11 = vsel %vm5708_vm14, %v5870_v21, %v9487_v3  ;;  %7448 = vmatprep.mubr.msk.bf16.mxu0 %vm129_vm8, %v6032_v28  ;;  %v9512_v59 = vunpack.i.l.bf16 %v9511_v37  ;;  %v10006_v49 = vld [vmem:[#allocation3 + $0x1d0] sm:$0xff] }
 0x54c   :  { %v9496_v41 = vpop.permute.xlu1 %9495  ;;  %v5998_v20 = vsel %vm5773_vm15, %v5934_v11, %v9492_v13  ;;  %v5999_v48 = vsel %vm5773_vm15, %v5935_v62, %v9493_v0  ;;  %v5679_v35 = vsel %vm129_vm8, %v10006_v49, %v8928_v6  ;;  %v10007_v0 = vld [vmem:[#allocation3 + $0x1c8] sm:$0xff]  ;;  %v19252_v6 = vld [vmem:[#allocation96_spill] sm:$0xff] }
 0x54d   :  { %v9498_v9 = vunpack.i.h.bf16 %v9496_v41  ;;  %v9497_v55 = vunpack.i.l.bf16 %v9496_v41  ;;  %v6079_v5 = vpack.c.bf16 %v5999_v48, %v5998_v20  ;;  %v9521_v18 = vpop.permute.xlu0 %9520  ;;  %v5744_v37 = vsel %vm5708_vm14, %v5679_v35, %v9088_v16  ;;  %v19246_v20 = vld [vmem:[#allocation34_spill] sm:$0xff]  ;;  %v19247_v48 = vld [vmem:[#allocation119_spill] sm:$0xff] }
 0x54e   :  { %9785 = vrot.lane.b32.xlu1 %v9784_v22, %s10069_s17  ;;  %v9523_v1 = vunpack.i.h.bf16 %v9521_v18  ;;  %v9522_v62 = vunpack.i.l.bf16 %v9521_v18 }
 0x54f   :  { %6496 = vmatprep.mubr.bf16.mxu1 %v6079_v5  ;;  %v5806_v52 = vsel %vm5773_vm15, %v5741_v27, %v9497_v55  ;;  %v5807_v28 = vsel %vm5773_vm15, %v5742_v8, %v9498_v9  ;;  %v6041_v27 = vpack.c.bf16 %v19247_v48, %v19246_v20  ;;  %v19248_v9 = vld [vmem:[#allocation134_spill] sm:$0xff]  ;;  %v19249_v8 = vld [vmem:[#allocation17_spill] sm:$0xff] }
 0x550   :  { %v9506_v39 = vpop.permute.xlu1 %9505  ;;  %v6078_v7 = vpack.c.bf16 %v5807_v28, %v5806_v52  ;;  %v8933_v55 = vunpack.i.h.bf16 %v19248_v9  ;;  %v8932_v5 = vunpack.i.l.bf16 %v19248_v9  ;;  %v6044_v40 = vpack.c.bf16 %v19250_v26, %v19249_v8 }
 0x551   :  { %v9508_v38 = vunpack.i.h.bf16 %v9506_v39  ;;  %v9507_v15 = vunpack.i.l.bf16 %v9506_v39  ;;  %v9531_v14 = vpop.permute.xlu0 %9530  ;;  %v19253_v39 = vld [vmem:[#allocation95_spill] sm:$0xff] }
 0x552   :  { %9795 = vrot.lane.b32.xlu1 %v16767_v30, %s10071_s22  ;;  %6497 = vmatmul.mubr.bf16.gmra.mrb[52].mxu1 %v6078_v7  ;;  %v5678_v30 = vsel %vm129_vm8, %v10007_v0, %v8927_v19  ;;  %v5875_v19 = vsel %vm129_vm8, %v19252_v6, %v9523_v1  ;;  %v5874_v7 = vsel %vm129_vm8, %v19253_v39, %v9522_v62  ;;  %v9533_v47 = vunpack.i.h.bf16 %v9531_v14  ;;  %v19254_v0 = vld [vmem:[#allocation122_spill] sm:$0xff]  ;;  %v10011_v39 = vld [vmem:[#allocation3 + $0x1f8] sm:$0xff] }
 0x553   :  { %v5937_v61 = vsel %vm5708_vm14, %v5873_v24, %v9508_v38  ;;  %v5936_v22 = vsel %vm5708_vm14, %v5872_v10, %v9507_v15  ;;  %7449 = vmatmul.mubr.msk.bf16.vlgmr.msra.gmra.mrb[76].mxu0 %vm129_vm8, %v6035_v42  ;;  %v5743_v11 = vsel %vm5708_vm14, %v5678_v30, %v9087_v33  ;;  %v19251_v42 = vld [vmem:[#allocation48_spill] sm:$0xff]  ;;  %v9532_v51 = vunpack.i.l.bf16 %v9531_v14  ;;  %v10008_v33 = vld [vmem:[#allocation3 + $0x1e8] sm:$0xff]  ;;  %v19255_v30 = vld [vmem:[#allocation123_spill] sm:$0xff] }
 0x554   :  { %7452 = vmatprep.mubr.msk.bf16.mxu0 %vm129_vm8, %v6038_v2  ;;  %v9516_v21 = vpop.permute.xlu1 %9515  ;;  %v6000_v17 = vsel %vm5773_vm15, %v5936_v22, %v9512_v59  ;;  %v6001_v3 = vsel %vm5773_vm15, %v5937_v61, %v9513_v43  ;;  %v9093_v18 = vunpack.i.h.bf16 %v19251_v42  ;;  %v9092_v52 = vunpack.i.l.bf16 %v19251_v42 }
 0x555   :  { %v9518_v13 = vunpack.i.h.bf16 %v9516_v21  ;;  %v9517_v44 = vunpack.i.l.bf16 %v9516_v21  ;;  %v6082_v46 = vpack.c.bf16 %v6001_v3, %v6000_v17  ;;  %v9541_v23 = vpop.permute.xlu0 %9540  ;;  %v5681_v38 = vsel %vm129_vm8, %v10008_v33, %v8933_v55  ;;  %v19260_v55 = vld [vmem:[#allocation74_spill] sm:$0xff] }
 0x556   :  { %v5680_v10 = vsel %vm129_vm8, %v10009_v34, %v8932_v5  ;;  %v9543_v22 = vunpack.i.h.bf16 %v9541_v23  ;;  %v9542_v14 = vunpack.i.l.bf16 %v9541_v23  ;;  %v5746_v35 = vsel %vm5708_vm14, %v5681_v38, %v9093_v18  ;;  %v19258_v23 = vld [vmem:[#allocation111_spill] sm:$0xff]  ;;  %v19262_v34 = vld [vmem:[#allocation145_spill] sm:$0xff] }
 0x557   :  { %6504 = vmatprep.mubr.bf16.mxu1 %v6082_v46  ;;  %v5808_v50 = vsel %vm5773_vm15, %v5743_v11, %v9517_v44  ;;  %v5809_v41 = vsel %vm5773_vm15, %v5744_v37, %v9518_v13  ;;  %v5745_v49 = vsel %vm5708_vm14, %v5680_v10, %v9092_v52  ;;  %v6047_v13 = vpack.c.bf16 %v19255_v30, %v19254_v0  ;;  %v19256_v44 = vld [vmem:[#allocation172_spill] sm:$0xff]  ;;  %v19257_v37 = vld [vmem:[#allocation118_spill] sm:$0xff]  ;;  %v19263_v10 = vld [vmem:[#allocation85_spill] sm:$0xff] }
 0x558   :  { %v9526_v63 = vpop.permute.xlu1 %9525  ;;  %v6081_v54 = vpack.c.bf16 %v5809_v41, %v5808_v50  ;;  %v8938_v46 = vunpack.i.h.bf16 %v19256_v44  ;;  %v8937_v1 = vunpack.i.l.bf16 %v19256_v44  ;;  %v6050_v50 = vpack.c.bf16 %v19258_v23, %v19257_v37  ;;  %v19259_v41 = vld [vmem:[#allocation192_spill] sm:$0xff] }
 0x559   :  { %v9528_v28 = vunpack.i.h.bf16 %v9526_v63  ;;  %v9527_v36 = vunpack.i.l.bf16 %v9526_v63  ;;  %v9551_v16 = vpop.permute.xlu0 %9550  ;;  %v9098_v20 = vunpack.i.h.bf16 %v19259_v41  ;;  %v9097_v48 = vunpack.i.l.bf16 %v19259_v41  ;;  %v19261_v63 = vld [vmem:[#allocation72_spill] sm:$0xff] }
 0x55a   :  { %6505 = vmatmul.mubr.bf16.gmra.mrb[56].mxu1 %v6081_v54  ;;  %v5877_v5 = vsel %vm129_vm8, %v19260_v55, %v9543_v22  ;;  %v5876_v54 = vsel %vm129_vm8, %v19261_v63, %v9542_v14  ;;  %v9553_v8 = vunpack.i.h.bf16 %v9551_v16  ;;  %v9552_v26 = vunpack.i.l.bf16 %v9551_v16  ;;  %v10010_v52 = vld [vmem:[#allocation3 + $0x200] sm:$0xff]  ;;  %v10013_v63 = vld [vmem:[#allocation3 + $0x210] sm:$0xff] }
 0x55b   :  { %v5939_v2 = vsel %vm5708_vm14, %v5875_v19, %v9528_v28  ;;  %v5938_v25 = vsel %vm5708_vm14, %v5874_v7, %v9527_v36  ;;  %7453 = vmatmul.mubr.msk.bf16.gmra.mrb[80].mxu0 %vm129_vm8, %v6041_v27  ;;  %v5683_v28 = vsel %vm129_vm8, %v10010_v52, %v8938_v46  ;;  %v5682_v7 = vsel %vm129_vm8, %v10011_v39, %v8937_v1  ;;  %v19268_v46 = vld [vmem:[#allocation140_spill] sm:$0xff] }
 0x55c   :  { %7456 = vmatprep.mubr.msk.bf16.mxu0 %vm129_vm8, %v6044_v40  ;;  %v9536_v15 = vpop.permute.xlu1 %9535  ;;  %v6002_v45 = vsel %vm5773_vm15, %v5938_v25, %v9532_v51  ;;  %v6003_v24 = vsel %vm5773_vm15, %v5939_v2, %v9533_v47  ;;  %v5747_v33 = vsel %vm5708_vm14, %v5682_v7, %v9097_v48  ;;  %v5748_v38 = vsel %vm5708_vm14, %v5683_v28, %v9098_v20  ;;  %v10012_v48 = vld [vmem:[#allocation3 + $0x218] sm:$0xff]  ;;  %v19270_v39 = vld [vmem:[#allocation152_spill] sm:$0xff]  ;;  %v19271_v7 = vld [vmem:[#allocation26_spill] sm:$0xff] }
 0x55d   :  { %v9538_v43 = vunpack.i.h.bf16 %v9536_v15  ;;  %v9537_v59 = vunpack.i.l.bf16 %v9536_v15  ;;  %v6085_v61 = vpack.c.bf16 %v6003_v24, %v6002_v45  ;;  %v9561_v21 = vpop.permute.xlu0 %9560 }
 0x55e   :  { %v9563_v25 = vunpack.i.h.bf16 %v9561_v21  ;;  %v9562_v16 = vunpack.i.l.bf16 %v9561_v21  ;;  %v19266_v21 = vld [vmem:[#allocation120_spill] sm:$0xff] }
 0x55f   :  { %6512 = vmatprep.mubr.bf16.mxu1 %v6085_v61  ;;  %v5810_v17 = vsel %vm5773_vm15, %v5745_v49, %v9537_v59  ;;  %v5811_v3 = vsel %vm5773_vm15, %v5746_v35, %v9538_v43  ;;  %v6053_v43 = vpack.c.bf16 %v19263_v10, %v19262_v34  ;;  %v19264_v59 = vld [vmem:[#allocation170_spill] sm:$0xff] }
 0x560   :  { %v9546_v62 = vpop.permute.xlu1 %9545  ;;  %v6084_v11 = vpack.c.bf16 %v5811_v3, %v5810_v17  ;;  %v8943_v61 = vunpack.i.h.bf16 %v19264_v59  ;;  %v8942_v22 = vunpack.i.l.bf16 %v19264_v59  ;;  %v19265_v35 = vld [vmem:[#allocation22_spill] sm:$0xff]  ;;  %v19267_v3 = vld [vmem:[#allocation189_spill] sm:$0xff]  ;;  %v5879_v1 = vsel %vm129_vm8, %v19268_v46, %v9563_v25 }
 0x561   :  { %v9548_v27 = vunpack.i.h.bf16 %v9546_v62  ;;  %v9547_v9 = vunpack.i.l.bf16 %v9546_v62  ;;  %v9571_v18 = vpop.permute.xlu0 %9570  ;;  %v6056_v17 = vpack.c.bf16 %v19266_v21, %v19265_v35  ;;  %v9103_v0 = vunpack.i.h.bf16 %v19267_v3  ;;  %v19269_v62 = vld [vmem:[#allocation141_spill] sm:$0xff] }
 0x562   :  { %6513 = vmatmul.mubr.bf16.gmra.mrb[60].mxu1 %v6084_v11  ;;  %v9102_v30 = vunpack.i.l.bf16 %v19267_v3  ;;  %v5878_v11 = vsel %vm129_vm8, %v19269_v62, %v9562_v16  ;;  %v9573_v37 = vunpack.i.h.bf16 %v9571_v18  ;;  %v9572_v23 = vunpack.i.l.bf16 %v9571_v18  ;;  %v10015_v62 = vld [vmem:[#allocation3 + $0x228] sm:$0xff] }
 0x563   :  { %v5941_v40 = vsel %vm5708_vm14, %v5877_v5, %v9548_v27  ;;  %v5940_v42 = vsel %vm5708_vm14, %v5876_v54, %v9547_v9  ;;  %7457 = vmatmul.mubr.msk.bf16.gmra.mrb[84].mxu0 %vm129_vm8, %v6047_v13  ;;  %v5685_v27 = vsel %vm129_vm8, %v10012_v48, %v8943_v61  ;;  %v5684_v54 = vsel %vm129_vm8, %v10013_v63, %v8942_v22  ;;  %v19276_v61 = vld [vmem:[#allocation139_spill] sm:$0xff] }
 0x564   :  { %7460 = vmatprep.mubr.msk.bf16.mxu0 %vm129_vm8, %v6050_v50  ;;  %v9556_v36 = vpop.permute.xlu1 %9555  ;;  %v6004_v6 = vsel %vm5773_vm15, %v5940_v42, %v9552_v26  ;;  %v6005_v19 = vsel %vm5773_vm15, %v5941_v40, %v9553_v8  ;;  %v5749_v52 = vsel %vm5708_vm14, %v5684_v54, %v9102_v30  ;;  %v5750_v28 = vsel %vm5708_vm14, %v5685_v27, %v9103_v0  ;;  %v10014_v30 = vld [vmem:[#allocation3 + $0x230] sm:$0xff]  ;;  %v19278_v63 = vld [vmem:[#allocation151_spill] sm:$0xff] }
 0x565   :  { %v9558_v47 = vunpack.i.h.bf16 %v9556_v36  ;;  %v9557_v51 = vunpack.i.l.bf16 %v9556_v36  ;;  %v6088_v2 = vpack.c.bf16 %v6005_v19, %v6004_v6  ;;  %v9581_v15 = vpop.permute.xlu0 %9580  ;;  %v19279_v54 = vld [vmem:[#allocation154_spill] sm:$0xff] }
 0x566   :  { %v9583_v42 = vunpack.i.h.bf16 %v9581_v15  ;;  %v9582_v18 = vunpack.i.l.bf16 %v9581_v15  ;;  %v19274_v15 = vld [vmem:[#allocation124_spill] sm:$0xff] }
 0x567   :  { %6520 = vmatprep.mubr.bf16.mxu1 %v6088_v2  ;;  %v5812_v45 = vsel %vm5773_vm15, %v5747_v33, %v9557_v51  ;;  %v5813_v24 = vsel %vm5773_vm15, %v5748_v38, %v9558_v47  ;;  %v6059_v47 = vpack.c.bf16 %v19271_v7, %v19270_v39  ;;  %v19272_v51 = vld [vmem:[#allocation174_spill] sm:$0xff]  ;;  %v19273_v38 = vld [vmem:[#allocation149_spill] sm:$0xff] }
 0x568   :  { %v9566_v14 = vpop.permute.xlu1 %9565  ;;  %v6087_v49 = vpack.c.bf16 %v5813_v24, %v5812_v45  ;;  %v8948_v2 = vunpack.i.h.bf16 %v19272_v51  ;;  %v8947_v25 = vunpack.i.l.bf16 %v19272_v51  ;;  %v6062_v45 = vpack.c.bf16 %v19274_v15, %v19273_v38  ;;  %v19275_v24 = vld [vmem:[#allocation193_spill] sm:$0xff] }
 0x569   :  { %v9568_v13 = vunpack.i.h.bf16 %v9566_v14  ;;  %v9567_v44 = vunpack.i.l.bf16 %v9566_v14  ;;  %v9591_v20 = vpop.permute.xlu0 %9590  ;;  %v9108_v34 = vunpack.i.h.bf16 %v19275_v24  ;;  %v9107_v10 = vunpack.i.l.bf16 %v19275_v24  ;;  %v19277_v14 = vld [vmem:[#allocation135_spill] sm:$0xff] }
 0x56a   :  { %6521 = vmatmul.mubr.bf16.gmra.mrb[64].mxu1 %v6087_v49  ;;  %v5881_v22 = vsel %vm129_vm8, %v19276_v61, %v9583_v42  ;;  %v5880_v49 = vsel %vm129_vm8, %v19277_v14, %v9582_v18  ;;  %v9593_v35 = vunpack.i.h.bf16 %v9591_v20  ;;  %v9592_v21 = vunpack.i.l.bf16 %v9591_v20  ;;  %v10017_v14 = vld [vmem:[#allocation3 + $0x240] sm:$0xff] }
 0x56b   :  { %v5943_v50 = vsel %vm5708_vm14, %v5879_v1, %v9568_v13  ;;  %v5942_v41 = vsel %vm5708_vm14, %v5878_v11, %v9567_v44  ;;  %7461 = vmatmul.mubr.msk.bf16.gmra.mrb[88].mxu0 %vm129_vm8, %v6053_v43  ;;  %v5687_v13 = vsel %vm129_vm8, %v10014_v30, %v8948_v2  ;;  %v5686_v11 = vsel %vm129_vm8, %v10015_v62, %v8947_v25  ;;  %v19284_v2 = vld [vmem:[#allocation84_spill] sm:$0xff]  ;;  %v19286_v62 = vld [vmem:[#allocation175_spill] sm:$0xff] }
 0x56c   :  { %7464 = vmatprep.mubr.msk.bf16.mxu0 %vm129_vm8, %v6056_v17  ;;  %v9576_v9 = vpop.permute.xlu1 %9575  ;;  %v6006_v55 = vsel %vm5773_vm15, %v5942_v41, %v9572_v23  ;;  %v6007_v5 = vsel %vm5773_vm15, %v5943_v50, %v9573_v37  ;;  %v5751_v48 = vsel %vm5708_vm14, %v5686_v11, %v9107_v10  ;;  %v5752_v27 = vsel %vm5708_vm14, %v5687_v13, %v9108_v34  ;;  %v10016_v10 = vld [vmem:[#allocation3 + $0x248] sm:$0xff] }
 0x56d   :  { %v9578_v8 = vunpack.i.h.bf16 %v9576_v9  ;;  %v9577_v26 = vunpack.i.l.bf16 %v9576_v9  ;;  %v6091_v40 = vpack.c.bf16 %v6007_v5, %v6006_v55  ;;  %v9601_v36 = vpop.permute.xlu0 %9600  ;;  %v8958_v11 = vunpack.i.h.bf16 %v19286_v62 }
 0x56e   :  { %v9603_v41 = vunpack.i.h.bf16 %v9601_v36  ;;  %v9602_v20 = vunpack.i.l.bf16 %v9601_v36  ;;  %v19282_v36 = vld [vmem:[#allocation148_spill] sm:$0xff] }
 0x56f   :  { %6528 = vmatprep.mubr.bf16.mxu1 %v6091_v40  ;;  %v5814_v6 = vsel %vm5773_vm15, %v5749_v52, %v9577_v26  ;;  %v5815_v19 = vsel %vm5773_vm15, %v5750_v28, %v9578_v8  ;;  %v6065_v8 = vpack.c.bf16 %v19279_v54, %v19278_v63  ;;  %v19280_v26 = vld [vmem:[#allocation147_spill] sm:$0xff]  ;;  %v19281_v28 = vld [vmem:[#allocation80_spill] sm:$0xff] }
 0x570   :  { %v9586_v16 = vpop.permute.xlu1 %9585  ;;  %v6090_v33 = vpack.c.bf16 %v5815_v19, %v5814_v6  ;;  %v8953_v40 = vunpack.i.h.bf16 %v19280_v26  ;;  %v8952_v42 = vunpack.i.l.bf16 %v19280_v26  ;;  %v6068_v6 = vpack.c.bf16 %v19282_v36, %v19281_v28  ;;  %v19283_v19 = vld [vmem:[#allocation191_spill] sm:$0xff]  ;;  %v19291_v26 = vld [vmem:[#allocation45_spill] sm:$0xff] }
 0x571   :  { %v9588_v43 = vunpack.i.h.bf16 %v9586_v16  ;;  %v9587_v59 = vunpack.i.l.bf16 %v9586_v16  ;;  %v9611_v0 = vpop.permute.xlu0 %9610  ;;  %v9113_v39 = vunpack.i.h.bf16 %v19283_v19  ;;  %v9112_v7 = vunpack.i.l.bf16 %v19283_v19  ;;  %v19285_v16 = vld [vmem:[#allocation115_spill] sm:$0xff] }
 0x572   :  { %6529 = vmatmul.mubr.bf16.gmra.mrb[68].mxu1 %v6090_v33  ;;  %v5883_v25 = vsel %vm129_vm8, %v19284_v2, %v9603_v41  ;;  %v5882_v33 = vsel %vm129_vm8, %v19285_v16, %v9602_v20  ;;  %v9613_v38 = vunpack.i.h.bf16 %v9611_v0  ;;  %v9612_v15 = vunpack.i.l.bf16 %v9611_v0  ;;  %v19287_v41 = vld [vmem:[#allocation125_spill] sm:$0xff]  ;;  %v19290_v54 = vld [vmem:[#allocation83_spill] sm:$0xff] }
 0x573   :  { %v5945_v17 = vsel %vm5708_vm14, %v5881_v22, %v9588_v43  ;;  %v5944_v3 = vsel %vm5708_vm14, %v5880_v49, %v9587_v59  ;;  %7465 = vmatmul.mubr.msk.bf16.gmra.mrb[92].mxu0 %vm129_vm8, %v6059_v47  ;;  %v5689_v43 = vsel %vm129_vm8, %v10016_v10, %v8953_v40  ;;  %v5688_v49 = vsel %vm129_vm8, %v10017_v14, %v8952_v42  ;;  %v19288_v20 = vld [vmem:[#allocation53_spill] sm:$0xff]  ;;  %v10019_v16 = vld [vmem:[#allocation3 + $0x258] sm:$0xff] }
 0x574   :  { %7468 = vmatprep.mubr.msk.bf16.mxu0 %vm129_vm8, %v6062_v45  ;;  %v9596_v44 = vpop.permute.xlu1 %9595  ;;  %v6008_v46 = vsel %vm5773_vm15, %v5944_v3, %v9592_v21  ;;  %v6009_v1 = vsel %vm5773_vm15, %v5945_v17, %v9593_v35  ;;  %v5753_v30 = vsel %vm5708_vm14, %v5688_v49, %v9112_v7  ;;  %v5754_v13 = vsel %vm5708_vm14, %v5689_v43, %v9113_v39  ;;  %v19292_v39 = vld [vmem:[#allocation51_spill] sm:$0xff]  ;;  %v19293_v7 = vld [vmem:[#allocation73_spill] sm:$0xff] }
 0x575   :  { %v9598_v37 = vunpack.i.h.bf16 %v9596_v44  ;;  %v9597_v23 = vunpack.i.l.bf16 %v9596_v44  ;;  %v6094_v50 = vpack.c.bf16 %v6009_v1, %v6008_v46  ;;  %v9621_v9 = vpop.permute.xlu0 %9620  ;;  %v19295_v14 = vld [vmem:[#allocation173_spill] sm:$0xff] }
 0x576   :  { %v9623_v3 = vunpack.i.h.bf16 %v9621_v9  ;;  %v9622_v0 = vunpack.i.l.bf16 %v9621_v9  ;;  %v8963_v49 = vunpack.i.h.bf16 %v19295_v14 }
 0x577   :  { %6536 = vmatprep.mubr.bf16.mxu1 %v6094_v50  ;;  %v5816_v55 = vsel %vm5773_vm15, %v5751_v48, %v9597_v23  ;;  %v5817_v5 = vsel %vm5773_vm15, %v5752_v27, %v9598_v37  ;;  %v8957_v37 = vunpack.i.l.bf16 %v19286_v62  ;;  %v6071_v48 = vpack.c.bf16 %v19288_v20, %v19287_v41  ;;  %v19289_v27 = vld [vmem:[#allocation196_spill] sm:$0xff] }
 0x578   :  { %v9606_v18 = vpop.permute.xlu1 %9605  ;;  %v6093_v52 = vpack.c.bf16 %v5817_v5, %v5816_v55  ;;  %v9118_v9 = vunpack.i.h.bf16 %v19289_v27  ;;  %v9117_v55 = vunpack.i.l.bf16 %v19289_v27  ;;  %v5884_v40 = vsel %vm129_vm8, %v19291_v26, %v9622_v0  ;;  %v19297_v0 = vld [vmem:[#allocation160_spill] sm:$0xff]  ;;  %v10021_v26 = vld [vmem:[#allocation3 + $0x270] sm:$0xff] }
 0x579   :  { %v9608_v47 = vunpack.i.h.bf16 %v9606_v18  ;;  %v9607_v51 = vunpack.i.l.bf16 %v9606_v18  ;;  %v9631_v34 = vpop.permute.xlu0 %9630 }
 0x57a   :  { %6537 = vmatmul.mubr.bf16.gmra.mrb[72].mxu1 %v6093_v52  ;;  %v9633_v42 = vunpack.i.h.bf16 %v9631_v34  ;;  %v9632_v18 = vunpack.i.l.bf16 %v9631_v34 }
 0x57b   :  { %v5947_v45 = vsel %vm5708_vm14, %v5883_v25, %v9608_v47  ;;  %v5946_v24 = vsel %vm5708_vm14, %v5882_v33, %v9607_v51  ;;  %7469 = vmatmul.mubr.msk.bf16.gmra.mrb[96].mxu0 %vm129_vm8, %v6065_v8  ;;  %v5885_v8 = vsel %vm129_vm8, %v19290_v54, %v9623_v3  ;;  %v19294_v47 = vpack.c.bf16 %v19292_v39, %v19293_v7  ;;  %v19296_v3 = vld [vmem:[#allocation27_spill] sm:$0xff]  ;;  %v19302_v7 = vld [vmem:[#allocation64_spill] sm:$0xff] }
 0x57c   :  { %7472 = vmatprep.mubr.msk.bf16.mxu0 %vm129_vm8, %v6068_v6  ;;  %v9616_v59 = vpop.permute.xlu1 %9615  ;;  %v6010_v61 = vsel %vm5773_vm15, %v5946_v24, %v9612_v15  ;;  %v6011_v22 = vsel %vm5773_vm15, %v5947_v45, %v9613_v38  ;;  %v10018_v6 = vld [vmem:[#allocation3 + $0x260] sm:$0xff]  ;;  %v5690_v33 = vsel %vm129_vm8, %v10019_v16, %v8957_v37  ;;  %v19301_v39 = vld [vmem:[#allocation67_spill] sm:$0xff] }
 0x57d   :  { %v9618_v35 = vunpack.i.h.bf16 %v9616_v59  ;;  %v9617_v21 = vunpack.i.l.bf16 %v9616_v59  ;;  %v6097_v17 = vpack.c.bf16 %v6011_v22, %v6010_v61  ;;  %v9641_v44 = vpop.permute.xlu0 %9640  ;;  %v5691_v19 = vsel %vm129_vm8, %v10018_v6, %v8958_v11  ;;  %v19299_v11 = vld [vmem:[#allocation88_spill] sm:$0xff] }
 0x57e   :  { %v9643_v24 = vunpack.i.h.bf16 %v9641_v44  ;;  %v9642_v34 = vunpack.i.l.bf16 %v9641_v44  ;;  %v5755_v10 = vsel %vm5708_vm14, %v5690_v33, %v9117_v55  ;;  %v5756_v43 = vsel %vm5708_vm14, %v5691_v19, %v9118_v9  ;;  %v10020_v55 = vld [vmem:[#allocation3 + $0x278] sm:$0xff] }
 0x57f   :  { %6544 = vmatprep.mubr.bf16.mxu1 %v6097_v17  ;;  %v5818_v46 = vsel %vm5773_vm15, %v5753_v30, %v9617_v21  ;;  %v5819_v1 = vsel %vm5773_vm15, %v5754_v13, %v9618_v35  ;;  %v8962_v35 = vunpack.i.l.bf16 %v19295_v14  ;;  %v6080_v30 = vpack.c.bf16 %v19297_v0, %v19296_v3  ;;  %v19298_v13 = vld [vmem:[#allocation162_spill] sm:$0xff]  ;;  %v19308_v14 = vld [vmem:[#allocation49_spill] sm:$0xff] }
 0x580   :  { %v9626_v23 = vpop.permute.xlu1 %9625  ;;  %v6096_v50 = vpack.c.bf16 %v5819_v1, %v5818_v46  ;;  %v9123_v44 = vunpack.i.h.bf16 %v19298_v13  ;;  %v9122_v46 = vunpack.i.l.bf16 %v19298_v13  ;;  %v5887_v37 = vsel %vm129_vm8, %v19299_v11, %v9643_v24  ;;  %v19306_v24 = vld [vmem:[#allocation200_spill] sm:$0xff] }
 0x581   :  { %v9628_v5 = vunpack.i.h.bf16 %v9626_v23  ;;  %v9627_v63 = vunpack.i.l.bf16 %v9626_v23  ;;  %v9651_v36 = vpop.permute.xlu0 %9650  ;;  %v19300_v23 = vld [vmem:[#allocation57_spill] sm:$0xff] }
 0x582   :  { %6545 = vmatmul.mubr.bf16.gmra.mrb[76].mxu1 %v6096_v50  ;;  %v5886_v50 = vsel %vm129_vm8, %v19300_v23, %v9642_v34  ;;  %v9653_v41 = vunpack.i.h.bf16 %v9651_v36  ;;  %v9652_v20 = vunpack.i.l.bf16 %v9651_v36  ;;  %v9128_v34 = vunpack.i.h.bf16 %v19306_v24 }
 0x583   :  { %v5949_v52 = vsel %vm5708_vm14, %v5885_v8, %v9628_v5  ;;  %v5948_v28 = vsel %vm5708_vm14, %v5884_v40, %v9627_v63  ;;  %7473 = vmatmul.mubr.msk.bf16.gmra.mrb[100].mxu0 %vm129_vm8, %v6071_v48  ;;  %v5693_v5 = vsel %vm129_vm8, %v10020_v55, %v8963_v49  ;;  %v5692_v40 = vsel %vm129_vm8, %v10021_v26, %v8962_v35  ;;  %v19311_v26 = vld [vmem:[#allocation19_spill] sm:$0xff] }
 0x584   :  { %7476 = vmatprep.mubr.msk.bf16.mxu0 %vm129_vm8, %v19294_v47  ;;  %v9636_v51 = vpop.permute.xlu1 %9635  ;;  %v6012_v2 = vsel %vm5773_vm15, %v5948_v28, %v9632_v18  ;;  %v6013_v25 = vsel %vm5773_vm15, %v5949_v52, %v9633_v42  ;;  %v5758_v28 = vsel %vm5708_vm14, %v5693_v5, %v9123_v44  ;;  %v6083_v47 = vpack.c.bf16 %v19302_v7, %v19301_v39  ;;  %v19315_v7 = vld [vmem:[#allocation65_spill] sm:$0xff] }
 0x585   :  { %v9638_v38 = vunpack.i.h.bf16 %v9636_v51  ;;  %v9637_v15 = vunpack.i.l.bf16 %v9636_v51  ;;  %v6100_v45 = vpack.c.bf16 %v6013_v25, %v6012_v2  ;;  %v9661_v59 = vpop.permute.xlu0 %9660  ;;  %v19303_v51 = vld [vmem:[#allocation177_spill] sm:$0xff] }
 0x586   :  { %v9663_v4 = vunpack.i.h.bf16 %v9661_v59  ;;  %v9662_v53 = vunpack.i.l.bf16 %v9661_v59  ;;  %v8968_v2 = vunpack.i.h.bf16 %v19303_v51  ;;  %v8967_v25 = vunpack.i.l.bf16 %v19303_v51  ;;  %v19316_v51 = vld [vmem:[#allocation101_spill] sm:$0xff] }
 0x587   :  { %6552 = vmatprep.mubr.bf16.mxu1 %v6100_v45  ;;  %v5820_v61 = vsel %vm5773_vm15, %v5755_v10, %v9637_v15  ;;  %v5821_v22 = vsel %vm5773_vm15, %v5756_v43, %v9638_v38  ;;  %v19304_v38 = vld [vmem:[#allocation62_spill] sm:$0xff]  ;;  %v19305_v15 = vld [vmem:[#allocation164_spill] sm:$0xff]  ;;  %v9127_v10 = vunpack.i.l.bf16 %v19306_v24 }
 0x588   :  { %v9646_v21 = vpop.permute.xlu1 %9645  ;;  %v6099_v17 = vpack.c.bf16 %v5821_v22, %v5820_v61  ;;  %v6086_v45 = vpack.c.bf16 %v19305_v15, %v19304_v38  ;;  %v19307_v61 = vld [vmem:[#allocation87_spill] sm:$0xff]  ;;  %v5888_v49 = vsel %vm129_vm8, %v19308_v14, %v9662_v53 }
 0x589   :  { %v9648_v1 = vunpack.i.h.bf16 %v9646_v21  ;;  %v9647_v62 = vunpack.i.l.bf16 %v9646_v21  ;;  %v9671_v9 = vpop.permute.xlu0 %9670  ;;  %v5889_v22 = vsel %vm129_vm8, %v19307_v61, %v9663_v4  ;;  %v19312_v4 = vld [vmem:[#allocation69_spill] sm:$0xff]  ;;  %v19313_v53 = vld [vmem:[#allocation127_spill] sm:$0xff] }
 0x58a   :  { %6553 = vmatmul.mubr.bf16.gmra.mrb[80].mxu1 %v6099_v17  ;;  %v9673_v35 = vunpack.i.h.bf16 %v9671_v9  ;;  %v9672_v21 = vunpack.i.l.bf16 %v9671_v9 }
 0x58b   :  { %v5951_v48 = vsel %vm5708_vm14, %v5887_v37, %v9648_v1  ;;  %v5950_v27 = vsel %vm5708_vm14, %v5886_v50, %v9647_v62  ;;  %7477 = vmatmul.mubr.msk.bf16.gmra.mrb[104].mxu0 %vm129_vm8, %v6077_v57  ;;  %v5757_v57 = vsel %vm5708_vm14, %v5692_v40, %v9122_v46  ;;  %v10023_v62 = vld [vmem:[#allocation3 + $0x288] sm:$0xff]  ;;  %v8973_v40 = vunpack.i.h.bf16 %v19311_v26 }
 0x58c   :  { %7480 = vmatprep.mubr.msk.bf16.mxu0 %vm129_vm8, %v6080_v30  ;;  %v9656_v63 = vpop.permute.xlu1 %9655  ;;  %v6014_v54 = vsel %vm5773_vm15, %v5950_v27, %v9652_v20  ;;  %v6015_v8 = vsel %vm5773_vm15, %v5951_v48, %v9653_v41  ;;  %v10022_v30 = vld [vmem:[#allocation3 + $0x290] sm:$0xff]  ;;  %v5694_v11 = vsel %vm129_vm8, %v10023_v62, %v8967_v25 }
 0x58d   :  { %v9658_v42 = vunpack.i.h.bf16 %v9656_v63  ;;  %v9657_v18 = vunpack.i.l.bf16 %v9656_v63  ;;  %v6103_v52 = vpack.c.bf16 %v6015_v8, %v6014_v54  ;;  %v9681_v36 = vpop.permute.xlu0 %9680  ;;  %v5695_v13 = vsel %vm129_vm8, %v10022_v30, %v8968_v2  ;;  %v19309_v63 = vld [vmem:[#allocation142_spill] sm:$0xff]  ;;  %v19310_v54 = vld [vmem:[#allocation132_spill] sm:$0xff] }
 0x58e   :  { %v9683_v41 = vunpack.i.h.bf16 %v9681_v36  ;;  %v9682_v20 = vunpack.i.l.bf16 %v9681_v36  ;;  %v5759_v48 = vsel %vm5708_vm14, %v5694_v11, %v9127_v10  ;;  %v5760_v27 = vsel %vm5708_vm14, %v5695_v13, %v9128_v34  ;;  %v19319_v62 = vld [vmem:[#allocation178_spill] sm:$0xff] }
 0x58f   :  { %6560 = vmatprep.mubr.bf16.mxu1 %v6103_v52  ;;  %v5822_v6 = vsel %vm5773_vm15, %v5757_v57, %v9657_v18  ;;  %v5823_v19 = vsel %vm5773_vm15, %v5758_v28, %v9658_v42  ;;  %v6089_v8 = vpack.c.bf16 %v19310_v54, %v19309_v63  ;;  %v8972_v42 = vunpack.i.l.bf16 %v19311_v26  ;;  %v19314_v28 = vld [vmem:[#allocation126_spill] sm:$0xff] }
 0x590   :  { %v9666_v16 = vpop.permute.xlu1 %9665  ;;  %v6102_v33 = vpack.c.bf16 %v5823_v19, %v5822_v6  ;;  %v6092_v57 = vpack.c.bf16 %v19313_v53, %v19312_v4  ;;  %v9133_v36 = vunpack.i.h.bf16 %v19314_v28  ;;  %v9132_v6 = vunpack.i.l.bf16 %v19314_v28  ;;  %v19323_v54 = vld [vmem:[#allocation90_spill] sm:$0xff] }
 0x591   :  { %v9668_v43 = vunpack.i.h.bf16 %v9666_v16  ;;  %v9667_v59 = vunpack.i.l.bf16 %v9666_v16  ;;  %v9691_v0 = vpop.permute.xlu0 %9690  ;;  %v5890_v2 = vsel %vm129_vm8, %v19316_v51, %v9682_v20  ;;  %v8978_v11 = vunpack.i.h.bf16 %v19319_v62  ;;  %v19321_v20 = vld [vmem:[#allocation37_spill] sm:$0xff]  ;;  %v19324_v26 = vld [vmem:[#allocation54_spill] sm:$0xff] }
 0x592   :  { %6561 = vmatmul.mubr.bf16.gmra.mrb[84].mxu1 %v6102_v33  ;;  %v9693_v25 = vunpack.i.h.bf16 %v9691_v0  ;;  %v9692_v16 = vunpack.i.l.bf16 %v9691_v0 }
 0x593   :  { %v5953_v17 = vsel %vm5708_vm14, %v5889_v22, %v9668_v43  ;;  %v5952_v3 = vsel %vm5708_vm14, %v5888_v49, %v9667_v59  ;;  %7481 = vmatmul.mubr.msk.bf16.gmra.mrb[108].mxu0 %vm129_vm8, %v6083_v47  ;;  %v5891_v47 = vsel %vm129_vm8, %v19315_v7, %v9683_v41  ;;  %v10025_v59 = vld [vmem:[#allocation3 + $0x2a0] sm:$0xff]  ;;  %v19320_v41 = vld [vmem:[#allocation98_spill] sm:$0xff] }
 0x594   :  { %7484 = vmatprep.mubr.msk.bf16.mxu0 %vm129_vm8, %v6086_v45  ;;  %v9676_v44 = vpop.permute.xlu1 %9675  ;;  %v6016_v46 = vsel %vm5773_vm15, %v5952_v3, %v9672_v21  ;;  %v6017_v1 = vsel %vm5773_vm15, %v5953_v17, %v9673_v35  ;;  %v10024_v45 = vld [vmem:[#allocation3 + $0x2a8] sm:$0xff]  ;;  %v5696_v61 = vsel %vm129_vm8, %v10025_v59, %v8972_v42 }
 0x595   :  { %v9678_v37 = vunpack.i.h.bf16 %v9676_v44  ;;  %v9677_v23 = vunpack.i.l.bf16 %v9676_v44  ;;  %v6106_v50 = vpack.c.bf16 %v6017_v1, %v6016_v46  ;;  %v9701_v9 = vpop.permute.xlu0 %9700  ;;  %v5697_v24 = vsel %vm129_vm8, %v10024_v45, %v8973_v40  ;;  %v19317_v44 = vld [vmem:[#allocation136_spill] sm:$0xff]  ;;  %v19318_v46 = vld [vmem:[#allocation39_spill] sm:$0xff]  ;;  %v19326_v59 = vld [vmem:[#allocation121_spill] sm:$0xff] }
 0x596   :  { %v9703_v35 = vunpack.i.h.bf16 %v9701_v9  ;;  %v9702_v21 = vunpack.i.l.bf16 %v9701_v9  ;;  %v5761_v17 = vsel %vm5708_vm14, %v5696_v61, %v9132_v6  ;;  %v5762_v3 = vsel %vm5708_vm14, %v5697_v24, %v9133_v36 }
 0x597   :  { %6568 = vmatprep.mubr.bf16.mxu1 %v6106_v50  ;;  %v5824_v55 = vsel %vm5773_vm15, %v5759_v48, %v9677_v23  ;;  %v5825_v5 = vsel %vm5773_vm15, %v5760_v27, %v9678_v37  ;;  %v6095_v1 = vpack.c.bf16 %v19318_v46, %v19317_v44  ;;  %v8977_v37 = vunpack.i.l.bf16 %v19319_v62  ;;  %v19322_v27 = vld [vmem:[#allocation201_spill] sm:$0xff] }
 0x598   :  { %v9686_v18 = vpop.permute.xlu1 %9685  ;;  %v6105_v52 = vpack.c.bf16 %v5825_v5, %v5824_v55  ;;  %v6098_v48 = vpack.c.bf16 %v19321_v20, %v19320_v41  ;;  %v9138_v9 = vunpack.i.h.bf16 %v19322_v27  ;;  %v9137_v55 = vunpack.i.l.bf16 %v19322_v27 }
 0x599   :  { %v9688_v19 = vunpack.i.h.bf16 %v9686_v18  ;;  %v9687_v39 = vunpack.i.l.bf16 %v9686_v18  ;;  %v9711_v15 = vpop.permute.xlu0 %9710  ;;  %v5892_v40 = vsel %vm129_vm8, %v19324_v26, %v9702_v21 }
 0x59a   :  { %6569 = vmatmul.mubr.bf16.gmra.mrb[88].mxu1 %v6105_v52  ;;  %v9713_v42 = vunpack.i.h.bf16 %v9711_v15  ;;  %v9712_v18 = vunpack.i.l.bf16 %v9711_v15 }
 0x59b   :  { %v5955_v33 = vsel %vm5708_vm14, %v5891_v47, %v9688_v19  ;;  %v5954_v38 = vsel %vm5708_vm14, %v5890_v2, %v9687_v39  ;;  %7485 = vmatmul.mubr.msk.bf16.gmra.mrb[112].mxu0 %vm129_vm8, %v6089_v8  ;;  %v5893_v8 = vsel %vm129_vm8, %v19323_v54, %v9703_v35  ;;  %v10027_v39 = vld [vmem:[#allocation3 + $0x2b8] sm:$0xff] }
 0x59c   :  { %7488 = vmatprep.mubr.msk.bf16.mxu0 %vm129_vm8, %v6092_v57  ;;  %v9696_v34 = vpop.permute.xlu1 %9695  ;;  %v6018_v10 = vsel %vm5773_vm15, %v5954_v38, %v9692_v16  ;;  %v6019_v43 = vsel %vm5773_vm15, %v5955_v33, %v9693_v25  ;;  %v10026_v57 = vld [vmem:[#allocation3 + $0x2c0] sm:$0xff]  ;;  %v5698_v7 = vsel %vm129_vm8, %v10027_v39, %v8977_v37  ;;  %v19331_v37 = vld [vmem:[#allocation58_spill] sm:$0xff] }
 0x59d   :  { %v9698_v22 = vunpack.i.h.bf16 %v9696_v34  ;;  %v9697_v14 = vunpack.i.l.bf16 %v9696_v34  ;;  %v6109_v49 = vpack.c.bf16 %v6019_v43, %v6018_v10  ;;  %v9721_v0 = vpop.permute.xlu0 %9720  ;;  %v5699_v28 = vsel %vm129_vm8, %v10026_v57, %v8978_v11  ;;  %v19325_v43 = vld [vmem:[#allocation82_spill] sm:$0xff] }
 0x59e   :  { %v9723_v25 = vunpack.i.h.bf16 %v9721_v0  ;;  %v9722_v16 = vunpack.i.l.bf16 %v9721_v0  ;;  %v5763_v38 = vsel %vm5708_vm14, %v5698_v7, %v9137_v55  ;;  %v5764_v15 = vsel %vm5708_vm14, %v5699_v28, %v9138_v9  ;;  %v19329_v0 = vld [vmem:[#allocation81_spill] sm:$0xff] }
 0x59f   :  { %6576 = vmatprep.mubr.bf16.mxu1 %v6109_v49  ;;  %v5826_v30 = vsel %vm5773_vm15, %v5761_v17, %v9697_v14  ;;  %v5827_v13 = vsel %vm5773_vm15, %v5762_v3, %v9698_v22  ;;  %v6101_v61 = vpack.c.bf16 %v19326_v59, %v19325_v43  ;;  %v19327_v22 = vld [vmem:[#allocation176_spill] sm:$0xff]  ;;  %v19337_v43 = vld [vmem:[#allocation47_spill] sm:$0xff] }
 0x5a0   :  { %v9706_v23 = vpop.permute.xlu1 %9705  ;;  %v6108_v50 = vpack.c.bf16 %v5827_v13, %v5826_v30  ;;  %v8983_v14 = vunpack.i.h.bf16 %v19327_v22  ;;  %v8982_v49 = vunpack.i.l.bf16 %v19327_v22  ;;  %v19328_v3 = vld [vmem:[#allocation68_spill] sm:$0xff]  ;;  %v19330_v13 = vld [vmem:[#allocation197_spill] sm:$0xff] }
 0x5a1   :  { %v9708_v5 = vunpack.i.h.bf16 %v9706_v23  ;;  %v9707_v63 = vunpack.i.l.bf16 %v9706_v23  ;;  %v9731_v53 = vpop.permute.xlu0 %9730  ;;  %v6104_v30 = vpack.c.bf16 %v19329_v0, %v19328_v3  ;;  %v9143_v44 = vunpack.i.h.bf16 %v19330_v13  ;;  %v19339_v3 = vld [vmem:[#allocation75_spill] sm:$0xff] }
 0x5a2   :  { %6577 = vmatmul.mubr.bf16.gmra.mrb[92].mxu1 %v6108_v50  ;;  %v9142_v46 = vunpack.i.l.bf16 %v19330_v13  ;;  %v5895_v23 = vsel %vm129_vm8, %v19331_v37, %v9723_v25  ;;  %v19332_v50 = vld [vmem:[#allocation106_spill] sm:$0xff]  ;;  %v9733_v20 = vunpack.i.h.bf16 %v9731_v53 }
 0x5a3   :  { %v5957_v52 = vsel %vm5708_vm14, %v5893_v8, %v9708_v5  ;;  %v5956_v4 = vsel %vm5708_vm14, %v5892_v40, %v9707_v63  ;;  %7489 = vmatmul.mubr.msk.bf16.gmra.mrb[116].mxu0 %vm129_vm8, %v6095_v1  ;;  %v5894_v41 = vsel %vm129_vm8, %v19332_v50, %v9722_v16  ;;  %v10028_v5 = vld [vmem:[#allocation3 + $0x2d8] sm:$0xff]  ;;  %v10029_v40 = vld [vmem:[#allocation3 + $0x2d0] sm:$0xff] }
 0x5a4   :  { %7492 = vmatprep.mubr.msk.bf16.mxu0 %vm129_vm8, %v6098_v48  ;;  %v9716_v36 = vpop.permute.xlu1 %9715  ;;  %v6020_v6 = vsel %vm5773_vm15, %v5956_v4, %v9712_v18  ;;  %v6021_v19 = vsel %vm5773_vm15, %v5957_v52, %v9713_v42  ;;  %v9732_v48 = vunpack.i.l.bf16 %v9731_v53  ;;  %v5701_v63 = vsel %vm129_vm8, %v10028_v5, %v8983_v14  ;;  %v19335_v16 = vld [vmem:[#allocation182_spill] sm:$0xff] }
 0x5a5   :  { %v9718_v47 = vunpack.i.h.bf16 %v9716_v36  ;;  %v9717_v51 = vunpack.i.l.bf16 %v9716_v36  ;;  %v6112_v2 = vpack.c.bf16 %v6021_v19, %v6020_v6  ;;  %v9741_v45 = vpop.permute.xlu0 %9740  ;;  %v5700_v42 = vsel %vm129_vm8, %v10029_v40, %v8982_v49  ;;  %v10030_v37 = vld [vmem:[#allocation3 + $0x2f0] sm:$0xff] }
 0x5a6   :  { %v17082_v33 = vpop.f32.mrb[0].mxu1  ;;  %v9743_v53 = vunpack.i.h.bf16 %v9741_v45  ;;  %v9742_v57 = vunpack.i.l.bf16 %v9741_v45  ;;  %v5765_v36 = vsel %vm5708_vm14, %v5700_v42, %v9142_v46  ;;  %v5766_v6 = vsel %vm5708_vm14, %v5701_v63, %v9143_v44 }
 0x5a7   :  { %v6396_v24 = vpop.f32.mrb[1].mxu1  ;;  %6584 = vmatprep.mubr.bf16.mxu1 %v6112_v2  ;;  %v5828_v34 = vsel %vm5773_vm15, %v5763_v38, %v9717_v51  ;;  %v5829_v10 = vsel %vm5773_vm15, %v5764_v15, %v9718_v47  ;;  %v19333_v51 = vld [vmem:[#allocation61_spill] sm:$0xff]  ;;  %v19334_v2 = vld [vmem:[#allocation102_spill] sm:$0xff]  ;;  %v8988_v38 = vunpack.i.h.bf16 %v19335_v16  ;;  %v8987_v15 = vunpack.i.l.bf16 %v19335_v16 }
 0x5a8   :  { %v9726_v35 = vpop.permute.xlu1 %9725  ;;  %v17092_v21 = vpop.f32.mrb[2].mxu1  ;;  %v6111_v17 = vpack.c.bf16 %v5829_v10, %v5828_v34  ;;  %v6107_v25 = vpack.c.bf16 %v19334_v2, %v19333_v51  ;;  %v19336_v10 = vld [vmem:[#allocation146_spill] sm:$0xff]  ;;  %v5897_v0 = vsel %vm129_vm8, %v19339_v3, %v9743_v53  ;;  %v19344_v51 = vld [vmem:[#allocation32_spill] sm:$0xff] }
 0x5a9   :  { %v9728_v1 = vunpack.i.h.bf16 %v9726_v35  ;;  %v9727_v62 = vunpack.i.l.bf16 %v9726_v35  ;;  %v6399_v11 = vpop.f32.mrb[3].mxu1  ;;  %v9751_v55 = vpop.permute.xlu0 %9750  ;;  %v6110_v59 = vpack.c.bf16 %v19337_v43, %v19336_v10  ;;  %v9153_v2 = vunpack.i.h.bf16 %v19344_v51  ;;  %v19346_v43 = vld [vmem:[#allocation112_spill] sm:$0xff] }
 0x5aa   :  { %6585 = vmatmul.mubr.bf16.gmra.mrb[96].mxu1 %v6111_v17  ;;  %v9753_v44 = vunpack.i.h.bf16 %v9751_v55  ;;  %v9752_v46 = vunpack.i.l.bf16 %v9751_v55 }
 0x5ab   :  { %v5959_v27 = vsel %vm5708_vm14, %v5895_v23, %v9728_v1  ;;  %v5958_v9 = vsel %vm5708_vm14, %v5894_v41, %v9727_v62  ;;  %7493 = vmatmul.mubr.msk.bf16.gmra.mrb[120].mxu0 %vm129_vm8, %v6101_v61  ;;  %v19338_v61 = vld [vmem:[#allocation203_spill] sm:$0xff]  ;;  %v5703_v23 = vsel %vm129_vm8, %v10030_v37, %v8988_v38 }
 0x5ac   :  { %7496 = vmatprep.mubr.msk.bf16.mxu0 %vm129_vm8, %v6104_v30  ;;  %v9736_v54 = vpop.permute.xlu1 %9735  ;;  %v6022_v8 = vsel %vm5773_vm15, %v5958_v9, %v9732_v48  ;;  %v6023_v26 = vsel %vm5773_vm15, %v5959_v27, %v9733_v20  ;;  %v9148_v22 = vunpack.i.h.bf16 %v19338_v61  ;;  %v9147_v14 = vunpack.i.l.bf16 %v19338_v61  ;;  %v19340_v30 = vld [vmem:[#allocation55_spill] sm:$0xff]  ;;  %v10031_v48 = vld [vmem:[#allocation3 + $0x2e8] sm:$0xff] }
 0x5ad   :  { %v9738_v18 = vunpack.i.h.bf16 %v9736_v54  ;;  %v9737_v52 = vunpack.i.l.bf16 %v9736_v54  ;;  %v6115_v4 = vpack.c.bf16 %v6023_v26, %v6022_v8  ;;  %v9761_v19 = vpop.permute.xlu0 %9760  ;;  %v5896_v13 = vsel %vm129_vm8, %v19340_v30, %v9742_v57 }
 0x5ae   :  { %v17110_v28 = vpop.f32.mrb[4].mxu1  ;;  %v5702_v27 = vsel %vm129_vm8, %v10031_v48, %v8987_v15  ;;  %v9763_v63 = vunpack.i.h.bf16 %v9761_v19  ;;  %v9762_v54 = vunpack.i.l.bf16 %v9761_v19  ;;  %v5768_v40 = vsel %vm5708_vm14, %v5703_v23, %v9148_v22 }
 0x5af   :  { %v6404_v39 = vpop.f32.mrb[5].mxu1  ;;  %6592 = vmatprep.mubr.bf16.mxu1 %v6115_v4  ;;  %v5830_v7 = vsel %vm5773_vm15, %v5765_v36, %v9737_v52  ;;  %v5831_v47 = vsel %vm5773_vm15, %v5766_v6, %v9738_v18  ;;  %v5767_v26 = vsel %vm5708_vm14, %v5702_v27, %v9147_v14  ;;  %v19341_v4 = vld [vmem:[#allocation35_spill] sm:$0xff] }
 0x5b0   :  { %v9746_v45 = vpop.permute.xlu1 %9745  ;;  %v17120_v24 = vpop.f32.mrb[6].mxu1  ;;  %v6114_v34 = vpack.c.bf16 %v5831_v47, %v5830_v7  ;;  %v8993_v53 = vunpack.i.h.bf16 %v19341_v4  ;;  %v8992_v57 = vunpack.i.l.bf16 %v19341_v4  ;;  %v19342_v39 = vld [vmem:[#allocation105_spill] sm:$0xff]  ;;  %v19343_v7 = vld [vmem:[#allocation99_spill] sm:$0xff] }
 0x5b1   :  { %v9748_v49 = vunpack.i.h.bf16 %v9746_v45  ;;  %v9747_v35 = vunpack.i.l.bf16 %v9746_v45  ;;  %v6407_v17 = vpop.f32.mrb[7].mxu1  ;;  %v9771_v11 = vpop.permute.xlu0 %9770  ;;  %v6116_v47 = vpack.c.bf16 %v19343_v7, %v19342_v39  ;;  %v19351_v39 = vld [vmem:[#allocation204_spill] sm:$0xff] }
 0x5b2   :  { %6593 = vmatmul.mubr.bf16.gmra.mrb[100].mxu1 %v6114_v34  ;;  %v19345_v34 = vld [vmem:[#allocation113_spill] sm:$0xff]  ;;  %v9773_v61 = vunpack.i.h.bf16 %v9771_v11  ;;  %v9772_v22 = vunpack.i.l.bf16 %v9771_v11  ;;  %v9158_v7 = vunpack.i.h.bf16 %v19351_v39 }
 0x5b3   :  { %v5961_v1 = vsel %vm5708_vm14, %v5897_v0, %v9748_v49  ;;  %v5960_v62 = vsel %vm5708_vm14, %v5896_v13, %v9747_v35  ;;  %7497 = vmatmul.mubr.msk.bf16.gmra.mrb[124].mxu0 %vm129_vm8, %v6107_v25  ;;  %v9152_v25 = vunpack.i.l.bf16 %v19344_v51  ;;  %v5899_v10 = vsel %vm129_vm8, %v19345_v34, %v9763_v63  ;;  %v19347_v35 = vld [vmem:[#allocation71_spill] sm:$0xff]  ;;  %v19348_v17 = vld [vmem:[#allocation133_spill] sm:$0xff]  ;;  %v10034_v34 = vld [vmem:[#allocation3 + $0x320] sm:$0xff] }
 0x5b4   :  { %7500 = vmatprep.mubr.msk.bf16.mxu0 %vm129_vm8, %v6110_v59  ;;  %v9756_v50 = vpop.permute.xlu1 %9755  ;;  %v6024_v41 = vsel %vm5773_vm15, %v5960_v62, %v9752_v46  ;;  %v6025_v20 = vsel %vm5773_vm15, %v5961_v1, %v9753_v44  ;;  %v5898_v59 = vsel %vm129_vm8, %v19346_v43, %v9762_v54  ;;  %v19349_v3 = vpack.c.bf16 %v19347_v35, %v19348_v17  ;;  %v10032_v0 = vld [vmem:[#allocation3 + $0x308] sm:$0xff]  ;;  %v10033_v1 = vld [vmem:[#allocation3 + $0x300] sm:$0xff]  ;;  %v19350_v54 = vld [vmem:[#allocation183_spill] sm:$0xff] }
 0x5b5   :  { %v9758_v9 = vunpack.i.h.bf16 %v9756_v50  ;;  %v9757_v55 = vunpack.i.l.bf16 %v9756_v50  ;;  %v6118_v5 = vpack.c.bf16 %v6025_v20, %v6024_v41  ;;  %v9781_v16 = vpop.permute.xlu0 %9780  ;;  %v5705_v30 = vsel %vm129_vm8, %v10032_v0, %v8993_v53 }
 0x5b6   :  { %v17138_v8 = vpop.f32.mrb[8].mxu1  ;;  %v5704_v62 = vsel %vm129_vm8, %v10033_v1, %v8992_v57  ;;  %v9783_v41 = vunpack.i.h.bf16 %v9781_v16  ;;  %v9782_v20 = vunpack.i.l.bf16 %v9781_v16  ;;  %v8997_v53 = vunpack.i.l.bf16 %v19350_v54 }
 0x5b7   :  { %v6412_v42 = vpop.f32.mrb[9].mxu1  ;;  %6600 = vmatprep.mubr.bf16.mxu1 %v6118_v5  ;;  %v5832_v18 = vsel %vm5773_vm15, %v5767_v26, %v9757_v55  ;;  %v5833_v52 = vsel %vm5773_vm15, %v5768_v40, %v9758_v9  ;;  %v5769_v27 = vsel %vm5708_vm14, %v5704_v62, %v9152_v25  ;;  %v5770_v9 = vsel %vm5708_vm14, %v5705_v30, %v9153_v2 }
 0x5b8   :  { %v9766_v36 = vpop.permute.xlu1 %9765  ;;  %v17146_v6 = vpop.f32.mrb[10].mxu1  ;;  %v6117_v19 = vpack.c.bf16 %v5833_v52, %v5832_v18  ;;  %v8998_v26 = vunpack.i.h.bf16 %v19350_v54  ;;  %v5901_v51 = vsel %vm129_vm8, %v16730_v31, %v9783_v41  ;;  %v5900_v2 = vsel %vm129_vm8, %v16716_v56, %v9782_v20 }
 0x5b9   :  { %v9768_v38 = vunpack.i.h.bf16 %v9766_v36  ;;  %v9767_v15 = vunpack.i.l.bf16 %v9766_v36  ;;  %v6415_v45 = vpop.f32.mrb[11].mxu1  ;;  %v9791_v50 = vpop.permute.xlu0 %9790  ;;  %v19355_v43 = vpack.c.bf16 %v19231_v12, %v19230_v58 }
 0x5ba   :  { %6601 = vmatmul.mubr.bf16.gmra.mrb[104].mxu1 %v6117_v19  ;;  %v9793_v18 = vunpack.i.h.bf16 %v9791_v50  ;;  %v9792_v52 = vunpack.i.l.bf16 %v9791_v50 }
 0x5bb   :  { %v5963_v14 = vsel %vm5708_vm14, %v5899_v10, %v9768_v38  ;;  %v5962_v49 = vsel %vm5708_vm14, %v5898_v59, %v9767_v15  ;;  %7501 = vmatmul.mubr.msk.bf16.gmra.mrb[128].mxu0 %vm129_vm8, %v19349_v3  ;;  %v19352_v38 = vld [vmem:[#allocation128_spill] sm:$0xff]  ;;  %v5707_v10 = vsel %vm129_vm8, %v10034_v34, %v8998_v26 }
 0x5bc   :  { %7504 = vmatprep.mubr.msk.bf16.mxu0 %vm129_vm8, %v6116_v47  ;;  %v9776_v13 = vpop.permute.xlu1 %9775  ;;  %v6026_v44 = vsel %vm5773_vm15, %v5962_v49, %v9772_v22  ;;  %v6027_v46 = vsel %vm5773_vm15, %v5963_v14, %v9773_v61  ;;  %v9157_v47 = vunpack.i.l.bf16 %v19351_v39  ;;  %v19353_v15 = vld [vmem:[#allocation60_spill] sm:$0xff]  ;;  %v10035_v61 = vld [vmem:[#allocation3 + $0x318] sm:$0xff]  ;;  %v5772_v0 = vsel %vm5708_vm14, %v5707_v10, %v9158_v7 }
 0x5bd   :  { %v9778_v11 = vunpack.i.h.bf16 %v9776_v13  ;;  %v9777_v37 = vunpack.i.l.bf16 %v9776_v13  ;;  %v6121_v23 = vpack.c.bf16 %v6027_v46, %v6026_v44  ;;  %v19354_v45 = vpack.c.bf16 %v19352_v38, %v19353_v15 }
 0x5be   :  { %v17167_v48 = vpop.f32.mrb[12].mxu1  ;;  %v5706_v22 = vsel %vm129_vm8, %v10035_v61, %v8997_v53 }
 0x5bf   :  { %v6420_v55 = vpop.f32.mrb[13].mxu1  ;;  %6608 = vmatprep.mubr.bf16.mxu1 %v6121_v23  ;;  %v5834_v5 = vsel %vm5773_vm15, %v5769_v27, %v9777_v37  ;;  %v5835_v63 = vsel %vm5773_vm15, %v5770_v9, %v9778_v11  ;;  %v5771_v3 = vsel %vm5708_vm14, %v5706_v22, %v9157_v47 }
 0x5c0   :  { %v9786_v40 = vpop.permute.xlu1 %9785  ;;  %v17174_v42 = vpop.f32.mrb[14].mxu1  ;;  %v6120_v4 = vpack.c.bf16 %v5835_v63, %v5834_v5 }
 0x5c1   :  { %v9788_v57 = vunpack.i.h.bf16 %v9786_v40  ;;  %v9787_v36 = vunpack.i.l.bf16 %v9786_v40  ;;  %v6423_v19 = vpop.f32.mrb[15].mxu1 }
 0x5c2   :  { %6609 = vmatmul.mubr.bf16.gmra.mrb[108].mxu1 %v6120_v4 }
 0x5c3   :  { %v5965_v25 = vsel %vm5708_vm14, %v5901_v51, %v9788_v57  ;;  %v5964_v16 = vsel %vm5708_vm14, %v5900_v2, %v9787_v36  ;;  %7505 = vmatmul.mubr.msk.bf16.gmra.mrb[132].mxu0 %vm129_vm8, %v19354_v45 }
 0x5c4   :  { %7508 = vmatprep.mubr.msk.bf16.mxu0 %vm129_vm8, %v19355_v43  ;;  %v9796_v31 = vpop.permute.xlu1 %9795  ;;  %v6028_v56 = vsel %vm5773_vm15, %v5964_v16, %v9792_v52  ;;  %v6029_v59 = vsel %vm5773_vm15, %v5965_v25, %v9793_v18 }
 0x5c5   :  { %v9798_v14 = vunpack.i.h.bf16 %v9796_v31  ;;  %v9797_v49 = vunpack.i.l.bf16 %v9796_v31  ;;  %v6124_v35 = vpack.c.bf16 %v6029_v59, %v6028_v56 }
 0x5c6   :  { %v17197_v17 = vpop.f32.mrb[16].mxu1 }
 0x5c7   :  { %v6428_v58 = vpop.f32.mrb[17].mxu1  ;;  %6616 = vmatprep.mubr.bf16.mxu1 %v6124_v35  ;;  %v5836_v12 = vsel %vm5773_vm15, %v5771_v3, %v9797_v49  ;;  %v5837_v30 = vsel %vm5773_vm15, %v5772_v0, %v9798_v14  ;;  %v17244_v14 = vld [vmem:[%s17482_s3 + $0x1] ss:$0 sm:$0xff]  ;;  %s10072_s3 = smov [#allocation5]  }
 0x5c8   :  { %v17203_v13 = vpop.f32.mrb[18].mxu1  ;;  %v6123_v44 = vpack.c.bf16 %v5837_v30, %v5836_v12  ;;  %s7047_s17 = sshll.u32 %s10072_s3, 4  ;;  %s7048_s17 = int_to_ptr.vmem [resolvable:$true] %s7047_s17 }
 0x5c9   :  { %v6431_v46 = vpop.f32.mrb[19].mxu1  ;;  %s10036_s6 = scalar_lea.vmem %s7048_s17, 8192  ;;  %p10041_p1 = scmp.lt.s32.totalorder %s7048_s17, %s7048_s17 }
 0x5ca   :  { %6617 = vmatmul.mubr.bf16.gmra.mrb[112].mxu1 %v6123_v44  ;;  %p10037_p0 = scmp.ne.s32.totalorder %s7048_s17, %s10036_s6  ;;  %p10042_p2 = scmp.lt.s32.totalorder %s10036_s6, %s10036_s6 }
 0x5cb   :  { %7509 = vmatmul.mubr.msk.bf16.gmra.mrb[136].mxu0 %vm129_vm8, %v6125_v60 }
 0x5cc   :  { %p10043_p3 = por %p10042_p2, %p10041_p1 }
 0x5ce   :  { %v17209_v1 = vpop.f32.mrb[20].mxu1  ;;  %p10044_p4 = pnand %p10043_p3, %p10037_p0 }
 0x5cf   :  { %v6436_v62 = vpop.f32.mrb[21].mxu1 }
 0x5d0   :  { %v17211_v11 = vpop.f32.mrb[22].mxu1 }
 0x5d1   :  { %v6439_v37 = vpop.f32.mrb[23].mxu1 }
 0x5d6   :  { %v17213_v23 = vpop.f32.mrb[24].mxu1 }
 0x5d7   :  { %v6444_v50 = vpop.f32.mrb[25].mxu1 }
 0x5d8   :  { %v17215_v41 = vpop.f32.mrb[26].mxu1 }
 0x5d9   :  { %v6447_v20 = vpop.f32.mrb[27].mxu1 }
 0x5de   :  { %v17217_v27 = vpop.f32.mrb[28].mxu1 }
 0x5df   :  { %v6452_v9 = vpop.f32.mrb[29].mxu1 }
 0x5e0   :  { %v17219_v55 = vpop.f32.mrb[30].mxu1 }
 0x5e1   :  { %v6455_v29 = vpop.f32.mrb[31].mxu1 }
 0x5e6   :  { %v17221_v32 = vpop.f32.mrb[32].mxu1 }
 0x5e7   :  { %v6460_v60 = vpop.f32.mrb[33].mxu1 }
 0x5e8   :  { %v17223_v5 = vpop.f32.mrb[34].mxu1 }
 0x5e9   :  { %v6463_v63 = vpop.f32.mrb[35].mxu1 }
 0x5ee   :  { %v17225_v54 = vpop.f32.mrb[36].mxu1 }
 0x5ef   :  { %v6468_v26 = vpop.f32.mrb[37].mxu1 }
 0x5f0   :  { %v17227_v40 = vpop.f32.mrb[38].mxu1 }
 0x5f1   :  { %v6471_v18 = vpop.f32.mrb[39].mxu1 }
 0x5fa   :  { %v17229_v52 = vpop.f32.mrb[40].mxu1 }
 0x5fb   :  { %v6476_v4 = vpop.f32.mrb[41].mxu1 }
 0x5fc   :  { %v17231_v53 = vpop.f32.mrb[42].mxu1 }
 0x5fd   :  { %v6479_v57 = vpop.f32.mrb[43].mxu1 }
 0x5fe   :  { %v6370_v36 = vpop.f32.mrb[64].mxu0  ;;  %v6395_v57 = vadd.f32 %v17244_v14, %v17082_v33 }
 0x5ff   :  { %v6372_v19 = vpop.f32.mrb[65].mxu0  ;;  %v6371_v3 = vadd.f32 %v17244_v14, %v6370_v36 }
 0x600   :  { %v6373_v39 = vpop.f32.mrb[66].mxu0 }
 0x601   :  { %v6375_v7 = vpop.f32.mrb[67].mxu0  ;;  %v6374_v62 = vadd.f32 %v17244_v14, %v6373_v39 }
 0x609   :  { %v17233_v47 = vpop.f32.mrb[44].mxu1 }
 0x60a   :  { %v6484_v51 = vpop.f32.mrb[45].mxu1 }
 0x60b   :  { %v17235_v2 = vpop.f32.mrb[46].mxu1  ;;  %v6398_v51 = vadd.f32 %v17244_v14, %v17092_v21 }
 0x60c   :  { %v6487_v25 = vpop.f32.mrb[47].mxu1 }
 0x60d   :  { %v6378_v16 = vpop.f32.mrb[68].mxu0 }
 0x60e   :  { %v6380_v38 = vpop.f32.mrb[69].mxu0  ;;  %v6379_v49 = vadd.f32 %v17244_v14, %v6378_v16 }
 0x60f   :  { %v6381_v15 = vpop.f32.mrb[70].mxu0 }
 0x610   :  { %v6383_v45 = vpop.f32.mrb[71].mxu0  ;;  %v6382_v12 = vadd.f32 %v17244_v14, %v6381_v15 }
 0x619   :  { %v17237_v34 = vpop.f32.mrb[48].mxu1 }
 0x61a   :  { %v6492_v10 = vpop.f32.mrb[49].mxu1 }
 0x61b   :  { %v17239_v43 = vpop.f32.mrb[50].mxu1 }
 0x61c   :  { %v6495_v31 = vpop.f32.mrb[51].mxu1 }
 0x61d   :  { %v6386_v56 = vpop.f32.mrb[72].mxu0 }
 0x61e   :  { %v6388_v59 = vpop.f32.mrb[73].mxu0  ;;  %v6387_v19 = vadd.f32 %v17244_v14, %v6386_v56 }
 0x61f   :  { %v6389_v61 = vpop.f32.mrb[74].mxu0 }
 0x620   :  { %v6391_v22 = vpop.f32.mrb[75].mxu0  ;;  %v6390_v15 = vadd.f32 %v17244_v14, %v6389_v61 }
 0x625   :  { %v17247_v35 = vpop.f32.mrb[52].mxu1 }
 0x626   :  { %v7450_v0 = vpop.f32.mrb[76].mxu0  ;;  %v6500_v58 = vpop.f32.mrb[53].mxu1 }
 0x627   :  { %v6668_v30 = vadd.f32 %v7450_v0, %v6379_v49  ;;  %v6659_v44 = vpop.f32.mrb[77].mxu0  ;;  %v17251_v46 = vpop.f32.mrb[54].mxu1  ;;  %v6411_v0 = vadd.f32 %v17244_v14, %v17138_v8  ;;  %v6403_v58 = vadd.f32 %v17244_v14, %v17110_v28  ;;  %v6406_v8 = vadd.f32 %v17244_v14, %v17120_v24 }
 0x628   :  { %v6660_v37 = vadd.f32 %v6659_v44, %v6371_v3  ;;  %v7451_v50 = vpop.f32.mrb[78].mxu0  ;;  %v6503_v20 = vpop.f32.mrb[55].mxu1  ;;  %v6414_v44 = vadd.f32 %v17244_v14, %v17146_v6 }
 0x629   :  { %v6916_v9 = vmax.f32 %v6668_v30, 0.0  ;;  %v6671_v29 = vadd.f32 %v7451_v50, %v6382_v12  ;;  %v6662_v60 = vpop.f32.mrb[79].mxu0 }
 0x62a   :  { %v6914_v63 = vmax.f32 %v6660_v37, 0.0  ;;  %v6663_v26 = vadd.f32 %v6662_v60, %v6374_v62 }
 0x62b   :  { %6980 = vst.msk [vmem:[#allocation5 + $0x10] sm:$0xff] %vm129_vm8, %v6916_v9  ;;  %v6917_v18 = vmax.f32 %v6671_v29, 0.0 }
 0x62c   :  { %6978 = vst.msk [vmem:[#allocation5] sm:$0xff] %vm129_vm8, %v6914_v63  ;;  %v6915_v4 = vmax.f32 %v6663_v26, 0.0 }
 0x62d   :  { %6981 = vst.msk [vmem:[#allocation5 + $0x18] sm:$0xff] %vm129_vm8, %v6917_v18  ;;  %v17259_v36 = vpop.f32.mrb[56].mxu1 }
 0x62e   :  { %6979 = vst.msk [vmem:[#allocation5 + $0x8] sm:$0xff] %vm129_vm8, %v6915_v4  ;;  %v7454_v39 = vpop.f32.mrb[80].mxu0  ;;  %v6508_v7 = vpop.f32.mrb[57].mxu1 }
 0x62f   :  { %v6684_v25 = vadd.f32 %v7454_v39, %v6395_v57  ;;  %v6675_v16 = vpop.f32.mrb[81].mxu0  ;;  %v17265_v38 = vpop.f32.mrb[58].mxu1  ;;  %v6427_v57 = vadd.f32 %v17244_v14, %v17197_v17  ;;  %v6422_v17 = vadd.f32 %v17244_v14, %v17174_v42 }
 0x630   :  { %v6676_v33 = vadd.f32 %v6675_v16, %v6387_v19  ;;  %v7455_v45 = vpop.f32.mrb[82].mxu0  ;;  %v6511_v10 = vpop.f32.mrb[59].mxu1  ;;  %v6419_v19 = vadd.f32 %v17244_v14, %v17167_v48 }
 0x631   :  { %v6920_v31 = vmax.f32 %v6684_v25, 0.0  ;;  %v6687_v59 = vadd.f32 %v7455_v45, %v6398_v51  ;;  %v6678_v22 = vpop.f32.mrb[83].mxu0  ;;  %v6430_v51 = vadd.f32 %v17244_v14, %v17203_v13 }
 0x632   :  { %v6918_v56 = vmax.f32 %v6676_v33, 0.0  ;;  %v6679_v49 = vadd.f32 %v6678_v22, %v6390_v15 }
 0x633   :  { %6984 = vst.msk [vmem:[#allocation5 + $0x30] sm:$0xff] %vm129_vm8, %v6920_v31  ;;  %v6921_v3 = vmax.f32 %v6687_v59, 0.0 }
 0x634   :  { %6982 = vst.msk [vmem:[#allocation5 + $0x20] sm:$0xff] %vm129_vm8, %v6918_v56  ;;  %v6919_v21 = vmax.f32 %v6679_v49, 0.0 }
 0x635   :  { %6985 = vst.msk [vmem:[#allocation5 + $0x38] sm:$0xff] %vm129_vm8, %v6921_v3  ;;  %v17273_v61 = vpop.f32.mrb[60].mxu1  ;;  %v6443_v3 = vadd.f32 %v17244_v14, %v17213_v23  ;;  %v6438_v23 = vadd.f32 %v17244_v14, %v17211_v11 }
 0x636   :  { %6983 = vst.msk [vmem:[#allocation5 + $0x28] sm:$0xff] %vm129_vm8, %v6919_v21  ;;  %v7458_v12 = vpop.f32.mrb[84].mxu0  ;;  %v6516_v30 = vpop.f32.mrb[61].mxu1  ;;  %v6435_v21 = vadd.f32 %v17244_v14, %v17209_v1 }
 0x637   :  { %v6700_v62 = vadd.f32 %v7458_v12, %v6411_v0  ;;  %v6691_v37 = vpop.f32.mrb[85].mxu0  ;;  %v17280_v50 = vpop.f32.mrb[62].mxu1  ;;  %v6446_v12 = vadd.f32 %v17244_v14, %v17215_v41 }
 0x638   :  { %v6692_v20 = vadd.f32 %v6691_v37, %v6403_v58  ;;  %v7459_v9 = vpop.f32.mrb[86].mxu0  ;;  %v6519_v29 = vpop.f32.mrb[63].mxu1 }
 0x639   :  { %v6924_v60 = vmax.f32 %v6700_v62, 0.0  ;;  %v6703_v63 = vadd.f32 %v7459_v9, %v6414_v44  ;;  %v6694_v28 = vpop.f32.mrb[87].mxu0 }
 0x63a   :  { %v6922_v26 = vmax.f32 %v6692_v20, 0.0  ;;  %v6695_v18 = vadd.f32 %v6694_v28, %v6406_v8 }
 0x63b   :  { %6988 = vst.msk [vmem:[#allocation5 + $0x50] sm:$0xff] %vm129_vm8, %v6924_v60  ;;  %v6925_v4 = vmax.f32 %v6703_v63, 0.0 }
 0x63c   :  { %6986 = vst.msk [vmem:[#allocation5 + $0x40] sm:$0xff] %vm129_vm8, %v6922_v26  ;;  %v6923_v6 = vmax.f32 %v6695_v18, 0.0  ;;  %v6459_v26 = vadd.f32 %v17244_v14, %v17221_v32  ;;  %v6451_v18 = vadd.f32 %v17244_v14, %v17217_v27  ;;  %v6454_v32 = vadd.f32 %v17244_v14, %v17219_v55 }
 0x63d   :  { %6989 = vst.msk [vmem:[#allocation5 + $0x58] sm:$0xff] %vm129_vm8, %v6925_v4  ;;  %v17289_v24 = vpop.f32.mrb[64].mxu1 }
 0x63e   :  { %6987 = vst.msk [vmem:[#allocation5 + $0x48] sm:$0xff] %vm129_vm8, %v6923_v6  ;;  %v7462_v39 = vpop.f32.mrb[88].mxu0  ;;  %v6524_v7 = vpop.f32.mrb[65].mxu1 }
 0x63f   :  { %v6716_v25 = vadd.f32 %v7462_v39, %v6427_v57  ;;  %v6707_v16 = vpop.f32.mrb[89].mxu0  ;;  %v17296_v15 = vpop.f32.mrb[66].mxu1  ;;  %v6462_v57 = vadd.f32 %v17244_v14, %v17223_v5 }
 0x640   :  { %v6708_v33 = vadd.f32 %v6707_v16, %v6419_v19  ;;  %v7463_v45 = vpop.f32.mrb[90].mxu0  ;;  %v6527_v10 = vpop.f32.mrb[67].mxu1 }
 0x641   :  { %v6928_v31 = vmax.f32 %v6716_v25, 0.0  ;;  %v6719_v59 = vadd.f32 %v7463_v45, %v6430_v51  ;;  %v6710_v48 = vpop.f32.mrb[91].mxu0 }
 0x642   :  { %v6926_v22 = vmax.f32 %v6708_v33, 0.0  ;;  %v6711_v56 = vadd.f32 %v6710_v48, %v6422_v17  ;;  %v6467_v48 = vadd.f32 %v17244_v14, %v17225_v54 }
 0x643   :  { %6992 = vst.msk [vmem:[#allocation5 + $0x70] sm:$0xff] %vm129_vm8, %v6928_v31  ;;  %v6929_v49 = vmax.f32 %v6719_v59, 0.0  ;;  %v6475_v59 = vadd.f32 %v17244_v14, %v17229_v52  ;;  %v6470_v52 = vadd.f32 %v17244_v14, %v17227_v40 }
 0x644   :  { %6990 = vst.msk [vmem:[#allocation5 + $0x60] sm:$0xff] %vm129_vm8, %v6926_v22  ;;  %v6927_v13 = vmax.f32 %v6711_v56, 0.0 }
 0x645   :  { %6993 = vst.msk [vmem:[#allocation5 + $0x78] sm:$0xff] %vm129_vm8, %v6929_v49  ;;  %v17305_v42 = vpop.f32.mrb[68].mxu1  ;;  %v6478_v49 = vadd.f32 %v17244_v14, %v17231_v53 }
 0x646   :  { %6991 = vst.msk [vmem:[#allocation5 + $0x68] sm:$0xff] %vm129_vm8, %v6927_v13  ;;  %v7466_v0 = vpop.f32.mrb[92].mxu0  ;;  %v6532_v58 = vpop.f32.mrb[69].mxu1 }
 0x647   :  { %v6732_v30 = vadd.f32 %v7466_v0, %v6443_v3  ;;  %v6723_v44 = vpop.f32.mrb[93].mxu0  ;;  %v17312_v62 = vpop.f32.mrb[70].mxu1 }
 0x648   :  { %v6724_v37 = vadd.f32 %v6723_v44, %v6435_v21  ;;  %v7467_v8 = vpop.f32.mrb[94].mxu0  ;;  %v6535_v20 = vpop.f32.mrb[71].mxu1 }
 0x649   :  { %v6932_v9 = vmax.f32 %v6732_v30, 0.0  ;;  %v6735_v29 = vadd.f32 %v7467_v8, %v6446_v12  ;;  %v6726_v1 = vpop.f32.mrb[95].mxu0  ;;  %v6491_v20 = vadd.f32 %v17244_v14, %v17237_v34  ;;  %v6486_v34 = vadd.f32 %v17244_v14, %v17235_v2 }
 0x64a   :  { %v6930_v60 = vmax.f32 %v6724_v37, 0.0  ;;  %v6727_v63 = vadd.f32 %v6726_v1, %v6438_v23 }
 0x64b   :  { %6996 = vst.msk [vmem:[#allocation5 + $0x90] sm:$0xff] %vm129_vm8, %v6932_v9  ;;  %v6933_v28 = vmax.f32 %v6735_v29, 0.0  ;;  %v6483_v9 = vadd.f32 %v17244_v14, %v17233_v47 }
 0x64c   :  { %6994 = vst.msk [vmem:[#allocation5 + $0x80] sm:$0xff] %vm129_vm8, %v6930_v60  ;;  %v6931_v41 = vmax.f32 %v6727_v63, 0.0  ;;  %v6494_v60 = vadd.f32 %v17244_v14, %v17239_v43 }
 0x64d   :  { %6997 = vst.msk [vmem:[#allocation5 + $0x98] sm:$0xff] %vm129_vm8, %v6933_v28  ;;  %v17321_v11 = vpop.f32.mrb[72].mxu1 }
 0x64e   :  { %6995 = vst.msk [vmem:[#allocation5 + $0x88] sm:$0xff] %vm129_vm8, %v6931_v41  ;;  %v7470_v4 = vpop.f32.mrb[96].mxu0  ;;  %v6540_v6 = vpop.f32.mrb[73].mxu1 }
 0x64f   :  { %v6748_v19 = vadd.f32 %v7470_v4, %v6459_v26  ;;  %v6739_v39 = vpop.f32.mrb[97].mxu0  ;;  %v17328_v7 = vpop.f32.mrb[74].mxu1 }
 0x650   :  { %v6740_v51 = vadd.f32 %v6739_v39, %v6451_v18  ;;  %v7471_v25 = vpop.f32.mrb[98].mxu0  ;;  %v6543_v16 = vpop.f32.mrb[75].mxu1 }
 0x651   :  { %v6936_v17 = vmax.f32 %v6748_v19, 0.0  ;;  %v6751_v33 = vadd.f32 %v7471_v25, %v6462_v57  ;;  %v6742_v27 = vpop.f32.mrb[99].mxu0  ;;  %v6499_v25 = vadd.f32 %v17244_v14, %v17247_v35 }
 0x652   :  { %v6934_v45 = vmax.f32 %v6740_v51, 0.0  ;;  %v6743_v10 = vadd.f32 %v6742_v27, %v6454_v32  ;;  %v6507_v51 = vadd.f32 %v17244_v14, %v17259_v36  ;;  %v6502_v36 = vadd.f32 %v17244_v14, %v17251_v46 }
 0x653   :  { %7000 = vst.msk [vmem:[#allocation5 + $0xb0] sm:$0xff] %vm129_vm8, %v6936_v17  ;;  %v6937_v31 = vmax.f32 %v6751_v33, 0.0  ;;  %v6510_v33 = vadd.f32 %v17244_v14, %v17265_v38 }
 0x654   :  { %6998 = vst.msk [vmem:[#allocation5 + $0xa0] sm:$0xff] %vm129_vm8, %v6934_v45  ;;  %v6935_v5 = vmax.f32 %v6743_v10, 0.0 }
 0x655   :  { %7001 = vst.msk [vmem:[#allocation5 + $0xb8] sm:$0xff] %vm129_vm8, %v6937_v31  ;;  %v17337_v55 = vpop.f32.mrb[76].mxu1 }
 0x656   :  { %6999 = vst.msk [vmem:[#allocation5 + $0xa8] sm:$0xff] %vm129_vm8, %v6935_v5  ;;  %v7474_v22 = vpop.f32.mrb[100].mxu0  ;;  %v6548_v56 = vpop.f32.mrb[77].mxu1 }
 0x657   :  { %v6764_v13 = vadd.f32 %v7474_v22, %v6475_v59  ;;  %v6755_v3 = vpop.f32.mrb[101].mxu0  ;;  %v17344_v21 = vpop.f32.mrb[78].mxu1 }
 0x658   :  { %v6756_v0 = vadd.f32 %v6755_v3, %v6467_v48  ;;  %v7475_v58 = vpop.f32.mrb[102].mxu0  ;;  %v6551_v12 = vpop.f32.mrb[79].mxu1  ;;  %v6523_v3 = vadd.f32 %v17244_v14, %v17289_v24  ;;  %v6518_v24 = vadd.f32 %v17244_v14, %v17280_v50 }
 0x659   :  { %v6940_v30 = vmax.f32 %v6764_v13, 0.0  ;;  %v6767_v44 = vadd.f32 %v7475_v58, %v6478_v49  ;;  %v6758_v54 = vpop.f32.mrb[103].mxu0  ;;  %v6526_v12 = vadd.f32 %v17244_v14, %v17296_v15 }
 0x65a   :  { %v6938_v23 = vmax.f32 %v6756_v0, 0.0  ;;  %v6759_v37 = vadd.f32 %v6758_v54, %v6470_v52  ;;  %v6515_v52 = vadd.f32 %v17244_v14, %v17273_v61 }
 0x65b   :  { %7004 = vst.msk [vmem:[#allocation5 + $0xd0] sm:$0xff] %vm129_vm8, %v6940_v30  ;;  %v6941_v8 = vmax.f32 %v6767_v44, 0.0 }
 0x65c   :  { %7002 = vst.msk [vmem:[#allocation5 + $0xc0] sm:$0xff] %vm129_vm8, %v6938_v23  ;;  %v6939_v53 = vmax.f32 %v6759_v37, 0.0 }
 0x65d   :  { %7005 = vst.msk [vmem:[#allocation5 + $0xd8] sm:$0xff] %vm129_vm8, %v6941_v8  ;;  %v17353_v40 = vpop.f32.mrb[80].mxu1 }
 0x65e   :  { %7003 = vst.msk [vmem:[#allocation5 + $0xc8] sm:$0xff] %vm129_vm8, %v6939_v53  ;;  %v7478_v29 = vpop.f32.mrb[104].mxu0  ;;  %v6556_v1 = vpop.f32.mrb[81].mxu1 }
 0x65f   :  { %v6780_v63 = vadd.f32 %v7478_v29, %v6491_v20  ;;  %v6771_v28 = vpop.f32.mrb[105].mxu0  ;;  %v17360_v41 = vpop.f32.mrb[82].mxu1 }
 0x660   :  { %v6772_v26 = vadd.f32 %v6771_v28, %v6483_v9  ;;  %v7479_v18 = vpop.f32.mrb[106].mxu0  ;;  %v6559_v4 = vpop.f32.mrb[83].mxu1 }
 0x661   :  { %v6944_v6 = vmax.f32 %v6780_v63, 0.0  ;;  %v6783_v57 = vadd.f32 %v7479_v18, %v6494_v60  ;;  %v6774_v47 = vpop.f32.mrb[107].mxu0  ;;  %v6539_v60 = vadd.f32 %v17244_v14, %v17321_v11  ;;  %v6531_v63 = vadd.f32 %v17244_v14, %v17305_v42 }
 0x662   :  { %v6942_v19 = vmax.f32 %v6772_v26, 0.0  ;;  %v6775_v39 = vadd.f32 %v6774_v47, %v6486_v34  ;;  %v6542_v26 = vadd.f32 %v17244_v14, %v17328_v7  ;;  %v6534_v11 = vadd.f32 %v17244_v14, %v17312_v62 }
 0x663   :  { %7008 = vst.msk [vmem:[#allocation5 + $0xf0] sm:$0xff] %vm129_vm8, %v6944_v6  ;;  %v6945_v32 = vmax.f32 %v6783_v57, 0.0 }
 0x664   :  { %7006 = vst.msk [vmem:[#allocation5 + $0xe0] sm:$0xff] %vm129_vm8, %v6942_v19  ;;  %v6943_v43 = vmax.f32 %v6775_v39, 0.0 }
 0x665   :  { %7009 = vst.msk [vmem:[#allocation5 + $0xf8] sm:$0xff] %vm129_vm8, %v6945_v32  ;;  %v17369_v2 = vpop.f32.mrb[84].mxu1 }
 0x666   :  { %7007 = vst.msk [vmem:[#allocation5 + $0xe8] sm:$0xff] %vm129_vm8, %v6943_v43  ;;  %v7482_v16 = vpop.f32.mrb[108].mxu0  ;;  %v6564_v17 = vpop.f32.mrb[85].mxu1 }
 0x667   :  { %v6796_v27 = vadd.f32 %v7482_v16, %v6507_v51  ;;  %v6787_v45 = vpop.f32.mrb[109].mxu0  ;;  %v17376_v10 = vpop.f32.mrb[86].mxu1  ;;  %v6555_v16 = vadd.f32 %v17244_v14, %v17353_v40  ;;  %v6547_v17 = vadd.f32 %v17244_v14, %v17337_v55 }
 0x668   :  { %v6788_v31 = vadd.f32 %v6787_v45, %v6499_v25  ;;  %v7483_v5 = vpop.f32.mrb[110].mxu0  ;;  %v6567_v59 = vpop.f32.mrb[87].mxu1  ;;  %v6558_v45 = vadd.f32 %v17244_v14, %v17360_v41 }
 0x669   :  { %v6948_v48 = vmax.f32 %v6796_v27, 0.0  ;;  %v6799_v22 = vadd.f32 %v7483_v5, %v6510_v33  ;;  %v6790_v35 = vpop.f32.mrb[111].mxu0  ;;  %v6550_v59 = vadd.f32 %v17244_v14, %v17344_v21 }
 0x66a   :  { %v6946_v56 = vmax.f32 %v6788_v31, 0.0  ;;  %v6791_v49 = vadd.f32 %v6790_v35, %v6502_v36 }
 0x66b   :  { %7012 = vst.msk [vmem:[#allocation5 + $0x110] sm:$0xff] %vm129_vm8, %v6948_v48  ;;  %v6949_v13 = vmax.f32 %v6799_v22, 0.0 }
 0x66c   :  { %7010 = vst.msk [vmem:[#allocation5 + $0x100] sm:$0xff] %vm129_vm8, %v6946_v56  ;;  %v6947_v38 = vmax.f32 %v6791_v49, 0.0 }
 0x66d   :  { %7013 = vst.msk [vmem:[#allocation5 + $0x118] sm:$0xff] %vm129_vm8, %v6949_v13  ;;  %v17385_v46 = vpop.f32.mrb[88].mxu1 }
 0x66e   :  { %7011 = vst.msk [vmem:[#allocation5 + $0x108] sm:$0xff] %vm129_vm8, %v6947_v38  ;;  %v7486_v0 = vpop.f32.mrb[112].mxu0  ;;  %v6572_v58 = vpop.f32.mrb[89].mxu1 }
 0x66f   :  { %v6812_v30 = vadd.f32 %v7486_v0, %v6523_v3  ;;  %v6803_v44 = vpop.f32.mrb[113].mxu0  ;;  %v17392_v54 = vpop.f32.mrb[90].mxu1  ;;  %v6571_v3 = vadd.f32 %v17244_v14, %v17385_v46 }
 0x670   :  { %v6804_v23 = vadd.f32 %v6803_v44, %v6515_v52  ;;  %v7487_v37 = vpop.f32.mrb[114].mxu0  ;;  %v6575_v8 = vpop.f32.mrb[91].mxu1  ;;  %v6563_v52 = vadd.f32 %v17244_v14, %v17369_v2 }
 0x671   :  { %v6952_v53 = vmax.f32 %v6812_v30, 0.0  ;;  %v6815_v20 = vadd.f32 %v7487_v37, %v6526_v12  ;;  %v6806_v61 = vpop.f32.mrb[115].mxu0  ;;  %v6574_v12 = vadd.f32 %v17244_v14, %v17392_v54 }
 0x672   :  { %v6950_v9 = vmax.f32 %v6804_v23, 0.0  ;;  %v6807_v29 = vadd.f32 %v6806_v61, %v6518_v24  ;;  %v6566_v23 = vadd.f32 %v17244_v14, %v17376_v10 }
 0x673   :  { %7016 = vst.msk [vmem:[#allocation5 + $0x130] sm:$0xff] %vm129_vm8, %v6952_v53  ;;  %v6953_v1 = vmax.f32 %v6815_v20, 0.0 }
 0x674   :  { %7014 = vst.msk [vmem:[#allocation5 + $0x120] sm:$0xff] %vm129_vm8, %v6950_v9  ;;  %v6951_v15 = vmax.f32 %v6807_v29, 0.0 }
 0x675   :  { %7017 = vst.msk [vmem:[#allocation5 + $0x138] sm:$0xff] %vm129_vm8, %v6953_v1  ;;  %v17401_v50 = vpop.f32.mrb[92].mxu1 }
 0x676   :  { %7015 = vst.msk [vmem:[#allocation5 + $0x128] sm:$0xff] %vm129_vm8, %v6951_v15  ;;  %v7490_v28 = vpop.f32.mrb[116].mxu0  ;;  %v6580_v34 = vpop.f32.mrb[93].mxu1  ;;  %v6579_v10 = vadd.f32 %v17244_v14, %v17401_v50 }
 0x677   :  { %v6828_v18 = vadd.f32 %v7490_v28, %v6539_v60  ;;  %v6819_v4 = vpop.f32.mrb[117].mxu0  ;;  %v17408_v6 = vpop.f32.mrb[94].mxu1 }
 0x678   :  { %v6820_v57 = vadd.f32 %v6819_v4, %v6531_v63  ;;  %v7491_v47 = vpop.f32.mrb[118].mxu0  ;;  %v6583_v19 = vpop.f32.mrb[95].mxu1  ;;  %v6582_v4 = vadd.f32 %v17244_v14, %v17408_v6 }
 0x679   :  { %v6956_v39 = vmax.f32 %v6828_v18, 0.0  ;;  %v6831_v32 = vadd.f32 %v7491_v47, %v6542_v26  ;;  %v6822_v42 = vpop.f32.mrb[119].mxu0 }
 0x67a   :  { %v6954_v43 = vmax.f32 %v6820_v57, 0.0  ;;  %v6823_v51 = vadd.f32 %v6822_v42, %v6534_v11 }
 0x67b   :  { %7020 = vst.msk [vmem:[#allocation5 + $0x150] sm:$0xff] %vm129_vm8, %v6956_v39  ;;  %v6957_v25 = vmax.f32 %v6831_v32, 0.0 }
 0x67c   :  { %7018 = vst.msk [vmem:[#allocation5 + $0x140] sm:$0xff] %vm129_vm8, %v6954_v43  ;;  %v6955_v7 = vmax.f32 %v6823_v51, 0.0 }
 0x67d   :  { %7021 = vst.msk [vmem:[#allocation5 + $0x158] sm:$0xff] %vm129_vm8, %v6957_v25  ;;  %v6586_v62 = vpop.f32.mrb[96].mxu1 }
 0x67e   :  { %7019 = vst.msk [vmem:[#allocation5 + $0x148] sm:$0xff] %vm129_vm8, %v6955_v7  ;;  %v7494_v33 = vpop.f32.mrb[120].mxu0  ;;  %v6588_v27 = vpop.f32.mrb[97].mxu1  ;;  %v6587_v1 = vadd.f32 %v17244_v14, %v6586_v62 }
 0x67f   :  { %v6844_v36 = vadd.f32 %v7494_v33, %v6555_v16  ;;  %v6835_v31 = vpop.f32.mrb[121].mxu0  ;;  %v6589_v5 = vpop.f32.mrb[98].mxu1 }
 0x680   :  { %v6836_v40 = vadd.f32 %v6835_v31, %v6547_v17  ;;  %v7495_v48 = vpop.f32.mrb[122].mxu0  ;;  %v6591_v22 = vpop.f32.mrb[99].mxu1  ;;  %v6590_v28 = vadd.f32 %v17244_v14, %v6589_v5 }
 0x681   :  { %v6960_v35 = vmax.f32 %v6844_v36, 0.0  ;;  %v6847_v56 = vadd.f32 %v7495_v48, %v6558_v45  ;;  %v6838_v49 = vpop.f32.mrb[123].mxu0 }
 0x682   :  { %v6958_v55 = vmax.f32 %v6836_v40, 0.0  ;;  %v6839_v13 = vadd.f32 %v6838_v49, %v6550_v59 }
 0x683   :  { %7024 = vst.msk [vmem:[#allocation5 + $0x170] sm:$0xff] %vm129_vm8, %v6960_v35  ;;  %v6961_v38 = vmax.f32 %v6847_v56, 0.0 }
 0x684   :  { %7022 = vst.msk [vmem:[#allocation5 + $0x160] sm:$0xff] %vm129_vm8, %v6958_v55  ;;  %v6959_v41 = vmax.f32 %v6839_v13, 0.0 }
 0x685   :  { %7025 = vst.msk [vmem:[#allocation5 + $0x178] sm:$0xff] %vm129_vm8, %v6961_v38  ;;  %v6594_v21 = vpop.f32.mrb[100].mxu1 }
 0x686   :  { %7023 = vst.msk [vmem:[#allocation5 + $0x168] sm:$0xff] %vm129_vm8, %v6959_v41  ;;  %v7498_v0 = vpop.f32.mrb[124].mxu0  ;;  %v6596_v58 = vpop.f32.mrb[101].mxu1  ;;  %v6595_v6 = vadd.f32 %v17244_v14, %v6594_v21 }
 0x687   :  { %v6860_v30 = vadd.f32 %v7498_v0, %v6571_v3  ;;  %v6851_v44 = vpop.f32.mrb[125].mxu0  ;;  %v6597_v24 = vpop.f32.mrb[102].mxu1 }
 0x688   :  { %v6852_v46 = vadd.f32 %v6851_v44, %v6563_v52  ;;  %v7499_v37 = vpop.f32.mrb[126].mxu0  ;;  %v6599_v8 = vpop.f32.mrb[103].mxu1  ;;  %v6598_v36 = vadd.f32 %v17244_v14, %v6597_v24 }
 0x689   :  { %v6964_v53 = vmax.f32 %v6860_v30, 0.0  ;;  %v6863_v20 = vadd.f32 %v7499_v37, %v6574_v12  ;;  %v6854_v61 = vpop.f32.mrb[127].mxu0 }
 0x68a   :  { %v6962_v2 = vmax.f32 %v6852_v46, 0.0  ;;  %v6855_v9 = vadd.f32 %v6854_v61, %v6566_v23 }
 0x68b   :  { %7028 = vst.msk [vmem:[#allocation5 + $0x190] sm:$0xff] %vm129_vm8, %v6964_v53  ;;  %v6965_v29 = vmax.f32 %v6863_v20, 0.0 }
 0x68c   :  { %7026 = vst.msk [vmem:[#allocation5 + $0x180] sm:$0xff] %vm129_vm8, %v6962_v2  ;;  %v6963_v54 = vmax.f32 %v6855_v9, 0.0 }
 0x68d   :  { %7029 = vst.msk [vmem:[#allocation5 + $0x198] sm:$0xff] %vm129_vm8, %v6965_v29  ;;  %v6602_v15 = vpop.f32.mrb[104].mxu1 }
 0x68e   :  { %7027 = vst.msk [vmem:[#allocation5 + $0x188] sm:$0xff] %vm129_vm8, %v6963_v54  ;;  %v7502_v60 = vpop.f32.mrb[128].mxu0  ;;  %v6604_v63 = vpop.f32.mrb[105].mxu1  ;;  %v6603_v25 = vadd.f32 %v17244_v14, %v6602_v15 }
 0x68f   :  { %v6876_v34 = vadd.f32 %v7502_v60, %v6587_v1  ;;  %v6867_v26 = vpop.f32.mrb[129].mxu0  ;;  %v6605_v18 = vpop.f32.mrb[106].mxu1 }
 0x690   :  { %v6868_v11 = vadd.f32 %v6867_v26, %v6579_v10  ;;  %v7503_v57 = vpop.f32.mrb[130].mxu0  ;;  %v6607_v47 = vpop.f32.mrb[107].mxu1  ;;  %v6606_v17 = vadd.f32 %v17244_v14, %v6605_v18 }
 0x691   :  { %v6968_v19 = vmax.f32 %v6876_v34, 0.0  ;;  %v6879_v39 = vadd.f32 %v7503_v57, %v6590_v28  ;;  %v6870_v32 = vpop.f32.mrb[131].mxu0 }
 0x692   :  { %v6966_v42 = vmax.f32 %v6868_v11, 0.0  ;;  %v6871_v50 = vadd.f32 %v6870_v32, %v6582_v4 }
 0x693   :  { %7032 = vst.msk [vmem:[#allocation5 + $0x1b0] sm:$0xff] %vm129_vm8, %v6968_v19  ;;  %v6969_v43 = vmax.f32 %v6879_v39, 0.0 }
 0x694   :  { %7030 = vst.msk [vmem:[#allocation5 + $0x1a0] sm:$0xff] %vm129_vm8, %v6966_v42  ;;  %v6967_v51 = vmax.f32 %v6871_v50, 0.0 }
 0x695   :  { %7033 = vst.msk [vmem:[#allocation5 + $0x1b8] sm:$0xff] %vm129_vm8, %v6969_v43  ;;  %v6610_v7 = vpop.f32.mrb[108].mxu1 }
 0x696   :  { %7031 = vst.msk [vmem:[#allocation5 + $0x1a8] sm:$0xff] %vm129_vm8, %v6967_v51  ;;  %v7506_v16 = vpop.f32.mrb[132].mxu0  ;;  %v6612_v62 = vpop.f32.mrb[109].mxu1  ;;  %v6611_v38 = vadd.f32 %v17244_v14, %v6610_v7 }
 0x697   :  { %v6892_v33 = vadd.f32 %v7506_v16, %v6603_v25  ;;  %v6883_v27 = vpop.f32.mrb[133].mxu0  ;;  %v6613_v45 = vpop.f32.mrb[110].mxu1 }
 0x698   :  { %v6884_v31 = vadd.f32 %v6883_v27, %v6595_v6  ;;  %v7507_v5 = vpop.f32.mrb[134].mxu0  ;;  %v6615_v59 = vpop.f32.mrb[111].mxu1  ;;  %v6614_v58 = vadd.f32 %v17244_v14, %v6613_v45 }
 0x699   :  { %v6972_v40 = vmax.f32 %v6892_v33, 0.0  ;;  %v6895_v48 = vadd.f32 %v7507_v5, %v6606_v17  ;;  %v6886_v22 = vpop.f32.mrb[135].mxu0 }
 0x69a   :  { %v6970_v35 = vmax.f32 %v6884_v31, 0.0  ;;  %v6887_v56 = vadd.f32 %v6886_v22, %v6598_v36 }
 0x69b   :  { %7036 = vst.msk [vmem:[#allocation5 + $0x1d0] sm:$0xff] %vm129_vm8, %v6972_v40  ;;  %v6973_v49 = vmax.f32 %v6895_v48, 0.0 }
 0x69c   :  { %7034 = vst.msk [vmem:[#allocation5 + $0x1c0] sm:$0xff] %vm129_vm8, %v6970_v35  ;;  %v6971_v55 = vmax.f32 %v6887_v56, 0.0 }
 0x69d   :  { %7037 = vst.msk [vmem:[#allocation5 + $0x1d8] sm:$0xff] %vm129_vm8, %v6973_v49  ;;  %v6618_v13 = vpop.f32.mrb[112].mxu1 }
 0x69e   :  { %7035 = vst.msk [vmem:[#allocation5 + $0x1c8] sm:$0xff] %vm129_vm8, %v6971_v55  ;;  %v6619_v41 = vadd.f32 %v17244_v14, %v6618_v13  ;;  %v7510_v3 = vpop.f32.mrb[136].mxu0  ;;  %v6620_v21 = vpop.f32.mrb[113].mxu1 }
 0x69f   :  { %v6899_v52 = vpop.f32.mrb[137].mxu0  ;;  %v6621_v0 = vpop.f32.mrb[114].mxu1 }
 0x6a0   :  { %v6908_v12 = vadd.f32 %v7510_v3, %v6619_v41  ;;  %v6900_v30 = vadd.f32 %v6899_v52, %v6611_v38  ;;  %v6622_v44 = vadd.f32 %v17244_v14, %v6621_v0  ;;  %v7511_v24 = vpop.f32.mrb[138].mxu0  ;;  %v6623_v23 = vpop.f32.mrb[115].mxu1 }
 0x6a1   :  { %v6902_v46 = vpop.f32.mrb[139].mxu0 }
 0x6a2   :  { %v6976_v37 = vmax.f32 %v6908_v12, 0.0  ;;  %v6974_v8 = vmax.f32 %v6900_v30, 0.0  ;;  %v6911_v53 = vadd.f32 %v7511_v24, %v6622_v44  ;;  %v6903_v20 = vadd.f32 %v6902_v46, %v6614_v58 }
 0x6a4   :  { %7040 = vst.msk [vmem:[#allocation5 + $0x1f0] sm:$0xff] %vm129_vm8, %v6976_v37  ;;  %7038 = vst.msk [vmem:[#allocation5 + $0x1e0] sm:$0xff] %vm129_vm8, %v6974_v8  ;;  %v6977_v61 = vmax.f32 %v6911_v53, 0.0  ;;  %v6975_v2 = vmax.f32 %v6903_v20, 0.0 }
 0x6a6   :  { %7041 = vst.msk [vmem:[#allocation5 + $0x1f8] sm:$0xff] %vm129_vm8, %v6977_v61  ;;  %7039 = vst.msk [vmem:[#allocation5 + $0x1e8] sm:$0xff] %vm129_vm8, %v6975_v2 }
 0x6a7   :  { %10047 = shalt.err (!%p10044_p4)
}
 0x6a8   :  { %s10048_s9 = scalar_lea.hbm %s17483_s4, 8192 }
 0x6a9   :  { %p10049_p5 = scmp.ne.s32.totalorder %s17483_s4, %s10048_s9  ;;  %p10052_p6 = scmp.lt.u32.totalorder %s10048_s9, %s17483_s4 }
 0x6ab   :  { %p10054_p7 = pnand %p10052_p6, %p10049_p5 }
 0x6ad   :  { %10057 = shalt.err (!%p10054_p7)
}
 0x6ae   :  { %s10073_s14 = smov 128  }
 0x6af   :  { %7053 = dma.vmem_to_hbm [thread:$0]  %s7048_s17, 8192, %s17483_s4, [#allocation6], %s10073_s14, %s10073_s14, %s10062_s25  }
 0x6b0   :  { %10058 = dma.done.wait [#allocation6], 8192  }
 0x6b1   :  { %10059 = vsyncadd [#allocation6], 4294959104 }
 0x6b2   :  { %7057 = vsyncpa [#allocation6], 1 }

</bundles_post_ra>
